<compile_context>
chip_gen: v5e
topology: v5e:2x2
jax: 0.10.0
libtpu: 0.0.40
codegen_flags: <defaults>
</compile_context>

<pallas_src>
import functools

import jax
import jax.numpy as jnp
from jax.experimental import pallas as pl
from jax.experimental.pallas import tpu as pltpu

_BN_EPS = 1e-5
_LANES = 128

# Static architecture metadata (kept out of the jitted pytree arguments).
_ENC_COUT = (32, 32, 64, 64)
_DEC_COUT = (64, 32, 32, 3)
_DEC_OUTPAD = (0, 0, 1, 0)
# Per the reference module, the last decoder block is ConvTranspose+BN+ReLU and
# the Sequential then applies Sigmoid -> sigmoid(relu(x)).
_DEC_ACT = ("relu", "relu", "relu", "relu_sigmoid")
_LATENT = 32


def _round_up(v, m):
    return ((v + m - 1) // m) * m


# ----------------------------------------------------------------------------
# Pallas kernel: fused matmul (bf16 MXU, f32 accumulate) + shift + activation
# ----------------------------------------------------------------------------
def _mm_shift_act_kernel(a_ref, w_ref, shift_ref, o_ref, *, act):
    y = jnp.dot(a_ref[...], w_ref[...], preferred_element_type=jnp.float32)
    y = y + shift_ref[...]
    if act == "relu":
        y = jnp.maximum(y, 0.0)
    elif act == "relu_sigmoid":
        y = jax.nn.sigmoid(jnp.maximum(y, 0.0))
    o_ref[...] = y


def matmul_shift_act(a, w, shift, act="none", *, use_pallas=True):
    """act(a @ w + shift).  a: (M, K); w: (K, Np) bf16 with Np % 128 == 0;
    shift: (Np,) f32.  Returns (M, Np) f32 (caller slices the valid columns)."""
    M, K = a.shape
    Kw, Np = w.shape
    assert K == Kw and Np % _LANES == 0

    if not use_pallas:  # pure-jnp f32 reference path (same layer decomposition)
        y = jnp.dot(a.astype(jnp.float32), w.astype(jnp.float32)) + shift[None, :]
        if act == "relu":
            y = jnp.maximum(y, 0.0)
        elif act == "relu_sigmoid":
            y = jax.nn.sigmoid(jnp.maximum(y, 0.0))
        return y

    a = a.astype(jnp.bfloat16)
    # Single block for the small layers; 512-row blocks (>=4 grid steps,
    # megacore-friendly) for the big ones.  Ragged last block handled by Pallas.
    tm = M if M < 1024 else 512
    grid_m = pl.cdiv(M, tm)

    return pl.pallas_call(
        functools.partial(_mm_shift_act_kernel, act=act),
        out_shape=jax.ShapeDtypeStruct((M, Np), jnp.float32),
        grid_spec=pltpu.PrefetchScalarGridSpec(
            num_scalar_prefetch=0,
            grid=(grid_m,),
            in_specs=[
                pl.BlockSpec((tm, K), lambda i: (i, 0)),   # activation rows
                pl.BlockSpec((K, Np), lambda i: (0, 0)),   # full folded weight
                pl.BlockSpec((1, Np), lambda i: (0, 0)),   # per-column shift
            ],
            out_specs=pl.BlockSpec((tm, Np), lambda i: (i, 0)),
        ),
        compiler_params=pltpu.CompilerParams(
            dimension_semantics=("parallel",),
            vmem_limit_bytes=32 * 1024 * 1024,
        ),
    )(a, w, shift.reshape(1, Np))


# ----------------------------------------------------------------------------
# NHWC im2col and layer wrappers (glue fuses under jit)
# ----------------------------------------------------------------------------
def _im2col_nhwc(x, k, s):
    """x: (N,H,W,C) -> (N*OH*OW, k*k*C), column order (kh, kw, c)."""
    n, h, w, c = x.shape
    oh = (h - k) // s + 1
    ow = (w - k) // s + 1
    cols = []
    for kh in range(k):
        for kw in range(k):
            cols.append(x[:, kh:kh + s * (oh - 1) + 1:s,
                            kw:kw + s * (ow - 1) + 1:s, :])
    patches = jnp.concatenate(cols, axis=-1)
    return patches.reshape(n * oh * ow, k * k * c), (n, oh, ow)


def _conv_block(x, layer, cout, act, use_pallas):
    """Conv2d(k=4, s=2, p=0) + BatchNorm(eval) + act; NHWC in/out."""
    patches, (n, oh, ow) = _im2col_nhwc(x, k=4, s=2)
    y = matmul_shift_act(patches, layer["W"], layer["shift"], act=act,
                         use_pallas=use_pallas)
    return y[:, :cout].reshape(n, oh, ow, cout)


def _deconv_block(x, layer, cout, act, out_pad, use_pallas):
    """ConvTranspose2d(k=4, s=2, p=0, output_padding=out_pad) + BN(eval) + act.

    Sub-pixel decomposition:
      out[2m+a, 2n+b] = sum_{dh,dw in {0,1}} x[m-dh, n-dw] . Wt[:,:,2dh+a,2dw+b]
    i.e. a stride-1 2x2 conv over x padded by 1, with the 4 output-phase
    sub-kernels stacked along N of a single fused matmul; the phases are then
    interleaved back spatially.  No zero-dilated input, no 16x im2col blowup.
    """
    n, h, w, _ = x.shape
    xp = jnp.pad(x, ((0, 0), (1, 1), (1, 1), (0, 0)))
    patches, (_, ph, pw) = _im2col_nhwc(xp, k=2, s=1)        # ph=h+1, pw=w+1
    y = matmul_shift_act(patches, layer["W"], layer["shift"], act=act,
                         use_pallas=use_pallas)
    y = y[:, :4 * cout].reshape(n, ph, pw, 2, 2, cout)        # (n, m, mw, a, b, c)
    y = y.transpose(0, 1, 3, 2, 4, 5).reshape(n, 2 * ph, 2 * pw, cout)
    if out_pad:
        # output_padding rows/cols get no conv contribution -> act(shift).
        border = layer["border"]
        row = jnp.broadcast_to(border, (n, out_pad, 2 * pw, cout))
        y = jnp.concatenate([y, row], axis=1)
        col = jnp.broadcast_to(border, (n, 2 * ph + out_pad, out_pad, cout))
        y = jnp.concatenate([y, col], axis=2)
    return y


def _linear(x, layer, nout, act, use_pallas):
    y = matmul_shift_act(x, layer["W"], layer["shift"], act=act,
                         use_pallas=use_pallas)
    return y[:, :nout]


# ----------------------------------------------------------------------------
# Parameters: synthetic init (PyTorch layout) + one-time folding/packing
# ----------------------------------------------------------------------------
def _init_params(key, latent=_LATENT):
    keys = iter(jax.random.split(key, 64))

    def nrm(shape, s=0.05):
        return (s * jax.random.normal(next(keys), shape)).astype(jnp.float32)

    def conv_p(cin, cout):       # Conv2d(cout, cin, 4, 4) + BatchNorm2d
        return dict(W=nrm((cout, cin, 4, 4)), b=nrm((cout,)),
                    gamma=1.0 + nrm((cout,)), beta=nrm((cout,)),
                    mean=nrm((cout,)), var=1.0 + jnp.abs(nrm((cout,))))

    def deconv_p(cin, cout):     # ConvTranspose2d(cin, cout, 4, 4) + BatchNorm2d
        return dict(W=nrm((cin, cout, 4, 4)), b=nrm((cout,)),
                    gamma=1.0 + nrm((cout,)), beta=nrm((cout,)),
                    mean=nrm((cout,)), var=1.0 + jnp.abs(nrm((cout,))))

    def lin_p(fin, fout):
        return dict(W=nrm((fout, fin)), b=nrm((fout,)))

    return dict(
        enc=[conv_p(3, 32), conv_p(32, 32), conv_p(32, 64), conv_p(64, 64)],
        fc_mu=lin_p(256, latent),
        fc_var=lin_p(256, latent),
        fc_z=lin_p(latent, 256),
        dec=[deconv_p(64, 64), deconv_p(64, 32), deconv_p(32, 32), deconv_p(32, 3)],
    )


def _fold_bn(b, gamma, beta, mean, var):
    scale = gamma * jax.lax.rsqrt(var + _BN_EPS)
    shift = (b - mean) * scale + beta
    return scale, shift


def _pad_n(w2d, shift):
    _, n = w2d.shape
    npad = _round_up(n, _LANES)
    w2d = jnp.pad(w2d, ((0, 0), (0, npad - n)))
    shift = jnp.pad(shift, (0, npad - n))
    return w2d.astype(jnp.bfloat16), shift.astype(jnp.float32)


def prepare_params(params):
    """One-time folding: BN scale into weight columns, bias/BN into shift,
    deconv phase re-layout, zero-pad N to a multiple of 128, cast W to bf16."""
    prep = {"enc": [], "dec": []}
    for p in params["enc"]:
        cout, cin, k, _ = p["W"].shape
        scale, shift = _fold_bn(p["b"], p["gamma"], p["beta"], p["mean"], p["var"])
        w2d = p["W"].transpose(2, 3, 1, 0).reshape(k * k * cin, cout)   # (kh,kw,ci) rows
        w2d = w2d * scale[None, :]
        w2d, shift_p = _pad_n(w2d, shift)
        prep["enc"].append(dict(W=w2d, shift=shift_p))
    for p in params["dec"]:
        cin, cout, _, _ = p["W"].shape
        scale, shift = _fold_bn(p["b"], p["gamma"], p["beta"], p["mean"], p["var"])
        # Wt[ci,co,kh,kw] with kh = 2*dh + a, kw = 2*dw + b.  Build
        # W_all[(i,j,ci), (a,b,co)] = Wt[ci,co, 2(1-i)+a, 2(1-j)+b] to match
        # the (i,j,ci) patch order and (a,b,co) output-phase/channel order.
        wr = p["W"].reshape(cin, cout, 2, 2, 2, 2)        # (ci, co, dh, a, dw, b)
        wf = jnp.flip(wr, axis=(2, 4))                    # (ci, co, i, a, j, b)
        w_all = wf.transpose(2, 4, 0, 3, 5, 1).reshape(4 * cin, 4 * cout)
        w_all = w_all * jnp.tile(scale, 4)[None, :]
        shift4 = jnp.tile(shift, 4)
        w_all, shift4_p = _pad_n(w_all, shift4)
        prep["dec"].append(dict(W=w_all, shift=shift4_p,
                                border=jnp.maximum(shift, 0.0)))  # ReLU(shift)
    for name in ("fc_mu", "fc_var", "fc_z"):
        W, b = params[name]["W"], params[name]["b"]
        w2d, shift_p = _pad_n(W.T, b)
        prep[name] = dict(W=w2d, shift=shift_p)
    return prep


# ----------------------------------------------------------------------------
# Forward pass (single jax.jit over everything)
# ----------------------------------------------------------------------------
def _forward_impl(prep, x_nchw, eps_key, *, use_pallas):
    x = x_nchw.transpose(0, 2, 3, 1)                       # NHWC end-to-end
    h = x
    for layer, cout in zip(prep["enc"], _ENC_COUT):
        h = _conv_block(h, layer, cout, "relu", use_pallas)
    nb = h.shape[0]
    # match PyTorch x.view(-1, 256) applied to NCHW
    h_flat = h.transpose(0, 3, 1, 2).reshape(nb, 256)
    mu = _linear(h_flat, prep["fc_mu"], _LATENT, "none", use_pallas)
    logvar = _linear(h_flat, prep["fc_var"], _LATENT, "none", use_pallas)

    std = jnp.exp(0.5 * logvar)
    eps = jax.random.normal(eps_key, std.shape, dtype=std.dtype)
    z = eps * std + mu

    d = _linear(z, prep["fc_z"], 256, "none", use_pallas)
    d = d.reshape(nb, 64, 2, 2).transpose(0, 2, 3, 1)      # NCHW view -> NHWC
    for layer, cout, act, op in zip(prep["dec"], _DEC_COUT, _DEC_ACT, _DEC_OUTPAD):
        d = _deconv_block(d, layer, cout, act, op, use_pallas)
    rx = d.transpose(0, 3, 1, 2)                           # back to NCHW
    return rx, mu, logvar


beta_vae_forward = jax.jit(functools.partial(_forward_impl, use_pallas=True))
beta_vae_reference = jax.jit(functools.partial(_forward_impl, use_pallas=False))


if __name__ == "__main__":
    key = jax.random.PRNGKey(0)
    pkey, xkey, ekey = jax.random.split(key, 3)

    params = _init_params(pkey, latent=_LATENT)
    prep = prepare_params(params)
    # Architecture forces 64x64 inputs (4 stride-2 k=4 convs -> 2x2x64 = 256).
    x = jax.random.uniform(xkey, (2, 3, 64, 64), dtype=jnp.float32)

    rx, mu, logvar = beta_vae_forward(prep, x, ekey)
    jax.block_until_ready((rx, mu, logvar))

    assert rx.shape == (2, 3, 64, 64)
    assert mu.shape == (2, _LATENT) and logvar.shape == (2, _LATENT)
    assert bool(jnp.all(jnp.isfinite(rx)))

    # Cross-check the Pallas path against the pure-jnp f32 reference (same
    # layer decomposition; differences come only from bf16 MXU inputs).
    rx_ref, mu_ref, logvar_ref = beta_vae_reference(prep, x, ekey)
    assert float(jnp.max(jnp.abs(rx - rx_ref))) < 2e-2
    assert float(jnp.max(jnp.abs(mu - mu_ref))) < 1e-1
    assert float(jnp.max(jnp.abs(logvar - logvar_ref))) < 1e-1

    print("KERNEL_OK")
</pallas_src>

<mosaic_0001>
module attributes {stable_mosaic.version = 11 : i64} {
  func.func @_mm_shift_act_kernel(%arg0: i32, %arg1: memref<512x48xbf16, #tpu.memory_space<vmem>>, %arg2: memref<48x128xbf16, #tpu.memory_space<vmem>>, %arg3: memref<1x128xf32, #tpu.memory_space<vmem>>, %arg4: memref<512x128xf32, #tpu.memory_space<vmem>>) attributes {dimension_semantics = [#tpu.dimension_semantics<parallel>], iteration_bounds = array<i64: 4>, scalar_prefetch = 0 : i64, scratch_operands = 0 : i64, tpu.core_type = #tpu.core_type<tc>, window_params = [{transform_indices = @transform_0, window_bounds = array<i64: 512, 48>}, {pipeline_mode = #tpu.pipeline_mode<synchronous>, transform_indices = @transform_1, window_bounds = array<i64: 48, 128>}, {pipeline_mode = #tpu.pipeline_mode<synchronous>, transform_indices = @transform_2, window_bounds = array<i64: 1, 128>}, {transform_indices = @transform_3, window_bounds = array<i64: 512, 128>}]} {
    %c0 = arith.constant 0 : index
    %c0_0 = arith.constant 0 : index
    %0 = vector.load %arg1[%c0, %c0_0] : memref<512x48xbf16, #tpu.memory_space<vmem>>, vector<512x48xbf16>
    %c0_1 = arith.constant 0 : index
    %c0_2 = arith.constant 0 : index
    %1 = vector.load %arg2[%c0_1, %c0_2] : memref<48x128xbf16, #tpu.memory_space<vmem>>, vector<48x128xbf16>
    %cst = arith.constant dense<0.000000e+00> : vector<512x128xf32>
    %2 = tpu.matmul %0, %1, %cst {dimension_numbers = #tpu.dot_dimension_numbers<[1], [0], [0], [1], [0, 0, 1, 1], [], []>} : vector<512x48xbf16>, vector<48x128xbf16>, vector<512x128xf32> -> vector<512x128xf32>
    %c0_3 = arith.constant 0 : index
    %c0_4 = arith.constant 0 : index
    %3 = vector.load %arg3[%c0_3, %c0_4] : memref<1x128xf32, #tpu.memory_space<vmem>>, vector<1x128xf32>
    %4 = vector.broadcast %3 : vector<1x128xf32> to vector<512x128xf32>
    %5 = arith.addf %2, %4 : vector<512x128xf32>
    %cst_5 = arith.constant 0.000000e+00 : f32
    %6 = vector.broadcast %cst_5 : f32 to vector<512x128xf32>
    %7 = arith.maximumf %5, %6 : vector<512x128xf32>
    %c0_6 = arith.constant 0 : index
    %c0_7 = arith.constant 0 : index
    %8 = vector.load %arg4[%c0_6, %c0_7] : memref<512x128xf32, #tpu.memory_space<vmem>>, vector<512x128xf32>
    tpu.vector_store %arg4[%c0_6, %c0_7], %7 {strides = array<i32>} : memref<512x128xf32, #tpu.memory_space<vmem>>, vector<512x128xf32>,
    return
  }
  func.func @transform_0(%arg0: i32) -> (i32, i32) {
    %c0_i32 = arith.constant 0 : i32
    %c0_i32_0 = arith.constant 0 : i32
    return %arg0, %c0_i32 : i32, i32
  }
  func.func @transform_1(%arg0: i32) -> (i32, i32) {
    %c0_i32 = arith.constant 0 : i32
    %c0_i32_0 = arith.constant 0 : i32
    %c0_i32_1 = arith.constant 0 : i32
    return %c0_i32, %c0_i32_0 : i32, i32
  }
  func.func @transform_2(%arg0: i32) -> (i32, i32) {
    %c0_i32 = arith.constant 0 : i32
    %c0_i32_0 = arith.constant 0 : i32
    %c0_i32_1 = arith.constant 0 : i32
    return %c0_i32, %c0_i32_0 : i32, i32
  }
  func.func @transform_3(%arg0: i32) -> (i32, i32) {
    %c0_i32 = arith.constant 0 : i32
    %c0_i32_0 = arith.constant 0 : i32
    return %arg0, %c0_i32 : i32, i32
  }
}

module attributes {stable_mosaic.version = 11 : i64} {
  func.func @_mm_shift_act_kernel(%arg0: i32, %arg1: memref<392x512xbf16, #tpu.memory_space<vmem>>, %arg2: memref<512x128xbf16, #tpu.memory_space<vmem>>, %arg3: memref<1x128xf32, #tpu.memory_space<vmem>>, %arg4: memref<392x128xf32, #tpu.memory_space<vmem>>) attributes {dimension_semantics = [#tpu.dimension_semantics<parallel>], iteration_bounds = array<i64: 1>, scalar_prefetch = 0 : i64, scratch_operands = 0 : i64, tpu.core_type = #tpu.core_type<tc>, window_params = [{transform_indices = @transform_0, window_bounds = array<i64: 392, 512>}, {pipeline_mode = #tpu.pipeline_mode<synchronous>, transform_indices = @transform_1, window_bounds = array<i64: 512, 128>}, {pipeline_mode = #tpu.pipeline_mode<synchronous>, transform_indices = @transform_2, window_bounds = array<i64: 1, 128>}, {transform_indices = @transform_3, window_bounds = array<i64: 392, 128>}]} {
    %c0 = arith.constant 0 : index
    %c0_0 = arith.constant 0 : index
    %0 = vector.load %arg1[%c0, %c0_0] : memref<392x512xbf16, #tpu.memory_space<vmem>>, vector<392x512xbf16>
    %c0_1 = arith.constant 0 : index
    %c0_2 = arith.constant 0 : index
    %1 = vector.load %arg2[%c0_1, %c0_2] : memref<512x128xbf16, #tpu.memory_space<vmem>>, vector<512x128xbf16>
    %cst = arith.constant dense<0.000000e+00> : vector<392x128xf32>
    %2 = tpu.matmul %0, %1, %cst {dimension_numbers = #tpu.dot_dimension_numbers<[1], [0], [0], [1], [0, 0, 1, 1], [], []>} : vector<392x512xbf16>, vector<512x128xbf16>, vector<392x128xf32> -> vector<392x128xf32>
    %c0_3 = arith.constant 0 : index
    %c0_4 = arith.constant 0 : index
    %3 = vector.load %arg3[%c0_3, %c0_4] : memref<1x128xf32, #tpu.memory_space<vmem>>, vector<1x128xf32>
    %4 = vector.broadcast %3 : vector<1x128xf32> to vector<392x128xf32>
    %5 = arith.addf %2, %4 : vector<392x128xf32>
    %cst_5 = arith.constant 0.000000e+00 : f32
    %6 = vector.broadcast %cst_5 : f32 to vector<392x128xf32>
    %7 = arith.maximumf %5, %6 : vector<392x128xf32>
    %c0_6 = arith.constant 0 : index
    %c0_7 = arith.constant 0 : index
    %8 = vector.load %arg4[%c0_6, %c0_7] : memref<392x128xf32, #tpu.memory_space<vmem>>, vector<392x128xf32>
    tpu.vector_store %arg4[%c0_6, %c0_7], %7 {strides = array<i32>} : memref<392x128xf32, #tpu.memory_space<vmem>>, vector<392x128xf32>,
    return
  }
  func.func @transform_0(%arg0: i32) -> (i32, i32) {
    %c0_i32 = arith.constant 0 : i32
    %c0_i32_0 = arith.constant 0 : i32
    return %arg0, %c0_i32 : i32, i32
  }
  func.func @transform_1(%arg0: i32) -> (i32, i32) {
    %c0_i32 = arith.constant 0 : i32
    %c0_i32_0 = arith.constant 0 : i32
    %c0_i32_1 = arith.constant 0 : i32
    return %c0_i32, %c0_i32_0 : i32, i32
  }
  func.func @transform_2(%arg0: i32) -> (i32, i32) {
    %c0_i32 = arith.constant 0 : i32
    %c0_i32_0 = arith.constant 0 : i32
    %c0_i32_1 = arith.constant 0 : i32
    return %c0_i32, %c0_i32_0 : i32, i32
  }
  func.func @transform_3(%arg0: i32) -> (i32, i32) {
    %c0_i32 = arith.constant 0 : i32
    %c0_i32_0 = arith.constant 0 : i32
    return %arg0, %c0_i32 : i32, i32
  }
}

module attributes {stable_mosaic.version = 11 : i64} {
  func.func @_mm_shift_act_kernel(%arg0: i32, %arg1: memref<72x512xbf16, #tpu.memory_space<vmem>>, %arg2: memref<512x128xbf16, #tpu.memory_space<vmem>>, %arg3: memref<1x128xf32, #tpu.memory_space<vmem>>, %arg4: memref<72x128xf32, #tpu.memory_space<vmem>>) attributes {dimension_semantics = [#tpu.dimension_semantics<parallel>], iteration_bounds = array<i64: 1>, scalar_prefetch = 0 : i64, scratch_operands = 0 : i64, tpu.core_type = #tpu.core_type<tc>, window_params = [{transform_indices = @transform_0, window_bounds = array<i64: 72, 512>}, {pipeline_mode = #tpu.pipeline_mode<synchronous>, transform_indices = @transform_1, window_bounds = array<i64: 512, 128>}, {pipeline_mode = #tpu.pipeline_mode<synchronous>, transform_indices = @transform_2, window_bounds = array<i64: 1, 128>}, {transform_indices = @transform_3, window_bounds = array<i64: 72, 128>}]} {
    %c0 = arith.constant 0 : index
    %c0_0 = arith.constant 0 : index
    %0 = vector.load %arg1[%c0, %c0_0] : memref<72x512xbf16, #tpu.memory_space<vmem>>, vector<72x512xbf16>
    %c0_1 = arith.constant 0 : index
    %c0_2 = arith.constant 0 : index
    %1 = vector.load %arg2[%c0_1, %c0_2] : memref<512x128xbf16, #tpu.memory_space<vmem>>, vector<512x128xbf16>
    %cst = arith.constant dense<0.000000e+00> : vector<72x128xf32>
    %2 = tpu.matmul %0, %1, %cst {dimension_numbers = #tpu.dot_dimension_numbers<[1], [0], [0], [1], [0, 0, 1, 1], [], []>} : vector<72x512xbf16>, vector<512x128xbf16>, vector<72x128xf32> -> vector<72x128xf32>
    %c0_3 = arith.constant 0 : index
    %c0_4 = arith.constant 0 : index
    %3 = vector.load %arg3[%c0_3, %c0_4] : memref<1x128xf32, #tpu.memory_space<vmem>>, vector<1x128xf32>
    %4 = vector.broadcast %3 : vector<1x128xf32> to vector<72x128xf32>
    %5 = arith.addf %2, %4 : vector<72x128xf32>
    %cst_5 = arith.constant 0.000000e+00 : f32
    %6 = vector.broadcast %cst_5 : f32 to vector<72x128xf32>
    %7 = arith.maximumf %5, %6 : vector<72x128xf32>
    %c0_6 = arith.constant 0 : index
    %c0_7 = arith.constant 0 : index
    %8 = vector.load %arg4[%c0_6, %c0_7] : memref<72x128xf32, #tpu.memory_space<vmem>>, vector<72x128xf32>
    tpu.vector_store %arg4[%c0_6, %c0_7], %7 {strides = array<i32>} : memref<72x128xf32, #tpu.memory_space<vmem>>, vector<72x128xf32>,
    return
  }
  func.func @transform_0(%arg0: i32) -> (i32, i32) {
    %c0_i32 = arith.constant 0 : i32
    %c0_i32_0 = arith.constant 0 : i32
    return %arg0, %c0_i32 : i32, i32
  }
  func.func @transform_1(%arg0: i32) -> (i32, i32) {
    %c0_i32 = arith.constant 0 : i32
    %c0_i32_0 = arith.constant 0 : i32
    %c0_i32_1 = arith.constant 0 : i32
    return %c0_i32, %c0_i32_0 : i32, i32
  }
  func.func @transform_2(%arg0: i32) -> (i32, i32) {
    %c0_i32 = arith.constant 0 : i32
    %c0_i32_0 = arith.constant 0 : i32
    %c0_i32_1 = arith.constant 0 : i32
    return %c0_i32, %c0_i32_0 : i32, i32
  }
  func.func @transform_3(%arg0: i32) -> (i32, i32) {
    %c0_i32 = arith.constant 0 : i32
    %c0_i32_0 = arith.constant 0 : i32
    return %arg0, %c0_i32 : i32, i32
  }
}

module attributes {stable_mosaic.version = 11 : i64} {
  func.func @_mm_shift_act_kernel(%arg0: i32, %arg1: memref<8x1024xbf16, #tpu.memory_space<vmem>>, %arg2: memref<1024x128xbf16, #tpu.memory_space<vmem>>, %arg3: memref<1x128xf32, #tpu.memory_space<vmem>>, %arg4: memref<8x128xf32, #tpu.memory_space<vmem>>) attributes {dimension_semantics = [#tpu.dimension_semantics<parallel>], iteration_bounds = array<i64: 1>, scalar_prefetch = 0 : i64, scratch_operands = 0 : i64, tpu.core_type = #tpu.core_type<tc>, window_params = [{transform_indices = @transform_0, window_bounds = array<i64: 8, 1024>}, {pipeline_mode = #tpu.pipeline_mode<synchronous>, transform_indices = @transform_1, window_bounds = array<i64: 1024, 128>}, {pipeline_mode = #tpu.pipeline_mode<synchronous>, transform_indices = @transform_2, window_bounds = array<i64: 1, 128>}, {transform_indices = @transform_3, window_bounds = array<i64: 8, 128>}]} {
    %c0 = arith.constant 0 : index
    %c0_0 = arith.constant 0 : index
    %0 = vector.load %arg1[%c0, %c0_0] : memref<8x1024xbf16, #tpu.memory_space<vmem>>, vector<8x1024xbf16>
    %c0_1 = arith.constant 0 : index
    %c0_2 = arith.constant 0 : index
    %1 = vector.load %arg2[%c0_1, %c0_2] : memref<1024x128xbf16, #tpu.memory_space<vmem>>, vector<1024x128xbf16>
    %cst = arith.constant dense<0.000000e+00> : vector<8x128xf32>
    %2 = tpu.matmul %0, %1, %cst {dimension_numbers = #tpu.dot_dimension_numbers<[1], [0], [0], [1], [0, 0, 1, 1], [], []>} : vector<8x1024xbf16>, vector<1024x128xbf16>, vector<8x128xf32> -> vector<8x128xf32>
    %c0_3 = arith.constant 0 : index
    %c0_4 = arith.constant 0 : index
    %3 = vector.load %arg3[%c0_3, %c0_4] : memref<1x128xf32, #tpu.memory_space<vmem>>, vector<1x128xf32>
    %4 = vector.broadcast %3 : vector<1x128xf32> to vector<8x128xf32>
    %5 = arith.addf %2, %4 : vector<8x128xf32>
    %cst_5 = arith.constant 0.000000e+00 : f32
    %6 = vector.broadcast %cst_5 : f32 to vector<8x128xf32>
    %7 = arith.maximumf %5, %6 : vector<8x128xf32>
    %c0_6 = arith.constant 0 : index
    %c0_7 = arith.constant 0 : index
    %8 = vector.load %arg4[%c0_6, %c0_7] : memref<8x128xf32, #tpu.memory_space<vmem>>, vector<8x128xf32>
    tpu.vector_store %arg4[%c0_6, %c0_7], %7 {strides = array<i32>} : memref<8x128xf32, #tpu.memory_space<vmem>>, vector<8x128xf32>,
    return
  }
  func.func @transform_0(%arg0: i32) -> (i32, i32) {
    %c0_i32 = arith.constant 0 : i32
    %c0_i32_0 = arith.constant 0 : i32
    return %arg0, %c0_i32 : i32, i32
  }
  func.func @transform_1(%arg0: i32) -> (i32, i32) {
    %c0_i32 = arith.constant 0 : i32
    %c0_i32_0 = arith.constant 0 : i32
    %c0_i32_1 = arith.constant 0 : i32
    return %c0_i32, %c0_i32_0 : i32, i32
  }
  func.func @transform_2(%arg0: i32) -> (i32, i32) {
    %c0_i32 = arith.constant 0 : i32
    %c0_i32_0 = arith.constant 0 : i32
    %c0_i32_1 = arith.constant 0 : i32
    return %c0_i32, %c0_i32_0 : i32, i32
  }
  func.func @transform_3(%arg0: i32) -> (i32, i32) {
    %c0_i32 = arith.constant 0 : i32
    %c0_i32_0 = arith.constant 0 : i32
    return %arg0, %c0_i32 : i32, i32
  }
}

module attributes {stable_mosaic.version = 11 : i64} {
  func.func @_mm_shift_act_kernel(%arg0: i32, %arg1: memref<2x256xbf16, #tpu.memory_space<vmem>>, %arg2: memref<256x128xbf16, #tpu.memory_space<vmem>>, %arg3: memref<1x128xf32, #tpu.memory_space<vmem>>, %arg4: memref<2x128xf32, #tpu.memory_space<vmem>>) attributes {dimension_semantics = [#tpu.dimension_semantics<parallel>], iteration_bounds = array<i64: 1>, scalar_prefetch = 0 : i64, scratch_operands = 0 : i64, tpu.core_type = #tpu.core_type<tc>, window_params = [{transform_indices = @transform_0, window_bounds = array<i64: 2, 256>}, {pipeline_mode = #tpu.pipeline_mode<synchronous>, transform_indices = @transform_1, window_bounds = array<i64: 256, 128>}, {pipeline_mode = #tpu.pipeline_mode<synchronous>, transform_indices = @transform_2, window_bounds = array<i64: 1, 128>}, {transform_indices = @transform_3, window_bounds = array<i64: 2, 128>}]} {
    %c0 = arith.constant 0 : index
    %c0_0 = arith.constant 0 : index
    %0 = vector.load %arg1[%c0, %c0_0] : memref<2x256xbf16, #tpu.memory_space<vmem>>, vector<2x256xbf16>
    %c0_1 = arith.constant 0 : index
    %c0_2 = arith.constant 0 : index
    %1 = vector.load %arg2[%c0_1, %c0_2] : memref<256x128xbf16, #tpu.memory_space<vmem>>, vector<256x128xbf16>
    %cst = arith.constant dense<0.000000e+00> : vector<2x128xf32>
    %2 = tpu.matmul %0, %1, %cst {dimension_numbers = #tpu.dot_dimension_numbers<[1], [0], [0], [1], [0, 0, 1, 1], [], []>} : vector<2x256xbf16>, vector<256x128xbf16>, vector<2x128xf32> -> vector<2x128xf32>
    %c0_3 = arith.constant 0 : index
    %c0_4 = arith.constant 0 : index
    %3 = vector.load %arg3[%c0_3, %c0_4] : memref<1x128xf32, #tpu.memory_space<vmem>>, vector<1x128xf32>
    %4 = vector.broadcast %3 : vector<1x128xf32> to vector<2x128xf32>
    %5 = arith.addf %2, %4 : vector<2x128xf32>
    %c0_5 = arith.constant 0 : index
    %c0_6 = arith.constant 0 : index
    %6 = vector.load %arg4[%c0_5, %c0_6] : memref<2x128xf32, #tpu.memory_space<vmem>>, vector<2x128xf32>
    tpu.vector_store %arg4[%c0_5, %c0_6], %5 {strides = array<i32>} : memref<2x128xf32, #tpu.memory_space<vmem>>, vector<2x128xf32>,
    return
  }
  func.func @transform_0(%arg0: i32) -> (i32, i32) {
    %c0_i32 = arith.constant 0 : i32
    %c0_i32_0 = arith.constant 0 : i32
    return %arg0, %c0_i32 : i32, i32
  }
  func.func @transform_1(%arg0: i32) -> (i32, i32) {
    %c0_i32 = arith.constant 0 : i32
    %c0_i32_0 = arith.constant 0 : i32
    %c0_i32_1 = arith.constant 0 : i32
    return %c0_i32, %c0_i32_0 : i32, i32
  }
  func.func @transform_2(%arg0: i32) -> (i32, i32) {
    %c0_i32 = arith.constant 0 : i32
    %c0_i32_0 = arith.constant 0 : i32
    %c0_i32_1 = arith.constant 0 : i32
    return %c0_i32, %c0_i32_0 : i32, i32
  }
  func.func @transform_3(%arg0: i32) -> (i32, i32) {
    %c0_i32 = arith.constant 0 : i32
    %c0_i32_0 = arith.constant 0 : i32
    return %arg0, %c0_i32 : i32, i32
  }
}

module attributes {stable_mosaic.version = 11 : i64} {
  func.func @_mm_shift_act_kernel(%arg0: i32, %arg1: memref<2x32xbf16, #tpu.memory_space<vmem>>, %arg2: memref<32x256xbf16, #tpu.memory_space<vmem>>, %arg3: memref<1x256xf32, #tpu.memory_space<vmem>>, %arg4: memref<2x256xf32, #tpu.memory_space<vmem>>) attributes {dimension_semantics = [#tpu.dimension_semantics<parallel>], iteration_bounds = array<i64: 1>, scalar_prefetch = 0 : i64, scratch_operands = 0 : i64, tpu.core_type = #tpu.core_type<tc>, window_params = [{transform_indices = @transform_0, window_bounds = array<i64: 2, 32>}, {pipeline_mode = #tpu.pipeline_mode<synchronous>, transform_indices = @transform_1, window_bounds = array<i64: 32, 256>}, {pipeline_mode = #tpu.pipeline_mode<synchronous>, transform_indices = @transform_2, window_bounds = array<i64: 1, 256>}, {transform_indices = @transform_3, window_bounds = array<i64: 2, 256>}]} {
    %c0 = arith.constant 0 : index
    %c0_0 = arith.constant 0 : index
    %0 = vector.load %arg1[%c0, %c0_0] : memref<2x32xbf16, #tpu.memory_space<vmem>>, vector<2x32xbf16>
    %c0_1 = arith.constant 0 : index
    %c0_2 = arith.constant 0 : index
    %1 = vector.load %arg2[%c0_1, %c0_2] : memref<32x256xbf16, #tpu.memory_space<vmem>>, vector<32x256xbf16>
    %cst = arith.constant dense<0.000000e+00> : vector<2x256xf32>
    %2 = tpu.matmul %0, %1, %cst {dimension_numbers = #tpu.dot_dimension_numbers<[1], [0], [0], [1], [0, 0, 1, 1], [], []>} : vector<2x32xbf16>, vector<32x256xbf16>, vector<2x256xf32> -> vector<2x256xf32>
    %c0_3 = arith.constant 0 : index
    %c0_4 = arith.constant 0 : index
    %3 = vector.load %arg3[%c0_3, %c0_4] : memref<1x256xf32, #tpu.memory_space<vmem>>, vector<1x256xf32>
    %4 = vector.broadcast %3 : vector<1x256xf32> to vector<2x256xf32>
    %5 = arith.addf %2, %4 : vector<2x256xf32>
    %c0_5 = arith.constant 0 : index
    %c0_6 = arith.constant 0 : index
    %6 = vector.load %arg4[%c0_5, %c0_6] : memref<2x256xf32, #tpu.memory_space<vmem>>, vector<2x256xf32>
    tpu.vector_store %arg4[%c0_5, %c0_6], %5 {strides = array<i32>} : memref<2x256xf32, #tpu.memory_space<vmem>>, vector<2x256xf32>,
    return
  }
  func.func @transform_0(%arg0: i32) -> (i32, i32) {
    %c0_i32 = arith.constant 0 : i32
    %c0_i32_0 = arith.constant 0 : i32
    return %arg0, %c0_i32 : i32, i32
  }
  func.func @transform_1(%arg0: i32) -> (i32, i32) {
    %c0_i32 = arith.constant 0 : i32
    %c0_i32_0 = arith.constant 0 : i32
    %c0_i32_1 = arith.constant 0 : i32
    return %c0_i32, %c0_i32_0 : i32, i32
  }
  func.func @transform_2(%arg0: i32) -> (i32, i32) {
    %c0_i32 = arith.constant 0 : i32
    %c0_i32_0 = arith.constant 0 : i32
    %c0_i32_1 = arith.constant 0 : i32
    return %c0_i32, %c0_i32_0 : i32, i32
  }
  func.func @transform_3(%arg0: i32) -> (i32, i32) {
    %c0_i32 = arith.constant 0 : i32
    %c0_i32_0 = arith.constant 0 : i32
    return %arg0, %c0_i32 : i32, i32
  }
}

module attributes {stable_mosaic.version = 11 : i64} {
  func.func @_mm_shift_act_kernel(%arg0: i32, %arg1: memref<18x256xbf16, #tpu.memory_space<vmem>>, %arg2: memref<256x256xbf16, #tpu.memory_space<vmem>>, %arg3: memref<1x256xf32, #tpu.memory_space<vmem>>, %arg4: memref<18x256xf32, #tpu.memory_space<vmem>>) attributes {dimension_semantics = [#tpu.dimension_semantics<parallel>], iteration_bounds = array<i64: 1>, scalar_prefetch = 0 : i64, scratch_operands = 0 : i64, tpu.core_type = #tpu.core_type<tc>, window_params = [{transform_indices = @transform_0, window_bounds = array<i64: 18, 256>}, {pipeline_mode = #tpu.pipeline_mode<synchronous>, transform_indices = @transform_1, window_bounds = array<i64: 256, 256>}, {pipeline_mode = #tpu.pipeline_mode<synchronous>, transform_indices = @transform_2, window_bounds = array<i64: 1, 256>}, {transform_indices = @transform_3, window_bounds = array<i64: 18, 256>}]} {
    %c0 = arith.constant 0 : index
    %c0_0 = arith.constant 0 : index
    %0 = vector.load %arg1[%c0, %c0_0] : memref<18x256xbf16, #tpu.memory_space<vmem>>, vector<18x256xbf16>
    %c0_1 = arith.constant 0 : index
    %c0_2 = arith.constant 0 : index
    %1 = vector.load %arg2[%c0_1, %c0_2] : memref<256x256xbf16, #tpu.memory_space<vmem>>, vector<256x256xbf16>
    %cst = arith.constant dense<0.000000e+00> : vector<18x256xf32>
    %2 = tpu.matmul %0, %1, %cst {dimension_numbers = #tpu.dot_dimension_numbers<[1], [0], [0], [1], [0, 0, 1, 1], [], []>} : vector<18x256xbf16>, vector<256x256xbf16>, vector<18x256xf32> -> vector<18x256xf32>
    %c0_3 = arith.constant 0 : index
    %c0_4 = arith.constant 0 : index
    %3 = vector.load %arg3[%c0_3, %c0_4] : memref<1x256xf32, #tpu.memory_space<vmem>>, vector<1x256xf32>
    %4 = vector.broadcast %3 : vector<1x256xf32> to vector<18x256xf32>
    %5 = arith.addf %2, %4 : vector<18x256xf32>
    %cst_5 = arith.constant 0.000000e+00 : f32
    %6 = vector.broadcast %cst_5 : f32 to vector<18x256xf32>
    %7 = arith.maximumf %5, %6 : vector<18x256xf32>
    %c0_6 = arith.constant 0 : index
    %c0_7 = arith.constant 0 : index
    %8 = vector.load %arg4[%c0_6, %c0_7] : memref<18x256xf32, #tpu.memory_space<vmem>>, vector<18x256xf32>
    tpu.vector_store %arg4[%c0_6, %c0_7], %7 {strides = array<i32>} : memref<18x256xf32, #tpu.memory_space<vmem>>, vector<18x256xf32>,
    return
  }
  func.func @transform_0(%arg0: i32) -> (i32, i32) {
    %c0_i32 = arith.constant 0 : i32
    %c0_i32_0 = arith.constant 0 : i32
    return %arg0, %c0_i32 : i32, i32
  }
  func.func @transform_1(%arg0: i32) -> (i32, i32) {
    %c0_i32 = arith.constant 0 : i32
    %c0_i32_0 = arith.constant 0 : i32
    %c0_i32_1 = arith.constant 0 : i32
    return %c0_i32, %c0_i32_0 : i32, i32
  }
  func.func @transform_2(%arg0: i32) -> (i32, i32) {
    %c0_i32 = arith.constant 0 : i32
    %c0_i32_0 = arith.constant 0 : i32
    %c0_i32_1 = arith.constant 0 : i32
    return %c0_i32, %c0_i32_0 : i32, i32
  }
  func.func @transform_3(%arg0: i32) -> (i32, i32) {
    %c0_i32 = arith.constant 0 : i32
    %c0_i32_0 = arith.constant 0 : i32
    return %arg0, %c0_i32 : i32, i32
  }
}

module attributes {stable_mosaic.version = 11 : i64} {
  func.func @_mm_shift_act_kernel(%arg0: i32, %arg1: memref<98x256xbf16, #tpu.memory_space<vmem>>, %arg2: memref<256x128xbf16, #tpu.memory_space<vmem>>, %arg3: memref<1x128xf32, #tpu.memory_space<vmem>>, %arg4: memref<98x128xf32, #tpu.memory_space<vmem>>) attributes {dimension_semantics = [#tpu.dimension_semantics<parallel>], iteration_bounds = array<i64: 1>, scalar_prefetch = 0 : i64, scratch_operands = 0 : i64, tpu.core_type = #tpu.core_type<tc>, window_params = [{transform_indices = @transform_0, window_bounds = array<i64: 98, 256>}, {pipeline_mode = #tpu.pipeline_mode<synchronous>, transform_indices = @transform_1, window_bounds = array<i64: 256, 128>}, {pipeline_mode = #tpu.pipeline_mode<synchronous>, transform_indices = @transform_2, window_bounds = array<i64: 1, 128>}, {transform_indices = @transform_3, window_bounds = array<i64: 98, 128>}]} {
    %c0 = arith.constant 0 : index
    %c0_0 = arith.constant 0 : index
    %0 = vector.load %arg1[%c0, %c0_0] : memref<98x256xbf16, #tpu.memory_space<vmem>>, vector<98x256xbf16>
    %c0_1 = arith.constant 0 : index
    %c0_2 = arith.constant 0 : index
    %1 = vector.load %arg2[%c0_1, %c0_2] : memref<256x128xbf16, #tpu.memory_space<vmem>>, vector<256x128xbf16>
    %cst = arith.constant dense<0.000000e+00> : vector<98x128xf32>
    %2 = tpu.matmul %0, %1, %cst {dimension_numbers = #tpu.dot_dimension_numbers<[1], [0], [0], [1], [0, 0, 1, 1], [], []>} : vector<98x256xbf16>, vector<256x128xbf16>, vector<98x128xf32> -> vector<98x128xf32>
    %c0_3 = arith.constant 0 : index
    %c0_4 = arith.constant 0 : index
    %3 = vector.load %arg3[%c0_3, %c0_4] : memref<1x128xf32, #tpu.memory_space<vmem>>, vector<1x128xf32>
    %4 = vector.broadcast %3 : vector<1x128xf32> to vector<98x128xf32>
    %5 = arith.addf %2, %4 : vector<98x128xf32>
    %cst_5 = arith.constant 0.000000e+00 : f32
    %6 = vector.broadcast %cst_5 : f32 to vector<98x128xf32>
    %7 = arith.maximumf %5, %6 : vector<98x128xf32>
    %c0_6 = arith.constant 0 : index
    %c0_7 = arith.constant 0 : index
    %8 = vector.load %arg4[%c0_6, %c0_7] : memref<98x128xf32, #tpu.memory_space<vmem>>, vector<98x128xf32>
    tpu.vector_store %arg4[%c0_6, %c0_7], %7 {strides = array<i32>} : memref<98x128xf32, #tpu.memory_space<vmem>>, vector<98x128xf32>,
    return
  }
  func.func @transform_0(%arg0: i32) -> (i32, i32) {
    %c0_i32 = arith.constant 0 : i32
    %c0_i32_0 = arith.constant 0 : i32
    return %arg0, %c0_i32 : i32, i32
  }
  func.func @transform_1(%arg0: i32) -> (i32, i32) {
    %c0_i32 = arith.constant 0 : i32
    %c0_i32_0 = arith.constant 0 : i32
    %c0_i32_1 = arith.constant 0 : i32
    return %c0_i32, %c0_i32_0 : i32, i32
  }
  func.func @transform_2(%arg0: i32) -> (i32, i32) {
    %c0_i32 = arith.constant 0 : i32
    %c0_i32_0 = arith.constant 0 : i32
    %c0_i32_1 = arith.constant 0 : i32
    return %c0_i32, %c0_i32_0 : i32, i32
  }
  func.func @transform_3(%arg0: i32) -> (i32, i32) {
    %c0_i32 = arith.constant 0 : i32
    %c0_i32_0 = arith.constant 0 : i32
    return %arg0, %c0_i32 : i32, i32
  }
}

module attributes {stable_mosaic.version = 11 : i64} {
  func.func @_mm_shift_act_kernel(%arg0: i32, %arg1: memref<450x128xbf16, #tpu.memory_space<vmem>>, %arg2: memref<128x128xbf16, #tpu.memory_space<vmem>>, %arg3: memref<1x128xf32, #tpu.memory_space<vmem>>, %arg4: memref<450x128xf32, #tpu.memory_space<vmem>>) attributes {dimension_semantics = [#tpu.dimension_semantics<parallel>], iteration_bounds = array<i64: 1>, scalar_prefetch = 0 : i64, scratch_operands = 0 : i64, tpu.core_type = #tpu.core_type<tc>, window_params = [{transform_indices = @transform_0, window_bounds = array<i64: 450, 128>}, {pipeline_mode = #tpu.pipeline_mode<synchronous>, transform_indices = @transform_1, window_bounds = array<i64: 128, 128>}, {pipeline_mode = #tpu.pipeline_mode<synchronous>, transform_indices = @transform_2, window_bounds = array<i64: 1, 128>}, {transform_indices = @transform_3, window_bounds = array<i64: 450, 128>}]} {
    %c0 = arith.constant 0 : index
    %c0_0 = arith.constant 0 : index
    %0 = vector.load %arg1[%c0, %c0_0] : memref<450x128xbf16, #tpu.memory_space<vmem>>, vector<450x128xbf16>
    %c0_1 = arith.constant 0 : index
    %c0_2 = arith.constant 0 : index
    %1 = vector.load %arg2[%c0_1, %c0_2] : memref<128x128xbf16, #tpu.memory_space<vmem>>, vector<128x128xbf16>
    %cst = arith.constant dense<0.000000e+00> : vector<450x128xf32>
    %2 = tpu.matmul %0, %1, %cst {dimension_numbers = #tpu.dot_dimension_numbers<[1], [0], [0], [1], [0, 0, 1, 1], [], []>} : vector<450x128xbf16>, vector<128x128xbf16>, vector<450x128xf32> -> vector<450x128xf32>
    %c0_3 = arith.constant 0 : index
    %c0_4 = arith.constant 0 : index
    %3 = vector.load %arg3[%c0_3, %c0_4] : memref<1x128xf32, #tpu.memory_space<vmem>>, vector<1x128xf32>
    %4 = vector.broadcast %3 : vector<1x128xf32> to vector<450x128xf32>
    %5 = arith.addf %2, %4 : vector<450x128xf32>
    %cst_5 = arith.constant 0.000000e+00 : f32
    %6 = vector.broadcast %cst_5 : f32 to vector<450x128xf32>
    %7 = arith.maximumf %5, %6 : vector<450x128xf32>
    %c0_6 = arith.constant 0 : index
    %c0_7 = arith.constant 0 : index
    %8 = vector.load %arg4[%c0_6, %c0_7] : memref<450x128xf32, #tpu.memory_space<vmem>>, vector<450x128xf32>
    tpu.vector_store %arg4[%c0_6, %c0_7], %7 {strides = array<i32>} : memref<450x128xf32, #tpu.memory_space<vmem>>, vector<450x128xf32>,
    return
  }
  func.func @transform_0(%arg0: i32) -> (i32, i32) {
    %c0_i32 = arith.constant 0 : i32
    %c0_i32_0 = arith.constant 0 : i32
    return %arg0, %c0_i32 : i32, i32
  }
  func.func @transform_1(%arg0: i32) -> (i32, i32) {
    %c0_i32 = arith.constant 0 : i32
    %c0_i32_0 = arith.constant 0 : i32
    %c0_i32_1 = arith.constant 0 : i32
    return %c0_i32, %c0_i32_0 : i32, i32
  }
  func.func @transform_2(%arg0: i32) -> (i32, i32) {
    %c0_i32 = arith.constant 0 : i32
    %c0_i32_0 = arith.constant 0 : i32
    %c0_i32_1 = arith.constant 0 : i32
    return %c0_i32, %c0_i32_0 : i32, i32
  }
  func.func @transform_3(%arg0: i32) -> (i32, i32) {
    %c0_i32 = arith.constant 0 : i32
    %c0_i32_0 = arith.constant 0 : i32
    return %arg0, %c0_i32 : i32, i32
  }
}

module attributes {stable_mosaic.version = 11 : i64} {
  func.func @_mm_shift_act_kernel(%arg0: i32, %arg1: memref<512x128xbf16, #tpu.memory_space<vmem>>, %arg2: memref<128x128xbf16, #tpu.memory_space<vmem>>, %arg3: memref<1x128xf32, #tpu.memory_space<vmem>>, %arg4: memref<512x128xf32, #tpu.memory_space<vmem>>) attributes {dimension_semantics = [#tpu.dimension_semantics<parallel>], iteration_bounds = array<i64: 4>, scalar_prefetch = 0 : i64, scratch_operands = 0 : i64, tpu.core_type = #tpu.core_type<tc>, window_params = [{transform_indices = @transform_0, window_bounds = array<i64: 512, 128>}, {pipeline_mode = #tpu.pipeline_mode<synchronous>, transform_indices = @transform_1, window_bounds = array<i64: 128, 128>}, {pipeline_mode = #tpu.pipeline_mode<synchronous>, transform_indices = @transform_2, window_bounds = array<i64: 1, 128>}, {transform_indices = @transform_3, window_bounds = array<i64: 512, 128>}]} {
    %c0 = arith.constant 0 : index
    %c0_0 = arith.constant 0 : index
    %0 = vector.load %arg1[%c0, %c0_0] : memref<512x128xbf16, #tpu.memory_space<vmem>>, vector<512x128xbf16>
    %c0_1 = arith.constant 0 : index
    %c0_2 = arith.constant 0 : index
    %1 = vector.load %arg2[%c0_1, %c0_2] : memref<128x128xbf16, #tpu.memory_space<vmem>>, vector<128x128xbf16>
    %cst = arith.constant dense<0.000000e+00> : vector<512x128xf32>
    %2 = tpu.matmul %0, %1, %cst {dimension_numbers = #tpu.dot_dimension_numbers<[1], [0], [0], [1], [0, 0, 1, 1], [], []>} : vector<512x128xbf16>, vector<128x128xbf16>, vector<512x128xf32> -> vector<512x128xf32>
    %c0_3 = arith.constant 0 : index
    %c0_4 = arith.constant 0 : index
    %3 = vector.load %arg3[%c0_3, %c0_4] : memref<1x128xf32, #tpu.memory_space<vmem>>, vector<1x128xf32>
    %4 = vector.broadcast %3 : vector<1x128xf32> to vector<512x128xf32>
    %5 = arith.addf %2, %4 : vector<512x128xf32>
    %cst_5 = arith.constant 0.000000e+00 : f32
    %6 = vector.broadcast %cst_5 : f32 to vector<512x128xf32>
    %7 = arith.maximumf %5, %6 : vector<512x128xf32>
    %8 = arith.negf %7 : vector<512x128xf32>
    %9 = math.exp %8 : vector<512x128xf32>
    %cst_6 = arith.constant 1.000000e+00 : f32
    %10 = vector.broadcast %cst_6 : f32 to vector<512x128xf32>
    %11 = arith.addf %10, %9 : vector<512x128xf32>
    %12 = arith.divf %10, %11 : vector<512x128xf32>
    %c0_7 = arith.constant 0 : index
    %c0_8 = arith.constant 0 : index
    %13 = vector.load %arg4[%c0_7, %c0_8] : memref<512x128xf32, #tpu.memory_space<vmem>>, vector<512x128xf32>
    tpu.vector_store %arg4[%c0_7, %c0_8], %12 {strides = array<i32>} : memref<512x128xf32, #tpu.memory_space<vmem>>, vector<512x128xf32>,
    return
  }
  func.func @transform_0(%arg0: i32) -> (i32, i32) {
    %c0_i32 = arith.constant 0 : i32
    %c0_i32_0 = arith.constant 0 : i32
    return %arg0, %c0_i32 : i32, i32
  }
  func.func @transform_1(%arg0: i32) -> (i32, i32) {
    %c0_i32 = arith.constant 0 : i32
    %c0_i32_0 = arith.constant 0 : i32
    %c0_i32_1 = arith.constant 0 : i32
    return %c0_i32, %c0_i32_0 : i32, i32
  }
  func.func @transform_2(%arg0: i32) -> (i32, i32) {
    %c0_i32 = arith.constant 0 : i32
    %c0_i32_0 = arith.constant 0 : i32
    %c0_i32_1 = arith.constant 0 : i32
    return %c0_i32, %c0_i32_0 : i32, i32
  }
  func.func @transform_3(%arg0: i32) -> (i32, i32) {
    %c0_i32 = arith.constant 0 : i32
    %c0_i32_0 = arith.constant 0 : i32
    return %arg0, %c0_i32 : i32, i32
  }
}

</mosaic_0001>

<bundles_post_ra>
// kernel: _forward_impl.11
= control target key start
LH: loop header
LB: loop body
LE: loop exit
PB: predicated region body
PF: predicated region fallthrough
CT: control target
= control target key end

     0   :  { %s1619_s12 = smov 0   ;;  %s1621_s13 = smov 0   ;;  %s2009_s0 = inlined_call_operand.vmem [shape: bf16[1922,48], index: 0, kind: input, shape index: {}]   ;;  %s2010_s1 = inlined_call_operand.vmem [shape: bf16[48,128], index: 1, kind: input, shape index: {}]   ;;  %s2011_s2 = inlined_call_operand.vmem [shape: f32[1,128], index: 2, kind: input, shape index: {}]   ;;  %s2012_s3 = inlined_call_operand.vmem [shape: f32[1922,128], index: 3, kind: output, shape index: {}]  }
   0x1   :  { %s1623_s14 = smov 0  }
   0x2 LB: > { %s1632_s15 = sadd.s32 4294967295, %s1565_s14   ;;  %s1634_s16 = sadd.s32 1, %s1565_s14   ;;  %s1565_s14 = sphi %s1623_s14, %s2021_s14   ;;  %s1561_s13 = sphi %s1621_s13, %s2020_s13   ;;  %s1557_s12 = sphi %s1619_s12, %s2019_s12  }
   0x3   : > { %s85_s17 = ssub.s32 %s1565_s14, %s1634_s16  ;;  %s88_s18 = sadd.s32 1, %s1561_s13 }
   0x4   : > { %p86_p0 = scmp.eq.s32.totalorder %s85_s17, 0  ;;  %p98_p1 = scmp.ne.s32.totalorder %s1561_s13, %s1557_s12 }
   0x5   : > { %p99_p2 = scmp.eq.s32.totalorder %s1632_s15, 3  ;;  %p1182_p3 = scmp.ge.s32.totalorder %s1565_s14, 1 }
   0x6   : > { %s1642_s19 = scalar_select %p86_p0, %s1561_s13, %s88_s18  }
   0x7   : > { %p1644_p4 = por %p99_p2, %p98_p1  ;;  %p146_p5 = scmp.lt.s32.totalorder %s1565_s14, 5 }
   0x9   : > { %p147_p6 = pnand %p1182_p3, %p146_p5 }
   0xa   : > { %s1652_s23 = sshll.u32 (!%p147_p6), %s1632_s15, 6  ;;  %s170_s6 = sand.u32 (!%p147_p6), 1, %s1557_s12  }
   0xb   : > { %150 = sbr.rel (%p147_p6) target bundleno = 351 (0x15f), region = 32  ;;  %p178_p7 = scmp.lt.s32.totalorder (!%p147_p6), %s1652_s23, 240 }
   0xc   : > { %s1183_s9 = sshll.u32 (!%p147_p6), %s170_s6, 9 }
   0xd   : > { %s1739_s10 = scalar_lea.vmem (!%p147_p6), [#allocation2], %s1183_s9  }
  0x10   : > { %v1409_v0 = vld [vmem:[%s2010_s1 + $0x10] sm:$0xff]  ;;  %v1408_v1 = vld [vmem:[%s2010_s1 + $0x8] sm:$0xff]  ;;  %s179_s26 = scalar_select %p178_p7, %s1652_s23, 240  ;;  %v1407_v2 = vld [vmem:[%s2010_s1] sm:$0xff]  ;;  %vm445_vm0 = vcmask 392192  }
  0x11   : > { %547 = vmatpush.bf16.msra.mxu0 %v1409_v0  ;;  %1413 = vmatpush.bf16.msra.mxu1 %v1409_v0  ;;  %v1735_v35 = vld [vmem:[%s2011_s2] ss:$0 sm:$0xff]  ;;  %s847_s11 = ssub.s32 (%p1644_p4), 241, %s1652_s23  ;;  %s1410_s12 = sshll.u32 (%p1644_p4), %s1632_s15, 9 }
  0x12   : > { %1414 = vmatpush.bf16.msra.mxu2 %v1409_v0  ;;  %1415 = vmatpush.bf16.msra.mxu3 %v1409_v0  ;;  %s1185_s27 = sshll.u32 %s179_s26, 2  ;;  %p848_p8 = scmp.lt.s32.totalorder (%p1644_p4), %s847_s11, 64 }
  0x13   : > { %s1665_s5 = scalar_lea.vmem %s2009_s0, %s1185_s27  ;;  %s1874_s18 = scalar_lea.vmem (%p1644_p4), %s2012_s3, %s1410_s12  }
  0x14   : > { %v1375_v3 = vld [vmem:[%s1665_s5] sm:$0xff]  ;;  %v1376_v7 = vld [vmem:[%s1665_s5 + $0x8] sm:$0xff]  ;;  %v1377_v11 = vld [vmem:[%s1665_s5 + $0x10] sm:$0xff] }
  0x15   : > { %548 = vmatpush.bf16.msra.mxu0 %v1408_v1  ;;  %1416 = vmatpush.bf16.msra.mxu1 %v1408_v1  ;;  %v1383_v4 = vld [vmem:[%s1665_s5 + $0x40] sm:$0xff]  ;;  %v1384_v8 = vld [vmem:[%s1665_s5 + $0x48] sm:$0xff]  ;;  %v1385_v12 = vld [vmem:[%s1665_s5 + $0x50] sm:$0xff] }
  0x16   : > { %1417 = vmatpush.bf16.msra.mxu2 %v1408_v1  ;;  %1418 = vmatpush.bf16.msra.mxu3 %v1408_v1  ;;  %v1391_v5 = vld [vmem:[%s1665_s5 + $0x80] sm:$0xff]  ;;  %v1392_v9 = vld [vmem:[%s1665_s5 + $0x88] sm:$0xff]  ;;  %v1393_v13 = vld [vmem:[%s1665_s5 + $0x90] sm:$0xff] }
  0x17   : > { %v1399_v6 = vld [vmem:[%s1665_s5 + $0xc0] sm:$0xff]  ;;  %v1400_v10 = vld [vmem:[%s1665_s5 + $0xc8] sm:$0xff]  ;;  %v1401_v14 = vld [vmem:[%s1665_s5 + $0xd0] sm:$0xff] }
  0x18   : > { %v1378_v15 = vld [vmem:[%s1665_s5 + $0x18] sm:$0xff]  ;;  %v1379_v19 = vld [vmem:[%s1665_s5 + $0x20] sm:$0xff]  ;;  %v1380_v23 = vld [vmem:[%s1665_s5 + $0x28] sm:$0xff] }
  0x19   : > { %549 = vmatpush.bf16.msra.mxu0 %v1407_v2  ;;  %1419 = vmatpush.bf16.msra.mxu1 %v1407_v2  ;;  %v1386_v16 = vld [vmem:[%s1665_s5 + $0x58] sm:$0xff]  ;;  %v1387_v20 = vld [vmem:[%s1665_s5 + $0x60] sm:$0xff]  ;;  %v1388_v24 = vld [vmem:[%s1665_s5 + $0x68] sm:$0xff] }
  0x1a   : > { %1420 = vmatpush.bf16.msra.mxu2 %v1407_v2  ;;  %1421 = vmatpush.bf16.msra.mxu3 %v1407_v2  ;;  %v1394_v17 = vld [vmem:[%s1665_s5 + $0x98] sm:$0xff]  ;;  %v1395_v21 = vld [vmem:[%s1665_s5 + $0xa0] sm:$0xff]  ;;  %v1396_v25 = vld [vmem:[%s1665_s5 + $0xa8] sm:$0xff] }
  0x1b   : > { %v1402_v18 = vld [vmem:[%s1665_s5 + $0xd8] sm:$0xff]  ;;  %v1403_v22 = vld [vmem:[%s1665_s5 + $0xe0] sm:$0xff]  ;;  %v1404_v26 = vld [vmem:[%s1665_s5 + $0xe8] sm:$0xff] }
  0x1c   : > { %1326 = vmatmul.msk.bf16.vlgmr.msra.gmra.mxu0 %vm445_vm0, %v1375_v3  ;;  %1334 = vmatmul.msk.bf16.vlgmr.msra.gmra.mxu1 %vm445_vm0, %v1383_v4  ;;  %v1381_v27 = vld [vmem:[%s1665_s5 + $0x30] sm:$0xff]  ;;  %v1382_v31 = vld [vmem:[%s1665_s5 + $0x38] sm:$0xff] }
  0x1d   : > { %1342 = vmatmul.msk.bf16.vlgmr.msra.gmra.mxu2 %vm445_vm0, %v1391_v5  ;;  %1350 = vmatmul.msk.bf16.vlgmr.msra.gmra.mxu3 %vm445_vm0, %v1399_v6  ;;  %v1389_v28 = vld [vmem:[%s1665_s5 + $0x70] sm:$0xff]  ;;  %v1390_v32 = vld [vmem:[%s1665_s5 + $0x78] sm:$0xff] }
  0x1e   : > { %v1397_v29 = vld [vmem:[%s1665_s5 + $0xb0] sm:$0xff]  ;;  %v1398_v33 = vld [vmem:[%s1665_s5 + $0xb8] sm:$0xff] }
  0x1f   : > { %v1405_v30 = vld [vmem:[%s1665_s5 + $0xf0] sm:$0xff]  ;;  %v1406_v34 = vld [vmem:[%s1665_s5 + $0xf8] sm:$0xff] }
  0x2c   : > { %1327 = vmatmul.msk.bf16.gmra.mxu0 %vm445_vm0, %v1376_v7  ;;  %1335 = vmatmul.msk.bf16.gmra.mxu1 %vm445_vm0, %v1384_v8 }
  0x2d   : > { %1343 = vmatmul.msk.bf16.gmra.mxu2 %vm445_vm0, %v1392_v9  ;;  %1351 = vmatmul.msk.bf16.gmra.mxu3 %vm445_vm0, %v1400_v10 }
  0x3c   : > { %1328 = vmatmul.msk.bf16.gmra.mxu0 %vm445_vm0, %v1377_v11  ;;  %1336 = vmatmul.msk.bf16.gmra.mxu1 %vm445_vm0, %v1385_v12 }
  0x3d   : > { %1344 = vmatmul.msk.bf16.gmra.mxu2 %vm445_vm0, %v1393_v13  ;;  %1352 = vmatmul.msk.bf16.gmra.mxu3 %vm445_vm0, %v1401_v14 }
  0x4c   : > { %1329 = vmatmul.msk.bf16.gmra.mxu0 %vm445_vm0, %v1378_v15  ;;  %1337 = vmatmul.msk.bf16.gmra.mxu1 %vm445_vm0, %v1386_v16 }
  0x4d   : > { %1345 = vmatmul.msk.bf16.gmra.mxu2 %vm445_vm0, %v1394_v17  ;;  %1353 = vmatmul.msk.bf16.gmra.mxu3 %vm445_vm0, %v1402_v18 }
  0x5c   : > { %1330 = vmatmul.msk.bf16.gmra.mxu0 %vm445_vm0, %v1379_v19  ;;  %1338 = vmatmul.msk.bf16.gmra.mxu1 %vm445_vm0, %v1387_v20 }
  0x5d   : > { %1346 = vmatmul.msk.bf16.gmra.mxu2 %vm445_vm0, %v1395_v21  ;;  %1354 = vmatmul.msk.bf16.gmra.mxu3 %vm445_vm0, %v1403_v22 }
  0x6c   : > { %1331 = vmatmul.msk.bf16.gmra.mxu0 %vm445_vm0, %v1380_v23  ;;  %1339 = vmatmul.msk.bf16.gmra.mxu1 %vm445_vm0, %v1388_v24 }
  0x6d   : > { %1347 = vmatmul.msk.bf16.gmra.mxu2 %vm445_vm0, %v1396_v25  ;;  %1355 = vmatmul.msk.bf16.gmra.mxu3 %vm445_vm0, %v1404_v26 }
  0x7c   : > { %1332 = vmatmul.msk.bf16.gmra.mxu0 %vm445_vm0, %v1381_v27  ;;  %1340 = vmatmul.msk.bf16.gmra.mxu1 %vm445_vm0, %v1389_v28 }
  0x7d   : > { %1348 = vmatmul.msk.bf16.gmra.mxu2 %vm445_vm0, %v1397_v29  ;;  %1356 = vmatmul.msk.bf16.gmra.mxu3 %vm445_vm0, %v1405_v30 }
  0x8c   : > { %1333 = vmatmul.msk.bf16.gmra.mxu0 %vm445_vm0, %v1382_v31  ;;  %1341 = vmatmul.msk.bf16.gmra.mxu1 %vm445_vm0, %v1390_v32 }
  0x8d   : > { %1349 = vmatmul.msk.bf16.gmra.mxu2 %vm445_vm0, %v1398_v33  ;;  %1357 = vmatmul.msk.bf16.gmra.mxu3 %vm445_vm0, %v1406_v34 }
  0x99   : > { %v551_v36 = vpop.f32.mrf.mxu0  ;;  %v591_v37 = vpop.f32.mrf.mxu1 }
  0x9a   : > { %v552_v38 = vadd.f32 %v1735_v35, %v551_v36  ;;  %v592_v39 = vadd.f32 %v1735_v35, %v591_v37 }
  0x9c   : > { %v711_v40 = vmax.f32 %v552_v38, 0.0  ;;  %v727_v41 = vmax.f32 %v592_v39, 0.0 }
  0x9e   : > { %775 = vst [vmem:[%s1739_s10] sm:$0xff] %v711_v40 }
  0x9f   : > { %791 = vst [vmem:[%s1739_s10 + $0x80] sm:$0xff] %v727_v41 }
  0xa0   : > { %v631_v42 = vpop.f32.mrf.mxu2  ;;  %v671_v43 = vpop.f32.mrf.mxu3 }
  0xa1   : > { %v632_v44 = vadd.f32 %v1735_v35, %v631_v42  ;;  %v672_v45 = vadd.f32 %v1735_v35, %v671_v43  ;;  %v553_v46 = vpop.f32.mrf.mxu0  ;;  %v593_v47 = vpop.f32.mrf.mxu1 }
  0xa2   : > { %v554_v48 = vadd.f32 %v1735_v35, %v553_v46  ;;  %v594_v49 = vadd.f32 %v1735_v35, %v593_v47 }
  0xa3   : > { %v743_v50 = vmax.f32 %v632_v44, 0.0  ;;  %v759_v51 = vmax.f32 %v672_v45, 0.0 }
  0xa4   : > { %v712_v52 = vmax.f32 %v554_v48, 0.0  ;;  %v728_v53 = vmax.f32 %v594_v49, 0.0 }
  0xa5   : > { %807 = vst [vmem:[%s1739_s10 + $0x100] sm:$0xff] %v743_v50 }
  0xa6   : > { %823 = vst [vmem:[%s1739_s10 + $0x180] sm:$0xff] %v759_v51 }
  0xa7   : > { %776 = vst [vmem:[%s1739_s10 + $0x8] sm:$0xff] %v712_v52 }
  0xa8   : > { %792 = vst [vmem:[%s1739_s10 + $0x88] sm:$0xff] %v728_v53  ;;  %v633_v54 = vpop.f32.mrf.mxu2  ;;  %v673_v55 = vpop.f32.mrf.mxu3 }
  0xa9   : > { %v634_v56 = vadd.f32 %v1735_v35, %v633_v54  ;;  %v674_v57 = vadd.f32 %v1735_v35, %v673_v55  ;;  %v556_v58 = vpop.f32.mrf.mxu0  ;;  %v596_v59 = vpop.f32.mrf.mxu1 }
  0xaa   : > { %v557_v60 = vadd.f32 %v1735_v35, %v556_v58  ;;  %v597_v61 = vadd.f32 %v1735_v35, %v596_v59 }
  0xab   : > { %v744_v62 = vmax.f32 %v634_v56, 0.0  ;;  %v760_v63 = vmax.f32 %v674_v57, 0.0 }
  0xac   : > { %v713_v0 = vmax.f32 %v557_v60, 0.0  ;;  %v729_v1 = vmax.f32 %v597_v61, 0.0 }
  0xad   : > { %808 = vst [vmem:[%s1739_s10 + $0x108] sm:$0xff] %v744_v62 }
  0xae   : > { %824 = vst [vmem:[%s1739_s10 + $0x188] sm:$0xff] %v760_v63 }
  0xaf   : > { %777 = vst [vmem:[%s1739_s10 + $0x10] sm:$0xff] %v713_v0 }
  0xb0   : > { %793 = vst [vmem:[%s1739_s10 + $0x90] sm:$0xff] %v729_v1  ;;  %v636_v2 = vpop.f32.mrf.mxu2  ;;  %v676_v3 = vpop.f32.mrf.mxu3 }
  0xb1   : > { %v637_v4 = vadd.f32 %v1735_v35, %v636_v2  ;;  %v677_v5 = vadd.f32 %v1735_v35, %v676_v3  ;;  %v558_v6 = vpop.f32.mrf.mxu0  ;;  %v598_v7 = vpop.f32.mrf.mxu1 }
  0xb2   : > { %v559_v8 = vadd.f32 %v1735_v35, %v558_v6  ;;  %v599_v9 = vadd.f32 %v1735_v35, %v598_v7 }
  0xb3   : > { %v745_v10 = vmax.f32 %v637_v4, 0.0  ;;  %v761_v11 = vmax.f32 %v677_v5, 0.0 }
  0xb4   : > { %v714_v12 = vmax.f32 %v559_v8, 0.0  ;;  %v730_v13 = vmax.f32 %v599_v9, 0.0 }
  0xb5   : > { %809 = vst [vmem:[%s1739_s10 + $0x110] sm:$0xff] %v745_v10 }
  0xb6   : > { %825 = vst [vmem:[%s1739_s10 + $0x190] sm:$0xff] %v761_v11 }
  0xb7   : > { %778 = vst [vmem:[%s1739_s10 + $0x18] sm:$0xff] %v714_v12 }
  0xb8   : > { %794 = vst [vmem:[%s1739_s10 + $0x98] sm:$0xff] %v730_v13  ;;  %v638_v14 = vpop.f32.mrf.mxu2  ;;  %v678_v15 = vpop.f32.mrf.mxu3 }
  0xb9   : > { %v639_v16 = vadd.f32 %v1735_v35, %v638_v14  ;;  %v679_v17 = vadd.f32 %v1735_v35, %v678_v15  ;;  %v561_v18 = vpop.f32.mrf.mxu0  ;;  %v601_v19 = vpop.f32.mrf.mxu1 }
  0xba   : > { %v562_v20 = vadd.f32 %v1735_v35, %v561_v18  ;;  %v602_v21 = vadd.f32 %v1735_v35, %v601_v19 }
  0xbb   : > { %v746_v22 = vmax.f32 %v639_v16, 0.0  ;;  %v762_v23 = vmax.f32 %v679_v17, 0.0 }
  0xbc   : > { %v715_v24 = vmax.f32 %v562_v20, 0.0  ;;  %v731_v25 = vmax.f32 %v602_v21, 0.0 }
  0xbd   : > { %810 = vst [vmem:[%s1739_s10 + $0x118] sm:$0xff] %v746_v22 }
  0xbe   : > { %826 = vst [vmem:[%s1739_s10 + $0x198] sm:$0xff] %v762_v23 }
  0xbf   : > { %779 = vst [vmem:[%s1739_s10 + $0x20] sm:$0xff] %v715_v24 }
  0xc0   : > { %795 = vst [vmem:[%s1739_s10 + $0xa0] sm:$0xff] %v731_v25  ;;  %v641_v26 = vpop.f32.mrf.mxu2  ;;  %v681_v27 = vpop.f32.mrf.mxu3 }
  0xc1   : > { %v642_v28 = vadd.f32 %v1735_v35, %v641_v26  ;;  %v682_v29 = vadd.f32 %v1735_v35, %v681_v27  ;;  %v563_v30 = vpop.f32.mrf.mxu0  ;;  %v603_v31 = vpop.f32.mrf.mxu1 }
  0xc2   : > { %v564_v32 = vadd.f32 %v1735_v35, %v563_v30  ;;  %v604_v33 = vadd.f32 %v1735_v35, %v603_v31 }
  0xc3   : > { %v747_v34 = vmax.f32 %v642_v28, 0.0  ;;  %v763_v36 = vmax.f32 %v682_v29, 0.0 }
  0xc4   : > { %v716_v37 = vmax.f32 %v564_v32, 0.0  ;;  %v732_v38 = vmax.f32 %v604_v33, 0.0 }
  0xc5   : > { %811 = vst [vmem:[%s1739_s10 + $0x120] sm:$0xff] %v747_v34 }
  0xc6   : > { %827 = vst [vmem:[%s1739_s10 + $0x1a0] sm:$0xff] %v763_v36 }
  0xc7   : > { %780 = vst [vmem:[%s1739_s10 + $0x28] sm:$0xff] %v716_v37 }
  0xc8   : > { %796 = vst [vmem:[%s1739_s10 + $0xa8] sm:$0xff] %v732_v38  ;;  %v643_v39 = vpop.f32.mrf.mxu2  ;;  %v683_v40 = vpop.f32.mrf.mxu3 }
  0xc9   : > { %v644_v41 = vadd.f32 %v1735_v35, %v643_v39  ;;  %v684_v42 = vadd.f32 %v1735_v35, %v683_v40  ;;  %v566_v43 = vpop.f32.mrf.mxu0  ;;  %v606_v44 = vpop.f32.mrf.mxu1 }
  0xca   : > { %v567_v45 = vadd.f32 %v1735_v35, %v566_v43  ;;  %v607_v46 = vadd.f32 %v1735_v35, %v606_v44 }
  0xcb   : > { %v748_v47 = vmax.f32 %v644_v41, 0.0  ;;  %v764_v48 = vmax.f32 %v684_v42, 0.0 }
  0xcc   : > { %v717_v49 = vmax.f32 %v567_v45, 0.0  ;;  %v733_v50 = vmax.f32 %v607_v46, 0.0 }
  0xcd   : > { %812 = vst [vmem:[%s1739_s10 + $0x128] sm:$0xff] %v748_v47 }
  0xce   : > { %828 = vst [vmem:[%s1739_s10 + $0x1a8] sm:$0xff] %v764_v48 }
  0xcf   : > { %781 = vst [vmem:[%s1739_s10 + $0x30] sm:$0xff] %v717_v49 }
  0xd0   : > { %797 = vst [vmem:[%s1739_s10 + $0xb0] sm:$0xff] %v733_v50  ;;  %v646_v51 = vpop.f32.mrf.mxu2  ;;  %v686_v52 = vpop.f32.mrf.mxu3 }
  0xd1   : > { %v647_v53 = vadd.f32 %v1735_v35, %v646_v51  ;;  %v687_v54 = vadd.f32 %v1735_v35, %v686_v52  ;;  %v568_v55 = vpop.f32.mrf.mxu0  ;;  %v608_v56 = vpop.f32.mrf.mxu1 }
  0xd2   : > { %v569_v57 = vadd.f32 %v1735_v35, %v568_v55  ;;  %v609_v58 = vadd.f32 %v1735_v35, %v608_v56 }
  0xd3   : > { %v749_v59 = vmax.f32 %v647_v53, 0.0  ;;  %v765_v60 = vmax.f32 %v687_v54, 0.0 }
  0xd4   : > { %v718_v61 = vmax.f32 %v569_v57, 0.0  ;;  %v734_v62 = vmax.f32 %v609_v58, 0.0 }
  0xd5   : > { %813 = vst [vmem:[%s1739_s10 + $0x130] sm:$0xff] %v749_v59 }
  0xd6   : > { %829 = vst [vmem:[%s1739_s10 + $0x1b0] sm:$0xff] %v765_v60 }
  0xd7   : > { %782 = vst [vmem:[%s1739_s10 + $0x38] sm:$0xff] %v718_v61 }
  0xd8   : > { %798 = vst [vmem:[%s1739_s10 + $0xb8] sm:$0xff] %v734_v62  ;;  %v648_v63 = vpop.f32.mrf.mxu2  ;;  %v688_v0 = vpop.f32.mrf.mxu3 }
  0xd9   : > { %v649_v1 = vadd.f32 %v1735_v35, %v648_v63  ;;  %v689_v2 = vadd.f32 %v1735_v35, %v688_v0  ;;  %v571_v3 = vpop.f32.mrf.mxu0  ;;  %v611_v4 = vpop.f32.mrf.mxu1 }
  0xda   : > { %v572_v5 = vadd.f32 %v1735_v35, %v571_v3  ;;  %v612_v6 = vadd.f32 %v1735_v35, %v611_v4 }
  0xdb   : > { %v750_v7 = vmax.f32 %v649_v1, 0.0  ;;  %v766_v8 = vmax.f32 %v689_v2, 0.0 }
  0xdc   : > { %v719_v9 = vmax.f32 %v572_v5, 0.0  ;;  %v735_v10 = vmax.f32 %v612_v6, 0.0 }
  0xdd   : > { %814 = vst [vmem:[%s1739_s10 + $0x138] sm:$0xff] %v750_v7 }
  0xde   : > { %830 = vst [vmem:[%s1739_s10 + $0x1b8] sm:$0xff] %v766_v8 }
  0xdf   : > { %783 = vst [vmem:[%s1739_s10 + $0x40] sm:$0xff] %v719_v9 }
  0xe0   : > { %799 = vst [vmem:[%s1739_s10 + $0xc0] sm:$0xff] %v735_v10  ;;  %v651_v11 = vpop.f32.mrf.mxu2  ;;  %v691_v12 = vpop.f32.mrf.mxu3 }
  0xe1   : > { %v652_v13 = vadd.f32 %v1735_v35, %v651_v11  ;;  %v692_v14 = vadd.f32 %v1735_v35, %v691_v12  ;;  %v573_v15 = vpop.f32.mrf.mxu0  ;;  %v613_v16 = vpop.f32.mrf.mxu1 }
  0xe2   : > { %v574_v17 = vadd.f32 %v1735_v35, %v573_v15  ;;  %v614_v18 = vadd.f32 %v1735_v35, %v613_v16 }
  0xe3   : > { %v751_v19 = vmax.f32 %v652_v13, 0.0  ;;  %v767_v20 = vmax.f32 %v692_v14, 0.0 }
  0xe4   : > { %v720_v21 = vmax.f32 %v574_v17, 0.0  ;;  %v736_v22 = vmax.f32 %v614_v18, 0.0 }
  0xe5   : > { %815 = vst [vmem:[%s1739_s10 + $0x140] sm:$0xff] %v751_v19 }
  0xe6   : > { %831 = vst [vmem:[%s1739_s10 + $0x1c0] sm:$0xff] %v767_v20 }
  0xe7   : > { %784 = vst [vmem:[%s1739_s10 + $0x48] sm:$0xff] %v720_v21 }
  0xe8   : > { %800 = vst [vmem:[%s1739_s10 + $0xc8] sm:$0xff] %v736_v22  ;;  %v653_v23 = vpop.f32.mrf.mxu2  ;;  %v693_v24 = vpop.f32.mrf.mxu3 }
  0xe9   : > { %v654_v25 = vadd.f32 %v1735_v35, %v653_v23  ;;  %v694_v26 = vadd.f32 %v1735_v35, %v693_v24  ;;  %v576_v27 = vpop.f32.mrf.mxu0  ;;  %v616_v28 = vpop.f32.mrf.mxu1 }
  0xea   : > { %v577_v29 = vadd.f32 %v1735_v35, %v576_v27  ;;  %v617_v30 = vadd.f32 %v1735_v35, %v616_v28 }
  0xeb   : > { %v752_v31 = vmax.f32 %v654_v25, 0.0  ;;  %v768_v32 = vmax.f32 %v694_v26, 0.0 }
  0xec   : > { %v721_v33 = vmax.f32 %v577_v29, 0.0  ;;  %v737_v34 = vmax.f32 %v617_v30, 0.0 }
  0xed   : > { %816 = vst [vmem:[%s1739_s10 + $0x148] sm:$0xff] %v752_v31 }
  0xee   : > { %832 = vst [vmem:[%s1739_s10 + $0x1c8] sm:$0xff] %v768_v32 }
  0xef   : > { %785 = vst [vmem:[%s1739_s10 + $0x50] sm:$0xff] %v721_v33 }
  0xf0   : > { %801 = vst [vmem:[%s1739_s10 + $0xd0] sm:$0xff] %v737_v34  ;;  %v656_v36 = vpop.f32.mrf.mxu2  ;;  %v696_v37 = vpop.f32.mrf.mxu3 }
  0xf1   : > { %v657_v38 = vadd.f32 %v1735_v35, %v656_v36  ;;  %v697_v39 = vadd.f32 %v1735_v35, %v696_v37  ;;  %v578_v40 = vpop.f32.mrf.mxu0  ;;  %v618_v41 = vpop.f32.mrf.mxu1 }
  0xf2   : > { %v579_v42 = vadd.f32 %v1735_v35, %v578_v40  ;;  %v619_v43 = vadd.f32 %v1735_v35, %v618_v41 }
  0xf3   : > { %v753_v44 = vmax.f32 %v657_v38, 0.0  ;;  %v769_v45 = vmax.f32 %v697_v39, 0.0 }
  0xf4   : > { %v722_v46 = vmax.f32 %v579_v42, 0.0  ;;  %v738_v47 = vmax.f32 %v619_v43, 0.0 }
  0xf5   : > { %817 = vst [vmem:[%s1739_s10 + $0x150] sm:$0xff] %v753_v44 }
  0xf6   : > { %833 = vst [vmem:[%s1739_s10 + $0x1d0] sm:$0xff] %v769_v45 }
  0xf7   : > { %786 = vst [vmem:[%s1739_s10 + $0x58] sm:$0xff] %v722_v46 }
  0xf8   : > { %802 = vst [vmem:[%s1739_s10 + $0xd8] sm:$0xff] %v738_v47  ;;  %v658_v48 = vpop.f32.mrf.mxu2  ;;  %v698_v49 = vpop.f32.mrf.mxu3 }
  0xf9   : > { %v659_v50 = vadd.f32 %v1735_v35, %v658_v48  ;;  %v699_v51 = vadd.f32 %v1735_v35, %v698_v49  ;;  %v581_v52 = vpop.f32.mrf.mxu0  ;;  %v621_v53 = vpop.f32.mrf.mxu1 }
  0xfa   : > { %v582_v54 = vadd.f32 %v1735_v35, %v581_v52  ;;  %v622_v55 = vadd.f32 %v1735_v35, %v621_v53 }
  0xfb   : > { %v754_v56 = vmax.f32 %v659_v50, 0.0  ;;  %v770_v57 = vmax.f32 %v699_v51, 0.0 }
  0xfc   : > { %v723_v58 = vmax.f32 %v582_v54, 0.0  ;;  %v739_v59 = vmax.f32 %v622_v55, 0.0 }
  0xfd   : > { %818 = vst [vmem:[%s1739_s10 + $0x158] sm:$0xff] %v754_v56 }
  0xfe   : > { %834 = vst [vmem:[%s1739_s10 + $0x1d8] sm:$0xff] %v770_v57 }
  0xff   : > { %787 = vst [vmem:[%s1739_s10 + $0x60] sm:$0xff] %v723_v58 }
 0x100   : > { %803 = vst [vmem:[%s1739_s10 + $0xe0] sm:$0xff] %v739_v59  ;;  %v661_v60 = vpop.f32.mrf.mxu2  ;;  %v701_v61 = vpop.f32.mrf.mxu3 }
 0x101   : > { %v662_v62 = vadd.f32 %v1735_v35, %v661_v60  ;;  %v702_v63 = vadd.f32 %v1735_v35, %v701_v61  ;;  %v583_v0 = vpop.f32.mrf.mxu0  ;;  %v623_v1 = vpop.f32.mrf.mxu1 }
 0x102   : > { %v584_v2 = vadd.f32 %v1735_v35, %v583_v0  ;;  %v624_v3 = vadd.f32 %v1735_v35, %v623_v1 }
 0x103   : > { %v755_v4 = vmax.f32 %v662_v62, 0.0  ;;  %v771_v5 = vmax.f32 %v702_v63, 0.0 }
 0x104   : > { %v724_v6 = vmax.f32 %v584_v2, 0.0  ;;  %v740_v7 = vmax.f32 %v624_v3, 0.0 }
 0x105   : > { %819 = vst [vmem:[%s1739_s10 + $0x160] sm:$0xff] %v755_v4 }
 0x106   : > { %835 = vst [vmem:[%s1739_s10 + $0x1e0] sm:$0xff] %v771_v5 }
 0x107   : > { %788 = vst [vmem:[%s1739_s10 + $0x68] sm:$0xff] %v724_v6 }
 0x108   : > { %804 = vst [vmem:[%s1739_s10 + $0xe8] sm:$0xff] %v740_v7  ;;  %v663_v8 = vpop.f32.mrf.mxu2  ;;  %v703_v9 = vpop.f32.mrf.mxu3 }
 0x109   : > { %v664_v10 = vadd.f32 %v1735_v35, %v663_v8  ;;  %v704_v11 = vadd.f32 %v1735_v35, %v703_v9  ;;  %v586_v12 = vpop.f32.mrf.mxu0  ;;  %v626_v13 = vpop.f32.mrf.mxu1 }
 0x10a   : > { %v587_v14 = vadd.f32 %v1735_v35, %v586_v12  ;;  %v627_v15 = vadd.f32 %v1735_v35, %v626_v13 }
 0x10b   : > { %v756_v16 = vmax.f32 %v664_v10, 0.0  ;;  %v772_v17 = vmax.f32 %v704_v11, 0.0 }
 0x10c   : > { %v725_v18 = vmax.f32 %v587_v14, 0.0  ;;  %v741_v19 = vmax.f32 %v627_v15, 0.0 }
 0x10d   : > { %820 = vst [vmem:[%s1739_s10 + $0x168] sm:$0xff] %v756_v16 }
 0x10e   : > { %836 = vst [vmem:[%s1739_s10 + $0x1e8] sm:$0xff] %v772_v17 }
 0x10f   : > { %789 = vst [vmem:[%s1739_s10 + $0x70] sm:$0xff] %v725_v18 }
 0x110   : > { %805 = vst [vmem:[%s1739_s10 + $0xf0] sm:$0xff] %v741_v19  ;;  %v666_v20 = vpop.f32.mrf.mxu2  ;;  %v706_v21 = vpop.f32.mrf.mxu3 }
 0x111   : > { %v667_v22 = vadd.f32 %v1735_v35, %v666_v20  ;;  %v707_v23 = vadd.f32 %v1735_v35, %v706_v21  ;;  %v588_v24 = vpop.f32.mrf.mxu0  ;;  %v628_v25 = vpop.f32.mrf.mxu1 }
 0x112   : > { %v589_v26 = vadd.f32 %v1735_v35, %v588_v24  ;;  %v629_v27 = vadd.f32 %v1735_v35, %v628_v25 }
 0x113   : > { %v757_v28 = vmax.f32 %v667_v22, 0.0  ;;  %v773_v29 = vmax.f32 %v707_v23, 0.0 }
 0x114   : > { %v726_v30 = vmax.f32 %v589_v26, 0.0  ;;  %v742_v31 = vmax.f32 %v629_v27, 0.0 }
 0x115   : > { %821 = vst [vmem:[%s1739_s10 + $0x170] sm:$0xff] %v757_v28 }
 0x116   : > { %837 = vst [vmem:[%s1739_s10 + $0x1f0] sm:$0xff] %v773_v29 }
 0x117   : > { %790 = vst [vmem:[%s1739_s10 + $0x78] sm:$0xff] %v726_v30 }
 0x118   : > { %806 = vst [vmem:[%s1739_s10 + $0xf8] sm:$0xff] %v742_v31  ;;  %v668_v32 = vpop.f32.mrf.mxu2  ;;  %v708_v33 = vpop.f32.mrf.mxu3 }
 0x119   : > { %v669_v34 = vadd.f32 %v1735_v35, %v668_v32  ;;  %v709_v36 = vadd.f32 %v1735_v35, %v708_v33 }
 0x11a   : > { %845 = sbr.rel (!%p1644_p4) target bundleno = 351 (0x15f), region = 36 }
 0x11b   : > { %v758_v37 = vmax.f32 %v669_v34, 0.0  ;;  %v774_v38 = vmax.f32 %v709_v36, 0.0 }
 0x11d   : > { %822 = vst [vmem:[%s1739_s10 + $0x178] sm:$0xff] %v758_v37 }
 0x11e   : > { %838 = vst [vmem:[%s1739_s10 + $0x1f8] sm:$0xff] %v774_v38 }
 0x11f   : > { %s2023_s11 = smov (!%p848_p8, %s847_s11), 64 }
 0x120   : > { %s1360_s21 = sshll.u32 %s2023_s11, 3 }
 0x121   : > { %p1363_p9 = scmp.eq.s32.totalorder %s1360_s21, 0 }
 0x122   : > { %s1880_s22 = sshrl.u32 (!%p1363_p9), %s2023_s11, 5 }
 0x123   : > { %856 = sbr.rel (%p1363_p9) target bundleno = 351 (0x15f), region = 40  ;;  %p1364_p10 = scmp.le.s32.totalorder (!%p1363_p9), %s1880_s22, 0 }
 0x128   : > { %1135 = sbr.rel (%p1364_p10) target bundleno = 334 (0x14e), region = 116  ;;  %s2014_s15 = smov (!%p1364_p10), %s1874_s18 }
 0x129   : > { %s2015_s20 = smov (!%p1364_p10), %s1739_s10  ;;  %s1889_s23 = smov (!%p1364_p10), 0  }
 0x12a   : > { %s1891_s24 = smov (!%p1364_p10), 0  }
 0x12d LB: >> { %v981_v35 = vld [vmem:[%s1573_s20] sm:$0xff]  ;;  %v983_v39 = vld [vmem:[%s1573_s20 + $0x8] sm:$0xff]  ;;  %v985_v40 = vld [vmem:[%s1573_s20 + $0x10] sm:$0xff]  ;;  %s1045_s25 = sadd.s32 1, %s1577_s23  ;;  %s975_s24 = sadd.s32 1, %s1581_s24   ;;  %s1581_s24 = sphi %s1891_s24, %s975_s24   ;;  %s1577_s23 = sphi %s1889_s23, %s2018_s23   ;;  %s1573_s20 = sphi %s2015_s20, %s2017_s20   ;;  %s1569_s15 = sphi %s2014_s15, %s2016_s15  }
 0x12e   : >> { %982 = vst [vmem:[%s1569_s15] sm:$0xff] %v981_v35  ;;  %v987_v41 = vld [vmem:[%s1573_s20 + $0x18] sm:$0xff]  ;;  %p1046_p11 = scmp.ge.s32.totalorder %s1045_s25, %s1880_s22  ;;  %v989_v42 = vld [vmem:[%s1573_s20 + $0x20] sm:$0xff]  ;;  %v991_v43 = vld [vmem:[%s1573_s20 + $0x28] sm:$0xff]  ;;  %p974_p12 = scmp.ge.s32.totalorder %s975_s24, %s1880_s22 }
 0x12f   : >> { %984 = vst [vmem:[%s1569_s15 + $0x8] sm:$0xff] %v983_v39  ;;  %v993_v44 = vld [vmem:[%s1573_s20 + $0x30] sm:$0xff]  ;;  %v995_v45 = vld [vmem:[%s1573_s20 + $0x38] sm:$0xff]  ;;  %v997_v46 = vld [vmem:[%s1573_s20 + $0x40] sm:$0xff] }
 0x130   : >> { %986 = vst [vmem:[%s1569_s15 + $0x10] sm:$0xff] %v985_v40  ;;  %s2025_s25 = smov (%p1046_p11, %s1045_s25), 0  ;;  %v999_v47 = vld [vmem:[%s1573_s20 + $0x48] sm:$0xff]  ;;  %v1001_v48 = vld [vmem:[%s1573_s20 + $0x50] sm:$0xff]  ;;  %v1003_v49 = vld [vmem:[%s1573_s20 + $0x58] sm:$0xff] }
 0x131   : >> { %988 = vst [vmem:[%s1569_s15 + $0x18] sm:$0xff] %v987_v41  ;;  %s1365_s26 = sshll.u32 %s2025_s25, 8  ;;  %v1005_v50 = vld [vmem:[%s1573_s20 + $0x60] sm:$0xff]  ;;  %v1007_v51 = vld [vmem:[%s1573_s20 + $0x68] sm:$0xff]  ;;  %v1009_v52 = vld [vmem:[%s1573_s20 + $0x70] sm:$0xff]  ;;  %s2018_s23 = smov %s2025_s25 }
 0x132   : >> { %990 = vst [vmem:[%s1569_s15 + $0x20] sm:$0xff] %v989_v42  ;;  %s1923_s27 = scalar_lea.vmem %s1739_s10, %s1365_s26 [#allocation2]   ;;  %s1926_s28 = scalar_lea.vmem %s1874_s18, %s1365_s26   ;;  %v1011_v53 = vld [vmem:[%s1573_s20 + $0x78] sm:$0xff]  ;;  %v1013_v54 = vld [vmem:[%s1573_s20 + $0x80] sm:$0xff]  ;;  %v1015_v55 = vld [vmem:[%s1573_s20 + $0x88] sm:$0xff] }
 0x133   : >> { %992 = vst [vmem:[%s1569_s15 + $0x28] sm:$0xff] %v991_v43  ;;  %v1017_v56 = vld [vmem:[%s1573_s20 + $0x90] sm:$0xff]  ;;  %v1019_v57 = vld [vmem:[%s1573_s20 + $0x98] sm:$0xff]  ;;  %v1021_v58 = vld [vmem:[%s1573_s20 + $0xa0] sm:$0xff] }
 0x134   : >> { %994 = vst [vmem:[%s1569_s15 + $0x30] sm:$0xff] %v993_v44  ;;  %v1023_v59 = vld [vmem:[%s1573_s20 + $0xa8] sm:$0xff]  ;;  %v1025_v60 = vld [vmem:[%s1573_s20 + $0xb0] sm:$0xff]  ;;  %v1027_v61 = vld [vmem:[%s1573_s20 + $0xb8] sm:$0xff] }
 0x135   : >> { %996 = vst [vmem:[%s1569_s15 + $0x38] sm:$0xff] %v995_v45  ;;  %v1029_v62 = vld [vmem:[%s1573_s20 + $0xc0] sm:$0xff]  ;;  %v1031_v63 = vld [vmem:[%s1573_s20 + $0xc8] sm:$0xff]  ;;  %v1033_v0 = vld [vmem:[%s1573_s20 + $0xd0] sm:$0xff] }
 0x136   : >> { %998 = vst [vmem:[%s1569_s15 + $0x40] sm:$0xff] %v997_v46  ;;  %v1035_v1 = vld [vmem:[%s1573_s20 + $0xd8] sm:$0xff]  ;;  %v1037_v2 = vld [vmem:[%s1573_s20 + $0xe0] sm:$0xff]  ;;  %v1039_v3 = vld [vmem:[%s1573_s20 + $0xe8] sm:$0xff] }
 0x137   : >> { %1000 = vst [vmem:[%s1569_s15 + $0x48] sm:$0xff] %v999_v47  ;;  %v1041_v4 = vld [vmem:[%s1573_s20 + $0xf0] sm:$0xff]  ;;  %v1043_v5 = vld [vmem:[%s1573_s20 + $0xf8] sm:$0xff]  ;;  %s2017_s20 = smov %s1923_s27 }
 0x138   : >> { %1002 = vst [vmem:[%s1569_s15 + $0x50] sm:$0xff] %v1001_v48 }
 0x139   : >> { %1004 = vst [vmem:[%s1569_s15 + $0x58] sm:$0xff] %v1003_v49 }
 0x13a   : >> { %1006 = vst [vmem:[%s1569_s15 + $0x60] sm:$0xff] %v1005_v50 }
 0x13b   : >> { %1008 = vst [vmem:[%s1569_s15 + $0x68] sm:$0xff] %v1007_v51 }
 0x13c   : >> { %1010 = vst [vmem:[%s1569_s15 + $0x70] sm:$0xff] %v1009_v52 }
 0x13d   : >> { %1012 = vst [vmem:[%s1569_s15 + $0x78] sm:$0xff] %v1011_v53 }
 0x13e   : >> { %1014 = vst [vmem:[%s1569_s15 + $0x80] sm:$0xff] %v1013_v54 }
 0x13f   : >> { %1016 = vst [vmem:[%s1569_s15 + $0x88] sm:$0xff] %v1015_v55 }
 0x140   : >> { %1018 = vst [vmem:[%s1569_s15 + $0x90] sm:$0xff] %v1017_v56 }
 0x141   : >> { %1020 = vst [vmem:[%s1569_s15 + $0x98] sm:$0xff] %v1019_v57 }
 0x142   : >> { %1022 = vst [vmem:[%s1569_s15 + $0xa0] sm:$0xff] %v1021_v58 }
 0x143   : >> { %1024 = vst [vmem:[%s1569_s15 + $0xa8] sm:$0xff] %v1023_v59 }
 0x144   : >> { %1026 = vst [vmem:[%s1569_s15 + $0xb0] sm:$0xff] %v1025_v60 }
 0x145   : >> { %1028 = vst [vmem:[%s1569_s15 + $0xb8] sm:$0xff] %v1027_v61 }
 0x146   : >> { %1030 = vst [vmem:[%s1569_s15 + $0xc0] sm:$0xff] %v1029_v62 }
 0x147   : >> { %1032 = vst [vmem:[%s1569_s15 + $0xc8] sm:$0xff] %v1031_v63 }
 0x148   : >> { %1034 = vst [vmem:[%s1569_s15 + $0xd0] sm:$0xff] %v1033_v0 }
 0x149   : >> { %1036 = vst [vmem:[%s1569_s15 + $0xd8] sm:$0xff] %v1035_v1  ;;  %977 = sbr.rel (!%p974_p12) target bundleno = 301 (0x12d), region = 122 }
 0x14a   : >> { %1038 = vst [vmem:[%s1569_s15 + $0xe0] sm:$0xff] %v1037_v2 }
 0x14b   : >> { %1040 = vst [vmem:[%s1569_s15 + $0xe8] sm:$0xff] %v1039_v3 }
 0x14c   : >> { %1042 = vst [vmem:[%s1569_s15 + $0xf0] sm:$0xff] %v1041_v4 }
 0x14d   : >> { %1044 = vst [vmem:[%s1569_s15 + $0xf8] sm:$0xff] %v1043_v5  ;;  %s2016_s15 = smov %s1926_s28 }
 0x14e PF: > { %s1991_s29 = sand.u32 31, %s2023_s11   ;;  %s1411_s30 = sshll.u32 %s1880_s22, 8 }
 0x14f   : > { %s1056_s4 = scalar_lea.vmem %s1739_s10, %s1411_s30 [#allocation2]   ;;  %s1058_s5 = scalar_lea.vmem %s1874_s18, %s1411_s30  }
 0x150   : > { %p1370_p13 = scmp.le.s32.totalorder %s1991_s29, 0 }
 0x151   : > { %s1583_s6 = smov (!%p1370_p13), %s1058_s5   ;;  %s1587_s7 = smov (!%p1370_p13), %s1056_s4  }
 0x152   : > { %1149 = sbr.rel (%p1370_p13) target bundleno = 351 (0x15f), region = 127  ;;  %s1591_s8 = smov (!%p1370_p13), 0  }
 0x153   : > { %s1595_s9 = smov (!%p1370_p13), 0  }
 0x157 LB: >> { %v1068_v6 = vld [vmem:[%s1589_s7] sm:$0xff]  ;;  %s1070_s11 = sadd.s32 1, %s1593_s8  ;;  %s1062_s9 = sadd.s32 1, %s1597_s9   ;;  %s1597_s9 = sphi %s1595_s9, %s1062_s9   ;;  %s1593_s8 = sphi %s1591_s8, %s1592_s8   ;;  %s1589_s7 = sphi %s1587_s7, %s1075_s7   ;;  %s1585_s6 = sphi %s1583_s6, %s1076_s6  }
 0x158   : >> { %1069 = vst [vmem:[%s1585_s6] sm:$0xff] %v1068_v6  ;;  %p1071_p0 = scmp.ge.s32.totalorder %s1070_s11, %s1991_s29  ;;  %p1061_p1 = scmp.ge.s32.totalorder %s1062_s9, %s1991_s29 }
 0x15a   : >> { %s2027_s11 = smov (%p1071_p0, %s1070_s11), 0  ;;  %1064 = sbr.rel (!%p1061_p1) target bundleno = 343 (0x157), region = 133 }
 0x15b   : >> { %s1371_s10 = sshll.u32 %s2027_s11, 3  ;;  %s1592_s8 = smov %s2027_s11  }
 0x15c   : >> { %s1075_s7 = scalar_lea.vmem %s1056_s4, %s1371_s10 [#allocation2]   ;;  %s1076_s6 = scalar_lea.vmem %s1058_s5, %s1371_s10  }
 0x15f PF: > { %p10_p2 = scmp.ge.s32.totalorder %s1634_s16, 6   ;;  %s2019_s12 = smov %s1561_s13 }
 0x160   : > { %s2020_s13 = smov %s1642_s19  ;;  %s2021_s14 = smov %s1634_s16 }
 0x161   :  { %12 = sbr.rel (!%p10_p2) target bundleno = 2 (0x2), region = 144 }

// kernel: _forward_impl.12
= control target key start
LH: loop header
LB: loop body
LE: loop exit
PB: predicated region body
PF: predicated region fallthrough
CT: control target
= control target key end

     0   :  { %s3046_s1 = inlined_call_operand.vmem [shape: bf16[512,128], index: 1, kind: input, shape index: {}]   ;;  %s3047_s2 = inlined_call_operand.vmem [shape: f32[1,128], index: 2, kind: input, shape index: {}]   ;;  %s3048_s0 = inlined_call_operand.vmem [shape: bf16[392,512], index: 0, kind: input, shape index: {}]   ;;  %s3049_s3 = inlined_call_operand.vmem [shape: f32[392,128], index: 3, kind: output, shape index: {}]  }
   0x1   :  { %v2115_v0 = vld [vmem:[%s3046_s1 + $0x38] sm:$0xff]  ;;  %v2114_v4 = vld [vmem:[%s3046_s1 + $0x30] sm:$0xff]  ;;  %v2113_v8 = vld [vmem:[%s3046_s1 + $0x28] sm:$0xff] }
   0x2   :  { %v2123_v1 = vld [vmem:[%s3046_s1 + $0x78] sm:$0xff]  ;;  %866 = vmatpush.bf16.msra.mxu0 %v2115_v0  ;;  %v2122_v5 = vld [vmem:[%s3046_s1 + $0x70] sm:$0xff]  ;;  %v2121_v9 = vld [vmem:[%s3046_s1 + $0x68] sm:$0xff] }
   0x3   :  { %v2131_v2 = vld [vmem:[%s3046_s1 + $0xb8] sm:$0xff]  ;;  %999 = vmatpush.bf16.msra.mxu1 %v2123_v1  ;;  %v2130_v6 = vld [vmem:[%s3046_s1 + $0xb0] sm:$0xff]  ;;  %v2129_v10 = vld [vmem:[%s3046_s1 + $0xa8] sm:$0xff] }
   0x4   :  { %v2139_v3 = vld [vmem:[%s3046_s1 + $0xf8] sm:$0xff]  ;;  %1132 = vmatpush.bf16.msra.mxu2 %v2131_v2  ;;  %v2138_v7 = vld [vmem:[%s3046_s1 + $0xf0] sm:$0xff]  ;;  %v2137_v11 = vld [vmem:[%s3046_s1 + $0xe8] sm:$0xff] }
   0x5   :  { %1265 = vmatpush.bf16.msra.mxu3 %v2139_v3  ;;  %v2112_v12 = vld [vmem:[%s3046_s1 + $0x20] sm:$0xff]  ;;  %v2111_v16 = vld [vmem:[%s3046_s1 + $0x18] sm:$0xff]  ;;  %v2110_v20 = vld [vmem:[%s3046_s1 + $0x10] sm:$0xff] }
   0x6   :  { %867 = vmatpush.bf16.msra.mxu0 %v2114_v4  ;;  %v2120_v13 = vld [vmem:[%s3046_s1 + $0x60] sm:$0xff]  ;;  %v2119_v17 = vld [vmem:[%s3046_s1 + $0x58] sm:$0xff]  ;;  %v2118_v21 = vld [vmem:[%s3046_s1 + $0x50] sm:$0xff] }
   0x7   :  { %1000 = vmatpush.bf16.msra.mxu1 %v2122_v5  ;;  %v2128_v14 = vld [vmem:[%s3046_s1 + $0xa0] sm:$0xff]  ;;  %v2127_v18 = vld [vmem:[%s3046_s1 + $0x98] sm:$0xff]  ;;  %v2126_v22 = vld [vmem:[%s3046_s1 + $0x90] sm:$0xff] }
   0x8   :  { %1133 = vmatpush.bf16.msra.mxu2 %v2130_v6  ;;  %v2136_v15 = vld [vmem:[%s3046_s1 + $0xe0] sm:$0xff]  ;;  %v2135_v19 = vld [vmem:[%s3046_s1 + $0xd8] sm:$0xff]  ;;  %v2134_v23 = vld [vmem:[%s3046_s1 + $0xd0] sm:$0xff] }
   0x9   :  { %1266 = vmatpush.bf16.msra.mxu3 %v2138_v7  ;;  %v2109_v24 = vld [vmem:[%s3046_s1 + $0x8] sm:$0xff]  ;;  %v2108_v28 = vld [vmem:[%s3046_s1] sm:$0xff]  ;;  %v2014_v33 = vld [vmem:[%s3048_s0 + $0xc] sm:$0xf0] }
   0xa   :  { %868 = vmatpush.bf16.msra.mxu0 %v2113_v8  ;;  %v2117_v25 = vld [vmem:[%s3046_s1 + $0x48] sm:$0xff]  ;;  %v2116_v29 = vld [vmem:[%s3046_s1 + $0x40] sm:$0xff]  ;;  %v1504_v35 = vld [vmem:[%s3048_s0 + $0x10] sm:$0xf0] }
   0xb   :  { %1001 = vmatpush.bf16.msra.mxu1 %v2121_v9  ;;  %v2125_v26 = vld [vmem:[%s3046_s1 + $0x88] sm:$0xff]  ;;  %v2124_v30 = vld [vmem:[%s3046_s1 + $0x80] sm:$0xff]  ;;  %v2015_v37 = vld [vmem:[%s3048_s0 + $0x14] sm:$0xf0] }
   0xc   :  { %1134 = vmatpush.bf16.msra.mxu2 %v2129_v10  ;;  %v2133_v27 = vld [vmem:[%s3046_s1 + $0xc8] sm:$0xff]  ;;  %v2132_v31 = vld [vmem:[%s3046_s1 + $0xc0] sm:$0xff]  ;;  %v1512_v39 = vld [vmem:[%s3048_s0 + $0x18] sm:$0xf0] }
   0xd   :  { %1267 = vmatpush.bf16.msra.mxu3 %v2137_v11  ;;  %v1502_v32 = vld [vmem:[%s3048_s0] sm:$0xf]  ;;  %v2012_v34 = vld [vmem:[%s3048_s0 + $0x4] sm:$0xf]  ;;  %v1510_v36 = vld [vmem:[%s3048_s0 + $0x8] sm:$0xf] }
   0xe   :  { %869 = vmatpush.bf16.msra.mxu0 %v2112_v12  ;;  %v2013_v38 = vld [vmem:[%s3048_s0 + $0xc] sm:$0xf]  ;;  %v1503_v40 = vor.u32 %v2014_v33, %v1502_v32  ;;  %v1507_v41 = vor.u32 %v2012_v34, %v1504_v35  ;;  %v1511_v42 = vor.u32 %v2015_v37, %v1510_v36  ;;  %v1518_v44 = vld [vmem:[%s3048_s0 + $0x20] sm:$0xf]  ;;  %v2018_v45 = vld [vmem:[%s3048_s0 + $0x2c] sm:$0xf0] }
   0xf   :  { %1002 = vmatpush.bf16.msra.mxu1 %v2120_v13  ;;  %v1515_v43 = vor.u32 %v2013_v38, %v1512_v39  ;;  %v2016_v46 = vld [vmem:[%s3048_s0 + $0x24] sm:$0xf]  ;;  %v1520_v47 = vld [vmem:[%s3048_s0 + $0x30] sm:$0xf0]  ;;  %v1526_v48 = vld [vmem:[%s3048_s0 + $0x28] sm:$0xf]  ;;  %v1519_v52 = vor.u32 %v2018_v45, %v1518_v44 }
  0x10   :  { %1135 = vmatpush.bf16.msra.mxu2 %v2128_v14  ;;  %v2019_v49 = vld [vmem:[%s3048_s0 + $0x34] sm:$0xf0]  ;;  %v2017_v50 = vld [vmem:[%s3048_s0 + $0x2c] sm:$0xf]  ;;  %v1528_v51 = vld [vmem:[%s3048_s0 + $0x38] sm:$0xf0]  ;;  %v1523_v53 = vor.u32 %v2016_v46, %v1520_v47 }
  0x11   :  { %1268 = vmatpush.bf16.msra.mxu3 %v2136_v15  ;;  %v1527_v54 = vor.u32 %v2019_v49, %v1526_v48  ;;  %v1531_v55 = vor.u32 %v2017_v50, %v1528_v51  ;;  %v1534_v56 = vld [vmem:[%s3048_s0 + $0x40] sm:$0xf]  ;;  %v2022_v57 = vld [vmem:[%s3048_s0 + $0x4c] sm:$0xf0]  ;;  %v2020_v58 = vld [vmem:[%s3048_s0 + $0x44] sm:$0xf] }
  0x12   :  { %870 = vmatpush.bf16.msra.mxu0 %v2111_v16  ;;  %v1536_v59 = vld [vmem:[%s3048_s0 + $0x50] sm:$0xf0]  ;;  %v1542_v60 = vld [vmem:[%s3048_s0 + $0x48] sm:$0xf]  ;;  %v2023_v61 = vld [vmem:[%s3048_s0 + $0x54] sm:$0xf0]  ;;  %v1535_v0 = vor.u32 %v2022_v57, %v1534_v56 }
  0x13   :  { %1003 = vmatpush.bf16.msra.mxu1 %v2119_v17  ;;  %v2021_v62 = vld [vmem:[%s3048_s0 + $0x4c] sm:$0xf]  ;;  %v1544_v63 = vld [vmem:[%s3048_s0 + $0x58] sm:$0xf0]  ;;  %v1539_v1 = vor.u32 %v2020_v58, %v1536_v59  ;;  %v1543_v2 = vor.u32 %v2023_v61, %v1542_v60  ;;  %v1550_v4 = vld [vmem:[%s3048_s0 + $0x60] sm:$0xf] }
  0x14   :  { %1136 = vmatpush.bf16.msra.mxu2 %v2127_v18  ;;  %v1547_v3 = vor.u32 %v2021_v62, %v1544_v63  ;;  %v2026_v5 = vld [vmem:[%s3048_s0 + $0x6c] sm:$0xf0]  ;;  %v2024_v6 = vld [vmem:[%s3048_s0 + $0x64] sm:$0xf]  ;;  %v1552_v7 = vld [vmem:[%s3048_s0 + $0x70] sm:$0xf0] }
  0x15   :  { %1269 = vmatpush.bf16.msra.mxu3 %v2135_v19  ;;  %v1558_v8 = vld [vmem:[%s3048_s0 + $0x68] sm:$0xf]  ;;  %v2027_v9 = vld [vmem:[%s3048_s0 + $0x74] sm:$0xf0]  ;;  %v2025_v10 = vld [vmem:[%s3048_s0 + $0x6c] sm:$0xf]  ;;  %v1551_v12 = vor.u32 %v2026_v5, %v1550_v4  ;;  %v1555_v13 = vor.u32 %v2024_v6, %v1552_v7 }
  0x16   :  { %871 = vmatpush.bf16.msra.mxu0 %v2110_v20  ;;  %v1560_v11 = vld [vmem:[%s3048_s0 + $0x78] sm:$0xf0]  ;;  %v1559_v14 = vor.u32 %v2027_v9, %v1558_v8  ;;  %v1566_v16 = vld [vmem:[%s3048_s0 + $0x80] sm:$0xf]  ;;  %v2030_v17 = vld [vmem:[%s3048_s0 + $0x8c] sm:$0xf0] }
  0x17   :  { %1004 = vmatpush.bf16.msra.mxu1 %v2118_v21  ;;  %v1563_v15 = vor.u32 %v2025_v10, %v1560_v11  ;;  %v2028_v18 = vld [vmem:[%s3048_s0 + $0x84] sm:$0xf]  ;;  %v1568_v19 = vld [vmem:[%s3048_s0 + $0x90] sm:$0xf0]  ;;  %v1574_v20 = vld [vmem:[%s3048_s0 + $0x88] sm:$0xf] }
  0x18   :  { %1137 = vmatpush.bf16.msra.mxu2 %v2126_v22  ;;  %v2031_v21 = vld [vmem:[%s3048_s0 + $0x94] sm:$0xf0]  ;;  %v2029_v22 = vld [vmem:[%s3048_s0 + $0x8c] sm:$0xf]  ;;  %v1590_v32 = vld [vmem:[%s3048_s0 + $0xa8] sm:$0xf] }
  0x19   :  { %1270 = vmatpush.bf16.msra.mxu3 %v2134_v23  ;;  %v1576_v23 = vld [vmem:[%s3048_s0 + $0x98] sm:$0xf0]  ;;  %v2035_v33 = vld [vmem:[%s3048_s0 + $0xb4] sm:$0xf0]  ;;  %v2033_v34 = vld [vmem:[%s3048_s0 + $0xac] sm:$0xf] }
  0x1a   :  { %872 = vmatpush.bf16.msra.mxu0 %v2109_v24  ;;  %v1567_v24 = vor.u32 %v2030_v17, %v1566_v16  ;;  %v1592_v35 = vld [vmem:[%s3048_s0 + $0xb8] sm:$0xf0]  ;;  %v1591_v38 = vor.u32 %v2035_v33, %v1590_v32  ;;  %v1606_v44 = vld [vmem:[%s3048_s0 + $0xc8] sm:$0xf]  ;;  %v2039_v45 = vld [vmem:[%s3048_s0 + $0xd4] sm:$0xf0] }
  0x1b   :  { %1005 = vmatpush.bf16.msra.mxu1 %v2117_v25  ;;  %v1571_v25 = vor.u32 %v2028_v18, %v1568_v19  ;;  %v1595_v39 = vor.u32 %v2033_v34, %v1592_v35  ;;  %v2037_v46 = vld [vmem:[%s3048_s0 + $0xcc] sm:$0xf]  ;;  %v1608_v47 = vld [vmem:[%s3048_s0 + $0xd8] sm:$0xf0]  ;;  %v1607_v50 = vor.u32 %v2039_v45, %v1606_v44  ;;  %v1622_v56 = vld [vmem:[%s3048_s0 + $0xe8] sm:$0xf] }
  0x1c   :  { %1138 = vmatpush.bf16.msra.mxu2 %v2125_v26  ;;  %v1575_v26 = vor.u32 %v2031_v21, %v1574_v20  ;;  %v1611_v51 = vor.u32 %v2037_v46, %v1608_v47  ;;  %v2043_v57 = vld [vmem:[%s3048_s0 + $0xf4] sm:$0xf0]  ;;  %v2041_v58 = vld [vmem:[%s3048_s0 + $0xec] sm:$0xf]  ;;  %v1624_v59 = vld [vmem:[%s3048_s0 + $0xf8] sm:$0xf0] }
  0x1d   :  { %1271 = vmatpush.bf16.msra.mxu3 %v2133_v27  ;;  %v1579_v27 = vor.u32 %v2029_v22, %v1576_v23  ;;  %v1623_v62 = vor.u32 %v2043_v57, %v1622_v56  ;;  %v1627_v63 = vor.u32 %v2041_v58, %v1624_v59  ;;  %v1632_v4 = vld [vmem:[%s3048_s0 + $0x110] sm:$0xf0]  ;;  %v1638_v5 = vld [vmem:[%s3048_s0 + $0x108] sm:$0xf]  ;;  %v2047_v6 = vld [vmem:[%s3048_s0 + $0x114] sm:$0xf0] }
  0x1e   :  { %873 = vmatpush.bf16.msra.mxu0 %v2108_v28  ;;  %v1582_v28 = vld [vmem:[%s3048_s0 + $0xa0] sm:$0xf]  ;;  %v2045_v7 = vld [vmem:[%s3048_s0 + $0x10c] sm:$0xf]  ;;  %v1640_v8 = vld [vmem:[%s3048_s0 + $0x118] sm:$0xf0] }
  0x1f   :  { %1006 = vmatpush.bf16.msra.mxu1 %v2116_v29  ;;  %v2034_v29 = vld [vmem:[%s3048_s0 + $0xac] sm:$0xf0]  ;;  %v1656_v32 = vld [vmem:[%s3048_s0 + $0x138] sm:$0xf0]  ;;  %v2052_v56 = vld [vmem:[%s3048_s0 + $0x144] sm:$0xf] }
  0x20   :  { %1139 = vmatpush.bf16.msra.mxu2 %v2124_v30  ;;  %v2032_v30 = vld [vmem:[%s3048_s0 + $0xa4] sm:$0xf]  ;;  %v1583_v36 = vor.u32 %v2034_v29, %v1582_v28  ;;  %v1648_v28 = vld [vmem:[%s3048_s0 + $0x130] sm:$0xf0]  ;;  %v1654_v29 = vld [vmem:[%s3048_s0 + $0x128] sm:$0xf] }
  0x21   :  { %1272 = vmatpush.bf16.msra.mxu3 %v2132_v31  ;;  %874 = vmatmul.bf16.vlgmr.msra.gmra.mxu0 %v1503_v40  ;;  %v1584_v31 = vld [vmem:[%s3048_s0 + $0xb0] sm:$0xf0]  ;;  %v1598_v40 = vld [vmem:[%s3048_s0 + $0xc0] sm:$0xf]  ;;  %v1670_v59 = vld [vmem:[%s3048_s0 + $0x148] sm:$0xf] }
  0x22   :  { %1007 = vmatmul.bf16.vlgmr.msra.gmra.mxu1 %v1507_v41  ;;  %v1587_v37 = vor.u32 %v2032_v30, %v1584_v31  ;;  %v2038_v41 = vld [vmem:[%s3048_s0 + $0xcc] sm:$0xf0]  ;;  %v2051_v30 = vld [vmem:[%s3048_s0 + $0x134] sm:$0xf0]  ;;  %v2049_v31 = vld [vmem:[%s3048_s0 + $0x12c] sm:$0xf] }
  0x23   :  { %1140 = vmatmul.bf16.vlgmr.msra.gmra.mxu2 %v1511_v42  ;;  %v2036_v42 = vld [vmem:[%s3048_s0 + $0xc4] sm:$0xf]  ;;  %v1599_v48 = vor.u32 %v2038_v41, %v1598_v40  ;;  %v1655_v41 = vor.u32 %v2051_v30, %v1654_v29  ;;  %v1664_v58 = vld [vmem:[%s3048_s0 + $0x150] sm:$0xf0]  ;;  %v1688_v29 = vld [vmem:[%s3048_s0 + $0x178] sm:$0xf0] }
  0x24   :  { %1273 = vmatmul.bf16.vlgmr.msra.gmra.mxu3 %v1515_v43  ;;  %v1600_v43 = vld [vmem:[%s3048_s0 + $0xd0] sm:$0xf0] }
  0x25   :  { %v1603_v49 = vor.u32 %v2036_v42, %v1600_v43  ;;  %v1659_v42 = vor.u32 %v2049_v31, %v1656_v32 }
  0x31   :  { %879 = vmatmul.bf16.gmra.mxu0 %v1519_v52  ;;  %v1614_v52 = vld [vmem:[%s3048_s0 + $0xe0] sm:$0xf] }
  0x32   :  { %1012 = vmatmul.bf16.gmra.mxu1 %v1523_v53  ;;  %v2042_v53 = vld [vmem:[%s3048_s0 + $0xec] sm:$0xf0] }
  0x33   :  { %1145 = vmatmul.bf16.gmra.mxu2 %v1527_v54  ;;  %v2040_v54 = vld [vmem:[%s3048_s0 + $0xe4] sm:$0xf]  ;;  %v1615_v60 = vor.u32 %v2042_v53, %v1614_v52 }
  0x34   :  { %1278 = vmatmul.bf16.gmra.mxu3 %v1531_v55  ;;  %v1616_v55 = vld [vmem:[%s3048_s0 + $0xf0] sm:$0xf0] }
  0x35   :  { %v1619_v61 = vor.u32 %v2040_v54, %v1616_v55  ;;  %v1662_v54 = vld [vmem:[%s3048_s0 + $0x140] sm:$0xf]  ;;  %v2054_v55 = vld [vmem:[%s3048_s0 + $0x14c] sm:$0xf0] }
  0x41   :  { %884 = vmatmul.bf16.gmra.mxu0 %v1535_v0  ;;  %v2453_v0 = vld [vmem:[%s3047_s2] ss:$0 sm:$0xff] }
  0x42   :  { %1017 = vmatmul.bf16.gmra.mxu1 %v1539_v1  ;;  %v1630_v1 = vld [vmem:[%s3048_s0 + $0x100] sm:$0xf] }
  0x43   :  { %1150 = vmatmul.bf16.gmra.mxu2 %v1543_v2  ;;  %v2046_v2 = vld [vmem:[%s3048_s0 + $0x10c] sm:$0xf0] }
  0x44   :  { %1283 = vmatmul.bf16.gmra.mxu3 %v1547_v3  ;;  %v2044_v3 = vld [vmem:[%s3048_s0 + $0x104] sm:$0xf]  ;;  %v1631_v9 = vor.u32 %v2046_v2, %v1630_v1 }
  0x45   :  { %v1635_v10 = vor.u32 %v2044_v3, %v1632_v4  ;;  %v1663_v3 = vor.u32 %v2054_v55, %v1662_v54  ;;  %v1667_v4 = vor.u32 %v2052_v56, %v1664_v58  ;;  %v1696_v55 = vld [vmem:[%s3048_s0 + $0x190] sm:$0xf0]  ;;  %v1702_v56 = vld [vmem:[%s3048_s0 + $0x188] sm:$0xf]  ;;  %v2061_v58 = vld [vmem:[%s3048_s0 + $0x18c] sm:$0xf] }
  0x51   :  { %889 = vmatmul.bf16.gmra.mxu0 %v1551_v12 }
  0x52   :  { %1022 = vmatmul.bf16.gmra.mxu1 %v1555_v13  ;;  %v1639_v13 = vor.u32 %v2047_v6, %v1638_v5 }
  0x53   :  { %1155 = vmatmul.bf16.gmra.mxu2 %v1559_v14  ;;  %v1643_v14 = vor.u32 %v2045_v7, %v1640_v8 }
  0x54   :  { %1288 = vmatmul.bf16.gmra.mxu3 %v1563_v15 }
  0x61   :  { %894 = vmatmul.bf16.gmra.mxu0 %v1567_v24  ;;  %v1646_v24 = vld [vmem:[%s3048_s0 + $0x120] sm:$0xf] }
  0x62   :  { %1027 = vmatmul.bf16.gmra.mxu1 %v1571_v25  ;;  %v2050_v25 = vld [vmem:[%s3048_s0 + $0x12c] sm:$0xf0] }
  0x63   :  { %1160 = vmatmul.bf16.gmra.mxu2 %v1575_v26  ;;  %v2048_v26 = vld [vmem:[%s3048_s0 + $0x124] sm:$0xf] }
  0x64   :  { %1293 = vmatmul.bf16.gmra.mxu3 %v1579_v27 }
  0x71   :  { %899 = vmatmul.bf16.gmra.mxu0 %v1583_v36  ;;  %v1647_v36 = vor.u32 %v2050_v25, %v1646_v24  ;;  %v1680_v25 = vld [vmem:[%s3048_s0 + $0x170] sm:$0xf0] }
  0x72   :  { %1032 = vmatmul.bf16.gmra.mxu1 %v1587_v37  ;;  %v1651_v37 = vor.u32 %v2048_v26, %v1648_v28  ;;  %v1686_v26 = vld [vmem:[%s3048_s0 + $0x168] sm:$0xf]  ;;  %v2057_v28 = vld [vmem:[%s3048_s0 + $0x16c] sm:$0xf] }
  0x73   :  { %1165 = vmatmul.bf16.gmra.mxu2 %v1591_v38 }
  0x74   :  { %1298 = vmatmul.bf16.gmra.mxu3 %v1595_v39 }
  0x81   :  { %904 = vmatmul.bf16.gmra.mxu0 %v1599_v48 }
  0x82   :  { %1037 = vmatmul.bf16.gmra.mxu1 %v1603_v49 }
  0x83   :  { %1170 = vmatmul.bf16.gmra.mxu2 %v1607_v50 }
  0x84   :  { %1303 = vmatmul.bf16.gmra.mxu3 %v1611_v51 }
  0x91   :  { %909 = vmatmul.bf16.gmra.mxu0 %v1615_v60  ;;  %v2055_v60 = vld [vmem:[%s3048_s0 + $0x154] sm:$0xf0] }
  0x92   :  { %1042 = vmatmul.bf16.gmra.mxu1 %v1619_v61  ;;  %v2053_v61 = vld [vmem:[%s3048_s0 + $0x14c] sm:$0xf]  ;;  %v1671_v8 = vor.u32 %v2055_v60, %v1670_v59  ;;  %v1704_v59 = vld [vmem:[%s3048_s0 + $0x198] sm:$0xf0] }
  0x93   :  { %1175 = vmatmul.bf16.gmra.mxu2 %v1623_v62  ;;  %v1672_v62 = vld [vmem:[%s3048_s0 + $0x158] sm:$0xf0] }
  0x94   :  { %1308 = vmatmul.bf16.gmra.mxu3 %v1627_v63 }
  0x9e   :  { %v875_v11 = vpop.f32.mrf.mxu0 }
  0x9f   :  { %v1008_v12 = vpop.f32.mrf.mxu1  ;;  %v876_v15 = vadd.f32 %v2453_v0, %v875_v11 }
  0xa1   :  { %914 = vmatmul.bf16.gmra.mxu0 %v1631_v9  ;;  %v1009_v16 = vadd.f32 %v1008_v12, %v876_v15  ;;  %v1675_v9 = vor.u32 %v2053_v61, %v1672_v62 }
  0xa2   :  { %1047 = vmatmul.bf16.gmra.mxu1 %v1635_v10 }
  0xa3   :  { %1180 = vmatmul.bf16.gmra.mxu2 %v1639_v13 }
  0xa4   :  { %1313 = vmatmul.bf16.gmra.mxu3 %v1643_v14 }
  0xa6   :  { %v1141_v17 = vpop.f32.mrf.mxu2  ;;  %v877_v20 = vpop.f32.mrf.mxu0 }
  0xa7   :  { %v1274_v18 = vpop.f32.mrf.mxu3  ;;  %v1142_v19 = vadd.f32 %v1141_v17, %v1009_v16  ;;  %v1010_v21 = vpop.f32.mrf.mxu1  ;;  %v878_v23 = vadd.f32 %v2453_v0, %v877_v20 }
  0xa9   :  { %v1275_v22 = vadd.f32 %v1274_v18, %v1142_v19  ;;  %v1011_v33 = vadd.f32 %v1010_v21, %v878_v23  ;;  %v1678_v21 = vld [vmem:[%s3048_s0 + $0x160] sm:$0xf]  ;;  %v2056_v23 = vld [vmem:[%s3048_s0 + $0x164] sm:$0xf] }
  0xab   :  { %v1398_v27 = vmax.f32 %v1275_v22, 0.0  ;;  %v2058_v22 = vld [vmem:[%s3048_s0 + $0x16c] sm:$0xf0] }
  0xad   :  { %1447 = vst [vmem:[%s3049_s3] sm:$0xff] %v1398_v27  ;;  %v2059_v27 = vld [vmem:[%s3048_s0 + $0x174] sm:$0xf0] }
  0xae   :  { %v1143_v34 = vpop.f32.mrf.mxu2  ;;  %v880_v39 = vpop.f32.mrf.mxu0 }
  0xaf   :  { %v1276_v35 = vpop.f32.mrf.mxu3  ;;  %v1144_v38 = vadd.f32 %v1143_v34, %v1011_v33  ;;  %v1013_v40 = vpop.f32.mrf.mxu1  ;;  %v881_v43 = vadd.f32 %v2453_v0, %v880_v39  ;;  %v1679_v33 = vor.u32 %v2058_v22, %v1678_v21  ;;  %v1683_v34 = vor.u32 %v2056_v23, %v1680_v25  ;;  %v1712_v22 = vld [vmem:[%s3048_s0 + $0x1b0] sm:$0xf0]  ;;  %v1718_v23 = vld [vmem:[%s3048_s0 + $0x1a8] sm:$0xf]  ;;  %v2065_v25 = vld [vmem:[%s3048_s0 + $0x1ac] sm:$0xf] }
  0xb0   :  { %v1691_v39 = vor.u32 %v2057_v28, %v1688_v29 }
  0xb1   :  { %v1277_v44 = vadd.f32 %v1276_v35, %v1144_v38  ;;  %919 = vmatmul.bf16.gmra.mxu0 %v1647_v36  ;;  %v1014_v46 = vadd.f32 %v1013_v40, %v881_v43  ;;  %v1687_v38 = vor.u32 %v2059_v27, %v1686_v26  ;;  %v1720_v26 = vld [vmem:[%s3048_s0 + $0x1b8] sm:$0xf0] }
  0xb2   :  { %1052 = vmatmul.bf16.gmra.mxu1 %v1651_v37 }
  0xb3   :  { %v1399_v45 = vmax.f32 %v1277_v44, 0.0  ;;  %1185 = vmatmul.bf16.gmra.mxu2 %v1655_v41 }
  0xb4   :  { %1318 = vmatmul.bf16.gmra.mxu3 %v1659_v42 }
  0xb5   :  { %1448 = vst [vmem:[%s3049_s3 + $0x8] sm:$0xff] %v1399_v45 }
  0xb6   :  { %v1146_v47 = vpop.f32.mrf.mxu2  ;;  %v882_v50 = vpop.f32.mrf.mxu0 }
  0xb7   :  { %v1279_v48 = vpop.f32.mrf.mxu3  ;;  %v1147_v49 = vadd.f32 %v1146_v47, %v1014_v46  ;;  %v1015_v51 = vpop.f32.mrf.mxu1  ;;  %v883_v53 = vadd.f32 %v2453_v0, %v882_v50 }
  0xb9   :  { %v1280_v52 = vadd.f32 %v1279_v48, %v1147_v49  ;;  %v1016_v63 = vadd.f32 %v1015_v51, %v883_v53  ;;  %v1694_v51 = vld [vmem:[%s3048_s0 + $0x180] sm:$0xf]  ;;  %v2060_v53 = vld [vmem:[%s3048_s0 + $0x184] sm:$0xf] }
  0xbb   :  { %v1400_v57 = vmax.f32 %v1280_v52, 0.0  ;;  %v2062_v52 = vld [vmem:[%s3048_s0 + $0x18c] sm:$0xf0] }
  0xbd   :  { %1449 = vst [vmem:[%s3049_s3 + $0x10] sm:$0xff] %v1400_v57  ;;  %v2063_v57 = vld [vmem:[%s3048_s0 + $0x194] sm:$0xf0] }
  0xbe   :  { %v1148_v1 = vpop.f32.mrf.mxu2  ;;  %v885_v6 = vpop.f32.mrf.mxu0 }
  0xbf   :  { %v1281_v2 = vpop.f32.mrf.mxu3  ;;  %v1149_v5 = vadd.f32 %v1148_v1, %v1016_v63  ;;  %v1018_v7 = vpop.f32.mrf.mxu1  ;;  %v886_v10 = vadd.f32 %v2453_v0, %v885_v6  ;;  %v1695_v63 = vor.u32 %v2062_v52, %v1694_v51  ;;  %v1699_v1 = vor.u32 %v2060_v53, %v1696_v55  ;;  %v1728_v52 = vld [vmem:[%s3048_s0 + $0x1d0] sm:$0xf0]  ;;  %v1734_v53 = vld [vmem:[%s3048_s0 + $0x1c8] sm:$0xf]  ;;  %v2069_v55 = vld [vmem:[%s3048_s0 + $0x1cc] sm:$0xf] }
  0xc0   :  { %v1707_v6 = vor.u32 %v2061_v58, %v1704_v59 }
  0xc1   :  { %v1282_v11 = vadd.f32 %v1281_v2, %v1149_v5  ;;  %924 = vmatmul.bf16.gmra.mxu0 %v1663_v3  ;;  %v1019_v13 = vadd.f32 %v1018_v7, %v886_v10  ;;  %v1703_v5 = vor.u32 %v2063_v57, %v1702_v56  ;;  %v1736_v56 = vld [vmem:[%s3048_s0 + $0x1d8] sm:$0xf0] }
  0xc2   :  { %1057 = vmatmul.bf16.gmra.mxu1 %v1667_v4 }
  0xc3   :  { %v1401_v12 = vmax.f32 %v1282_v11, 0.0  ;;  %1190 = vmatmul.bf16.gmra.mxu2 %v1671_v8 }
  0xc4   :  { %1323 = vmatmul.bf16.gmra.mxu3 %v1675_v9 }
  0xc5   :  { %1450 = vst [vmem:[%s3049_s3 + $0x18] sm:$0xff] %v1401_v12 }
  0xc6   :  { %v1151_v14 = vpop.f32.mrf.mxu2  ;;  %v887_v17 = vpop.f32.mrf.mxu0 }
  0xc7   :  { %v1284_v15 = vpop.f32.mrf.mxu3  ;;  %v1152_v16 = vadd.f32 %v1151_v14, %v1019_v13  ;;  %v1020_v18 = vpop.f32.mrf.mxu1  ;;  %v888_v20 = vadd.f32 %v2453_v0, %v887_v17 }
  0xc9   :  { %v1285_v19 = vadd.f32 %v1284_v15, %v1152_v16  ;;  %v1021_v30 = vadd.f32 %v1020_v18, %v888_v20  ;;  %v1710_v18 = vld [vmem:[%s3048_s0 + $0x1a0] sm:$0xf]  ;;  %v2064_v20 = vld [vmem:[%s3048_s0 + $0x1a4] sm:$0xf] }
  0xcb   :  { %v1402_v24 = vmax.f32 %v1285_v19, 0.0  ;;  %v2066_v19 = vld [vmem:[%s3048_s0 + $0x1ac] sm:$0xf0] }
  0xcd   :  { %1451 = vst [vmem:[%s3049_s3 + $0x20] sm:$0xff] %v1402_v24  ;;  %v2067_v24 = vld [vmem:[%s3048_s0 + $0x1b4] sm:$0xf0] }
  0xce   :  { %v1153_v31 = vpop.f32.mrf.mxu2  ;;  %v890_v36 = vpop.f32.mrf.mxu0 }
  0xcf   :  { %v1286_v32 = vpop.f32.mrf.mxu3  ;;  %v1154_v35 = vadd.f32 %v1153_v31, %v1021_v30  ;;  %v1023_v37 = vpop.f32.mrf.mxu1  ;;  %v891_v40 = vadd.f32 %v2453_v0, %v890_v36  ;;  %v1711_v30 = vor.u32 %v2066_v19, %v1710_v18  ;;  %v1715_v31 = vor.u32 %v2064_v20, %v1712_v22  ;;  %v1744_v19 = vld [vmem:[%s3048_s0 + $0x1f0] sm:$0xf0]  ;;  %v1750_v20 = vld [vmem:[%s3048_s0 + $0x1e8] sm:$0xf]  ;;  %v2073_v22 = vld [vmem:[%s3048_s0 + $0x1ec] sm:$0xf] }
  0xd0   :  { %v1723_v36 = vor.u32 %v2065_v25, %v1720_v26 }
  0xd1   :  { %v1287_v41 = vadd.f32 %v1286_v32, %v1154_v35  ;;  %929 = vmatmul.bf16.gmra.mxu0 %v1679_v33  ;;  %v1024_v43 = vadd.f32 %v1023_v37, %v891_v40  ;;  %v1719_v35 = vor.u32 %v2067_v24, %v1718_v23  ;;  %v1752_v23 = vld [vmem:[%s3048_s0 + $0x1f8] sm:$0xf0] }
  0xd2   :  { %1062 = vmatmul.bf16.gmra.mxu1 %v1683_v34 }
  0xd3   :  { %v1403_v42 = vmax.f32 %v1287_v41, 0.0  ;;  %1195 = vmatmul.bf16.gmra.mxu2 %v1687_v38 }
  0xd4   :  { %1328 = vmatmul.bf16.gmra.mxu3 %v1691_v39 }
  0xd5   :  { %1452 = vst [vmem:[%s3049_s3 + $0x28] sm:$0xff] %v1403_v42 }
  0xd6   :  { %v1156_v44 = vpop.f32.mrf.mxu2  ;;  %v892_v47 = vpop.f32.mrf.mxu0 }
  0xd7   :  { %v1289_v45 = vpop.f32.mrf.mxu3  ;;  %v1157_v46 = vadd.f32 %v1156_v44, %v1024_v43  ;;  %v1025_v48 = vpop.f32.mrf.mxu1  ;;  %v893_v50 = vadd.f32 %v2453_v0, %v892_v47 }
  0xd9   :  { %v1290_v49 = vadd.f32 %v1289_v45, %v1157_v46  ;;  %v1026_v60 = vadd.f32 %v1025_v48, %v893_v50  ;;  %v1726_v48 = vld [vmem:[%s3048_s0 + $0x1c0] sm:$0xf]  ;;  %v2068_v50 = vld [vmem:[%s3048_s0 + $0x1c4] sm:$0xf] }
  0xdb   :  { %v1404_v54 = vmax.f32 %v1290_v49, 0.0  ;;  %v2070_v49 = vld [vmem:[%s3048_s0 + $0x1cc] sm:$0xf0] }
  0xdd   :  { %1453 = vst [vmem:[%s3049_s3 + $0x30] sm:$0xff] %v1404_v54  ;;  %v2071_v54 = vld [vmem:[%s3048_s0 + $0x1d4] sm:$0xf0] }
  0xde   :  { %v1158_v61 = vpop.f32.mrf.mxu2  ;;  %v895_v3 = vpop.f32.mrf.mxu0 }
  0xdf   :  { %v1291_v62 = vpop.f32.mrf.mxu3  ;;  %v1159_v2 = vadd.f32 %v1158_v61, %v1026_v60  ;;  %v1028_v4 = vpop.f32.mrf.mxu1  ;;  %v896_v7 = vadd.f32 %v2453_v0, %v895_v3  ;;  %v1727_v60 = vor.u32 %v2070_v49, %v1726_v48  ;;  %v1731_v61 = vor.u32 %v2068_v50, %v1728_v52  ;;  %v1760_v49 = vld [vmem:[%s3048_s0 + $0x210] sm:$0xf0]  ;;  %v1766_v50 = vld [vmem:[%s3048_s0 + $0x208] sm:$0xf]  ;;  %v2077_v52 = vld [vmem:[%s3048_s0 + $0x20c] sm:$0xf] }
  0xe0   :  { %v1739_v3 = vor.u32 %v2069_v55, %v1736_v56 }
  0xe1   :  { %v1292_v8 = vadd.f32 %v1291_v62, %v1159_v2  ;;  %934 = vmatmul.bf16.gmra.mxu0 %v1695_v63  ;;  %v1029_v10 = vadd.f32 %v1028_v4, %v896_v7  ;;  %v1735_v2 = vor.u32 %v2071_v54, %v1734_v53  ;;  %v1768_v53 = vld [vmem:[%s3048_s0 + $0x218] sm:$0xf0] }
  0xe2   :  { %1067 = vmatmul.bf16.gmra.mxu1 %v1699_v1 }
  0xe3   :  { %v1405_v9 = vmax.f32 %v1292_v8, 0.0  ;;  %1200 = vmatmul.bf16.gmra.mxu2 %v1703_v5 }
  0xe4   :  { %1333 = vmatmul.bf16.gmra.mxu3 %v1707_v6 }
  0xe5   :  { %1454 = vst [vmem:[%s3049_s3 + $0x38] sm:$0xff] %v1405_v9 }
  0xe6   :  { %v1161_v11 = vpop.f32.mrf.mxu2  ;;  %v897_v14 = vpop.f32.mrf.mxu0 }
  0xe7   :  { %v1294_v12 = vpop.f32.mrf.mxu3  ;;  %v1162_v13 = vadd.f32 %v1161_v11, %v1029_v10  ;;  %v1030_v15 = vpop.f32.mrf.mxu1  ;;  %v898_v17 = vadd.f32 %v2453_v0, %v897_v14 }
  0xe9   :  { %v1295_v16 = vadd.f32 %v1294_v12, %v1162_v13  ;;  %v1031_v27 = vadd.f32 %v1030_v15, %v898_v17  ;;  %v1742_v15 = vld [vmem:[%s3048_s0 + $0x1e0] sm:$0xf]  ;;  %v2072_v17 = vld [vmem:[%s3048_s0 + $0x1e4] sm:$0xf] }
  0xeb   :  { %v1406_v21 = vmax.f32 %v1295_v16, 0.0  ;;  %v2074_v16 = vld [vmem:[%s3048_s0 + $0x1ec] sm:$0xf0] }
  0xed   :  { %1455 = vst [vmem:[%s3049_s3 + $0x40] sm:$0xff] %v1406_v21  ;;  %v2075_v21 = vld [vmem:[%s3048_s0 + $0x1f4] sm:$0xf0] }
  0xee   :  { %v1163_v28 = vpop.f32.mrf.mxu2  ;;  %v900_v33 = vpop.f32.mrf.mxu0 }
  0xef   :  { %v1296_v29 = vpop.f32.mrf.mxu3  ;;  %v1164_v32 = vadd.f32 %v1163_v28, %v1031_v27  ;;  %v1033_v34 = vpop.f32.mrf.mxu1  ;;  %v901_v37 = vadd.f32 %v2453_v0, %v900_v33  ;;  %v1743_v27 = vor.u32 %v2074_v16, %v1742_v15  ;;  %v1747_v28 = vor.u32 %v2072_v17, %v1744_v19  ;;  %v1776_v16 = vld [vmem:[%s3048_s0 + $0x230] sm:$0xf0]  ;;  %v1782_v17 = vld [vmem:[%s3048_s0 + $0x228] sm:$0xf]  ;;  %v2081_v19 = vld [vmem:[%s3048_s0 + $0x22c] sm:$0xf] }
  0xf0   :  { %v1755_v33 = vor.u32 %v2073_v22, %v1752_v23 }
  0xf1   :  { %v1297_v38 = vadd.f32 %v1296_v29, %v1164_v32  ;;  %939 = vmatmul.bf16.gmra.mxu0 %v1711_v30  ;;  %v1034_v40 = vadd.f32 %v1033_v34, %v901_v37  ;;  %v1751_v32 = vor.u32 %v2075_v21, %v1750_v20  ;;  %v1784_v20 = vld [vmem:[%s3048_s0 + $0x238] sm:$0xf0] }
  0xf2   :  { %1072 = vmatmul.bf16.gmra.mxu1 %v1715_v31 }
  0xf3   :  { %v1407_v39 = vmax.f32 %v1297_v38, 0.0  ;;  %1205 = vmatmul.bf16.gmra.mxu2 %v1719_v35 }
  0xf4   :  { %1338 = vmatmul.bf16.gmra.mxu3 %v1723_v36 }
  0xf5   :  { %1456 = vst [vmem:[%s3049_s3 + $0x48] sm:$0xff] %v1407_v39 }
  0xf6   :  { %v1166_v41 = vpop.f32.mrf.mxu2  ;;  %v902_v44 = vpop.f32.mrf.mxu0 }
  0xf7   :  { %v1299_v42 = vpop.f32.mrf.mxu3  ;;  %v1167_v43 = vadd.f32 %v1166_v41, %v1034_v40  ;;  %v1035_v45 = vpop.f32.mrf.mxu1  ;;  %v903_v47 = vadd.f32 %v2453_v0, %v902_v44 }
  0xf9   :  { %v1300_v46 = vadd.f32 %v1299_v42, %v1167_v43  ;;  %v1036_v57 = vadd.f32 %v1035_v45, %v903_v47  ;;  %v1758_v45 = vld [vmem:[%s3048_s0 + $0x200] sm:$0xf]  ;;  %v2076_v47 = vld [vmem:[%s3048_s0 + $0x204] sm:$0xf] }
  0xfb   :  { %v1408_v51 = vmax.f32 %v1300_v46, 0.0  ;;  %v2078_v46 = vld [vmem:[%s3048_s0 + $0x20c] sm:$0xf0] }
  0xfd   :  { %1457 = vst [vmem:[%s3049_s3 + $0x50] sm:$0xff] %v1408_v51  ;;  %v2079_v51 = vld [vmem:[%s3048_s0 + $0x214] sm:$0xf0] }
  0xfe   :  { %v1168_v58 = vpop.f32.mrf.mxu2  ;;  %v905_v63 = vpop.f32.mrf.mxu0 }
  0xff   :  { %v1301_v59 = vpop.f32.mrf.mxu3  ;;  %v1169_v62 = vadd.f32 %v1168_v58, %v1036_v57  ;;  %v1038_v1 = vpop.f32.mrf.mxu1  ;;  %v906_v4 = vadd.f32 %v2453_v0, %v905_v63  ;;  %v1759_v57 = vor.u32 %v2078_v46, %v1758_v45  ;;  %v1763_v58 = vor.u32 %v2076_v47, %v1760_v49  ;;  %v1792_v46 = vld [vmem:[%s3048_s0 + $0x250] sm:$0xf0]  ;;  %v1798_v47 = vld [vmem:[%s3048_s0 + $0x248] sm:$0xf]  ;;  %v2085_v49 = vld [vmem:[%s3048_s0 + $0x24c] sm:$0xf] }
 0x100   :  { %v1771_v63 = vor.u32 %v2077_v52, %v1768_v53 }
 0x101   :  { %v1302_v5 = vadd.f32 %v1301_v59, %v1169_v62  ;;  %944 = vmatmul.bf16.gmra.mxu0 %v1727_v60  ;;  %v1039_v7 = vadd.f32 %v1038_v1, %v906_v4  ;;  %v1767_v62 = vor.u32 %v2079_v51, %v1766_v50  ;;  %v1800_v50 = vld [vmem:[%s3048_s0 + $0x258] sm:$0xf0] }
 0x102   :  { %1077 = vmatmul.bf16.gmra.mxu1 %v1731_v61 }
 0x103   :  { %v1409_v6 = vmax.f32 %v1302_v5, 0.0  ;;  %1210 = vmatmul.bf16.gmra.mxu2 %v1735_v2 }
 0x104   :  { %1343 = vmatmul.bf16.gmra.mxu3 %v1739_v3 }
 0x105   :  { %1458 = vst [vmem:[%s3049_s3 + $0x58] sm:$0xff] %v1409_v6 }
 0x106   :  { %v1171_v8 = vpop.f32.mrf.mxu2  ;;  %v907_v11 = vpop.f32.mrf.mxu0 }
 0x107   :  { %v1304_v9 = vpop.f32.mrf.mxu3  ;;  %v1172_v10 = vadd.f32 %v1171_v8, %v1039_v7  ;;  %v1040_v12 = vpop.f32.mrf.mxu1  ;;  %v908_v14 = vadd.f32 %v2453_v0, %v907_v11 }
 0x109   :  { %v1305_v13 = vadd.f32 %v1304_v9, %v1172_v10  ;;  %v1041_v24 = vadd.f32 %v1040_v12, %v908_v14  ;;  %v1774_v12 = vld [vmem:[%s3048_s0 + $0x220] sm:$0xf]  ;;  %v2080_v14 = vld [vmem:[%s3048_s0 + $0x224] sm:$0xf] }
 0x10b   :  { %v1410_v18 = vmax.f32 %v1305_v13, 0.0  ;;  %v2082_v13 = vld [vmem:[%s3048_s0 + $0x22c] sm:$0xf0] }
 0x10d   :  { %1459 = vst [vmem:[%s3049_s3 + $0x60] sm:$0xff] %v1410_v18  ;;  %v2083_v18 = vld [vmem:[%s3048_s0 + $0x234] sm:$0xf0] }
 0x10e   :  { %v1173_v25 = vpop.f32.mrf.mxu2  ;;  %v910_v30 = vpop.f32.mrf.mxu0 }
 0x10f   :  { %v1306_v26 = vpop.f32.mrf.mxu3  ;;  %v1174_v29 = vadd.f32 %v1173_v25, %v1041_v24  ;;  %v1043_v31 = vpop.f32.mrf.mxu1  ;;  %v911_v34 = vadd.f32 %v2453_v0, %v910_v30  ;;  %v1775_v24 = vor.u32 %v2082_v13, %v1774_v12  ;;  %v1779_v25 = vor.u32 %v2080_v14, %v1776_v16  ;;  %v1808_v13 = vld [vmem:[%s3048_s0 + $0x270] sm:$0xf0]  ;;  %v1814_v14 = vld [vmem:[%s3048_s0 + $0x268] sm:$0xf]  ;;  %v2089_v16 = vld [vmem:[%s3048_s0 + $0x26c] sm:$0xf] }
 0x110   :  { %v1787_v30 = vor.u32 %v2081_v19, %v1784_v20 }
 0x111   :  { %v1307_v35 = vadd.f32 %v1306_v26, %v1174_v29  ;;  %949 = vmatmul.bf16.gmra.mxu0 %v1743_v27  ;;  %v1044_v37 = vadd.f32 %v1043_v31, %v911_v34  ;;  %v1783_v29 = vor.u32 %v2083_v18, %v1782_v17  ;;  %v1816_v17 = vld [vmem:[%s3048_s0 + $0x278] sm:$0xf0] }
 0x112   :  { %1082 = vmatmul.bf16.gmra.mxu1 %v1747_v28 }
 0x113   :  { %v1411_v36 = vmax.f32 %v1307_v35, 0.0  ;;  %1215 = vmatmul.bf16.gmra.mxu2 %v1751_v32 }
 0x114   :  { %1348 = vmatmul.bf16.gmra.mxu3 %v1755_v33 }
 0x115   :  { %1460 = vst [vmem:[%s3049_s3 + $0x68] sm:$0xff] %v1411_v36 }
 0x116   :  { %v1176_v38 = vpop.f32.mrf.mxu2  ;;  %v912_v41 = vpop.f32.mrf.mxu0 }
 0x117   :  { %v1309_v39 = vpop.f32.mrf.mxu3  ;;  %v1177_v40 = vadd.f32 %v1176_v38, %v1044_v37  ;;  %v1045_v42 = vpop.f32.mrf.mxu1  ;;  %v913_v44 = vadd.f32 %v2453_v0, %v912_v41 }
 0x119   :  { %v1310_v43 = vadd.f32 %v1309_v39, %v1177_v40  ;;  %v1046_v54 = vadd.f32 %v1045_v42, %v913_v44  ;;  %v1790_v42 = vld [vmem:[%s3048_s0 + $0x240] sm:$0xf]  ;;  %v2084_v44 = vld [vmem:[%s3048_s0 + $0x244] sm:$0xf] }
 0x11b   :  { %v1412_v48 = vmax.f32 %v1310_v43, 0.0  ;;  %v2086_v43 = vld [vmem:[%s3048_s0 + $0x24c] sm:$0xf0] }
 0x11d   :  { %1461 = vst [vmem:[%s3049_s3 + $0x70] sm:$0xff] %v1412_v48  ;;  %v2087_v48 = vld [vmem:[%s3048_s0 + $0x254] sm:$0xf0] }
 0x11e   :  { %v1178_v55 = vpop.f32.mrf.mxu2  ;;  %v915_v60 = vpop.f32.mrf.mxu0 }
 0x11f   :  { %v1311_v56 = vpop.f32.mrf.mxu3  ;;  %v1179_v59 = vadd.f32 %v1178_v55, %v1046_v54  ;;  %v1048_v61 = vpop.f32.mrf.mxu1  ;;  %v916_v1 = vadd.f32 %v2453_v0, %v915_v60  ;;  %v1791_v54 = vor.u32 %v2086_v43, %v1790_v42  ;;  %v1795_v55 = vor.u32 %v2084_v44, %v1792_v46  ;;  %v1824_v43 = vld [vmem:[%s3048_s0 + $0x290] sm:$0xf0]  ;;  %v1830_v44 = vld [vmem:[%s3048_s0 + $0x288] sm:$0xf]  ;;  %v2093_v46 = vld [vmem:[%s3048_s0 + $0x28c] sm:$0xf] }
 0x120   :  { %v1803_v60 = vor.u32 %v2085_v49, %v1800_v50 }
 0x121   :  { %v1312_v2 = vadd.f32 %v1311_v56, %v1179_v59  ;;  %954 = vmatmul.bf16.gmra.mxu0 %v1759_v57  ;;  %v1049_v4 = vadd.f32 %v1048_v61, %v916_v1  ;;  %v1799_v59 = vor.u32 %v2087_v48, %v1798_v47  ;;  %v1832_v47 = vld [vmem:[%s3048_s0 + $0x298] sm:$0xf0] }
 0x122   :  { %1087 = vmatmul.bf16.gmra.mxu1 %v1763_v58 }
 0x123   :  { %v1413_v3 = vmax.f32 %v1312_v2, 0.0  ;;  %1220 = vmatmul.bf16.gmra.mxu2 %v1767_v62 }
 0x124   :  { %1353 = vmatmul.bf16.gmra.mxu3 %v1771_v63 }
 0x125   :  { %1462 = vst [vmem:[%s3049_s3 + $0x78] sm:$0xff] %v1413_v3 }
 0x126   :  { %v1181_v5 = vpop.f32.mrf.mxu2  ;;  %v917_v8 = vpop.f32.mrf.mxu0 }
 0x127   :  { %v1314_v6 = vpop.f32.mrf.mxu3  ;;  %v1182_v7 = vadd.f32 %v1181_v5, %v1049_v4  ;;  %v1050_v9 = vpop.f32.mrf.mxu1  ;;  %v918_v11 = vadd.f32 %v2453_v0, %v917_v8 }
 0x129   :  { %v1315_v10 = vadd.f32 %v1314_v6, %v1182_v7  ;;  %v1051_v21 = vadd.f32 %v1050_v9, %v918_v11  ;;  %v1806_v9 = vld [vmem:[%s3048_s0 + $0x260] sm:$0xf]  ;;  %v2088_v11 = vld [vmem:[%s3048_s0 + $0x264] sm:$0xf] }
 0x12b   :  { %v1414_v15 = vmax.f32 %v1315_v10, 0.0  ;;  %v2090_v10 = vld [vmem:[%s3048_s0 + $0x26c] sm:$0xf0] }
 0x12d   :  { %1463 = vst [vmem:[%s3049_s3 + $0x80] sm:$0xff] %v1414_v15  ;;  %v2091_v15 = vld [vmem:[%s3048_s0 + $0x274] sm:$0xf0] }
 0x12e   :  { %v1183_v22 = vpop.f32.mrf.mxu2  ;;  %v920_v27 = vpop.f32.mrf.mxu0 }
 0x12f   :  { %v1316_v23 = vpop.f32.mrf.mxu3  ;;  %v1184_v26 = vadd.f32 %v1183_v22, %v1051_v21  ;;  %v1053_v28 = vpop.f32.mrf.mxu1  ;;  %v921_v31 = vadd.f32 %v2453_v0, %v920_v27  ;;  %v1807_v21 = vor.u32 %v2090_v10, %v1806_v9  ;;  %v1811_v22 = vor.u32 %v2088_v11, %v1808_v13  ;;  %v1840_v10 = vld [vmem:[%s3048_s0 + $0x2b0] sm:$0xf0]  ;;  %v1846_v11 = vld [vmem:[%s3048_s0 + $0x2a8] sm:$0xf]  ;;  %v2097_v13 = vld [vmem:[%s3048_s0 + $0x2ac] sm:$0xf] }
 0x130   :  { %v1819_v27 = vor.u32 %v2089_v16, %v1816_v17 }
 0x131   :  { %v1317_v32 = vadd.f32 %v1316_v23, %v1184_v26  ;;  %959 = vmatmul.bf16.gmra.mxu0 %v1775_v24  ;;  %v1054_v34 = vadd.f32 %v1053_v28, %v921_v31  ;;  %v1815_v26 = vor.u32 %v2091_v15, %v1814_v14  ;;  %v1848_v14 = vld [vmem:[%s3048_s0 + $0x2b8] sm:$0xf0] }
 0x132   :  { %1092 = vmatmul.bf16.gmra.mxu1 %v1779_v25 }
 0x133   :  { %v1415_v33 = vmax.f32 %v1317_v32, 0.0  ;;  %1225 = vmatmul.bf16.gmra.mxu2 %v1783_v29 }
 0x134   :  { %1358 = vmatmul.bf16.gmra.mxu3 %v1787_v30 }
 0x135   :  { %1464 = vst [vmem:[%s3049_s3 + $0x88] sm:$0xff] %v1415_v33 }
 0x136   :  { %v1186_v35 = vpop.f32.mrf.mxu2  ;;  %v922_v38 = vpop.f32.mrf.mxu0 }
 0x137   :  { %v1319_v36 = vpop.f32.mrf.mxu3  ;;  %v1187_v37 = vadd.f32 %v1186_v35, %v1054_v34  ;;  %v1055_v39 = vpop.f32.mrf.mxu1  ;;  %v923_v41 = vadd.f32 %v2453_v0, %v922_v38 }
 0x139   :  { %v1320_v40 = vadd.f32 %v1319_v36, %v1187_v37  ;;  %v1056_v51 = vadd.f32 %v1055_v39, %v923_v41  ;;  %v1822_v39 = vld [vmem:[%s3048_s0 + $0x280] sm:$0xf]  ;;  %v2092_v41 = vld [vmem:[%s3048_s0 + $0x284] sm:$0xf] }
 0x13b   :  { %v1416_v45 = vmax.f32 %v1320_v40, 0.0  ;;  %v2094_v40 = vld [vmem:[%s3048_s0 + $0x28c] sm:$0xf0] }
 0x13d   :  { %1465 = vst [vmem:[%s3049_s3 + $0x90] sm:$0xff] %v1416_v45  ;;  %v2095_v45 = vld [vmem:[%s3048_s0 + $0x294] sm:$0xf0] }
 0x13e   :  { %v1188_v52 = vpop.f32.mrf.mxu2  ;;  %v925_v57 = vpop.f32.mrf.mxu0 }
 0x13f   :  { %v1321_v53 = vpop.f32.mrf.mxu3  ;;  %v1189_v56 = vadd.f32 %v1188_v52, %v1056_v51  ;;  %v1058_v58 = vpop.f32.mrf.mxu1  ;;  %v926_v61 = vadd.f32 %v2453_v0, %v925_v57  ;;  %v1823_v51 = vor.u32 %v2094_v40, %v1822_v39  ;;  %v1827_v52 = vor.u32 %v2092_v41, %v1824_v43  ;;  %v1856_v40 = vld [vmem:[%s3048_s0 + $0x2d0] sm:$0xf0]  ;;  %v2103_v41 = vld [vmem:[%s3048_s0 + $0x2d4] sm:$0xf0]  ;;  %v1864_v43 = vld [vmem:[%s3048_s0 + $0x2d8] sm:$0xf0] }
 0x140   :  { %v1835_v57 = vor.u32 %v2093_v46, %v1832_v47 }
 0x141   :  { %v1322_v62 = vadd.f32 %v1321_v53, %v1189_v56  ;;  %964 = vmatmul.bf16.gmra.mxu0 %v1791_v54  ;;  %v1059_v1 = vadd.f32 %v1058_v58, %v926_v61  ;;  %v1831_v56 = vor.u32 %v2095_v45, %v1830_v44 }
 0x142   :  { %1097 = vmatmul.bf16.gmra.mxu1 %v1795_v55 }
 0x143   :  { %v1417_v63 = vmax.f32 %v1322_v62, 0.0  ;;  %1230 = vmatmul.bf16.gmra.mxu2 %v1799_v59 }
 0x144   :  { %1363 = vmatmul.bf16.gmra.mxu3 %v1803_v60 }
 0x145   :  { %1466 = vst [vmem:[%s3049_s3 + $0x98] sm:$0xff] %v1417_v63 }
 0x146   :  { %v1191_v2 = vpop.f32.mrf.mxu2  ;;  %v927_v5 = vpop.f32.mrf.mxu0 }
 0x147   :  { %v1324_v3 = vpop.f32.mrf.mxu3  ;;  %v1192_v4 = vadd.f32 %v1191_v2, %v1059_v1  ;;  %v1060_v6 = vpop.f32.mrf.mxu1  ;;  %v928_v8 = vadd.f32 %v2453_v0, %v927_v5 }
 0x149   :  { %v1325_v7 = vadd.f32 %v1324_v3, %v1192_v4  ;;  %v1061_v18 = vadd.f32 %v1060_v6, %v928_v8  ;;  %v1838_v6 = vld [vmem:[%s3048_s0 + $0x2a0] sm:$0xf]  ;;  %v2096_v8 = vld [vmem:[%s3048_s0 + $0x2a4] sm:$0xf] }
 0x14b   :  { %v1418_v12 = vmax.f32 %v1325_v7, 0.0  ;;  %v2098_v7 = vld [vmem:[%s3048_s0 + $0x2ac] sm:$0xf0] }
 0x14d   :  { %1467 = vst [vmem:[%s3049_s3 + $0xa0] sm:$0xff] %v1418_v12  ;;  %v2099_v12 = vld [vmem:[%s3048_s0 + $0x2b4] sm:$0xf0] }
 0x14e   :  { %v1193_v19 = vpop.f32.mrf.mxu2  ;;  %v930_v24 = vpop.f32.mrf.mxu0 }
 0x14f   :  { %v1326_v20 = vpop.f32.mrf.mxu3  ;;  %v1194_v23 = vadd.f32 %v1193_v19, %v1061_v18  ;;  %v1063_v25 = vpop.f32.mrf.mxu1  ;;  %v931_v28 = vadd.f32 %v2453_v0, %v930_v24  ;;  %v1839_v18 = vor.u32 %v2098_v7, %v1838_v6  ;;  %v1843_v19 = vor.u32 %v2096_v8, %v1840_v10  ;;  %v1872_v7 = vld [vmem:[%s3048_s0 + $0x2f0] sm:$0xf0]  ;;  %v1878_v8 = vld [vmem:[%s3048_s0 + $0x2e8] sm:$0xf]  ;;  %v2105_v10 = vld [vmem:[%s3048_s0 + $0x2ec] sm:$0xf] }
 0x150   :  { %v1851_v24 = vor.u32 %v2097_v13, %v1848_v14 }
 0x151   :  { %v1327_v29 = vadd.f32 %v1326_v20, %v1194_v23  ;;  %969 = vmatmul.bf16.gmra.mxu0 %v1807_v21  ;;  %v1064_v31 = vadd.f32 %v1063_v25, %v931_v28  ;;  %v1847_v23 = vor.u32 %v2099_v12, %v1846_v11  ;;  %v1880_v11 = vld [vmem:[%s3048_s0 + $0x2f8] sm:$0xf0] }
 0x152   :  { %1102 = vmatmul.bf16.gmra.mxu1 %v1811_v22 }
 0x153   :  { %v1419_v30 = vmax.f32 %v1327_v29, 0.0  ;;  %1235 = vmatmul.bf16.gmra.mxu2 %v1815_v26 }
 0x154   :  { %1368 = vmatmul.bf16.gmra.mxu3 %v1819_v27 }
 0x155   :  { %1468 = vst [vmem:[%s3049_s3 + $0xa8] sm:$0xff] %v1419_v30 }
 0x156   :  { %v1196_v32 = vpop.f32.mrf.mxu2  ;;  %v932_v35 = vpop.f32.mrf.mxu0 }
 0x157   :  { %v1329_v33 = vpop.f32.mrf.mxu3  ;;  %v1197_v34 = vadd.f32 %v1196_v32, %v1064_v31  ;;  %v1065_v36 = vpop.f32.mrf.mxu1  ;;  %v933_v38 = vadd.f32 %v2453_v0, %v932_v35 }
 0x159   :  { %v1330_v37 = vadd.f32 %v1329_v33, %v1197_v34  ;;  %v1066_v48 = vadd.f32 %v1065_v36, %v933_v38  ;;  %v1854_v36 = vld [vmem:[%s3048_s0 + $0x2c0] sm:$0xf]  ;;  %v2100_v38 = vld [vmem:[%s3048_s0 + $0x2c4] sm:$0xf] }
 0x15b   :  { %v1420_v42 = vmax.f32 %v1330_v37, 0.0  ;;  %v2102_v37 = vld [vmem:[%s3048_s0 + $0x2cc] sm:$0xf0] }
 0x15c   :  { %v1855_v47 = vor.u32 %v2102_v37, %v1854_v36 }
 0x15d   :  { %1469 = vst [vmem:[%s3049_s3 + $0xb0] sm:$0xff] %v1420_v42  ;;  %v2101_v42 = vld [vmem:[%s3048_s0 + $0x2cc] sm:$0xf] }
 0x15e   :  { %v1198_v49 = vpop.f32.mrf.mxu2  ;;  %v935_v54 = vpop.f32.mrf.mxu0 }
 0x15f   :  { %v1331_v50 = vpop.f32.mrf.mxu3  ;;  %v1199_v53 = vadd.f32 %v1198_v49, %v1066_v48  ;;  %v1068_v55 = vpop.f32.mrf.mxu1  ;;  %v936_v58 = vadd.f32 %v2453_v0, %v935_v54  ;;  %v1859_v48 = vor.u32 %v2100_v38, %v1856_v40  ;;  %v2927_v54 = vld [vmem:[%s3047_s2] ss:$0 sm:$0xff] }
 0x161   :  { %v1332_v59 = vadd.f32 %v1331_v50, %v1199_v53  ;;  %974 = vmatmul.bf16.gmra.mxu0 %v1823_v51  ;;  %v1069_v61 = vadd.f32 %v1068_v55, %v936_v58  ;;  %v1867_v53 = vor.u32 %v2101_v42, %v1864_v43 }
 0x162   :  { %1107 = vmatmul.bf16.gmra.mxu1 %v1827_v52 }
 0x163   :  { %v1421_v60 = vmax.f32 %v1332_v59, 0.0  ;;  %1240 = vmatmul.bf16.gmra.mxu2 %v1831_v56 }
 0x164   :  { %1373 = vmatmul.bf16.gmra.mxu3 %v1835_v57 }
 0x165   :  { %1470 = vst [vmem:[%s3049_s3 + $0xb8] sm:$0xff] %v1421_v60 }
 0x166   :  { %v1201_v62 = vpop.f32.mrf.mxu2  ;;  %v937_v2 = vpop.f32.mrf.mxu0 }
 0x167   :  { %v1334_v63 = vpop.f32.mrf.mxu3  ;;  %v1202_v1 = vadd.f32 %v1201_v62, %v1069_v61  ;;  %v1070_v3 = vpop.f32.mrf.mxu1  ;;  %v938_v5 = vadd.f32 %v2453_v0, %v937_v2 }
 0x169   :  { %v1335_v4 = vadd.f32 %v1334_v63, %v1202_v1  ;;  %v1071_v15 = vadd.f32 %v1070_v3, %v938_v5  ;;  %v1870_v3 = vld [vmem:[%s3048_s0 + $0x2e0] sm:$0xf]  ;;  %v2104_v5 = vld [vmem:[%s3048_s0 + $0x2e4] sm:$0xf] }
 0x16b   :  { %v1422_v9 = vmax.f32 %v1335_v4, 0.0  ;;  %v2106_v4 = vld [vmem:[%s3048_s0 + $0x2ec] sm:$0xf0] }
 0x16d   :  { %1471 = vst [vmem:[%s3049_s3 + $0xc0] sm:$0xff] %v1422_v9  ;;  %v2107_v9 = vld [vmem:[%s3048_s0 + $0x2f4] sm:$0xf0] }
 0x16e   :  { %v1203_v16 = vpop.f32.mrf.mxu2  ;;  %v940_v21 = vpop.f32.mrf.mxu0 }
 0x16f   :  { %v1336_v17 = vpop.f32.mrf.mxu3  ;;  %v1204_v20 = vadd.f32 %v1203_v16, %v1071_v15  ;;  %v1073_v22 = vpop.f32.mrf.mxu1  ;;  %v941_v25 = vadd.f32 %v2453_v0, %v940_v21  ;;  %v1871_v15 = vor.u32 %v2106_v4, %v1870_v3  ;;  %v1875_v16 = vor.u32 %v2104_v5, %v1872_v7 }
 0x170   :  { %v1883_v21 = vor.u32 %v2105_v10, %v1880_v11 }
 0x171   :  { %v1337_v26 = vadd.f32 %v1336_v17, %v1204_v20  ;;  %979 = vmatmul.bf16.gmra.mxu0 %v1839_v18  ;;  %v1074_v28 = vadd.f32 %v1073_v22, %v941_v25  ;;  %v1879_v20 = vor.u32 %v2107_v9, %v1878_v8 }
 0x172   :  { %1112 = vmatmul.bf16.gmra.mxu1 %v1843_v19 }
 0x173   :  { %v1423_v27 = vmax.f32 %v1337_v26, 0.0  ;;  %1245 = vmatmul.bf16.gmra.mxu2 %v1847_v23 }
 0x174   :  { %1378 = vmatmul.bf16.gmra.mxu3 %v1851_v24 }
 0x175   :  { %1472 = vst [vmem:[%s3049_s3 + $0xc8] sm:$0xff] %v1423_v27 }
 0x176   :  { %v1206_v29 = vpop.f32.mrf.mxu2  ;;  %v942_v32 = vpop.f32.mrf.mxu0 }
 0x177   :  { %v1339_v30 = vpop.f32.mrf.mxu3  ;;  %v1207_v31 = vadd.f32 %v1206_v29, %v1074_v28  ;;  %v1075_v33 = vpop.f32.mrf.mxu1  ;;  %v943_v35 = vadd.f32 %v2453_v0, %v942_v32  ;;  %v1862_v0 = vld [vmem:[%s3048_s0 + $0x2c8] sm:$0xf] }
 0x178   :  { %v1863_v52 = vor.u32 %v2103_v41, %v1862_v0  ;;  %v111_v32 = vld [vmem:[%s3048_s0 + $0x308] sm:$0xff] }
 0x179   :  { %v1340_v34 = vadd.f32 %v1339_v30, %v1207_v31  ;;  %v1076_v44 = vadd.f32 %v1075_v33, %v943_v35  ;;  %v110_v31 = vld [vmem:[%s3048_s0 + $0x300] sm:$0xff]  ;;  %v472_v38 = vunpack.c.l.b16 %v111_v32 }
 0x17a   :  { %v470_v35 = vunpack.c.l.b16 %v110_v31  ;;  %v471_v36 = vunpack.c.h.b16 %v110_v31 }
 0x17b   :  { %v1424_v39 = vmax.f32 %v1340_v34, 0.0 }
 0x17c   :  { %v570_v42 = vpack.c.b16 %v470_v35, %v470_v35  ;;  %v571_v43 = vpack.c.b16 %v471_v36, %v471_v36 }
 0x17d   :  { %1473 = vst [vmem:[%s3049_s3 + $0xd0] sm:$0xff] %v1424_v39  ;;  %v473_v39 = vunpack.c.h.b16 %v111_v32 }
 0x17e   :  { %v1208_v45 = vpop.f32.mrf.mxu2  ;;  %v945_v50 = vpop.f32.mrf.mxu0 }
 0x17f   :  { %v1341_v46 = vpop.f32.mrf.mxu3  ;;  %v1209_v49 = vadd.f32 %v1208_v45, %v1076_v44  ;;  %v1078_v51 = vpop.f32.mrf.mxu1  ;;  %v946_v55 = vadd.f32 %v2927_v54, %v945_v50 }
 0x181   :  { %v1342_v56 = vadd.f32 %v1341_v46, %v1209_v49  ;;  %984 = vmatmul.bf16.gmra.mxu0 %v1855_v47  ;;  %v1079_v58 = vadd.f32 %v1078_v51, %v946_v55  ;;  %v572_v47 = vpack.c.b16 %v472_v38, %v472_v38 }
 0x182   :  { %1117 = vmatmul.bf16.gmra.mxu1 %v1859_v48  ;;  %v573_v48 = vpack.c.b16 %v473_v39, %v473_v39 }
 0x183   :  { %v1425_v57 = vmax.f32 %v1342_v56, 0.0  ;;  %1250 = vmatmul.bf16.gmra.mxu2 %v1863_v52 }
 0x184   :  { %1383 = vmatmul.bf16.gmra.mxu3 %v1867_v53 }
 0x185   :  { %1474 = vst [vmem:[%s3049_s3 + $0xd8] sm:$0xff] %v1425_v57 }
 0x186   :  { %v1211_v59 = vpop.f32.mrf.mxu2  ;;  %v947_v62 = vpop.f32.mrf.mxu0 }
 0x187   :  { %v1344_v60 = vpop.f32.mrf.mxu3  ;;  %v1212_v61 = vadd.f32 %v1211_v59, %v1079_v58  ;;  %v1080_v63 = vpop.f32.mrf.mxu1  ;;  %v948_v2 = vadd.f32 %v2927_v54, %v947_v62 }
 0x189   :  { %v1345_v1 = vadd.f32 %v1344_v60, %v1212_v61  ;;  %v1081_v12 = vadd.f32 %v1080_v63, %v948_v2 }
 0x18b   :  { %v1426_v6 = vmax.f32 %v1345_v1, 0.0 }
 0x18d   :  { %1475 = vst [vmem:[%s3049_s3 + $0xe0] sm:$0xff] %v1426_v6 }
 0x18e   :  { %v1213_v13 = vpop.f32.mrf.mxu2  ;;  %v950_v18 = vpop.f32.mrf.mxu0 }
 0x18f   :  { %v1346_v14 = vpop.f32.mrf.mxu3  ;;  %v1214_v17 = vadd.f32 %v1213_v13, %v1081_v12  ;;  %v1083_v19 = vpop.f32.mrf.mxu1  ;;  %v951_v22 = vadd.f32 %v2927_v54, %v950_v18 }
 0x191   :  { %v1347_v23 = vadd.f32 %v1346_v14, %v1214_v17  ;;  %989 = vmatmul.bf16.gmra.mxu0 %v1871_v15  ;;  %v1084_v25 = vadd.f32 %v1083_v19, %v951_v22 }
 0x192   :  { %1122 = vmatmul.bf16.gmra.mxu1 %v1875_v16 }
 0x193   :  { %v1427_v24 = vmax.f32 %v1347_v23, 0.0  ;;  %1255 = vmatmul.bf16.gmra.mxu2 %v1879_v20 }
 0x194   :  { %1388 = vmatmul.bf16.gmra.mxu3 %v1883_v21 }
 0x195   :  { %1476 = vst [vmem:[%s3049_s3 + $0xe8] sm:$0xff] %v1427_v24 }
 0x196   :  { %v1216_v26 = vpop.f32.mrf.mxu2  ;;  %v952_v29 = vpop.f32.mrf.mxu0 }
 0x197   :  { %v1349_v27 = vpop.f32.mrf.mxu3  ;;  %v1217_v28 = vadd.f32 %v1216_v26, %v1084_v25  ;;  %v1085_v30 = vpop.f32.mrf.mxu1  ;;  %v953_v34 = vadd.f32 %v2927_v54, %v952_v29 }
 0x199   :  { %v1350_v33 = vadd.f32 %v1349_v27, %v1217_v28  ;;  %v1086_v40 = vadd.f32 %v1085_v30, %v953_v34 }
 0x19b   :  { %v1428_v37 = vmax.f32 %v1350_v33, 0.0 }
 0x19d   :  { %1477 = vst [vmem:[%s3049_s3 + $0xf0] sm:$0xff] %v1428_v37 }
 0x19e   :  { %v1218_v0 = vpop.f32.mrf.mxu2  ;;  %v955_v45 = vpop.f32.mrf.mxu0 }
 0x19f   :  { %v1351_v41 = vpop.f32.mrf.mxu3  ;;  %v1219_v44 = vadd.f32 %v1218_v0, %v1086_v40  ;;  %v1088_v46 = vpop.f32.mrf.mxu1  ;;  %v956_v49 = vadd.f32 %v2927_v54, %v955_v45 }
 0x1a1   :  { %v1352_v50 = vadd.f32 %v1351_v41, %v1219_v44  ;;  %994 = vmatmul.bf16.gmra.mxu0 %v570_v42  ;;  %v1089_v52 = vadd.f32 %v1088_v46, %v956_v49 }
 0x1a2   :  { %1127 = vmatmul.bf16.gmra.mxu1 %v571_v43 }
 0x1a3   :  { %v1429_v51 = vmax.f32 %v1352_v50, 0.0  ;;  %1260 = vmatmul.bf16.gmra.mxu2 %v572_v47 }
 0x1a4   :  { %1393 = vmatmul.bf16.gmra.mxu3 %v573_v48 }
 0x1a5   :  { %1478 = vst [vmem:[%s3049_s3 + $0xf8] sm:$0xff] %v1429_v51 }
 0x1a6   :  { %v1221_v53 = vpop.f32.mrf.mxu2  ;;  %v957_v57 = vpop.f32.mrf.mxu0 }
 0x1a7   :  { %v1354_v55 = vpop.f32.mrf.mxu3  ;;  %v1222_v56 = vadd.f32 %v1221_v53, %v1089_v52  ;;  %v1090_v58 = vpop.f32.mrf.mxu1  ;;  %v958_v60 = vadd.f32 %v2927_v54, %v957_v57 }
 0x1a9   :  { %v1355_v59 = vadd.f32 %v1354_v55, %v1222_v56  ;;  %v1091_v62 = vadd.f32 %v1090_v58, %v958_v60 }
 0x1ab   :  { %v1430_v61 = vmax.f32 %v1355_v59, 0.0 }
 0x1ad   :  { %1479 = vst [vmem:[%s3049_s3 + $0x100] sm:$0xff] %v1430_v61 }
 0x1ae   :  { %v1223_v63 = vpop.f32.mrf.mxu2  ;;  %v960_v3 = vpop.f32.mrf.mxu0 }
 0x1af   :  { %v1356_v1 = vpop.f32.mrf.mxu3  ;;  %v1224_v2 = vadd.f32 %v1223_v63, %v1091_v62  ;;  %v1093_v4 = vpop.f32.mrf.mxu1  ;;  %v961_v5 = vadd.f32 %v2927_v54, %v960_v3 }
 0x1b1   :  { %v1357_v6 = vadd.f32 %v1356_v1, %v1224_v2  ;;  %v1094_v8 = vadd.f32 %v1093_v4, %v961_v5 }
 0x1b3   :  { %v1431_v7 = vmax.f32 %v1357_v6, 0.0 }
 0x1b5   :  { %1480 = vst [vmem:[%s3049_s3 + $0x108] sm:$0xff] %v1431_v7 }
 0x1b6   :  { %v1226_v9 = vpop.f32.mrf.mxu2  ;;  %v962_v12 = vpop.f32.mrf.mxu0 }
 0x1b7   :  { %v1359_v10 = vpop.f32.mrf.mxu3  ;;  %v1227_v11 = vadd.f32 %v1226_v9, %v1094_v8  ;;  %v1095_v13 = vpop.f32.mrf.mxu1  ;;  %v963_v15 = vadd.f32 %v2927_v54, %v962_v12 }
 0x1b9   :  { %v1360_v14 = vadd.f32 %v1359_v10, %v1227_v11  ;;  %v1096_v17 = vadd.f32 %v1095_v13, %v963_v15 }
 0x1bb   :  { %v1432_v16 = vmax.f32 %v1360_v14, 0.0 }
 0x1bd   :  { %1481 = vst [vmem:[%s3049_s3 + $0x110] sm:$0xff] %v1432_v16 }
 0x1be   :  { %v1228_v18 = vpop.f32.mrf.mxu2  ;;  %v965_v21 = vpop.f32.mrf.mxu0 }
 0x1bf   :  { %v1361_v19 = vpop.f32.mrf.mxu3  ;;  %v1229_v20 = vadd.f32 %v1228_v18, %v1096_v17  ;;  %v1098_v22 = vpop.f32.mrf.mxu1  ;;  %v966_v23 = vadd.f32 %v2927_v54, %v965_v21 }
 0x1c1   :  { %v1362_v24 = vadd.f32 %v1361_v19, %v1229_v20  ;;  %v1099_v26 = vadd.f32 %v1098_v22, %v966_v23 }
 0x1c3   :  { %v1433_v25 = vmax.f32 %v1362_v24, 0.0 }
 0x1c5   :  { %1482 = vst [vmem:[%s3049_s3 + $0x118] sm:$0xff] %v1433_v25 }
 0x1c6   :  { %v1231_v27 = vpop.f32.mrf.mxu2  ;;  %v967_v30 = vpop.f32.mrf.mxu0 }
 0x1c7   :  { %v1364_v28 = vpop.f32.mrf.mxu3  ;;  %v1232_v29 = vadd.f32 %v1231_v27, %v1099_v26  ;;  %v1100_v31 = vpop.f32.mrf.mxu1  ;;  %v968_v33 = vadd.f32 %v2927_v54, %v967_v30 }
 0x1c9   :  { %v1365_v32 = vadd.f32 %v1364_v28, %v1232_v29  ;;  %v1101_v35 = vadd.f32 %v1100_v31, %v968_v33 }
 0x1cb   :  { %v1434_v34 = vmax.f32 %v1365_v32, 0.0 }
 0x1cd   :  { %1483 = vst [vmem:[%s3049_s3 + $0x120] sm:$0xff] %v1434_v34 }
 0x1ce   :  { %v1233_v36 = vpop.f32.mrf.mxu2  ;;  %v970_v39 = vpop.f32.mrf.mxu0 }
 0x1cf   :  { %v1366_v37 = vpop.f32.mrf.mxu3  ;;  %v1234_v38 = vadd.f32 %v1233_v36, %v1101_v35  ;;  %v1103_v40 = vpop.f32.mrf.mxu1  ;;  %v971_v0 = vadd.f32 %v2927_v54, %v970_v39 }
 0x1d1   :  { %v1367_v41 = vadd.f32 %v1366_v37, %v1234_v38  ;;  %v1104_v43 = vadd.f32 %v1103_v40, %v971_v0 }
 0x1d3   :  { %v1435_v42 = vmax.f32 %v1367_v41, 0.0 }
 0x1d5   :  { %1484 = vst [vmem:[%s3049_s3 + $0x128] sm:$0xff] %v1435_v42 }
 0x1d6   :  { %v1236_v44 = vpop.f32.mrf.mxu2  ;;  %v972_v47 = vpop.f32.mrf.mxu0 }
 0x1d7   :  { %v1369_v45 = vpop.f32.mrf.mxu3  ;;  %v1237_v46 = vadd.f32 %v1236_v44, %v1104_v43  ;;  %v1105_v48 = vpop.f32.mrf.mxu1  ;;  %v973_v50 = vadd.f32 %v2927_v54, %v972_v47 }
 0x1d9   :  { %v1370_v49 = vadd.f32 %v1369_v45, %v1237_v46  ;;  %v1106_v52 = vadd.f32 %v1105_v48, %v973_v50 }
 0x1db   :  { %v1436_v51 = vmax.f32 %v1370_v49, 0.0 }
 0x1dd   :  { %1485 = vst [vmem:[%s3049_s3 + $0x130] sm:$0xff] %v1436_v51 }
 0x1de   :  { %v1238_v53 = vpop.f32.mrf.mxu2  ;;  %v975_v57 = vpop.f32.mrf.mxu0 }
 0x1df   :  { %v1371_v55 = vpop.f32.mrf.mxu3  ;;  %v1239_v56 = vadd.f32 %v1238_v53, %v1106_v52  ;;  %v1108_v58 = vpop.f32.mrf.mxu1  ;;  %v976_v59 = vadd.f32 %v2927_v54, %v975_v57 }
 0x1e1   :  { %v1372_v60 = vadd.f32 %v1371_v55, %v1239_v56  ;;  %v1109_v62 = vadd.f32 %v1108_v58, %v976_v59 }
 0x1e3   :  { %v1437_v61 = vmax.f32 %v1372_v60, 0.0 }
 0x1e5   :  { %1486 = vst [vmem:[%s3049_s3 + $0x138] sm:$0xff] %v1437_v61 }
 0x1e6   :  { %v1241_v63 = vpop.f32.mrf.mxu2  ;;  %v977_v3 = vpop.f32.mrf.mxu0 }
 0x1e7   :  { %v1374_v1 = vpop.f32.mrf.mxu3  ;;  %v1242_v2 = vadd.f32 %v1241_v63, %v1109_v62  ;;  %v1110_v4 = vpop.f32.mrf.mxu1  ;;  %v978_v6 = vadd.f32 %v2927_v54, %v977_v3 }
 0x1e9   :  { %v1375_v5 = vadd.f32 %v1374_v1, %v1242_v2  ;;  %v1111_v8 = vadd.f32 %v1110_v4, %v978_v6 }
 0x1eb   :  { %v1438_v7 = vmax.f32 %v1375_v5, 0.0 }
 0x1ed   :  { %1487 = vst [vmem:[%s3049_s3 + $0x140] sm:$0xff] %v1438_v7 }
 0x1ee   :  { %v1243_v9 = vpop.f32.mrf.mxu2  ;;  %v980_v12 = vpop.f32.mrf.mxu0 }
 0x1ef   :  { %v1376_v10 = vpop.f32.mrf.mxu3  ;;  %v1244_v11 = vadd.f32 %v1243_v9, %v1111_v8  ;;  %v1113_v13 = vpop.f32.mrf.mxu1  ;;  %v981_v14 = vadd.f32 %v2927_v54, %v980_v12 }
 0x1f1   :  { %v1377_v15 = vadd.f32 %v1376_v10, %v1244_v11  ;;  %v1114_v17 = vadd.f32 %v1113_v13, %v981_v14 }
 0x1f3   :  { %v1439_v16 = vmax.f32 %v1377_v15, 0.0 }
 0x1f5   :  { %1488 = vst [vmem:[%s3049_s3 + $0x148] sm:$0xff] %v1439_v16 }
 0x1f6   :  { %v1246_v18 = vpop.f32.mrf.mxu2  ;;  %v982_v21 = vpop.f32.mrf.mxu0 }
 0x1f7   :  { %v1379_v19 = vpop.f32.mrf.mxu3  ;;  %v1247_v20 = vadd.f32 %v1246_v18, %v1114_v17  ;;  %v1115_v22 = vpop.f32.mrf.mxu1  ;;  %v983_v24 = vadd.f32 %v2927_v54, %v982_v21 }
 0x1f9   :  { %v1380_v23 = vadd.f32 %v1379_v19, %v1247_v20  ;;  %v1116_v26 = vadd.f32 %v1115_v22, %v983_v24 }
 0x1fb   :  { %v1440_v25 = vmax.f32 %v1380_v23, 0.0 }
 0x1fd   :  { %1489 = vst [vmem:[%s3049_s3 + $0x150] sm:$0xff] %v1440_v25 }
 0x1fe   :  { %v1248_v27 = vpop.f32.mrf.mxu2  ;;  %v985_v30 = vpop.f32.mrf.mxu0 }
 0x1ff   :  { %v1381_v28 = vpop.f32.mrf.mxu3  ;;  %v1249_v29 = vadd.f32 %v1248_v27, %v1116_v26  ;;  %v1118_v31 = vpop.f32.mrf.mxu1  ;;  %v986_v32 = vadd.f32 %v2927_v54, %v985_v30 }
 0x201   :  { %v1382_v33 = vadd.f32 %v1381_v28, %v1249_v29  ;;  %v1119_v35 = vadd.f32 %v1118_v31, %v986_v32 }
 0x203   :  { %v1441_v34 = vmax.f32 %v1382_v33, 0.0 }
 0x205   :  { %1490 = vst [vmem:[%s3049_s3 + $0x158] sm:$0xff] %v1441_v34 }
 0x206   :  { %v1251_v36 = vpop.f32.mrf.mxu2  ;;  %v987_v39 = vpop.f32.mrf.mxu0 }
 0x207   :  { %v1384_v37 = vpop.f32.mrf.mxu3  ;;  %v1252_v38 = vadd.f32 %v1251_v36, %v1119_v35  ;;  %v1120_v40 = vpop.f32.mrf.mxu1  ;;  %v988_v41 = vadd.f32 %v2927_v54, %v987_v39 }
 0x209   :  { %v1385_v0 = vadd.f32 %v1384_v37, %v1252_v38  ;;  %v1121_v43 = vadd.f32 %v1120_v40, %v988_v41 }
 0x20b   :  { %v1442_v42 = vmax.f32 %v1385_v0, 0.0 }
 0x20d   :  { %1491 = vst [vmem:[%s3049_s3 + $0x160] sm:$0xff] %v1442_v42 }
 0x20e   :  { %v1253_v44 = vpop.f32.mrf.mxu2  ;;  %v990_v47 = vpop.f32.mrf.mxu0 }
 0x20f   :  { %v1386_v45 = vpop.f32.mrf.mxu3  ;;  %v1254_v46 = vadd.f32 %v1253_v44, %v1121_v43  ;;  %v1123_v48 = vpop.f32.mrf.mxu1  ;;  %v991_v49 = vadd.f32 %v2927_v54, %v990_v47 }
 0x211   :  { %v1387_v50 = vadd.f32 %v1386_v45, %v1254_v46  ;;  %v1124_v52 = vadd.f32 %v1123_v48, %v991_v49 }
 0x213   :  { %v1443_v51 = vmax.f32 %v1387_v50, 0.0 }
 0x215   :  { %1492 = vst [vmem:[%s3049_s3 + $0x168] sm:$0xff] %v1443_v51 }
 0x216   :  { %v1256_v53 = vpop.f32.mrf.mxu2  ;;  %v992_v57 = vpop.f32.mrf.mxu0 }
 0x217   :  { %v1389_v55 = vpop.f32.mrf.mxu3  ;;  %v1257_v56 = vadd.f32 %v1256_v53, %v1124_v52  ;;  %v1125_v58 = vpop.f32.mrf.mxu1  ;;  %v993_v60 = vadd.f32 %v2927_v54, %v992_v57 }
 0x219   :  { %v1390_v59 = vadd.f32 %v1389_v55, %v1257_v56  ;;  %v1126_v62 = vadd.f32 %v1125_v58, %v993_v60 }
 0x21b   :  { %v1444_v61 = vmax.f32 %v1390_v59, 0.0 }
 0x21d   :  { %1493 = vst [vmem:[%s3049_s3 + $0x170] sm:$0xff] %v1444_v61 }
 0x21e   :  { %v1258_v63 = vpop.f32.mrf.mxu2  ;;  %v995_v3 = vpop.f32.mrf.mxu0 }
 0x21f   :  { %v1391_v1 = vpop.f32.mrf.mxu3  ;;  %v1259_v2 = vadd.f32 %v1258_v63, %v1126_v62  ;;  %v1128_v4 = vpop.f32.mrf.mxu1  ;;  %v996_v5 = vadd.f32 %v2927_v54, %v995_v3 }
 0x221   :  { %v1392_v6 = vadd.f32 %v1391_v1, %v1259_v2  ;;  %v1129_v8 = vadd.f32 %v1128_v4, %v996_v5 }
 0x223   :  { %v1445_v7 = vmax.f32 %v1392_v6, 0.0 }
 0x225   :  { %1494 = vst [vmem:[%s3049_s3 + $0x178] sm:$0xff] %v1445_v7 }
 0x226   :  { %v1261_v9 = vpop.f32.mrf.mxu2  ;;  %v997_v12 = vpop.f32.mrf.mxu0 }
 0x227   :  { %v1394_v10 = vpop.f32.mrf.mxu3  ;;  %v1262_v11 = vadd.f32 %v1261_v9, %v1129_v8  ;;  %v1130_v13 = vpop.f32.mrf.mxu1 }
 0x229   :  { %v1395_v14 = vadd.f32 %v1394_v10, %v1262_v11 }
 0x22b   :  { %v1446_v15 = vmax.f32 %v1395_v14, 0.0 }
 0x22d   :  { %1495 = vst [vmem:[%s3049_s3 + $0x180] sm:$0xff] %v1446_v15 }
 0x22e   :  { %v1263_v16 = vpop.f32.mrf.mxu2 }
 0x22f   :  { %v1396_v54 = vpop.f32.mrf.mxu3 }

// kernel: _forward_impl.13
= control target key start
LH: loop header
LB: loop body
LE: loop exit
PB: predicated region body
PF: predicated region fallthrough
CT: control target
= control target key end

     0   :  { %s1040_s1 = inlined_call_operand.vmem [shape: bf16[512,128], index: 1, kind: input, shape index: {}]   ;;  %s1041_s2 = inlined_call_operand.vmem [shape: f32[1,128], index: 2, kind: input, shape index: {}]   ;;  %s1042_s0 = inlined_call_operand.vmem [shape: bf16[72,512], index: 0, kind: input, shape index: {}]   ;;  %s1043_s3 = inlined_call_operand.vmem [shape: f32[72,128], index: 3, kind: output, shape index: {}]  }
   0x1   :  { %v755_v0 = vld [vmem:[%s1040_s1 + $0x38] sm:$0xff]  ;;  %v754_v4 = vld [vmem:[%s1040_s1 + $0x30] sm:$0xff]  ;;  %v753_v8 = vld [vmem:[%s1040_s1 + $0x28] sm:$0xff] }
   0x2   :  { %v763_v1 = vld [vmem:[%s1040_s1 + $0x78] sm:$0xff]  ;;  %386 = vmatpush.bf16.msra.mxu0 %v755_v0  ;;  %v762_v5 = vld [vmem:[%s1040_s1 + $0x70] sm:$0xff]  ;;  %v761_v9 = vld [vmem:[%s1040_s1 + $0x68] sm:$0xff] }
   0x3   :  { %v771_v2 = vld [vmem:[%s1040_s1 + $0xb8] sm:$0xff]  ;;  %419 = vmatpush.bf16.msra.mxu1 %v763_v1  ;;  %v770_v6 = vld [vmem:[%s1040_s1 + $0xb0] sm:$0xff]  ;;  %v769_v10 = vld [vmem:[%s1040_s1 + $0xa8] sm:$0xff] }
   0x4   :  { %v779_v3 = vld [vmem:[%s1040_s1 + $0xf8] sm:$0xff]  ;;  %452 = vmatpush.bf16.msra.mxu2 %v771_v2  ;;  %v778_v7 = vld [vmem:[%s1040_s1 + $0xf0] sm:$0xff]  ;;  %v777_v11 = vld [vmem:[%s1040_s1 + $0xe8] sm:$0xff] }
   0x5   :  { %485 = vmatpush.bf16.msra.mxu3 %v779_v3  ;;  %v752_v12 = vld [vmem:[%s1040_s1 + $0x20] sm:$0xff]  ;;  %v751_v16 = vld [vmem:[%s1040_s1 + $0x18] sm:$0xff]  ;;  %v750_v20 = vld [vmem:[%s1040_s1 + $0x10] sm:$0xff] }
   0x6   :  { %387 = vmatpush.bf16.msra.mxu0 %v754_v4  ;;  %v760_v13 = vld [vmem:[%s1040_s1 + $0x60] sm:$0xff]  ;;  %v759_v17 = vld [vmem:[%s1040_s1 + $0x58] sm:$0xff]  ;;  %v758_v21 = vld [vmem:[%s1040_s1 + $0x50] sm:$0xff] }
   0x7   :  { %420 = vmatpush.bf16.msra.mxu1 %v762_v5  ;;  %v768_v14 = vld [vmem:[%s1040_s1 + $0xa0] sm:$0xff]  ;;  %v767_v18 = vld [vmem:[%s1040_s1 + $0x98] sm:$0xff]  ;;  %v766_v22 = vld [vmem:[%s1040_s1 + $0x90] sm:$0xff] }
   0x8   :  { %453 = vmatpush.bf16.msra.mxu2 %v770_v6  ;;  %v776_v15 = vld [vmem:[%s1040_s1 + $0xe0] sm:$0xff]  ;;  %v775_v19 = vld [vmem:[%s1040_s1 + $0xd8] sm:$0xff]  ;;  %v774_v23 = vld [vmem:[%s1040_s1 + $0xd0] sm:$0xff] }
   0x9   :  { %486 = vmatpush.bf16.msra.mxu3 %v778_v7  ;;  %v749_v24 = vld [vmem:[%s1040_s1 + $0x8] sm:$0xff]  ;;  %v748_v28 = vld [vmem:[%s1040_s1] sm:$0xff]  ;;  %v734_v33 = vld [vmem:[%s1042_s0 + $0xc] sm:$0xf0] }
   0xa   :  { %388 = vmatpush.bf16.msra.mxu0 %v753_v8  ;;  %v757_v25 = vld [vmem:[%s1040_s1 + $0x48] sm:$0xff]  ;;  %v756_v29 = vld [vmem:[%s1040_s1 + $0x40] sm:$0xff]  ;;  %v544_v35 = vld [vmem:[%s1042_s0 + $0x10] sm:$0xf0] }
   0xb   :  { %421 = vmatpush.bf16.msra.mxu1 %v761_v9  ;;  %v765_v26 = vld [vmem:[%s1040_s1 + $0x88] sm:$0xff]  ;;  %v764_v30 = vld [vmem:[%s1040_s1 + $0x80] sm:$0xff]  ;;  %v735_v37 = vld [vmem:[%s1042_s0 + $0x14] sm:$0xf0] }
   0xc   :  { %454 = vmatpush.bf16.msra.mxu2 %v769_v10  ;;  %v773_v27 = vld [vmem:[%s1040_s1 + $0xc8] sm:$0xff]  ;;  %v772_v31 = vld [vmem:[%s1040_s1 + $0xc0] sm:$0xff]  ;;  %v552_v39 = vld [vmem:[%s1042_s0 + $0x18] sm:$0xf0] }
   0xd   :  { %487 = vmatpush.bf16.msra.mxu3 %v777_v11  ;;  %v542_v32 = vld [vmem:[%s1042_s0] sm:$0xf]  ;;  %v732_v34 = vld [vmem:[%s1042_s0 + $0x4] sm:$0xf]  ;;  %v550_v36 = vld [vmem:[%s1042_s0 + $0x8] sm:$0xf] }
   0xe   :  { %389 = vmatpush.bf16.msra.mxu0 %v752_v12  ;;  %v733_v38 = vld [vmem:[%s1042_s0 + $0xc] sm:$0xf]  ;;  %v543_v40 = vor.u32 %v734_v33, %v542_v32  ;;  %v547_v41 = vor.u32 %v732_v34, %v544_v35  ;;  %v551_v42 = vor.u32 %v735_v37, %v550_v36  ;;  %v558_v44 = vld [vmem:[%s1042_s0 + $0x20] sm:$0xf]  ;;  %v738_v45 = vld [vmem:[%s1042_s0 + $0x2c] sm:$0xf0] }
   0xf   :  { %422 = vmatpush.bf16.msra.mxu1 %v760_v13  ;;  %v555_v43 = vor.u32 %v733_v38, %v552_v39  ;;  %v736_v46 = vld [vmem:[%s1042_s0 + $0x24] sm:$0xf]  ;;  %v560_v47 = vld [vmem:[%s1042_s0 + $0x30] sm:$0xf0]  ;;  %v566_v48 = vld [vmem:[%s1042_s0 + $0x28] sm:$0xf]  ;;  %v559_v52 = vor.u32 %v738_v45, %v558_v44 }
  0x10   :  { %455 = vmatpush.bf16.msra.mxu2 %v768_v14  ;;  %v739_v49 = vld [vmem:[%s1042_s0 + $0x34] sm:$0xf0]  ;;  %v737_v50 = vld [vmem:[%s1042_s0 + $0x2c] sm:$0xf]  ;;  %v568_v51 = vld [vmem:[%s1042_s0 + $0x38] sm:$0xf0]  ;;  %v563_v53 = vor.u32 %v736_v46, %v560_v47 }
  0x11   :  { %488 = vmatpush.bf16.msra.mxu3 %v776_v15  ;;  %v567_v54 = vor.u32 %v739_v49, %v566_v48  ;;  %v571_v55 = vor.u32 %v737_v50, %v568_v51  ;;  %v574_v56 = vld [vmem:[%s1042_s0 + $0x40] sm:$0xf]  ;;  %v742_v57 = vld [vmem:[%s1042_s0 + $0x4c] sm:$0xf0]  ;;  %v740_v58 = vld [vmem:[%s1042_s0 + $0x44] sm:$0xf] }
  0x12   :  { %390 = vmatpush.bf16.msra.mxu0 %v751_v16  ;;  %v576_v59 = vld [vmem:[%s1042_s0 + $0x50] sm:$0xf0]  ;;  %v582_v60 = vld [vmem:[%s1042_s0 + $0x48] sm:$0xf]  ;;  %v743_v61 = vld [vmem:[%s1042_s0 + $0x54] sm:$0xf0]  ;;  %v575_v0 = vor.u32 %v742_v57, %v574_v56 }
  0x13   :  { %423 = vmatpush.bf16.msra.mxu1 %v759_v17  ;;  %v741_v62 = vld [vmem:[%s1042_s0 + $0x4c] sm:$0xf]  ;;  %v584_v63 = vld [vmem:[%s1042_s0 + $0x58] sm:$0xf0]  ;;  %v579_v1 = vor.u32 %v740_v58, %v576_v59  ;;  %v583_v2 = vor.u32 %v743_v61, %v582_v60  ;;  %v590_v4 = vld [vmem:[%s1042_s0 + $0x60] sm:$0xf] }
  0x14   :  { %456 = vmatpush.bf16.msra.mxu2 %v767_v18  ;;  %v587_v3 = vor.u32 %v741_v62, %v584_v63  ;;  %v746_v5 = vld [vmem:[%s1042_s0 + $0x6c] sm:$0xf0]  ;;  %v744_v6 = vld [vmem:[%s1042_s0 + $0x64] sm:$0xf]  ;;  %v592_v7 = vld [vmem:[%s1042_s0 + $0x70] sm:$0xf0] }
  0x15   :  { %489 = vmatpush.bf16.msra.mxu3 %v775_v19  ;;  %v598_v8 = vld [vmem:[%s1042_s0 + $0x68] sm:$0xf]  ;;  %v747_v9 = vld [vmem:[%s1042_s0 + $0x74] sm:$0xf0]  ;;  %v745_v10 = vld [vmem:[%s1042_s0 + $0x6c] sm:$0xf]  ;;  %v591_v12 = vor.u32 %v746_v5, %v590_v4  ;;  %v595_v13 = vor.u32 %v744_v6, %v592_v7 }
  0x16   :  { %391 = vmatpush.bf16.msra.mxu0 %v750_v20  ;;  %v600_v11 = vld [vmem:[%s1042_s0 + $0x78] sm:$0xf0]  ;;  %v599_v14 = vor.u32 %v747_v9, %v598_v8  ;;  %v30_v16 = vld [vmem:[%s1042_s0 + $0x80] sm:$0xff]  ;;  %v31_v17 = vld [vmem:[%s1042_s0 + $0x88] sm:$0xff] }
  0x17   :  { %424 = vmatpush.bf16.msra.mxu1 %v758_v21  ;;  %v603_v15 = vor.u32 %v745_v10, %v600_v11  ;;  %v150_v18 = vunpack.c.l.b16 %v30_v16  ;;  %v151_v19 = vunpack.c.h.b16 %v30_v16  ;;  %v152_v20 = vunpack.c.l.b16 %v31_v17 }
  0x18   :  { %457 = vmatpush.bf16.msra.mxu2 %v766_v22  ;;  %v153_v21 = vunpack.c.h.b16 %v31_v17 }
  0x19   :  { %490 = vmatpush.bf16.msra.mxu3 %v774_v23  ;;  %v170_v22 = vpack.c.b16 %v150_v18, %v150_v18  ;;  %v171_v23 = vpack.c.b16 %v151_v19, %v151_v19 }
  0x1a   :  { %392 = vmatpush.bf16.msra.mxu0 %v749_v24  ;;  %v172_v24 = vpack.c.b16 %v152_v20, %v152_v20 }
  0x1b   :  { %425 = vmatpush.bf16.msra.mxu1 %v757_v25  ;;  %v173_v25 = vpack.c.b16 %v153_v21, %v153_v21 }
  0x1c   :  { %458 = vmatpush.bf16.msra.mxu2 %v765_v26  ;;  %v1002_v26 = vld [vmem:[%s1041_s2] ss:$0 sm:$0xff] }
  0x1d   :  { %491 = vmatpush.bf16.msra.mxu3 %v773_v27 }
  0x1e   :  { %393 = vmatpush.bf16.msra.mxu0 %v748_v28 }
  0x1f   :  { %426 = vmatpush.bf16.msra.mxu1 %v756_v29 }
  0x20   :  { %459 = vmatpush.bf16.msra.mxu2 %v764_v30 }
  0x21   :  { %492 = vmatpush.bf16.msra.mxu3 %v772_v31  ;;  %394 = vmatmul.bf16.vlgmr.msra.gmra.mxu0 %v543_v40 }
  0x22   :  { %427 = vmatmul.bf16.vlgmr.msra.gmra.mxu1 %v547_v41 }
  0x23   :  { %460 = vmatmul.bf16.vlgmr.msra.gmra.mxu2 %v551_v42 }
  0x24   :  { %493 = vmatmul.bf16.vlgmr.msra.gmra.mxu3 %v555_v43 }
  0x31   :  { %399 = vmatmul.bf16.gmra.mxu0 %v559_v52 }
  0x32   :  { %432 = vmatmul.bf16.gmra.mxu1 %v563_v53 }
  0x33   :  { %465 = vmatmul.bf16.gmra.mxu2 %v567_v54 }
  0x34   :  { %498 = vmatmul.bf16.gmra.mxu3 %v571_v55 }
  0x41   :  { %404 = vmatmul.bf16.gmra.mxu0 %v575_v0 }
  0x42   :  { %437 = vmatmul.bf16.gmra.mxu1 %v579_v1 }
  0x43   :  { %470 = vmatmul.bf16.gmra.mxu2 %v583_v2 }
  0x44   :  { %503 = vmatmul.bf16.gmra.mxu3 %v587_v3 }
  0x51   :  { %409 = vmatmul.bf16.gmra.mxu0 %v591_v12 }
  0x52   :  { %442 = vmatmul.bf16.gmra.mxu1 %v595_v13 }
  0x53   :  { %475 = vmatmul.bf16.gmra.mxu2 %v599_v14 }
  0x54   :  { %508 = vmatmul.bf16.gmra.mxu3 %v603_v15 }
  0x61   :  { %414 = vmatmul.bf16.gmra.mxu0 %v170_v22 }
  0x62   :  { %447 = vmatmul.bf16.gmra.mxu1 %v171_v23 }
  0x63   :  { %480 = vmatmul.bf16.gmra.mxu2 %v172_v24 }
  0x64   :  { %513 = vmatmul.bf16.gmra.mxu3 %v173_v25 }
  0x9e   :  { %v395_v27 = vpop.f32.mrf.mxu0 }
  0x9f   :  { %v428_v28 = vpop.f32.mrf.mxu1  ;;  %v396_v29 = vadd.f32 %v1002_v26, %v395_v27 }
  0xa1   :  { %v429_v30 = vadd.f32 %v428_v28, %v396_v29 }
  0xa6   :  { %v461_v31 = vpop.f32.mrf.mxu2  ;;  %v397_v34 = vpop.f32.mrf.mxu0 }
  0xa7   :  { %v494_v32 = vpop.f32.mrf.mxu3  ;;  %v462_v33 = vadd.f32 %v461_v31, %v429_v30  ;;  %v430_v35 = vpop.f32.mrf.mxu1  ;;  %v398_v37 = vadd.f32 %v1002_v26, %v397_v34 }
  0xa9   :  { %v495_v36 = vadd.f32 %v494_v32, %v462_v33  ;;  %v431_v39 = vadd.f32 %v430_v35, %v398_v37 }
  0xab   :  { %v518_v38 = vmax.f32 %v495_v36, 0.0 }
  0xad   :  { %527 = vst [vmem:[%s1043_s3] sm:$0xff] %v518_v38 }
  0xae   :  { %v463_v40 = vpop.f32.mrf.mxu2  ;;  %v400_v43 = vpop.f32.mrf.mxu0 }
  0xaf   :  { %v496_v41 = vpop.f32.mrf.mxu3  ;;  %v464_v42 = vadd.f32 %v463_v40, %v431_v39  ;;  %v433_v44 = vpop.f32.mrf.mxu1  ;;  %v401_v45 = vadd.f32 %v1002_v26, %v400_v43 }
  0xb1   :  { %v497_v46 = vadd.f32 %v496_v41, %v464_v42  ;;  %v434_v48 = vadd.f32 %v433_v44, %v401_v45 }
  0xb3   :  { %v519_v47 = vmax.f32 %v497_v46, 0.0 }
  0xb5   :  { %528 = vst [vmem:[%s1043_s3 + $0x8] sm:$0xff] %v519_v47 }
  0xb6   :  { %v466_v49 = vpop.f32.mrf.mxu2  ;;  %v402_v52 = vpop.f32.mrf.mxu0 }
  0xb7   :  { %v499_v50 = vpop.f32.mrf.mxu3  ;;  %v467_v51 = vadd.f32 %v466_v49, %v434_v48  ;;  %v435_v53 = vpop.f32.mrf.mxu1  ;;  %v403_v55 = vadd.f32 %v1002_v26, %v402_v52 }
  0xb9   :  { %v500_v54 = vadd.f32 %v499_v50, %v467_v51  ;;  %v436_v57 = vadd.f32 %v435_v53, %v403_v55 }
  0xbb   :  { %v520_v56 = vmax.f32 %v500_v54, 0.0 }
  0xbd   :  { %529 = vst [vmem:[%s1043_s3 + $0x10] sm:$0xff] %v520_v56 }
  0xbe   :  { %v468_v58 = vpop.f32.mrf.mxu2  ;;  %v405_v61 = vpop.f32.mrf.mxu0 }
  0xbf   :  { %v501_v59 = vpop.f32.mrf.mxu3  ;;  %v469_v60 = vadd.f32 %v468_v58, %v436_v57  ;;  %v438_v62 = vpop.f32.mrf.mxu1  ;;  %v406_v63 = vadd.f32 %v1002_v26, %v405_v61 }
  0xc1   :  { %v502_v0 = vadd.f32 %v501_v59, %v469_v60  ;;  %v439_v2 = vadd.f32 %v438_v62, %v406_v63 }
  0xc3   :  { %v521_v1 = vmax.f32 %v502_v0, 0.0 }
  0xc5   :  { %530 = vst [vmem:[%s1043_s3 + $0x18] sm:$0xff] %v521_v1 }
  0xc6   :  { %v471_v3 = vpop.f32.mrf.mxu2  ;;  %v407_v6 = vpop.f32.mrf.mxu0 }
  0xc7   :  { %v504_v4 = vpop.f32.mrf.mxu3  ;;  %v472_v5 = vadd.f32 %v471_v3, %v439_v2  ;;  %v440_v7 = vpop.f32.mrf.mxu1  ;;  %v408_v9 = vadd.f32 %v1002_v26, %v407_v6 }
  0xc9   :  { %v505_v8 = vadd.f32 %v504_v4, %v472_v5  ;;  %v441_v11 = vadd.f32 %v440_v7, %v408_v9 }
  0xcb   :  { %v522_v10 = vmax.f32 %v505_v8, 0.0 }
  0xcd   :  { %531 = vst [vmem:[%s1043_s3 + $0x20] sm:$0xff] %v522_v10 }
  0xce   :  { %v473_v12 = vpop.f32.mrf.mxu2  ;;  %v410_v15 = vpop.f32.mrf.mxu0 }
  0xcf   :  { %v506_v13 = vpop.f32.mrf.mxu3  ;;  %v474_v14 = vadd.f32 %v473_v12, %v441_v11  ;;  %v443_v16 = vpop.f32.mrf.mxu1  ;;  %v411_v17 = vadd.f32 %v1002_v26, %v410_v15 }
  0xd1   :  { %v507_v18 = vadd.f32 %v506_v13, %v474_v14  ;;  %v444_v20 = vadd.f32 %v443_v16, %v411_v17 }
  0xd3   :  { %v523_v19 = vmax.f32 %v507_v18, 0.0 }
  0xd5   :  { %532 = vst [vmem:[%s1043_s3 + $0x28] sm:$0xff] %v523_v19 }
  0xd6   :  { %v476_v21 = vpop.f32.mrf.mxu2  ;;  %v412_v24 = vpop.f32.mrf.mxu0 }
  0xd7   :  { %v509_v22 = vpop.f32.mrf.mxu3  ;;  %v477_v23 = vadd.f32 %v476_v21, %v444_v20  ;;  %v445_v25 = vpop.f32.mrf.mxu1  ;;  %v413_v28 = vadd.f32 %v1002_v26, %v412_v24 }
  0xd9   :  { %v510_v27 = vadd.f32 %v509_v22, %v477_v23  ;;  %v446_v30 = vadd.f32 %v445_v25, %v413_v28 }
  0xdb   :  { %v524_v29 = vmax.f32 %v510_v27, 0.0 }
  0xdd   :  { %533 = vst [vmem:[%s1043_s3 + $0x30] sm:$0xff] %v524_v29 }
  0xde   :  { %v478_v31 = vpop.f32.mrf.mxu2  ;;  %v415_v34 = vpop.f32.mrf.mxu0 }
  0xdf   :  { %v511_v32 = vpop.f32.mrf.mxu3  ;;  %v479_v33 = vadd.f32 %v478_v31, %v446_v30  ;;  %v448_v35 = vpop.f32.mrf.mxu1  ;;  %v416_v36 = vadd.f32 %v1002_v26, %v415_v34 }
  0xe1   :  { %v512_v37 = vadd.f32 %v511_v32, %v479_v33  ;;  %v449_v39 = vadd.f32 %v448_v35, %v416_v36 }
  0xe3   :  { %v525_v38 = vmax.f32 %v512_v37, 0.0 }
  0xe5   :  { %534 = vst [vmem:[%s1043_s3 + $0x38] sm:$0xff] %v525_v38 }
  0xe6   :  { %v481_v40 = vpop.f32.mrf.mxu2  ;;  %v417_v43 = vpop.f32.mrf.mxu0 }
  0xe7   :  { %v514_v41 = vpop.f32.mrf.mxu3  ;;  %v482_v42 = vadd.f32 %v481_v40, %v449_v39  ;;  %v450_v44 = vpop.f32.mrf.mxu1 }
  0xe9   :  { %v515_v45 = vadd.f32 %v514_v41, %v482_v42 }
  0xeb   :  { %v526_v46 = vmax.f32 %v515_v45, 0.0 }
  0xed   :  { %535 = vst [vmem:[%s1043_s3 + $0x40] sm:$0xff] %v526_v46 }
  0xee   :  { %v483_v47 = vpop.f32.mrf.mxu2 }
  0xef   :  { %v516_v26 = vpop.f32.mrf.mxu3 }

// kernel: _forward_impl.14
= control target key start
LH: loop header
LB: loop body
LE: loop exit
PB: predicated region body
PF: predicated region fallthrough
CT: control target
= control target key end

     0   :  { %s1223_s1 = inlined_call_operand.vmem [shape: bf16[1024,128], index: 1, kind: input, shape index: {}]   ;;  %s1224_s2 = inlined_call_operand.vmem [shape: f32[1,128], index: 2, kind: input, shape index: {}]   ;;  %s1225_s0 = inlined_call_operand.vmem [shape: bf16[8,1024], index: 0, kind: input, shape index: {}]   ;;  %s1226_s3 = inlined_call_operand.vmem [shape: f32[8,128], index: 3, kind: output, shape index: {}]  }
   0x1   :  { %v935_v0 = vld [vmem:[%s1223_s1 + $0x38] sm:$0xff]  ;;  %v934_v4 = vld [vmem:[%s1223_s1 + $0x30] sm:$0xff]  ;;  %v933_v8 = vld [vmem:[%s1223_s1 + $0x28] sm:$0xff] }
   0x2   :  { %v943_v1 = vld [vmem:[%s1223_s1 + $0x78] sm:$0xff]  ;;  %562 = vmatpush.bf16.msra.mxu0 %v935_v0  ;;  %v942_v5 = vld [vmem:[%s1223_s1 + $0x70] sm:$0xff]  ;;  %v941_v9 = vld [vmem:[%s1223_s1 + $0x68] sm:$0xff] }
   0x3   :  { %v951_v2 = vld [vmem:[%s1223_s1 + $0xb8] sm:$0xff]  ;;  %575 = vmatpush.bf16.msra.mxu1 %v943_v1  ;;  %v950_v6 = vld [vmem:[%s1223_s1 + $0xb0] sm:$0xff]  ;;  %v949_v10 = vld [vmem:[%s1223_s1 + $0xa8] sm:$0xff] }
   0x4   :  { %v959_v3 = vld [vmem:[%s1223_s1 + $0xf8] sm:$0xff]  ;;  %588 = vmatpush.bf16.msra.mxu2 %v951_v2  ;;  %v958_v7 = vld [vmem:[%s1223_s1 + $0xf0] sm:$0xff]  ;;  %v957_v11 = vld [vmem:[%s1223_s1 + $0xe8] sm:$0xff] }
   0x5   :  { %601 = vmatpush.bf16.msra.mxu3 %v959_v3  ;;  %v932_v12 = vld [vmem:[%s1223_s1 + $0x20] sm:$0xff]  ;;  %v931_v16 = vld [vmem:[%s1223_s1 + $0x18] sm:$0xff]  ;;  %v930_v20 = vld [vmem:[%s1223_s1 + $0x10] sm:$0xff] }
   0x6   :  { %563 = vmatpush.bf16.msra.mxu0 %v934_v4  ;;  %v940_v13 = vld [vmem:[%s1223_s1 + $0x60] sm:$0xff]  ;;  %v939_v17 = vld [vmem:[%s1223_s1 + $0x58] sm:$0xff]  ;;  %v938_v21 = vld [vmem:[%s1223_s1 + $0x50] sm:$0xff] }
   0x7   :  { %576 = vmatpush.bf16.msra.mxu1 %v942_v5  ;;  %v948_v14 = vld [vmem:[%s1223_s1 + $0xa0] sm:$0xff]  ;;  %v947_v18 = vld [vmem:[%s1223_s1 + $0x98] sm:$0xff]  ;;  %v946_v22 = vld [vmem:[%s1223_s1 + $0x90] sm:$0xff] }
   0x8   :  { %589 = vmatpush.bf16.msra.mxu2 %v950_v6  ;;  %v956_v15 = vld [vmem:[%s1223_s1 + $0xe0] sm:$0xff]  ;;  %v955_v19 = vld [vmem:[%s1223_s1 + $0xd8] sm:$0xff]  ;;  %v954_v23 = vld [vmem:[%s1223_s1 + $0xd0] sm:$0xff] }
   0x9   :  { %602 = vmatpush.bf16.msra.mxu3 %v958_v7  ;;  %v929_v24 = vld [vmem:[%s1223_s1 + $0x8] sm:$0xff]  ;;  %v14_v29 = vld [vmem:[%s1225_s0] sm:$0xff]  ;;  %v967_v38 = vld [vmem:[%s1223_s1 + $0x138] sm:$0xff] }
   0xa   :  { %564 = vmatpush.bf16.msra.mxu0 %v933_v8  ;;  %v937_v25 = vld [vmem:[%s1223_s1 + $0x48] sm:$0xff]  ;;  %v928_v30 = vld [vmem:[%s1223_s1] sm:$0xff]  ;;  %v154_v36 = vunpack.c.l.b16 %v14_v29  ;;  %v155_v37 = vunpack.c.h.b16 %v14_v29  ;;  %v975_v39 = vld [vmem:[%s1223_s1 + $0x178] sm:$0xff] }
   0xb   :  { %577 = vmatpush.bf16.msra.mxu1 %v941_v9  ;;  %v945_v26 = vld [vmem:[%s1223_s1 + $0x88] sm:$0xff]  ;;  %v936_v31 = vld [vmem:[%s1223_s1 + $0x40] sm:$0xff]  ;;  %v983_v40 = vld [vmem:[%s1223_s1 + $0x1b8] sm:$0xff] }
   0xc   :  { %590 = vmatpush.bf16.msra.mxu2 %v949_v10  ;;  %v953_v27 = vld [vmem:[%s1223_s1 + $0xc8] sm:$0xff]  ;;  %v944_v34 = vld [vmem:[%s1223_s1 + $0x80] sm:$0xff]  ;;  %v991_v41 = vld [vmem:[%s1223_s1 + $0x1f8] sm:$0xff]  ;;  %v162_v44 = vpack.c.b16 %v154_v36, %v154_v36  ;;  %v163_v45 = vpack.c.b16 %v155_v37, %v155_v37 }
   0xd   :  { %603 = vmatpush.bf16.msra.mxu3 %v957_v11  ;;  %v15_v28 = vld [vmem:[%s1225_s0 + $0x8] sm:$0xff]  ;;  %v952_v35 = vld [vmem:[%s1223_s1 + $0xc0] sm:$0xff]  ;;  %v966_v46 = vld [vmem:[%s1223_s1 + $0x130] sm:$0xff] }
   0xe   :  { %565 = vmatpush.bf16.msra.mxu0 %v932_v12  ;;  %v156_v32 = vunpack.c.l.b16 %v15_v28  ;;  %v157_v33 = vunpack.c.h.b16 %v15_v28  ;;  %v974_v47 = vld [vmem:[%s1223_s1 + $0x170] sm:$0xff]  ;;  %v965_v50 = vld [vmem:[%s1223_s1 + $0x128] sm:$0xff]  ;;  %v964_v54 = vld [vmem:[%s1223_s1 + $0x120] sm:$0xff] }
   0xf   :  { %578 = vmatpush.bf16.msra.mxu1 %v940_v13  ;;  %v982_v48 = vld [vmem:[%s1223_s1 + $0x1b0] sm:$0xff]  ;;  %v973_v51 = vld [vmem:[%s1223_s1 + $0x168] sm:$0xff]  ;;  %v972_v55 = vld [vmem:[%s1223_s1 + $0x160] sm:$0xff] }
  0x10   :  { %591 = vmatpush.bf16.msra.mxu2 %v948_v14  ;;  %v164_v42 = vpack.c.b16 %v156_v32, %v156_v32  ;;  %v165_v43 = vpack.c.b16 %v157_v33, %v157_v33  ;;  %v990_v49 = vld [vmem:[%s1223_s1 + $0x1f0] sm:$0xff]  ;;  %v981_v52 = vld [vmem:[%s1223_s1 + $0x1a8] sm:$0xff]  ;;  %v980_v56 = vld [vmem:[%s1223_s1 + $0x1a0] sm:$0xff] }
  0x11   :  { %604 = vmatpush.bf16.msra.mxu3 %v956_v15  ;;  %v989_v53 = vld [vmem:[%s1223_s1 + $0x1e8] sm:$0xff]  ;;  %v988_v57 = vld [vmem:[%s1223_s1 + $0x1e0] sm:$0xff]  ;;  %v963_v58 = vld [vmem:[%s1223_s1 + $0x118] sm:$0xff] }
  0x12   :  { %566 = vmatpush.bf16.msra.mxu0 %v931_v16  ;;  %v971_v59 = vld [vmem:[%s1223_s1 + $0x158] sm:$0xff]  ;;  %v962_v62 = vld [vmem:[%s1223_s1 + $0x110] sm:$0xff]  ;;  %v961_v2 = vld [vmem:[%s1223_s1 + $0x108] sm:$0xff] }
  0x13   :  { %579 = vmatpush.bf16.msra.mxu1 %v939_v17  ;;  %v979_v60 = vld [vmem:[%s1223_s1 + $0x198] sm:$0xff]  ;;  %v970_v63 = vld [vmem:[%s1223_s1 + $0x150] sm:$0xff]  ;;  %v969_v3 = vld [vmem:[%s1223_s1 + $0x148] sm:$0xff] }
  0x14   :  { %592 = vmatpush.bf16.msra.mxu2 %v947_v18  ;;  %v987_v61 = vld [vmem:[%s1223_s1 + $0x1d8] sm:$0xff]  ;;  %v978_v0 = vld [vmem:[%s1223_s1 + $0x190] sm:$0xff]  ;;  %v977_v5 = vld [vmem:[%s1223_s1 + $0x188] sm:$0xff] }
  0x15   :  { %605 = vmatpush.bf16.msra.mxu3 %v955_v19  ;;  %v986_v1 = vld [vmem:[%s1223_s1 + $0x1d0] sm:$0xff]  ;;  %v985_v6 = vld [vmem:[%s1223_s1 + $0x1c8] sm:$0xff]  ;;  %v17_v7 = vld [vmem:[%s1225_s0 + $0x18] sm:$0xff] }
  0x16   :  { %567 = vmatpush.bf16.msra.mxu0 %v930_v20  ;;  %v16_v4 = vld [vmem:[%s1225_s0 + $0x10] sm:$0xff]  ;;  %v960_v10 = vld [vmem:[%s1223_s1 + $0x100] sm:$0xff]  ;;  %v160_v12 = vunpack.c.l.b16 %v17_v7  ;;  %v161_v13 = vunpack.c.h.b16 %v17_v7 }
  0x17   :  { %580 = vmatpush.bf16.msra.mxu1 %v938_v21  ;;  %v158_v8 = vunpack.c.l.b16 %v16_v4  ;;  %v159_v9 = vunpack.c.h.b16 %v16_v4  ;;  %v968_v11 = vld [vmem:[%s1223_s1 + $0x140] sm:$0xff] }
  0x18   :  { %593 = vmatpush.bf16.msra.mxu2 %v946_v22  ;;  %v976_v14 = vld [vmem:[%s1223_s1 + $0x180] sm:$0xff]  ;;  %v168_v18 = vpack.c.b16 %v160_v12, %v160_v12  ;;  %v169_v19 = vpack.c.b16 %v161_v13, %v161_v13 }
  0x19   :  { %606 = vmatpush.bf16.msra.mxu3 %v954_v23  ;;  %v984_v15 = vld [vmem:[%s1223_s1 + $0x1c0] sm:$0xff]  ;;  %v166_v16 = vpack.c.b16 %v158_v8, %v158_v8  ;;  %v167_v17 = vpack.c.b16 %v159_v9, %v159_v9 }
  0x1a   :  { %568 = vmatpush.bf16.msra.mxu0 %v929_v24 }
  0x1b   :  { %581 = vmatpush.bf16.msra.mxu1 %v937_v25 }
  0x1c   :  { %594 = vmatpush.bf16.msra.mxu2 %v945_v26  ;;  %v992_v26 = vld [vmem:[%s1224_s2] ss:$0 sm:$0xff] }
  0x1d   :  { %607 = vmatpush.bf16.msra.mxu3 %v953_v27 }
  0x1e   :  { %569 = vmatpush.bf16.msra.mxu0 %v928_v30 }
  0x1f   :  { %582 = vmatpush.bf16.msra.mxu1 %v936_v31 }
  0x20   :  { %595 = vmatpush.bf16.msra.mxu2 %v944_v34 }
  0x21   :  { %608 = vmatpush.bf16.msra.mxu3 %v952_v35  ;;  %570 = vmatmul.bf16.vlgmr.msra.gmra.mxu0 %v162_v44 }
  0x22   :  { %614 = vmatpush.bf16.msrb.mxu0 %v967_v38  ;;  %583 = vmatmul.bf16.vlgmr.msra.gmra.mxu1 %v163_v45 }
  0x23   :  { %627 = vmatpush.bf16.msrb.mxu1 %v975_v39  ;;  %596 = vmatmul.bf16.vlgmr.msra.gmra.mxu2 %v164_v42 }
  0x24   :  { %640 = vmatpush.bf16.msrb.mxu2 %v983_v40  ;;  %609 = vmatmul.bf16.vlgmr.msra.gmra.mxu3 %v165_v43 }
  0x25   :  { %653 = vmatpush.bf16.msrb.mxu3 %v991_v41 }
  0x26   :  { %615 = vmatpush.bf16.msrb.mxu0 %v966_v46 }
  0x27   :  { %628 = vmatpush.bf16.msrb.mxu1 %v974_v47 }
  0x28   :  { %641 = vmatpush.bf16.msrb.mxu2 %v982_v48 }
  0x29   :  { %654 = vmatpush.bf16.msrb.mxu3 %v990_v49 }
  0x2a   :  { %616 = vmatpush.bf16.msrb.mxu0 %v965_v50 }
  0x2b   :  { %629 = vmatpush.bf16.msrb.mxu1 %v973_v51 }
  0x2c   :  { %642 = vmatpush.bf16.msrb.mxu2 %v981_v52 }
  0x2d   :  { %655 = vmatpush.bf16.msrb.mxu3 %v989_v53 }
  0x2e   :  { %617 = vmatpush.bf16.msrb.mxu0 %v964_v54 }
  0x2f   :  { %630 = vmatpush.bf16.msrb.mxu1 %v972_v55 }
  0x30   :  { %643 = vmatpush.bf16.msrb.mxu2 %v980_v56 }
  0x31   :  { %656 = vmatpush.bf16.msrb.mxu3 %v988_v57 }
  0x32   :  { %618 = vmatpush.bf16.msrb.mxu0 %v963_v58 }
  0x33   :  { %631 = vmatpush.bf16.msrb.mxu1 %v971_v59 }
  0x34   :  { %644 = vmatpush.bf16.msrb.mxu2 %v979_v60 }
  0x35   :  { %657 = vmatpush.bf16.msrb.mxu3 %v987_v61 }
  0x36   :  { %619 = vmatpush.bf16.msrb.mxu0 %v962_v62 }
  0x37   :  { %632 = vmatpush.bf16.msrb.mxu1 %v970_v63 }
  0x38   :  { %645 = vmatpush.bf16.msrb.mxu2 %v978_v0 }
  0x39   :  { %658 = vmatpush.bf16.msrb.mxu3 %v986_v1 }
  0x3a   :  { %620 = vmatpush.bf16.msrb.mxu0 %v961_v2 }
  0x3b   :  { %633 = vmatpush.bf16.msrb.mxu1 %v969_v3 }
  0x3c   :  { %646 = vmatpush.bf16.msrb.mxu2 %v977_v5 }
  0x3d   :  { %659 = vmatpush.bf16.msrb.mxu3 %v985_v6 }
  0x3e   :  { %621 = vmatpush.bf16.msrb.mxu0 %v960_v10 }
  0x3f   :  { %634 = vmatpush.bf16.msrb.mxu1 %v968_v11 }
  0x40   :  { %647 = vmatpush.bf16.msrb.mxu2 %v976_v14 }
  0x41   :  { %660 = vmatpush.bf16.msrb.mxu3 %v984_v15  ;;  %622 = vmatmul.bf16.vlgmr.msrb.gmra.mxu0 %v166_v16 }
  0x42   :  { %635 = vmatmul.bf16.vlgmr.msrb.gmra.mxu1 %v167_v17 }
  0x43   :  { %648 = vmatmul.bf16.vlgmr.msrb.gmra.mxu2 %v168_v18 }
  0x44   :  { %661 = vmatmul.bf16.vlgmr.msrb.gmra.mxu3 %v169_v19 }
  0x9e   :  { %v571_v20 = vpop.f32.mrf.mxu0 }
  0x9f   :  { %v584_v21 = vpop.f32.mrf.mxu1  ;;  %v572_v29 = vadd.f32 %v992_v26, %v571_v20 }
  0xa1   :  { %v585_v30 = vadd.f32 %v584_v21, %v572_v29 }
  0xa6   :  { %v597_v22 = vpop.f32.mrf.mxu2  ;;  %v573_v24 = vpop.f32.mrf.mxu0 }
  0xa7   :  { %v610_v23 = vpop.f32.mrf.mxu3  ;;  %v586_v25 = vpop.f32.mrf.mxu1  ;;  %v598_v31 = vadd.f32 %v597_v22, %v585_v30 }
  0xa9   :  { %v611_v32 = vadd.f32 %v610_v23, %v598_v31 }
  0xae   :  { %v599_v27 = vpop.f32.mrf.mxu2 }
  0xaf   :  { %v612_v28 = vpop.f32.mrf.mxu3 }
  0xbe   :  { %v623_v33 = vpop.f32.mrf.mxu0 }
  0xbf   :  { %v636_v34 = vpop.f32.mrf.mxu1  ;;  %v624_v35 = vadd.f32 %v623_v33, %v611_v32 }
  0xc1   :  { %v637_v36 = vadd.f32 %v636_v34, %v624_v35 }
  0xc6   :  { %v649_v37 = vpop.f32.mrf.mxu2  ;;  %v625_v40 = vpop.f32.mrf.mxu0 }
  0xc7   :  { %v662_v38 = vpop.f32.mrf.mxu3  ;;  %v650_v39 = vadd.f32 %v649_v37, %v637_v36  ;;  %v638_v41 = vpop.f32.mrf.mxu1 }
  0xc9   :  { %v663_v42 = vadd.f32 %v662_v38, %v650_v39 }
  0xcb   :  { %v666_v43 = vmax.f32 %v663_v42, 0.0 }
  0xcd   :  { %667 = vst [vmem:[%s1226_s3] sm:$0xff] %v666_v43 }
  0xce   :  { %v651_v44 = vpop.f32.mrf.mxu2 }
  0xcf   :  { %v664_v45 = vpop.f32.mrf.mxu3 }

// kernel: _forward_impl.15
= control target key start
LH: loop header
LB: loop body
LE: loop exit
PB: predicated region body
PF: predicated region fallthrough
CT: control target
= control target key end

     0   :  { %s342_s1 = inlined_call_operand.vmem [shape: bf16[256,128], index: 1, kind: input, shape index: {}]   ;;  %s343_s0 = inlined_call_operand.vmem [shape: bf16[2,256], index: 0, kind: input, shape index: {}]   ;;  %s344_s2 = inlined_call_operand.vmem [shape: f32[1,128], index: 2, kind: input, shape index: {}]   ;;  %s345_s3 = inlined_call_operand.vmem [shape: f32[2,128], index: 3, kind: output, shape index: {}]  }
   0x1   :  { %v255_v0 = vld [vmem:[%s342_s1 + $0x38] sm:$0xff]  ;;  %v254_v2 = vld [vmem:[%s342_s1 + $0x30] sm:$0xff]  ;;  %v14_v4 = vld [vmem:[%s343_s0] sm:$0x3] }
   0x2   :  { %v263_v1 = vld [vmem:[%s342_s1 + $0x78] sm:$0xff]  ;;  %153 = vmatpush.bf16.msra.mxu0 %v255_v0  ;;  %v262_v3 = vld [vmem:[%s342_s1 + $0x70] sm:$0xff]  ;;  %v253_v5 = vld [vmem:[%s342_s1 + $0x28] sm:$0xff]  ;;  %52 = vst [vmem:[#allocation1] ss:$9 sm:$0xff] %v14_v4 }
   0x3   :  { %166 = vmatpush.bf16.msra.mxu1 %v263_v1  ;;  %v261_v6 = vld [vmem:[%s342_s1 + $0x68] sm:$0xff]  ;;  %v252_v7 = vld [vmem:[%s342_s1 + $0x20] sm:$0xff]  ;;  %v251_v9 = vld [vmem:[%s342_s1 + $0x18] sm:$0xff] }
   0x4   :  { %v260_v8 = vld [vmem:[%s342_s1 + $0x60] sm:$0xff]  ;;  %v259_v10 = vld [vmem:[%s342_s1 + $0x58] sm:$0xff]  ;;  %v250_v11 = vld [vmem:[%s342_s1 + $0x10] sm:$0xff] }
   0x5   :  { %v258_v12 = vld [vmem:[%s342_s1 + $0x50] sm:$0xff]  ;;  %v249_v13 = vld [vmem:[%s342_s1 + $0x8] sm:$0xff]  ;;  %v248_v15 = vld [vmem:[%s342_s1] sm:$0xff] }
   0x6   :  { %154 = vmatpush.bf16.msra.mxu0 %v254_v2  ;;  %v257_v14 = vld [vmem:[%s342_s1 + $0x48] sm:$0xff]  ;;  %v256_v16 = vld [vmem:[%s342_s1 + $0x40] sm:$0xff] }
   0x7   :  { %167 = vmatpush.bf16.msra.mxu1 %v262_v3  ;;  %v264_v19 = vld [vmem:[%s344_s2] ss:$0 sm:$0xff] }
   0x9   :  { %v53_v17 = vld [vmem:[#allocation1] sm:$0xff]  ;;  %v54_v18 = vld [vmem:[#allocation1 + $0x9] sm:$0xff] }
   0xa   :  { %155 = vmatpush.bf16.msra.mxu0 %v253_v5 }
   0xb   :  { %168 = vmatpush.bf16.msra.mxu1 %v261_v6 }
   0xe   :  { %156 = vmatpush.bf16.msra.mxu0 %v252_v7 }
   0xf   :  { %169 = vmatpush.bf16.msra.mxu1 %v260_v8 }
  0x12   :  { %157 = vmatpush.bf16.msra.mxu0 %v251_v9 }
  0x13   :  { %170 = vmatpush.bf16.msra.mxu1 %v259_v10 }
  0x16   :  { %158 = vmatpush.bf16.msra.mxu0 %v250_v11 }
  0x17   :  { %171 = vmatpush.bf16.msra.mxu1 %v258_v12 }
  0x1a   :  { %159 = vmatpush.bf16.msra.mxu0 %v249_v13 }
  0x1b   :  { %172 = vmatpush.bf16.msra.mxu1 %v257_v14 }
  0x1e   :  { %160 = vmatpush.bf16.msra.mxu0 %v248_v15 }
  0x1f   :  { %173 = vmatpush.bf16.msra.mxu1 %v256_v16 }
  0x21   :  { %161 = vmatmul.bf16.vlgmr.msra.gmra.mxu0 %v53_v17 }
  0x22   :  { %174 = vmatmul.bf16.vlgmr.msra.gmra.mxu1 %v54_v18 }
  0x9e   :  { %v162_v20 = vpop.f32.mrf.mxu0 }
  0x9f   :  { %v175_v21 = vpop.f32.mrf.mxu1  ;;  %v163_v22 = vadd.f32 %v264_v19, %v162_v20 }
  0xa1   :  { %v176_v23 = vadd.f32 %v175_v21, %v163_v22 }
  0xa3   :  { %179 = vst [vmem:[%s345_s3] sm:$0x3] %v176_v23 }
  0xa6   :  { %v164_v24 = vpop.f32.mrf.mxu0 }
  0xa7   :  { %v177_v25 = vpop.f32.mrf.mxu1 }

// kernel: _forward_impl.17
= control target key start
LH: loop header
LB: loop body
LE: loop exit
PB: predicated region body
PF: predicated region fallthrough
CT: control target
= control target key end

     0   :  { %vm46_vm0 = vcmask 261120   ;;  %vm79_vm1 = vcmask 1041408   ;;  %s162_s1 = inlined_call_operand.vmem [shape: bf16[32,256], index: 1, kind: input, shape index: {}]   ;;  %s163_s0 = inlined_call_operand.vmem [shape: bf16[2,32], index: 0, kind: input, shape index: {}]   ;;  %s164_s2 = inlined_call_operand.vmem [shape: f32[1,256], index: 2, kind: input, shape index: {}]   ;;  %s165_s3 = inlined_call_operand.vmem [shape: f32[2,256], index: 3, kind: output, shape index: {}]  }
   0x1   :  { %v97_v0 = vld [vmem:[%s162_s1 + $0x10] sm:$0xf]  ;;  %v108_v1 = vld [vmem:[%s162_s1 + $0x14] sm:$0xf0]  ;;  %v107_v2 = vld [vmem:[%s162_s1 + $0x14] sm:$0xf] }
   0x2   :  { %v98_v3 = vor.u32 %v108_v1, %v97_v0  ;;  %v99_v4 = vld [vmem:[%s162_s1 + $0x18] sm:$0xf0]  ;;  %v89_v5 = vld [vmem:[%s162_s1] sm:$0xf]  ;;  %v106_v6 = vld [vmem:[%s162_s1 + $0x4] sm:$0xf0] }
   0x3   :  { %v102_v7 = vor.u32 %v107_v2, %v99_v4  ;;  %v105_v8 = vld [vmem:[%s162_s1 + $0x4] sm:$0xf]  ;;  %v91_v9 = vld [vmem:[%s162_s1 + $0x8] sm:$0xf0]  ;;  %v90_v10 = vor.u32 %v106_v6, %v89_v5  ;;  %v15_v12 = vld [vmem:[%s163_s0] sm:$0x1] }
   0x4   :  { %56 = vmatpush.bf16.msra.mxu0 %v98_v3  ;;  %v94_v11 = vor.u32 %v105_v8, %v91_v9  ;;  %v20_v13 = vld [vmem:[%s164_s2] sm:$0x3] }
   0x5   :  { %69 = vmatpush.bf16.msra.mxu1 %v102_v7  ;;  %v23_v14 = vperm.slane %v20_v13, 1  ;;  %v22_v15 = vperm.slane %v20_v13, 0 }
   0x8   :  { %57 = vmatpush.bf16.msra.mxu0 %v90_v10 }
   0x9   :  { %70 = vmatpush.bf16.msra.mxu1 %v94_v11 }
   0xb   :  { %103 = vmatmul.msk.bf16.vlgmr.msra.gmra.mxu0 %vm46_vm0, %v15_v12 }
   0xc   :  { %104 = vmatmul.msk.bf16.vlgmr.msra.gmra.mxu1 %vm46_vm0, %v15_v12 }
  0x88   :  { %v59_v16 = vpop.f32.mrf.mxu0 }
  0x89   :  { %v72_v17 = vpop.f32.mrf.mxu1  ;;  %v60_v19 = vadd.f32 %v59_v16, %v22_v15 }
  0x8a   :  { %v73_v18 = vadd.f32 %v72_v17, %v23_v14 }
  0x8c   :  { %v78_v20 = vrot.slane %v73_v18, 6 }
  0x8e   :  { %v80_v21 = vsel %vm79_vm1, %v60_v19, %v78_v20 }
  0x8f   :  { %82 = vst [vmem:[%s165_s3] sm:$0xf] %v80_v21 }
  0x90   :  { %v61_v22 = vpop.f32.mrf.mxu0 }
  0x91   :  { %v74_v23 = vpop.f32.mrf.mxu1 }

// kernel: _forward_impl.18
= control target key start
LH: loop header
LB: loop body
LE: loop exit
PB: predicated region body
PF: predicated region fallthrough
CT: control target
= control target key end

     0   :  { %s738_s1 = inlined_call_operand.vmem [shape: bf16[256,256], index: 1, kind: input, shape index: {}]   ;;  %s739_s0 = inlined_call_operand.vmem [shape: bf16[18,256], index: 0, kind: input, shape index: {}]   ;;  %s740_s2 = inlined_call_operand.vmem [shape: f32[1,256], index: 2, kind: input, shape index: {}]   ;;  %s741_s3 = inlined_call_operand.vmem [shape: f32[18,256], index: 3, kind: output, shape index: {}]  }
   0x1   :  { %v386_v0 = vld [vmem:[%s738_s1 + $0x70] sm:$0xf]  ;;  %v473_v1 = vld [vmem:[%s738_s1 + $0x74] sm:$0xf0]  ;;  %v472_v5 = vld [vmem:[%s738_s1 + $0x74] sm:$0xf] }
   0x2   :  { %v450_v2 = vld [vmem:[%s738_s1 + $0xf0] sm:$0xf]  ;;  %v387_v3 = vor.u32 %v473_v1, %v386_v0  ;;  %v489_v4 = vld [vmem:[%s738_s1 + $0xf4] sm:$0xf0]  ;;  %v388_v6 = vld [vmem:[%s738_s1 + $0x78] sm:$0xf0] }
   0x3   :  { %v451_v7 = vor.u32 %v489_v4, %v450_v2  ;;  %v391_v8 = vor.u32 %v472_v5, %v388_v6  ;;  %v488_v9 = vld [vmem:[%s738_s1 + $0xf4] sm:$0xf]  ;;  %v452_v10 = vld [vmem:[%s738_s1 + $0xf8] sm:$0xf0]  ;;  %v378_v11 = vld [vmem:[%s738_s1 + $0x60] sm:$0xf] }
   0x4   :  { %232 = vmatpush.bf16.msra.mxu0 %v387_v3  ;;  %v455_v12 = vor.u32 %v488_v9, %v452_v10  ;;  %v471_v13 = vld [vmem:[%s738_s1 + $0x64] sm:$0xf0]  ;;  %v442_v14 = vld [vmem:[%s738_s1 + $0xe0] sm:$0xf]  ;;  %v470_v18 = vld [vmem:[%s738_s1 + $0x64] sm:$0xf] }
   0x5   :  { %v487_v15 = vld [vmem:[%s738_s1 + $0xe4] sm:$0xf0]  ;;  %250 = vmatpush.bf16.msra.mxu1 %v451_v7  ;;  %268 = vmatpush.bf16.msra.mxu2 %v391_v8  ;;  %v379_v16 = vor.u32 %v471_v13, %v378_v11  ;;  %v380_v19 = vld [vmem:[%s738_s1 + $0x68] sm:$0xf0]  ;;  %v486_v20 = vld [vmem:[%s738_s1 + $0xe4] sm:$0xf] }
   0x6   :  { %v443_v17 = vor.u32 %v487_v15, %v442_v14  ;;  %286 = vmatpush.bf16.msra.mxu3 %v455_v12  ;;  %v383_v21 = vor.u32 %v470_v18, %v380_v19  ;;  %v444_v22 = vld [vmem:[%s738_s1 + $0xe8] sm:$0xf0]  ;;  %v370_v23 = vld [vmem:[%s738_s1 + $0x50] sm:$0xf]  ;;  %v469_v24 = vld [vmem:[%s738_s1 + $0x54] sm:$0xf0] }
   0x7   :  { %v447_v25 = vor.u32 %v486_v20, %v444_v22  ;;  %v434_v26 = vld [vmem:[%s738_s1 + $0xd0] sm:$0xf]  ;;  %v485_v27 = vld [vmem:[%s738_s1 + $0xd4] sm:$0xf0]  ;;  %v468_v28 = vld [vmem:[%s738_s1 + $0x54] sm:$0xf]  ;;  %v371_v29 = vor.u32 %v469_v24, %v370_v23 }
   0x8   :  { %233 = vmatpush.bf16.msra.mxu0 %v379_v16  ;;  %v372_v30 = vld [vmem:[%s738_s1 + $0x58] sm:$0xf0]  ;;  %v484_v31 = vld [vmem:[%s738_s1 + $0xd4] sm:$0xf]  ;;  %v435_v33 = vor.u32 %v485_v27, %v434_v26  ;;  %v362_v35 = vld [vmem:[%s738_s1 + $0x40] sm:$0xf] }
   0x9   :  { %v436_v32 = vld [vmem:[%s738_s1 + $0xd8] sm:$0xf0]  ;;  %251 = vmatpush.bf16.msra.mxu1 %v443_v17  ;;  %269 = vmatpush.bf16.msra.mxu2 %v383_v21  ;;  %v375_v34 = vor.u32 %v468_v28, %v372_v30  ;;  %v467_v36 = vld [vmem:[%s738_s1 + $0x44] sm:$0xf0]  ;;  %v426_v37 = vld [vmem:[%s738_s1 + $0xc0] sm:$0xf] }
   0xa   :  { %287 = vmatpush.bf16.msra.mxu3 %v447_v25  ;;  %v439_v38 = vor.u32 %v484_v31, %v436_v32  ;;  %v483_v39 = vld [vmem:[%s738_s1 + $0xc4] sm:$0xf0]  ;;  %v466_v40 = vld [vmem:[%s738_s1 + $0x44] sm:$0xf]  ;;  %v364_v41 = vld [vmem:[%s738_s1 + $0x48] sm:$0xf0]  ;;  %v363_v44 = vor.u32 %v467_v36, %v362_v35 }
   0xb   :  { %v482_v42 = vld [vmem:[%s738_s1 + $0xc4] sm:$0xf]  ;;  %v428_v43 = vld [vmem:[%s738_s1 + $0xc8] sm:$0xf0]  ;;  %v427_v45 = vor.u32 %v483_v39, %v426_v37  ;;  %v367_v46 = vor.u32 %v466_v40, %v364_v41  ;;  %v354_v47 = vld [vmem:[%s738_s1 + $0x30] sm:$0xf] }
   0xc   :  { %234 = vmatpush.bf16.msra.mxu0 %v371_v29  ;;  %v465_v48 = vld [vmem:[%s738_s1 + $0x34] sm:$0xf0]  ;;  %v418_v49 = vld [vmem:[%s738_s1 + $0xb0] sm:$0xf]  ;;  %v431_v50 = vor.u32 %v482_v42, %v428_v43  ;;  %v464_v52 = vld [vmem:[%s738_s1 + $0x34] sm:$0xf] }
   0xd   :  { %252 = vmatpush.bf16.msra.mxu1 %v435_v33  ;;  %270 = vmatpush.bf16.msra.mxu2 %v375_v34  ;;  %v481_v51 = vld [vmem:[%s738_s1 + $0xb4] sm:$0xf0]  ;;  %v356_v53 = vld [vmem:[%s738_s1 + $0x38] sm:$0xf0]  ;;  %v480_v54 = vld [vmem:[%s738_s1 + $0xb4] sm:$0xf]  ;;  %v355_v56 = vor.u32 %v465_v48, %v354_v47 }
   0xe   :  { %288 = vmatpush.bf16.msra.mxu3 %v439_v38  ;;  %v420_v55 = vld [vmem:[%s738_s1 + $0xb8] sm:$0xf0]  ;;  %v419_v57 = vor.u32 %v481_v51, %v418_v49  ;;  %v359_v58 = vor.u32 %v464_v52, %v356_v53  ;;  %v346_v59 = vld [vmem:[%s738_s1 + $0x20] sm:$0xf]  ;;  %v463_v60 = vld [vmem:[%s738_s1 + $0x24] sm:$0xf0] }
   0xf   :  { %v410_v61 = vld [vmem:[%s738_s1 + $0xa0] sm:$0xf]  ;;  %v423_v62 = vor.u32 %v480_v54, %v420_v55  ;;  %v479_v63 = vld [vmem:[%s738_s1 + $0xa4] sm:$0xf0]  ;;  %v462_v0 = vld [vmem:[%s738_s1 + $0x24] sm:$0xf]  ;;  %v347_v4 = vor.u32 %v463_v60, %v346_v59 }
  0x10   :  { %235 = vmatpush.bf16.msra.mxu0 %v363_v44  ;;  %v348_v1 = vld [vmem:[%s738_s1 + $0x28] sm:$0xf0]  ;;  %v478_v2 = vld [vmem:[%s738_s1 + $0xa4] sm:$0xf]  ;;  %v411_v5 = vor.u32 %v479_v63, %v410_v61  ;;  %v338_v7 = vld [vmem:[%s738_s1 + $0x10] sm:$0xf] }
  0x11   :  { %253 = vmatpush.bf16.msra.mxu1 %v427_v45  ;;  %271 = vmatpush.bf16.msra.mxu2 %v367_v46  ;;  %v412_v3 = vld [vmem:[%s738_s1 + $0xa8] sm:$0xf0]  ;;  %v351_v6 = vor.u32 %v462_v0, %v348_v1  ;;  %v461_v8 = vld [vmem:[%s738_s1 + $0x14] sm:$0xf0]  ;;  %v402_v9 = vld [vmem:[%s738_s1 + $0x90] sm:$0xf] }
  0x12   :  { %289 = vmatpush.bf16.msra.mxu3 %v431_v50  ;;  %v415_v10 = vor.u32 %v478_v2, %v412_v3  ;;  %v477_v11 = vld [vmem:[%s738_s1 + $0x94] sm:$0xf0]  ;;  %v460_v12 = vld [vmem:[%s738_s1 + $0x14] sm:$0xf]  ;;  %v340_v13 = vld [vmem:[%s738_s1 + $0x18] sm:$0xf0]  ;;  %v339_v16 = vor.u32 %v461_v8, %v338_v7 }
  0x13   :  { %v476_v14 = vld [vmem:[%s738_s1 + $0x94] sm:$0xf]  ;;  %v404_v15 = vld [vmem:[%s738_s1 + $0x98] sm:$0xf0]  ;;  %v403_v17 = vor.u32 %v477_v11, %v402_v9  ;;  %v343_v18 = vor.u32 %v460_v12, %v340_v13  ;;  %v330_v19 = vld [vmem:[%s738_s1] sm:$0xf] }
  0x14   :  { %236 = vmatpush.bf16.msra.mxu0 %v355_v56  ;;  %v459_v20 = vld [vmem:[%s738_s1 + $0x4] sm:$0xf0]  ;;  %v394_v21 = vld [vmem:[%s738_s1 + $0x80] sm:$0xf]  ;;  %v407_v22 = vor.u32 %v476_v14, %v404_v15  ;;  %v458_v24 = vld [vmem:[%s738_s1 + $0x4] sm:$0xf] }
  0x15   :  { %254 = vmatpush.bf16.msra.mxu1 %v419_v57  ;;  %272 = vmatpush.bf16.msra.mxu2 %v359_v58  ;;  %v475_v23 = vld [vmem:[%s738_s1 + $0x84] sm:$0xf0]  ;;  %v332_v25 = vld [vmem:[%s738_s1 + $0x8] sm:$0xf0]  ;;  %v474_v26 = vld [vmem:[%s738_s1 + $0x84] sm:$0xf]  ;;  %v331_v28 = vor.u32 %v459_v20, %v330_v19 }
  0x16   :  { %290 = vmatpush.bf16.msra.mxu3 %v423_v62  ;;  %v396_v27 = vld [vmem:[%s738_s1 + $0x88] sm:$0xf0]  ;;  %v322_v29 = vld [vmem:[%s739_s0] sm:$0xf]  ;;  %v457_v30 = vld [vmem:[%s739_s0 + $0x4] sm:$0xf0]  ;;  %v395_v31 = vor.u32 %v475_v23, %v394_v21  ;;  %v335_v32 = vor.u32 %v458_v24, %v332_v25 }
  0x17   :  { %v456_v33 = vld [vmem:[%s739_s0 + $0x4] sm:$0xf]  ;;  %v324_v34 = vld [vmem:[%s739_s0 + $0x8] sm:$0xf0]  ;;  %v399_v35 = vor.u32 %v474_v26, %v396_v27  ;;  %v323_v36 = vor.u32 %v457_v30, %v322_v29  ;;  %v16_v38 = vld [vmem:[%s739_s0 + $0x10] sm:$0x11] }
  0x18   :  { %237 = vmatpush.bf16.msra.mxu0 %v347_v4  ;;  %v327_v37 = vor.u32 %v456_v33, %v324_v34  ;;  %v62_v39 = vunpack.c.l.b16 %v16_v38  ;;  %v63_v40 = vunpack.c.h.b16 %v16_v38  ;;  %v49_v43 = vld [vmem:[%s740_s2] sm:$0x3] }
  0x19   :  { %255 = vmatpush.bf16.msra.mxu1 %v411_v5  ;;  %273 = vmatpush.bf16.msra.mxu2 %v351_v6  ;;  %v51_v44 = vperm.slane %v49_v43, 0  ;;  %v52_v49 = vperm.slane %v49_v43, 1 }
  0x1a   :  { %291 = vmatpush.bf16.msra.mxu3 %v415_v10  ;;  %v66_v41 = vpack.c.b16 %v62_v39, %v62_v39  ;;  %v67_v42 = vpack.c.b16 %v63_v40, %v63_v40 }
  0x1c   :  { %238 = vmatpush.bf16.msra.mxu0 %v339_v16 }
  0x1d   :  { %256 = vmatpush.bf16.msra.mxu1 %v403_v17  ;;  %274 = vmatpush.bf16.msra.mxu2 %v343_v18 }
  0x1e   :  { %292 = vmatpush.bf16.msra.mxu3 %v407_v22 }
  0x20   :  { %239 = vmatpush.bf16.msra.mxu0 %v331_v28 }
  0x21   :  { %257 = vmatpush.bf16.msra.mxu1 %v395_v31  ;;  %275 = vmatpush.bf16.msra.mxu2 %v335_v32 }
  0x22   :  { %293 = vmatpush.bf16.msra.mxu3 %v399_v35 }
  0x23   :  { %240 = vmatmul.bf16.vlgmr.msra.gmra.mxu0 %v323_v36 }
  0x24   :  { %258 = vmatmul.bf16.vlgmr.msra.gmra.mxu1 %v327_v37  ;;  %276 = vmatmul.bf16.vlgmr.msra.gmra.mxu2 %v323_v36 }
  0x25   :  { %294 = vmatmul.bf16.vlgmr.msra.gmra.mxu3 %v327_v37 }
  0x33   :  { %245 = vmatmul.bf16.gmra.mxu0 %v66_v41 }
  0x34   :  { %263 = vmatmul.bf16.gmra.mxu1 %v67_v42  ;;  %281 = vmatmul.bf16.gmra.mxu2 %v66_v41 }
  0x35   :  { %299 = vmatmul.bf16.gmra.mxu3 %v67_v42 }
  0xa0   :  { %v241_v45 = vpop.f32.mrf.mxu0 }
  0xa1   :  { %v242_v46 = vadd.f32 %v241_v45, %v51_v44  ;;  %v259_v47 = vpop.f32.mrf.mxu1 }
  0xa3   :  { %v260_v48 = vadd.f32 %v259_v47, %v242_v46 }
  0xa5   :  { %v304_v50 = vmax.f32 %v260_v48, 0.0 }
  0xa7   :  { %310 = vst [vmem:[%s741_s3] sm:$0xff] %v304_v50  ;;  %v277_v51 = vpop.f32.mrf.mxu2 }
  0xa8   :  { %v278_v52 = vadd.f32 %v277_v51, %v52_v49  ;;  %v295_v53 = vpop.f32.mrf.mxu3  ;;  %v243_v54 = vpop.f32.mrf.mxu0 }
  0xa9   :  { %v244_v55 = vadd.f32 %v243_v54, %v51_v44  ;;  %v261_v56 = vpop.f32.mrf.mxu1 }
  0xaa   :  { %v296_v57 = vadd.f32 %v295_v53, %v278_v52 }
  0xab   :  { %v262_v58 = vadd.f32 %v261_v56, %v244_v55 }
  0xac   :  { %v305_v59 = vmax.f32 %v296_v57, 0.0 }
  0xad   :  { %v306_v60 = vmax.f32 %v262_v58, 0.0 }
  0xae   :  { %311 = vst [vmem:[%s741_s3 + $0x8] sm:$0xff] %v305_v59 }
  0xaf   :  { %312 = vst [vmem:[%s741_s3 + $0x10] sm:$0xff] %v306_v60  ;;  %v279_v61 = vpop.f32.mrf.mxu2 }
  0xb0   :  { %v280_v62 = vadd.f32 %v279_v61, %v52_v49  ;;  %v297_v63 = vpop.f32.mrf.mxu3  ;;  %v246_v0 = vpop.f32.mrf.mxu0 }
  0xb1   :  { %v247_v1 = vadd.f32 %v246_v0, %v51_v44  ;;  %v264_v2 = vpop.f32.mrf.mxu1 }
  0xb2   :  { %v298_v3 = vadd.f32 %v297_v63, %v280_v62 }
  0xb3   :  { %v265_v4 = vadd.f32 %v264_v2, %v247_v1 }
  0xb4   :  { %v307_v5 = vmax.f32 %v298_v3, 0.0 }
  0xb5   :  { %v308_v6 = vmax.f32 %v265_v4, 0.0 }
  0xb6   :  { %313 = vst [vmem:[%s741_s3 + $0x18] sm:$0xff] %v307_v5 }
  0xb7   :  { %314 = vst [vmem:[%s741_s3 + $0x20] sm:$0x3] %v308_v6  ;;  %v282_v7 = vpop.f32.mrf.mxu2 }
  0xb8   :  { %v283_v8 = vadd.f32 %v282_v7, %v52_v49  ;;  %v300_v9 = vpop.f32.mrf.mxu3  ;;  %v248_v10 = vpop.f32.mrf.mxu0 }
  0xb9   :  { %v266_v11 = vpop.f32.mrf.mxu1 }
  0xba   :  { %v301_v12 = vadd.f32 %v300_v9, %v283_v8 }
  0xbc   :  { %v309_v13 = vmax.f32 %v301_v12, 0.0 }
  0xbe   :  { %315 = vst [vmem:[%s741_s3 + $0x28] sm:$0x3] %v309_v13 }
  0xbf   :  { %v284_v14 = vpop.f32.mrf.mxu2 }
  0xc0   :  { %v302_v15 = vpop.f32.mrf.mxu3 }

// kernel: _forward_impl.19
= control target key start
LH: loop header
LB: loop body
LE: loop exit
PB: predicated region body
PF: predicated region fallthrough
CT: control target
= control target key end

     0   :  { %s699_s1 = inlined_call_operand.vmem [shape: bf16[256,128], index: 1, kind: input, shape index: {}]   ;;  %s700_s2 = inlined_call_operand.vmem [shape: f32[1,128], index: 2, kind: input, shape index: {}]   ;;  %s701_s0 = inlined_call_operand.vmem [shape: bf16[98,256], index: 0, kind: input, shape index: {}]   ;;  %s702_s3 = inlined_call_operand.vmem [shape: f32[98,128], index: 3, kind: output, shape index: {}]  }
   0x1   :  { %v473_v0 = vld [vmem:[%s699_s1 + $0x38] sm:$0xff]  ;;  %v472_v2 = vld [vmem:[%s699_s1 + $0x30] sm:$0xff]  ;;  %v471_v4 = vld [vmem:[%s699_s1 + $0x28] sm:$0xff] }
   0x2   :  { %v481_v1 = vld [vmem:[%s699_s1 + $0x78] sm:$0xff]  ;;  %226 = vmatpush.bf16.msra.mxu0 %v473_v0  ;;  %482 = vmatpush.bf16.msra.mxu2 %v473_v0  ;;  %v480_v3 = vld [vmem:[%s699_s1 + $0x70] sm:$0xff]  ;;  %v479_v5 = vld [vmem:[%s699_s1 + $0x68] sm:$0xff] }
   0x3   :  { %269 = vmatpush.bf16.msra.mxu1 %v481_v1  ;;  %490 = vmatpush.bf16.msra.mxu3 %v481_v1  ;;  %v470_v6 = vld [vmem:[%s699_s1 + $0x20] sm:$0xff]  ;;  %v469_v8 = vld [vmem:[%s699_s1 + $0x18] sm:$0xff]  ;;  %v468_v10 = vld [vmem:[%s699_s1 + $0x10] sm:$0xff] }
   0x4   :  { %v478_v7 = vld [vmem:[%s699_s1 + $0x60] sm:$0xff]  ;;  %v477_v9 = vld [vmem:[%s699_s1 + $0x58] sm:$0xff]  ;;  %v476_v11 = vld [vmem:[%s699_s1 + $0x50] sm:$0xff] }
   0x5   :  { %v467_v12 = vld [vmem:[%s699_s1 + $0x8] sm:$0xff]  ;;  %v466_v14 = vld [vmem:[%s699_s1] sm:$0xff]  ;;  %v368_v18 = vld [vmem:[%s701_s0 + $0x30] sm:$0xf] }
   0x6   :  { %227 = vmatpush.bf16.msra.mxu0 %v472_v2  ;;  %483 = vmatpush.bf16.msra.mxu2 %v472_v2  ;;  %v475_v13 = vld [vmem:[%s699_s1 + $0x48] sm:$0xff]  ;;  %v474_v15 = vld [vmem:[%s699_s1 + $0x40] sm:$0xff]  ;;  %v461_v19 = vld [vmem:[%s701_s0 + $0x34] sm:$0xf0] }
   0x7   :  { %270 = vmatpush.bf16.msra.mxu1 %v480_v3  ;;  %491 = vmatpush.bf16.msra.mxu3 %v480_v3  ;;  %v344_v16 = vld [vmem:[%s701_s0] sm:$0xf]  ;;  %v455_v17 = vld [vmem:[%s701_s0 + $0x4] sm:$0xf0]  ;;  %v454_v20 = vld [vmem:[%s701_s0 + $0x4] sm:$0xf]  ;;  %v369_v25 = vor.u32 %v461_v19, %v368_v18 }
   0x8   :  { %v346_v21 = vld [vmem:[%s701_s0 + $0x8] sm:$0xf0]  ;;  %v462_v22 = vld [vmem:[%s701_s0 + $0x44] sm:$0xf]  ;;  %v345_v24 = vor.u32 %v455_v17, %v344_v16  ;;  %v352_v28 = vld [vmem:[%s701_s0 + $0x10] sm:$0xf] }
   0x9   :  { %v378_v23 = vld [vmem:[%s701_s0 + $0x48] sm:$0xf0]  ;;  %v349_v26 = vor.u32 %v454_v20, %v346_v21  ;;  %v457_v29 = vld [vmem:[%s701_s0 + $0x14] sm:$0xf0]  ;;  %v376_v30 = vld [vmem:[%s701_s0 + $0x40] sm:$0xf] }
   0xa   :  { %228 = vmatpush.bf16.msra.mxu0 %v471_v4  ;;  %484 = vmatpush.bf16.msra.mxu2 %v471_v4  ;;  %v381_v27 = vor.u32 %v462_v22, %v378_v23  ;;  %v463_v31 = vld [vmem:[%s701_s0 + $0x44] sm:$0xf0]  ;;  %v456_v32 = vld [vmem:[%s701_s0 + $0x14] sm:$0xf]  ;;  %v354_v33 = vld [vmem:[%s701_s0 + $0x18] sm:$0xf0]  ;;  %v353_v36 = vor.u32 %v457_v29, %v352_v28 }
   0xb   :  { %271 = vmatpush.bf16.msra.mxu1 %v479_v5  ;;  %492 = vmatpush.bf16.msra.mxu3 %v479_v5  ;;  %v464_v34 = vld [vmem:[%s701_s0 + $0x54] sm:$0xf]  ;;  %v386_v35 = vld [vmem:[%s701_s0 + $0x58] sm:$0xf0]  ;;  %v377_v37 = vor.u32 %v463_v31, %v376_v30  ;;  %v357_v38 = vor.u32 %v456_v32, %v354_v33  ;;  %v26_v40 = vld [vmem:[%s701_s0 + $0x60] sm:$0x11] }
   0xc   :  { %v389_v39 = vor.u32 %v464_v34, %v386_v35  ;;  %v360_v41 = vld [vmem:[%s701_s0 + $0x20] sm:$0xf]  ;;  %v459_v42 = vld [vmem:[%s701_s0 + $0x24] sm:$0xf0]  ;;  %v384_v43 = vld [vmem:[%s701_s0 + $0x50] sm:$0xf]  ;;  %v101_v45 = vunpack.c.h.b16 %v26_v40  ;;  %v100_v52 = vunpack.c.l.b16 %v26_v40 }
   0xd   :  { %v465_v44 = vld [vmem:[%s701_s0 + $0x54] sm:$0xf0]  ;;  %v458_v46 = vld [vmem:[%s701_s0 + $0x24] sm:$0xf]  ;;  %v362_v47 = vld [vmem:[%s701_s0 + $0x28] sm:$0xf0]  ;;  %v361_v48 = vor.u32 %v459_v42, %v360_v41 }
   0xe   :  { %229 = vmatpush.bf16.msra.mxu0 %v470_v6  ;;  %485 = vmatpush.bf16.msra.mxu2 %v470_v6  ;;  %v385_v49 = vor.u32 %v465_v44, %v384_v43  ;;  %v365_v50 = vor.u32 %v458_v46, %v362_v47  ;;  %v115_v51 = vpack.c.b16 %v101_v45, %v101_v45  ;;  %v460_v53 = vld [vmem:[%s701_s0 + $0x34] sm:$0xf]  ;;  %v370_v54 = vld [vmem:[%s701_s0 + $0x38] sm:$0xf0]  ;;  %v645_v57 = vld [vmem:[%s700_s2] ss:$0 sm:$0xff] }
   0xf   :  { %272 = vmatpush.bf16.msra.mxu1 %v478_v7  ;;  %493 = vmatpush.bf16.msra.mxu3 %v478_v7  ;;  %v114_v55 = vpack.c.b16 %v100_v52, %v100_v52  ;;  %v373_v56 = vor.u32 %v460_v53, %v370_v54 }
  0x12   :  { %230 = vmatpush.bf16.msra.mxu0 %v469_v8  ;;  %486 = vmatpush.bf16.msra.mxu2 %v469_v8 }
  0x13   :  { %273 = vmatpush.bf16.msra.mxu1 %v477_v9  ;;  %494 = vmatpush.bf16.msra.mxu3 %v477_v9 }
  0x16   :  { %231 = vmatpush.bf16.msra.mxu0 %v468_v10  ;;  %487 = vmatpush.bf16.msra.mxu2 %v468_v10 }
  0x17   :  { %274 = vmatpush.bf16.msra.mxu1 %v476_v11  ;;  %495 = vmatpush.bf16.msra.mxu3 %v476_v11 }
  0x1a   :  { %232 = vmatpush.bf16.msra.mxu0 %v467_v12  ;;  %488 = vmatpush.bf16.msra.mxu2 %v467_v12 }
  0x1b   :  { %275 = vmatpush.bf16.msra.mxu1 %v475_v13  ;;  %496 = vmatpush.bf16.msra.mxu3 %v475_v13 }
  0x1e   :  { %233 = vmatpush.bf16.msra.mxu0 %v466_v14  ;;  %489 = vmatpush.bf16.msra.mxu2 %v466_v14 }
  0x1f   :  { %276 = vmatpush.bf16.msra.mxu1 %v474_v15  ;;  %497 = vmatpush.bf16.msra.mxu3 %v474_v15 }
  0x21   :  { %234 = vmatmul.bf16.vlgmr.msra.gmra.mxu0 %v345_v24  ;;  %249 = vmatmul.bf16.vlgmr.msra.gmra.mxu2 %v369_v25 }
  0x22   :  { %277 = vmatmul.bf16.vlgmr.msra.gmra.mxu1 %v349_v26  ;;  %297 = vmatmul.bf16.vlgmr.msra.gmra.mxu3 %v381_v27 }
  0x31   :  { %239 = vmatmul.bf16.gmra.mxu0 %v353_v36  ;;  %254 = vmatmul.bf16.gmra.mxu2 %v377_v37 }
  0x32   :  { %282 = vmatmul.bf16.gmra.mxu1 %v357_v38  ;;  %302 = vmatmul.bf16.gmra.mxu3 %v389_v39 }
  0x41   :  { %244 = vmatmul.bf16.gmra.mxu0 %v361_v48  ;;  %259 = vmatmul.bf16.gmra.mxu2 %v385_v49 }
  0x42   :  { %287 = vmatmul.bf16.gmra.mxu1 %v365_v50  ;;  %307 = vmatmul.bf16.gmra.mxu3 %v115_v51 }
  0x51   :  { %264 = vmatmul.bf16.gmra.mxu2 %v114_v55 }
  0x52   :  { %292 = vmatmul.bf16.gmra.mxu1 %v373_v56 }
  0x9e   :  { %v235_v58 = vpop.f32.mrf.mxu0 }
  0x9f   :  { %v236_v59 = vadd.f32 %v645_v57, %v235_v58  ;;  %v278_v60 = vpop.f32.mrf.mxu1 }
  0xa1   :  { %v279_v61 = vadd.f32 %v278_v60, %v236_v59 }
  0xa3   :  { %v312_v62 = vmax.f32 %v279_v61, 0.0 }
  0xa4   :  { %v250_v63 = vpop.f32.mrf.mxu2 }
  0xa5   :  { %325 = vst [vmem:[%s702_s3] sm:$0xff] %v312_v62  ;;  %v298_v0 = vpop.f32.mrf.mxu3  ;;  %v251_v46 = vadd.f32 %v645_v57, %v250_v63 }
  0xa6   :  { %v237_v1 = vpop.f32.mrf.mxu0 }
  0xa7   :  { %v238_v2 = vadd.f32 %v645_v57, %v237_v1  ;;  %v280_v3 = vpop.f32.mrf.mxu1 }
  0xa9   :  { %v281_v4 = vadd.f32 %v280_v3, %v238_v2 }
  0xab   :  { %v313_v5 = vmax.f32 %v281_v4, 0.0 }
  0xac   :  { %v252_v6 = vpop.f32.mrf.mxu2 }
  0xad   :  { %326 = vst [vmem:[%s702_s3 + $0x8] sm:$0xff] %v313_v5  ;;  %v300_v7 = vpop.f32.mrf.mxu3  ;;  %v253_v54 = vadd.f32 %v645_v57, %v252_v6 }
  0xae   :  { %v240_v8 = vpop.f32.mrf.mxu0 }
  0xaf   :  { %v241_v9 = vadd.f32 %v645_v57, %v240_v8  ;;  %v283_v10 = vpop.f32.mrf.mxu1 }
  0xb1   :  { %v284_v11 = vadd.f32 %v283_v10, %v241_v9 }
  0xb3   :  { %v314_v12 = vmax.f32 %v284_v11, 0.0 }
  0xb4   :  { %v255_v13 = vpop.f32.mrf.mxu2 }
  0xb5   :  { %327 = vst [vmem:[%s702_s3 + $0x10] sm:$0xff] %v314_v12  ;;  %v256_v14 = vadd.f32 %v645_v57, %v255_v13  ;;  %v303_v15 = vpop.f32.mrf.mxu3 }
  0xb6   :  { %v242_v16 = vpop.f32.mrf.mxu0 }
  0xb7   :  { %v299_v17 = vadd.f32 %v298_v0, %v256_v14  ;;  %v243_v18 = vadd.f32 %v645_v57, %v242_v16  ;;  %v285_v19 = vpop.f32.mrf.mxu1 }
  0xb9   :  { %v320_v20 = vmax.f32 %v299_v17, 0.0  ;;  %v286_v21 = vadd.f32 %v285_v19, %v243_v18 }
  0xbb   :  { %333 = vst [vmem:[%s702_s3 + $0x40] sm:$0xff] %v320_v20  ;;  %v315_v22 = vmax.f32 %v286_v21, 0.0 }
  0xbc   :  { %v257_v23 = vpop.f32.mrf.mxu2 }
  0xbd   :  { %328 = vst [vmem:[%s702_s3 + $0x18] sm:$0xff] %v315_v22  ;;  %v258_v24 = vadd.f32 %v645_v57, %v257_v23  ;;  %v305_v25 = vpop.f32.mrf.mxu3 }
  0xbe   :  { %v245_v26 = vpop.f32.mrf.mxu0 }
  0xbf   :  { %v301_v27 = vadd.f32 %v300_v7, %v258_v24  ;;  %v246_v28 = vadd.f32 %v645_v57, %v245_v26  ;;  %v288_v29 = vpop.f32.mrf.mxu1 }
  0xc1   :  { %v321_v30 = vmax.f32 %v301_v27, 0.0  ;;  %v289_v31 = vadd.f32 %v288_v29, %v246_v28 }
  0xc3   :  { %334 = vst [vmem:[%s702_s3 + $0x48] sm:$0xff] %v321_v30  ;;  %v316_v32 = vmax.f32 %v289_v31, 0.0 }
  0xc4   :  { %v260_v33 = vpop.f32.mrf.mxu2 }
  0xc5   :  { %329 = vst [vmem:[%s702_s3 + $0x20] sm:$0xff] %v316_v32  ;;  %v261_v34 = vadd.f32 %v645_v57, %v260_v33  ;;  %v308_v35 = vpop.f32.mrf.mxu3 }
  0xc6   :  { %v247_v36 = vpop.f32.mrf.mxu0 }
  0xc7   :  { %v304_v37 = vadd.f32 %v303_v15, %v261_v34  ;;  %v248_v38 = vadd.f32 %v645_v57, %v247_v36  ;;  %v290_v39 = vpop.f32.mrf.mxu1 }
  0xc9   :  { %v322_v40 = vmax.f32 %v304_v37, 0.0  ;;  %v291_v41 = vadd.f32 %v290_v39, %v248_v38 }
  0xcb   :  { %335 = vst [vmem:[%s702_s3 + $0x50] sm:$0xff] %v322_v40  ;;  %v317_v42 = vmax.f32 %v291_v41, 0.0 }
  0xcc   :  { %v262_v43 = vpop.f32.mrf.mxu2 }
  0xcd   :  { %330 = vst [vmem:[%s702_s3 + $0x28] sm:$0xff] %v317_v42  ;;  %v263_v44 = vadd.f32 %v645_v57, %v262_v43  ;;  %v310_v45 = vpop.f32.mrf.mxu3 }
  0xcf   :  { %v306_v47 = vadd.f32 %v305_v25, %v263_v44  ;;  %v293_v48 = vpop.f32.mrf.mxu1 }
  0xd0   :  { %v294_v49 = vadd.f32 %v293_v48, %v251_v46 }
  0xd1   :  { %v323_v50 = vmax.f32 %v306_v47, 0.0 }
  0xd2   :  { %v318_v51 = vmax.f32 %v294_v49, 0.0 }
  0xd3   :  { %336 = vst [vmem:[%s702_s3 + $0x58] sm:$0xff] %v323_v50 }
  0xd4   :  { %331 = vst [vmem:[%s702_s3 + $0x30] sm:$0xff] %v318_v51  ;;  %v265_v52 = vpop.f32.mrf.mxu2 }
  0xd5   :  { %v266_v53 = vadd.f32 %v645_v57, %v265_v52 }
  0xd7   :  { %v309_v55 = vadd.f32 %v308_v35, %v266_v53  ;;  %v295_v56 = vpop.f32.mrf.mxu1 }
  0xd8   :  { %v296_v58 = vadd.f32 %v295_v56, %v253_v54 }
  0xd9   :  { %v324_v59 = vmax.f32 %v309_v55, 0.0 }
  0xda   :  { %v319_v60 = vmax.f32 %v296_v58, 0.0 }
  0xdb   :  { %337 = vst [vmem:[%s702_s3 + $0x60] sm:$0x3] %v324_v59 }
  0xdc   :  { %332 = vst [vmem:[%s702_s3 + $0x38] sm:$0xff] %v319_v60  ;;  %v267_v61 = vpop.f32.mrf.mxu2 }

// kernel: _forward_impl.20
= control target key start
LH: loop header
LB: loop body
LE: loop exit
PB: predicated region body
PF: predicated region fallthrough
CT: control target
= control target key end

     0   :  { %s1151_s1 = inlined_call_operand.vmem [shape: bf16[128,128], index: 1, kind: input, shape index: {}]   ;;  %s1152_s2 = inlined_call_operand.vmem [shape: f32[1,128], index: 2, kind: input, shape index: {}]   ;;  %s1153_s0 = inlined_call_operand.vmem [shape: bf16[450,128], index: 0, kind: input, shape index: {}]   ;;  %s1154_s3 = inlined_call_operand.vmem [shape: f32[450,128], index: 3, kind: output, shape index: {}]  }
   0x1   :  { %v761_v0 = vld [vmem:[%s1151_s1 + $0x38] sm:$0xff]  ;;  %v760_v1 = vld [vmem:[%s1151_s1 + $0x30] sm:$0xff]  ;;  %v759_v2 = vld [vmem:[%s1151_s1 + $0x28] sm:$0xff] }
   0x2   :  { %763 = vmatpush.bf16.msra.mxu2 %v761_v0  ;;  %764 = vmatpush.bf16.msra.mxu3 %v761_v0  ;;  %v758_v3 = vld [vmem:[%s1151_s1 + $0x20] sm:$0xff]  ;;  %v757_v4 = vld [vmem:[%s1151_s1 + $0x18] sm:$0xff]  ;;  %v756_v5 = vld [vmem:[%s1151_s1 + $0x10] sm:$0xff] }
   0x3   :  { %311 = vmatpush.bf16.msra.mxu0 %v761_v0  ;;  %762 = vmatpush.bf16.msra.mxu1 %v761_v0  ;;  %v755_v6 = vld [vmem:[%s1151_s1 + $0x8] sm:$0xff]  ;;  %v754_v7 = vld [vmem:[%s1151_s1] sm:$0xff]  ;;  %v740_v8 = vld [vmem:[%s1153_s0 + $0x70] sm:$0xff] }
   0x4   :  { %v748_v9 = vld [vmem:[%s1153_s0 + $0xb0] sm:$0xff]  ;;  %v726_v10 = vld [vmem:[%s1153_s0] sm:$0xff]  ;;  %v733_v11 = vld [vmem:[%s1153_s0 + $0x38] sm:$0xff] }
   0x5   :  { %v741_v12 = vld [vmem:[%s1153_s0 + $0x78] sm:$0xff]  ;;  %v727_v14 = vld [vmem:[%s1153_s0 + $0x8] sm:$0xff]  ;;  %v734_v15 = vld [vmem:[%s1153_s0 + $0x40] sm:$0xff] }
   0x6   :  { %766 = vmatpush.bf16.msra.mxu2 %v760_v1  ;;  %767 = vmatpush.bf16.msra.mxu3 %v760_v1  ;;  %v749_v13 = vld [vmem:[%s1153_s0 + $0xb8] sm:$0xff]  ;;  %v742_v16 = vld [vmem:[%s1153_s0 + $0x80] sm:$0xff]  ;;  %v728_v18 = vld [vmem:[%s1153_s0 + $0x10] sm:$0xff] }
   0x7   :  { %312 = vmatpush.bf16.msra.mxu0 %v760_v1  ;;  %765 = vmatpush.bf16.msra.mxu1 %v760_v1  ;;  %v750_v17 = vld [vmem:[%s1153_s0 + $0xc0] sm:$0xff]  ;;  %v735_v19 = vld [vmem:[%s1153_s0 + $0x48] sm:$0xff]  ;;  %v729_v22 = vld [vmem:[%s1153_s0 + $0x18] sm:$0xff] }
   0x8   :  { %v743_v20 = vld [vmem:[%s1153_s0 + $0x88] sm:$0xff]  ;;  %v736_v23 = vld [vmem:[%s1153_s0 + $0x50] sm:$0xff]  ;;  %v730_v26 = vld [vmem:[%s1153_s0 + $0x20] sm:$0xff] }
   0x9   :  { %v751_v21 = vld [vmem:[%s1153_s0 + $0xc8] sm:$0xff]  ;;  %v744_v24 = vld [vmem:[%s1153_s0 + $0x90] sm:$0xff]  ;;  %v737_v27 = vld [vmem:[%s1153_s0 + $0x58] sm:$0xff] }
   0xa   :  { %769 = vmatpush.bf16.msra.mxu2 %v759_v2  ;;  %770 = vmatpush.bf16.msra.mxu3 %v759_v2  ;;  %v752_v25 = vld [vmem:[%s1153_s0 + $0xd0] sm:$0xff]  ;;  %v745_v28 = vld [vmem:[%s1153_s0 + $0x98] sm:$0xff]  ;;  %v731_v30 = vld [vmem:[%s1153_s0 + $0x28] sm:$0xff] }
   0xb   :  { %313 = vmatpush.bf16.msra.mxu0 %v759_v2  ;;  %768 = vmatpush.bf16.msra.mxu1 %v759_v2  ;;  %v753_v29 = vld [vmem:[%s1153_s0 + $0xd8] sm:$0xff]  ;;  %v738_v31 = vld [vmem:[%s1153_s0 + $0x60] sm:$0xff]  ;;  %v732_v36 = vld [vmem:[%s1153_s0 + $0x30] sm:$0xff] }
   0xc   :  { %v70_v32 = vld [vmem:[%s1153_s0 + $0xe0] sm:$0x1]  ;;  %v739_v37 = vld [vmem:[%s1153_s0 + $0x68] sm:$0xff] }
   0xd   :  { %v204_v33 = vunpack.c.l.b16 %v70_v32  ;;  %v746_v34 = vld [vmem:[%s1153_s0 + $0xa0] sm:$0xff]  ;;  %v747_v38 = vld [vmem:[%s1153_s0 + $0xa8] sm:$0xff] }
   0xe   :  { %772 = vmatpush.bf16.msra.mxu2 %v758_v3  ;;  %773 = vmatpush.bf16.msra.mxu3 %v758_v3  ;;  %v921_v39 = vld [vmem:[%s1152_s2] ss:$0 sm:$0xff] }
   0xf   :  { %314 = vmatpush.bf16.msra.mxu0 %v758_v3  ;;  %771 = vmatpush.bf16.msra.mxu1 %v758_v3  ;;  %v233_v35 = vpack.c.b16 %v204_v33, %v204_v33 }
  0x12   :  { %775 = vmatpush.bf16.msra.mxu2 %v757_v4  ;;  %776 = vmatpush.bf16.msra.mxu3 %v757_v4 }
  0x13   :  { %315 = vmatpush.bf16.msra.mxu0 %v757_v4  ;;  %774 = vmatpush.bf16.msra.mxu1 %v757_v4 }
  0x16   :  { %778 = vmatpush.bf16.msra.mxu2 %v756_v5  ;;  %779 = vmatpush.bf16.msra.mxu3 %v756_v5 }
  0x17   :  { %316 = vmatpush.bf16.msra.mxu0 %v756_v5  ;;  %777 = vmatpush.bf16.msra.mxu1 %v756_v5 }
  0x1a   :  { %781 = vmatpush.bf16.msra.mxu2 %v755_v6  ;;  %782 = vmatpush.bf16.msra.mxu3 %v755_v6 }
  0x1b   :  { %317 = vmatpush.bf16.msra.mxu0 %v755_v6  ;;  %780 = vmatpush.bf16.msra.mxu1 %v755_v6 }
  0x1e   :  { %784 = vmatpush.bf16.msra.mxu2 %v754_v7  ;;  %785 = vmatpush.bf16.msra.mxu3 %v754_v7 }
  0x1f   :  { %318 = vmatpush.bf16.msra.mxu0 %v754_v7  ;;  %783 = vmatpush.bf16.msra.mxu1 %v754_v7 }
  0x21   :  { %389 = vmatmul.bf16.vlgmr.msra.gmra.mxu2 %v740_v8  ;;  %429 = vmatmul.bf16.vlgmr.msra.gmra.mxu3 %v748_v9 }
  0x22   :  { %319 = vmatmul.bf16.vlgmr.msra.gmra.mxu0 %v726_v10  ;;  %354 = vmatmul.bf16.vlgmr.msra.gmra.mxu1 %v733_v11 }
  0x31   :  { %394 = vmatmul.bf16.gmra.mxu2 %v741_v12  ;;  %434 = vmatmul.bf16.gmra.mxu3 %v749_v13 }
  0x32   :  { %324 = vmatmul.bf16.gmra.mxu0 %v727_v14  ;;  %359 = vmatmul.bf16.gmra.mxu1 %v734_v15 }
  0x41   :  { %399 = vmatmul.bf16.gmra.mxu2 %v742_v16  ;;  %439 = vmatmul.bf16.gmra.mxu3 %v750_v17 }
  0x42   :  { %329 = vmatmul.bf16.gmra.mxu0 %v728_v18  ;;  %364 = vmatmul.bf16.gmra.mxu1 %v735_v19 }
  0x51   :  { %404 = vmatmul.bf16.gmra.mxu2 %v743_v20  ;;  %444 = vmatmul.bf16.gmra.mxu3 %v751_v21 }
  0x52   :  { %334 = vmatmul.bf16.gmra.mxu0 %v729_v22  ;;  %369 = vmatmul.bf16.gmra.mxu1 %v736_v23 }
  0x61   :  { %409 = vmatmul.bf16.gmra.mxu2 %v744_v24  ;;  %449 = vmatmul.bf16.gmra.mxu3 %v752_v25 }
  0x62   :  { %339 = vmatmul.bf16.gmra.mxu0 %v730_v26  ;;  %374 = vmatmul.bf16.gmra.mxu1 %v737_v27 }
  0x71   :  { %414 = vmatmul.bf16.gmra.mxu2 %v745_v28  ;;  %454 = vmatmul.bf16.gmra.mxu3 %v753_v29 }
  0x72   :  { %344 = vmatmul.bf16.gmra.mxu0 %v731_v30  ;;  %379 = vmatmul.bf16.gmra.mxu1 %v738_v31 }
  0x81   :  { %419 = vmatmul.bf16.gmra.mxu2 %v746_v34  ;;  %459 = vmatmul.bf16.gmra.mxu3 %v233_v35 }
  0x82   :  { %349 = vmatmul.bf16.gmra.mxu0 %v732_v36  ;;  %384 = vmatmul.bf16.gmra.mxu1 %v739_v37 }
  0x91   :  { %424 = vmatmul.bf16.gmra.mxu2 %v747_v38 }
  0x9f   :  { %v320_v40 = vpop.f32.mrf.mxu0  ;;  %v355_v41 = vpop.f32.mrf.mxu1 }
  0xa0   :  { %v321_v42 = vadd.f32 %v921_v39, %v320_v40  ;;  %v356_v43 = vadd.f32 %v921_v39, %v355_v41 }
  0xa2   :  { %v464_v44 = vmax.f32 %v321_v42, 0.0  ;;  %v478_v45 = vmax.f32 %v356_v43, 0.0 }
  0xa4   :  { %v390_v46 = vpop.f32.mrf.mxu2  ;;  %521 = vst [vmem:[%s1154_s3] sm:$0xff] %v464_v44  ;;  %v430_v47 = vpop.f32.mrf.mxu3 }
  0xa5   :  { %v391_v48 = vadd.f32 %v921_v39, %v390_v46  ;;  %535 = vst [vmem:[%s1154_s3 + $0x70] sm:$0xff] %v478_v45  ;;  %v431_v49 = vadd.f32 %v921_v39, %v430_v47 }
  0xa7   :  { %v492_v50 = vmax.f32 %v391_v48, 0.0  ;;  %v508_v51 = vmax.f32 %v431_v49, 0.0  ;;  %v322_v52 = vpop.f32.mrf.mxu0  ;;  %v357_v53 = vpop.f32.mrf.mxu1 }
  0xa8   :  { %v323_v54 = vadd.f32 %v921_v39, %v322_v52  ;;  %v358_v55 = vadd.f32 %v921_v39, %v357_v53 }
  0xa9   :  { %549 = vst [vmem:[%s1154_s3 + $0xe0] sm:$0xff] %v492_v50 }
  0xaa   :  { %565 = vst [vmem:[%s1154_s3 + $0x160] sm:$0xff] %v508_v51  ;;  %v465_v56 = vmax.f32 %v323_v54, 0.0  ;;  %v479_v57 = vmax.f32 %v358_v55, 0.0 }
  0xac   :  { %v392_v58 = vpop.f32.mrf.mxu2  ;;  %522 = vst [vmem:[%s1154_s3 + $0x8] sm:$0xff] %v465_v56  ;;  %v432_v59 = vpop.f32.mrf.mxu3 }
  0xad   :  { %v393_v60 = vadd.f32 %v921_v39, %v392_v58  ;;  %536 = vst [vmem:[%s1154_s3 + $0x78] sm:$0xff] %v479_v57  ;;  %v433_v61 = vadd.f32 %v921_v39, %v432_v59 }
  0xaf   :  { %v493_v62 = vmax.f32 %v393_v60, 0.0  ;;  %v509_v63 = vmax.f32 %v433_v61, 0.0  ;;  %v325_v0 = vpop.f32.mrf.mxu0  ;;  %v360_v1 = vpop.f32.mrf.mxu1 }
  0xb0   :  { %v326_v2 = vadd.f32 %v921_v39, %v325_v0  ;;  %v361_v3 = vadd.f32 %v921_v39, %v360_v1 }
  0xb1   :  { %550 = vst [vmem:[%s1154_s3 + $0xe8] sm:$0xff] %v493_v62 }
  0xb2   :  { %566 = vst [vmem:[%s1154_s3 + $0x168] sm:$0xff] %v509_v63  ;;  %v466_v4 = vmax.f32 %v326_v2, 0.0  ;;  %v480_v5 = vmax.f32 %v361_v3, 0.0 }
  0xb4   :  { %v395_v6 = vpop.f32.mrf.mxu2  ;;  %523 = vst [vmem:[%s1154_s3 + $0x10] sm:$0xff] %v466_v4  ;;  %v435_v7 = vpop.f32.mrf.mxu3 }
  0xb5   :  { %v396_v8 = vadd.f32 %v921_v39, %v395_v6  ;;  %537 = vst [vmem:[%s1154_s3 + $0x80] sm:$0xff] %v480_v5  ;;  %v436_v9 = vadd.f32 %v921_v39, %v435_v7 }
  0xb7   :  { %v494_v10 = vmax.f32 %v396_v8, 0.0  ;;  %v510_v11 = vmax.f32 %v436_v9, 0.0  ;;  %v327_v12 = vpop.f32.mrf.mxu0  ;;  %v362_v13 = vpop.f32.mrf.mxu1 }
  0xb8   :  { %v328_v14 = vadd.f32 %v921_v39, %v327_v12  ;;  %v363_v15 = vadd.f32 %v921_v39, %v362_v13 }
  0xb9   :  { %551 = vst [vmem:[%s1154_s3 + $0xf0] sm:$0xff] %v494_v10 }
  0xba   :  { %567 = vst [vmem:[%s1154_s3 + $0x170] sm:$0xff] %v510_v11  ;;  %v467_v16 = vmax.f32 %v328_v14, 0.0  ;;  %v481_v17 = vmax.f32 %v363_v15, 0.0 }
  0xbc   :  { %v397_v18 = vpop.f32.mrf.mxu2  ;;  %524 = vst [vmem:[%s1154_s3 + $0x18] sm:$0xff] %v467_v16  ;;  %v437_v19 = vpop.f32.mrf.mxu3 }
  0xbd   :  { %v398_v20 = vadd.f32 %v921_v39, %v397_v18  ;;  %538 = vst [vmem:[%s1154_s3 + $0x88] sm:$0xff] %v481_v17  ;;  %v438_v21 = vadd.f32 %v921_v39, %v437_v19 }
  0xbf   :  { %v495_v22 = vmax.f32 %v398_v20, 0.0  ;;  %v511_v23 = vmax.f32 %v438_v21, 0.0  ;;  %v330_v24 = vpop.f32.mrf.mxu0  ;;  %v365_v25 = vpop.f32.mrf.mxu1 }
  0xc0   :  { %v331_v26 = vadd.f32 %v921_v39, %v330_v24  ;;  %v366_v27 = vadd.f32 %v921_v39, %v365_v25 }
  0xc1   :  { %552 = vst [vmem:[%s1154_s3 + $0xf8] sm:$0xff] %v495_v22 }
  0xc2   :  { %568 = vst [vmem:[%s1154_s3 + $0x178] sm:$0xff] %v511_v23  ;;  %v468_v28 = vmax.f32 %v331_v26, 0.0  ;;  %v482_v29 = vmax.f32 %v366_v27, 0.0 }
  0xc4   :  { %v400_v30 = vpop.f32.mrf.mxu2  ;;  %525 = vst [vmem:[%s1154_s3 + $0x20] sm:$0xff] %v468_v28  ;;  %v440_v31 = vpop.f32.mrf.mxu3 }
  0xc5   :  { %v401_v32 = vadd.f32 %v921_v39, %v400_v30  ;;  %539 = vst [vmem:[%s1154_s3 + $0x90] sm:$0xff] %v482_v29  ;;  %v441_v33 = vadd.f32 %v921_v39, %v440_v31 }
  0xc7   :  { %v496_v34 = vmax.f32 %v401_v32, 0.0  ;;  %v512_v35 = vmax.f32 %v441_v33, 0.0  ;;  %v332_v36 = vpop.f32.mrf.mxu0  ;;  %v367_v37 = vpop.f32.mrf.mxu1 }
  0xc8   :  { %v333_v38 = vadd.f32 %v921_v39, %v332_v36  ;;  %v368_v40 = vadd.f32 %v921_v39, %v367_v37 }
  0xc9   :  { %553 = vst [vmem:[%s1154_s3 + $0x100] sm:$0xff] %v496_v34 }
  0xca   :  { %569 = vst [vmem:[%s1154_s3 + $0x180] sm:$0xff] %v512_v35  ;;  %v469_v41 = vmax.f32 %v333_v38, 0.0  ;;  %v483_v42 = vmax.f32 %v368_v40, 0.0 }
  0xcc   :  { %v402_v43 = vpop.f32.mrf.mxu2  ;;  %526 = vst [vmem:[%s1154_s3 + $0x28] sm:$0xff] %v469_v41  ;;  %v442_v44 = vpop.f32.mrf.mxu3 }
  0xcd   :  { %v403_v45 = vadd.f32 %v921_v39, %v402_v43  ;;  %540 = vst [vmem:[%s1154_s3 + $0x98] sm:$0xff] %v483_v42  ;;  %v443_v46 = vadd.f32 %v921_v39, %v442_v44 }
  0xcf   :  { %v497_v47 = vmax.f32 %v403_v45, 0.0  ;;  %v513_v48 = vmax.f32 %v443_v46, 0.0  ;;  %v335_v49 = vpop.f32.mrf.mxu0  ;;  %v370_v50 = vpop.f32.mrf.mxu1 }
  0xd0   :  { %v336_v51 = vadd.f32 %v921_v39, %v335_v49  ;;  %v371_v52 = vadd.f32 %v921_v39, %v370_v50 }
  0xd1   :  { %554 = vst [vmem:[%s1154_s3 + $0x108] sm:$0xff] %v497_v47 }
  0xd2   :  { %570 = vst [vmem:[%s1154_s3 + $0x188] sm:$0xff] %v513_v48  ;;  %v470_v53 = vmax.f32 %v336_v51, 0.0  ;;  %v484_v54 = vmax.f32 %v371_v52, 0.0 }
  0xd4   :  { %v405_v55 = vpop.f32.mrf.mxu2  ;;  %527 = vst [vmem:[%s1154_s3 + $0x30] sm:$0xff] %v470_v53  ;;  %v445_v56 = vpop.f32.mrf.mxu3 }
  0xd5   :  { %v406_v57 = vadd.f32 %v921_v39, %v405_v55  ;;  %541 = vst [vmem:[%s1154_s3 + $0xa0] sm:$0xff] %v484_v54  ;;  %v446_v58 = vadd.f32 %v921_v39, %v445_v56 }
  0xd7   :  { %v498_v59 = vmax.f32 %v406_v57, 0.0  ;;  %v514_v60 = vmax.f32 %v446_v58, 0.0  ;;  %v337_v61 = vpop.f32.mrf.mxu0  ;;  %v372_v62 = vpop.f32.mrf.mxu1 }
  0xd8   :  { %v338_v63 = vadd.f32 %v921_v39, %v337_v61  ;;  %v373_v0 = vadd.f32 %v921_v39, %v372_v62 }
  0xd9   :  { %555 = vst [vmem:[%s1154_s3 + $0x110] sm:$0xff] %v498_v59 }
  0xda   :  { %571 = vst [vmem:[%s1154_s3 + $0x190] sm:$0xff] %v514_v60  ;;  %v471_v1 = vmax.f32 %v338_v63, 0.0  ;;  %v485_v2 = vmax.f32 %v373_v0, 0.0 }
  0xdc   :  { %v407_v3 = vpop.f32.mrf.mxu2  ;;  %528 = vst [vmem:[%s1154_s3 + $0x38] sm:$0xff] %v471_v1  ;;  %v447_v4 = vpop.f32.mrf.mxu3 }
  0xdd   :  { %v408_v5 = vadd.f32 %v921_v39, %v407_v3  ;;  %542 = vst [vmem:[%s1154_s3 + $0xa8] sm:$0xff] %v485_v2  ;;  %v448_v6 = vadd.f32 %v921_v39, %v447_v4 }
  0xdf   :  { %v499_v7 = vmax.f32 %v408_v5, 0.0  ;;  %v515_v8 = vmax.f32 %v448_v6, 0.0  ;;  %v340_v9 = vpop.f32.mrf.mxu0  ;;  %v375_v10 = vpop.f32.mrf.mxu1 }
  0xe0   :  { %v341_v11 = vadd.f32 %v921_v39, %v340_v9  ;;  %v376_v12 = vadd.f32 %v921_v39, %v375_v10 }
  0xe1   :  { %556 = vst [vmem:[%s1154_s3 + $0x118] sm:$0xff] %v499_v7 }
  0xe2   :  { %572 = vst [vmem:[%s1154_s3 + $0x198] sm:$0xff] %v515_v8  ;;  %v472_v13 = vmax.f32 %v341_v11, 0.0  ;;  %v486_v14 = vmax.f32 %v376_v12, 0.0 }
  0xe4   :  { %v410_v15 = vpop.f32.mrf.mxu2  ;;  %529 = vst [vmem:[%s1154_s3 + $0x40] sm:$0xff] %v472_v13  ;;  %v450_v16 = vpop.f32.mrf.mxu3 }
  0xe5   :  { %v411_v17 = vadd.f32 %v921_v39, %v410_v15  ;;  %543 = vst [vmem:[%s1154_s3 + $0xb0] sm:$0xff] %v486_v14  ;;  %v451_v18 = vadd.f32 %v921_v39, %v450_v16 }
  0xe7   :  { %v500_v19 = vmax.f32 %v411_v17, 0.0  ;;  %v516_v20 = vmax.f32 %v451_v18, 0.0  ;;  %v342_v21 = vpop.f32.mrf.mxu0  ;;  %v377_v22 = vpop.f32.mrf.mxu1 }
  0xe8   :  { %v343_v23 = vadd.f32 %v921_v39, %v342_v21  ;;  %v378_v24 = vadd.f32 %v921_v39, %v377_v22 }
  0xe9   :  { %557 = vst [vmem:[%s1154_s3 + $0x120] sm:$0xff] %v500_v19 }
  0xea   :  { %573 = vst [vmem:[%s1154_s3 + $0x1a0] sm:$0xff] %v516_v20  ;;  %v473_v25 = vmax.f32 %v343_v23, 0.0  ;;  %v487_v26 = vmax.f32 %v378_v24, 0.0 }
  0xec   :  { %v412_v27 = vpop.f32.mrf.mxu2  ;;  %530 = vst [vmem:[%s1154_s3 + $0x48] sm:$0xff] %v473_v25  ;;  %v452_v28 = vpop.f32.mrf.mxu3 }
  0xed   :  { %v413_v29 = vadd.f32 %v921_v39, %v412_v27  ;;  %544 = vst [vmem:[%s1154_s3 + $0xb8] sm:$0xff] %v487_v26  ;;  %v453_v30 = vadd.f32 %v921_v39, %v452_v28 }
  0xef   :  { %v501_v31 = vmax.f32 %v413_v29, 0.0  ;;  %v517_v32 = vmax.f32 %v453_v30, 0.0  ;;  %v345_v33 = vpop.f32.mrf.mxu0  ;;  %v380_v34 = vpop.f32.mrf.mxu1 }
  0xf0   :  { %v346_v35 = vadd.f32 %v921_v39, %v345_v33  ;;  %v381_v36 = vadd.f32 %v921_v39, %v380_v34 }
  0xf1   :  { %558 = vst [vmem:[%s1154_s3 + $0x128] sm:$0xff] %v501_v31 }
  0xf2   :  { %574 = vst [vmem:[%s1154_s3 + $0x1a8] sm:$0xff] %v517_v32  ;;  %v474_v37 = vmax.f32 %v346_v35, 0.0  ;;  %v488_v38 = vmax.f32 %v381_v36, 0.0 }
  0xf4   :  { %v415_v40 = vpop.f32.mrf.mxu2  ;;  %531 = vst [vmem:[%s1154_s3 + $0x50] sm:$0xff] %v474_v37  ;;  %v455_v41 = vpop.f32.mrf.mxu3 }
  0xf5   :  { %v416_v42 = vadd.f32 %v921_v39, %v415_v40  ;;  %545 = vst [vmem:[%s1154_s3 + $0xc0] sm:$0xff] %v488_v38  ;;  %v456_v43 = vadd.f32 %v921_v39, %v455_v41 }
  0xf7   :  { %v502_v44 = vmax.f32 %v416_v42, 0.0  ;;  %v518_v45 = vmax.f32 %v456_v43, 0.0  ;;  %v347_v46 = vpop.f32.mrf.mxu0  ;;  %v382_v47 = vpop.f32.mrf.mxu1 }
  0xf8   :  { %v348_v48 = vadd.f32 %v921_v39, %v347_v46  ;;  %v383_v49 = vadd.f32 %v921_v39, %v382_v47 }
  0xf9   :  { %559 = vst [vmem:[%s1154_s3 + $0x130] sm:$0xff] %v502_v44 }
  0xfa   :  { %575 = vst [vmem:[%s1154_s3 + $0x1b0] sm:$0xff] %v518_v45  ;;  %v475_v50 = vmax.f32 %v348_v48, 0.0  ;;  %v489_v51 = vmax.f32 %v383_v49, 0.0 }
  0xfc   :  { %v417_v52 = vpop.f32.mrf.mxu2  ;;  %532 = vst [vmem:[%s1154_s3 + $0x58] sm:$0xff] %v475_v50  ;;  %v457_v53 = vpop.f32.mrf.mxu3 }
  0xfd   :  { %v418_v54 = vadd.f32 %v921_v39, %v417_v52  ;;  %546 = vst [vmem:[%s1154_s3 + $0xc8] sm:$0xff] %v489_v51  ;;  %v458_v55 = vadd.f32 %v921_v39, %v457_v53 }
  0xff   :  { %v503_v56 = vmax.f32 %v418_v54, 0.0  ;;  %v519_v57 = vmax.f32 %v458_v55, 0.0  ;;  %v350_v58 = vpop.f32.mrf.mxu0  ;;  %v385_v59 = vpop.f32.mrf.mxu1 }
 0x100   :  { %v351_v60 = vadd.f32 %v921_v39, %v350_v58  ;;  %v386_v61 = vadd.f32 %v921_v39, %v385_v59 }
 0x101   :  { %560 = vst [vmem:[%s1154_s3 + $0x138] sm:$0xff] %v503_v56 }
 0x102   :  { %576 = vst [vmem:[%s1154_s3 + $0x1b8] sm:$0xff] %v519_v57  ;;  %v476_v62 = vmax.f32 %v351_v60, 0.0  ;;  %v490_v63 = vmax.f32 %v386_v61, 0.0 }
 0x104   :  { %v420_v0 = vpop.f32.mrf.mxu2  ;;  %533 = vst [vmem:[%s1154_s3 + $0x60] sm:$0xff] %v476_v62  ;;  %v460_v1 = vpop.f32.mrf.mxu3 }
 0x105   :  { %v421_v2 = vadd.f32 %v921_v39, %v420_v0  ;;  %547 = vst [vmem:[%s1154_s3 + $0xd0] sm:$0xff] %v490_v63  ;;  %v461_v3 = vadd.f32 %v921_v39, %v460_v1 }
 0x107   :  { %v504_v4 = vmax.f32 %v421_v2, 0.0  ;;  %v520_v5 = vmax.f32 %v461_v3, 0.0  ;;  %v352_v6 = vpop.f32.mrf.mxu0  ;;  %v387_v7 = vpop.f32.mrf.mxu1 }
 0x108   :  { %v353_v8 = vadd.f32 %v921_v39, %v352_v6  ;;  %v388_v9 = vadd.f32 %v921_v39, %v387_v7 }
 0x109   :  { %561 = vst [vmem:[%s1154_s3 + $0x140] sm:$0xff] %v504_v4 }
 0x10a   :  { %577 = vst [vmem:[%s1154_s3 + $0x1c0] sm:$0x3] %v520_v5  ;;  %v477_v10 = vmax.f32 %v353_v8, 0.0  ;;  %v491_v11 = vmax.f32 %v388_v9, 0.0 }
 0x10c   :  { %v422_v12 = vpop.f32.mrf.mxu2  ;;  %534 = vst [vmem:[%s1154_s3 + $0x68] sm:$0xff] %v477_v10  ;;  %v462_v13 = vpop.f32.mrf.mxu3 }
 0x10d   :  { %v423_v14 = vadd.f32 %v921_v39, %v422_v12  ;;  %548 = vst [vmem:[%s1154_s3 + $0xd8] sm:$0xff] %v491_v11 }
 0x10f   :  { %v505_v15 = vmax.f32 %v423_v14, 0.0 }
 0x111   :  { %562 = vst [vmem:[%s1154_s3 + $0x148] sm:$0xff] %v505_v15 }
 0x114   :  { %v425_v16 = vpop.f32.mrf.mxu2 }
 0x115   :  { %v426_v17 = vadd.f32 %v921_v39, %v425_v16 }
 0x117   :  { %v506_v18 = vmax.f32 %v426_v17, 0.0 }
 0x119   :  { %563 = vst [vmem:[%s1154_s3 + $0x150] sm:$0xff] %v506_v18 }
 0x11c   :  { %v427_v19 = vpop.f32.mrf.mxu2 }
 0x11d   :  { %v428_v20 = vadd.f32 %v921_v39, %v427_v19 }
 0x11f   :  { %v507_v21 = vmax.f32 %v428_v20, 0.0 }
 0x121   :  { %564 = vst [vmem:[%s1154_s3 + $0x158] sm:$0xff] %v507_v21 }

// kernel: _forward_impl.21
= control target key start
LH: loop header
LB: loop body
LE: loop exit
PB: predicated region body
PF: predicated region fallthrough
CT: control target
= control target key end

     0   :  { %s2661_s12 = smov 0   ;;  %s3812_s0 = inlined_call_operand.vmem [shape: bf16[2048,128], index: 0, kind: input, shape index: {}]   ;;  %s3813_s1 = inlined_call_operand.vmem [shape: bf16[128,128], index: 1, kind: input, shape index: {}]   ;;  %s3814_s2 = inlined_call_operand.vmem [shape: f32[1,128], index: 2, kind: input, shape index: {}]   ;;  %s3815_s3 = inlined_call_operand.vmem [shape: f32[2048,128], index: 3, kind: output, shape index: {}]  }
   0x1 LB: > { %s2067_s13 = sadd.s32 4294967295, %s2639_s12   ;;  %p2071_p0 = scmp.ge.s32.totalorder %s2639_s12, 1  ;;  %s2639_s12 = sphi %s2661_s12, %s13_s12  }
   0x2   : > { %p138_p1 = scmp.lt.s32.totalorder %s2639_s12, 5 }
   0x4   : > { %p139_p2 = pnand %p2071_p0, %p138_p1 }
   0x5   : > { %s2072_s22 = sshll.u32 (!%p139_p2), %s2067_s13, 6 }
   0x6   : > { %142 = sbr.rel (%p139_p2) target bundleno = 471 (0x1d7), region = 32  ;;  %p163_p3 = scmp.lt.s32.totalorder (!%p139_p2), %s2072_s22, 255 }
   0xb   : > { %v2341_v0 = vld [vmem:[%s3813_s1 + $0x38] sm:$0xff]  ;;  %v2340_v1 = vld [vmem:[%s3813_s1 + $0x30] sm:$0xff]  ;;  %v2339_v2 = vld [vmem:[%s3813_s1 + $0x28] sm:$0xff]  ;;  %s3919_s22 = smov (!%p163_p3, %s2072_s22), 255 }
   0xc   : > { %498 = vmatpush.bf16.msra.mxu0 %v2341_v0  ;;  %2342 = vmatpush.bf16.msra.mxu1 %v2341_v0  ;;  %v2338_v3 = vld [vmem:[%s3813_s1 + $0x20] sm:$0xff]  ;;  %v2337_v4 = vld [vmem:[%s3813_s1 + $0x18] sm:$0xff]  ;;  %v2336_v5 = vld [vmem:[%s3813_s1 + $0x10] sm:$0xff]  ;;  %s2073_s29 = sshll.u32 %s3919_s22, 2  ;;  %s2075_s10 = sshll.u32 %s3919_s22, 3 }
   0xd   : > { %2343 = vmatpush.bf16.msra.mxu2 %v2341_v0  ;;  %2344 = vmatpush.bf16.msra.mxu3 %v2341_v0  ;;  %v2335_v6 = vld [vmem:[%s3813_s1 + $0x8] sm:$0xff]  ;;  %v2334_v7 = vld [vmem:[%s3813_s1] sm:$0xff]  ;;  %s2699_s7 = scalar_lea.vmem %s3812_s0, %s2073_s29  ;;  %s2795_s14 = scalar_lea.vmem %s3815_s3, %s2075_s10 }
   0xe   : > { %v2302_v8 = vld [vmem:[%s2699_s7] sm:$0xff]  ;;  %v2303_v12 = vld [vmem:[%s2699_s7 + $0x8] sm:$0xff]  ;;  %v2304_v16 = vld [vmem:[%s2699_s7 + $0x10] sm:$0xff] }
   0xf   : > { %v2310_v9 = vld [vmem:[%s2699_s7 + $0x40] sm:$0xff]  ;;  %v2311_v13 = vld [vmem:[%s2699_s7 + $0x48] sm:$0xff]  ;;  %v2312_v17 = vld [vmem:[%s2699_s7 + $0x50] sm:$0xff] }
  0x10   : > { %499 = vmatpush.bf16.msra.mxu0 %v2340_v1  ;;  %2345 = vmatpush.bf16.msra.mxu1 %v2340_v1  ;;  %v2318_v10 = vld [vmem:[%s2699_s7 + $0x80] sm:$0xff]  ;;  %v2319_v14 = vld [vmem:[%s2699_s7 + $0x88] sm:$0xff]  ;;  %v2320_v18 = vld [vmem:[%s2699_s7 + $0x90] sm:$0xff] }
  0x11   : > { %2346 = vmatpush.bf16.msra.mxu2 %v2340_v1  ;;  %2347 = vmatpush.bf16.msra.mxu3 %v2340_v1  ;;  %v2326_v11 = vld [vmem:[%s2699_s7 + $0xc0] sm:$0xff]  ;;  %v2327_v15 = vld [vmem:[%s2699_s7 + $0xc8] sm:$0xff]  ;;  %v2328_v19 = vld [vmem:[%s2699_s7 + $0xd0] sm:$0xff] }
  0x12   : > { %v2305_v20 = vld [vmem:[%s2699_s7 + $0x18] sm:$0xff]  ;;  %v2306_v24 = vld [vmem:[%s2699_s7 + $0x20] sm:$0xff]  ;;  %v2307_v28 = vld [vmem:[%s2699_s7 + $0x28] sm:$0xff] }
  0x13   : > { %v2313_v21 = vld [vmem:[%s2699_s7 + $0x58] sm:$0xff]  ;;  %v2314_v25 = vld [vmem:[%s2699_s7 + $0x60] sm:$0xff]  ;;  %v2315_v29 = vld [vmem:[%s2699_s7 + $0x68] sm:$0xff] }
  0x14   : > { %500 = vmatpush.bf16.msra.mxu0 %v2339_v2  ;;  %2348 = vmatpush.bf16.msra.mxu1 %v2339_v2  ;;  %v2321_v22 = vld [vmem:[%s2699_s7 + $0x98] sm:$0xff]  ;;  %v2322_v26 = vld [vmem:[%s2699_s7 + $0xa0] sm:$0xff]  ;;  %v2323_v30 = vld [vmem:[%s2699_s7 + $0xa8] sm:$0xff] }
  0x15   : > { %2349 = vmatpush.bf16.msra.mxu2 %v2339_v2  ;;  %2350 = vmatpush.bf16.msra.mxu3 %v2339_v2  ;;  %v2329_v23 = vld [vmem:[%s2699_s7 + $0xd8] sm:$0xff]  ;;  %v2330_v27 = vld [vmem:[%s2699_s7 + $0xe0] sm:$0xff]  ;;  %v2331_v31 = vld [vmem:[%s2699_s7 + $0xe8] sm:$0xff] }
  0x16   : > { %v2308_v32 = vld [vmem:[%s2699_s7 + $0x30] sm:$0xff]  ;;  %v2309_v36 = vld [vmem:[%s2699_s7 + $0x38] sm:$0xff]  ;;  %v2736_v40 = vld [vmem:[%s3814_s2] ss:$0 sm:$0xff] }
  0x17   : > { %v2316_v33 = vld [vmem:[%s2699_s7 + $0x70] sm:$0xff]  ;;  %v2317_v37 = vld [vmem:[%s2699_s7 + $0x78] sm:$0xff] }
  0x18   : > { %501 = vmatpush.bf16.msra.mxu0 %v2338_v3  ;;  %2351 = vmatpush.bf16.msra.mxu1 %v2338_v3  ;;  %v2324_v34 = vld [vmem:[%s2699_s7 + $0xb0] sm:$0xff]  ;;  %v2325_v38 = vld [vmem:[%s2699_s7 + $0xb8] sm:$0xff] }
  0x19   : > { %2352 = vmatpush.bf16.msra.mxu2 %v2338_v3  ;;  %2353 = vmatpush.bf16.msra.mxu3 %v2338_v3  ;;  %v2332_v35 = vld [vmem:[%s2699_s7 + $0xf0] sm:$0xff]  ;;  %v2333_v39 = vld [vmem:[%s2699_s7 + $0xf8] sm:$0xff] }
  0x1c   : > { %502 = vmatpush.bf16.msra.mxu0 %v2337_v4  ;;  %2354 = vmatpush.bf16.msra.mxu1 %v2337_v4 }
  0x1d   : > { %2355 = vmatpush.bf16.msra.mxu2 %v2337_v4  ;;  %2356 = vmatpush.bf16.msra.mxu3 %v2337_v4 }
  0x20   : > { %503 = vmatpush.bf16.msra.mxu0 %v2336_v5  ;;  %2357 = vmatpush.bf16.msra.mxu1 %v2336_v5 }
  0x21   : > { %2358 = vmatpush.bf16.msra.mxu2 %v2336_v5  ;;  %2359 = vmatpush.bf16.msra.mxu3 %v2336_v5 }
  0x24   : > { %504 = vmatpush.bf16.msra.mxu0 %v2335_v6  ;;  %2360 = vmatpush.bf16.msra.mxu1 %v2335_v6 }
  0x25   : > { %2361 = vmatpush.bf16.msra.mxu2 %v2335_v6  ;;  %2362 = vmatpush.bf16.msra.mxu3 %v2335_v6 }
  0x28   : > { %505 = vmatpush.bf16.msra.mxu0 %v2334_v7  ;;  %2363 = vmatpush.bf16.msra.mxu1 %v2334_v7 }
  0x29   : > { %2364 = vmatpush.bf16.msra.mxu2 %v2334_v7  ;;  %2365 = vmatpush.bf16.msra.mxu3 %v2334_v7 }
  0x2b   : > { %506 = vmatmul.bf16.vlgmr.msra.gmra.mxu0 %v2302_v8  ;;  %546 = vmatmul.bf16.vlgmr.msra.gmra.mxu1 %v2310_v9 }
  0x2c   : > { %586 = vmatmul.bf16.vlgmr.msra.gmra.mxu2 %v2318_v10  ;;  %626 = vmatmul.bf16.vlgmr.msra.gmra.mxu3 %v2326_v11 }
  0x3b   : > { %511 = vmatmul.bf16.gmra.mxu0 %v2303_v12  ;;  %551 = vmatmul.bf16.gmra.mxu1 %v2311_v13 }
  0x3c   : > { %591 = vmatmul.bf16.gmra.mxu2 %v2319_v14  ;;  %631 = vmatmul.bf16.gmra.mxu3 %v2327_v15 }
  0x4b   : > { %516 = vmatmul.bf16.gmra.mxu0 %v2304_v16  ;;  %556 = vmatmul.bf16.gmra.mxu1 %v2312_v17 }
  0x4c   : > { %596 = vmatmul.bf16.gmra.mxu2 %v2320_v18  ;;  %636 = vmatmul.bf16.gmra.mxu3 %v2328_v19 }
  0x5b   : > { %521 = vmatmul.bf16.gmra.mxu0 %v2305_v20  ;;  %561 = vmatmul.bf16.gmra.mxu1 %v2313_v21 }
  0x5c   : > { %601 = vmatmul.bf16.gmra.mxu2 %v2321_v22  ;;  %641 = vmatmul.bf16.gmra.mxu3 %v2329_v23 }
  0x6b   : > { %526 = vmatmul.bf16.gmra.mxu0 %v2306_v24  ;;  %566 = vmatmul.bf16.gmra.mxu1 %v2314_v25 }
  0x6c   : > { %606 = vmatmul.bf16.gmra.mxu2 %v2322_v26  ;;  %646 = vmatmul.bf16.gmra.mxu3 %v2330_v27 }
  0x7b   : > { %531 = vmatmul.bf16.gmra.mxu0 %v2307_v28  ;;  %571 = vmatmul.bf16.gmra.mxu1 %v2315_v29 }
  0x7c   : > { %611 = vmatmul.bf16.gmra.mxu2 %v2323_v30  ;;  %651 = vmatmul.bf16.gmra.mxu3 %v2331_v31 }
  0x8b   : > { %536 = vmatmul.bf16.gmra.mxu0 %v2308_v32  ;;  %576 = vmatmul.bf16.gmra.mxu1 %v2316_v33 }
  0x8c   : > { %616 = vmatmul.bf16.gmra.mxu2 %v2324_v34  ;;  %656 = vmatmul.bf16.gmra.mxu3 %v2332_v35 }
  0x9b   : > { %541 = vmatmul.bf16.gmra.mxu0 %v2309_v36  ;;  %581 = vmatmul.bf16.gmra.mxu1 %v2317_v37 }
  0x9c   : > { %621 = vmatmul.bf16.gmra.mxu2 %v2325_v38  ;;  %661 = vmatmul.bf16.gmra.mxu3 %v2333_v39 }
  0xa8   : > { %v507_v41 = vpop.f32.mrf.mxu0  ;;  %v547_v42 = vpop.f32.mrf.mxu1 }
  0xa9   : > { %v508_v43 = vadd.f32 %v2736_v40, %v507_v41  ;;  %v548_v44 = vadd.f32 %v2736_v40, %v547_v42 }
  0xab   : > { %v667_v45 = vmax.f32 %v508_v43, 0.0  ;;  %v683_v46 = vmax.f32 %v548_v44, 0.0 }
  0xad   : > { %v2236_v47 = vmul.f32 -1.442695, %v667_v45  ;;  %v2252_v48 = vmul.f32 -1.442695, %v683_v46 }
  0xaf   : > { %2375 = vpow2.f32 %v2236_v47  ;;  %v587_v49 = vpop.f32.mrf.mxu2  ;;  %v627_v50 = vpop.f32.mrf.mxu3 }
  0xb0   : > { %2377 = vpow2.f32 %v2252_v48  ;;  %v588_v51 = vadd.f32 %v2736_v40, %v587_v49  ;;  %v628_v52 = vadd.f32 %v2736_v40, %v627_v50  ;;  %v509_v53 = vpop.f32.mrf.mxu0  ;;  %v549_v54 = vpop.f32.mrf.mxu1 }
  0xb1   : > { %v510_v55 = vadd.f32 %v2736_v40, %v509_v53  ;;  %v550_v56 = vadd.f32 %v2736_v40, %v549_v54 }
  0xb2   : > { %v699_v57 = vmax.f32 %v588_v51, 0.0  ;;  %v715_v58 = vmax.f32 %v628_v52, 0.0 }
  0xb3   : > { %v668_v59 = vmax.f32 %v510_v55, 0.0  ;;  %v684_v60 = vmax.f32 %v550_v56, 0.0 }
  0xb4   : > { %v2268_v61 = vmul.f32 -1.442695, %v699_v57  ;;  %v2284_v62 = vmul.f32 -1.442695, %v715_v58 }
  0xb5   : > { %v2376_v63 = vpop.eup %2375  ;;  %v2237_v2 = vmul.f32 -1.442695, %v668_v59  ;;  %v2253_v4 = vmul.f32 -1.442695, %v684_v60 }
  0xb6   : > { %v2378_v0 = vpop.eup %2377  ;;  %v2744_v1 = vadd.f32 1.0, %v2376_v63  ;;  %2379 = vpow2.f32 %v2268_v61 }
  0xb7   : > { %v2746_v3 = vadd.f32 1.0, %v2378_v0  ;;  %2381 = vpow2.f32 %v2284_v62  ;;  %v589_v5 = vpop.f32.mrf.mxu2  ;;  %v629_v7 = vpop.f32.mrf.mxu3 }
  0xb8   : > { %2383 = vrcp.f32 %v2744_v1  ;;  %v590_v6 = vadd.f32 %v2736_v40, %v589_v5  ;;  %v996_v8 = vand.u32 2147483647, %v2744_v1  ;;  %v512_v9 = vpop.f32.mrf.mxu0  ;;  %v552_v10 = vpop.f32.mrf.mxu1  ;;  %v998_v12 = vand.u32 2147483648, %v2744_v1 }
  0xb9   : > { %2385 = vrcp.f32 %v2746_v3  ;;  %v1236_v13 = vand.u32 2147483647, %v2746_v3  ;;  %v1238_v16 = vand.u32 2147483648, %v2746_v3  ;;  %v630_v18 = vadd.f32 %v2736_v40, %v629_v7 }
  0xba   : > { %2387 = vpow2.f32 %v2237_v2  ;;  %v700_v14 = vmax.f32 %v590_v6, 0.0  ;;  %vm992_vm0 = vweird.f32 %v2744_v1  ;;  %v2762_v21 = vadd.f32 %v2736_v40, %v512_v9 }
  0xbb   : > { %2389 = vpow2.f32 %v2253_v4  ;;  %v2765_v22 = vadd.f32 %v2736_v40, %v552_v10  ;;  %vm2768_vm1 = vcmp.eq.f32.partialorder %v996_v8, 8.507059e+37  ;;  %vm1232_vm2 = vweird.f32 %v2746_v3 }
  0xbc   : > { %v2380_v11 = vpop.eup %2379  ;;  %v999_v27 = vor.u32 1.1754944e-38, %v998_v12  ;;  %vm2775_vm3 = vcmp.eq.f32.partialorder %v1236_v13, 8.507059e+37  ;;  %v2269_v30 = vmul.f32 -1.442695, %v700_v14  ;;  %v1239_v33 = vor.u32 1.1754944e-38, %v1238_v16 }
  0xbd   : > { %v2382_v15 = vpop.eup %2381  ;;  %v2755_v17 = vadd.f32 1.0, %v2380_v11  ;;  %v716_v34 = vmax.f32 %v630_v18, 0.0  ;;  %v669_v36 = vmax.f32 %v2762_v21, 0.0  ;;  %v685_v37 = vmax.f32 %v2765_v22, 0.0 }
  0xbe   : > { %v2384_v19 = vpop.eup %2383  ;;  %v2759_v20 = vadd.f32 1.0, %v2382_v15 }
  0xbf   : > { %v2386_v23 = vpop.eup %2385  ;;  %v988_v24 = vmul.f32 %v2384_v19, %v2744_v1  ;;  %2391 = vrcp.f32 %v2755_v17  ;;  %vm993_vm4 = vweird.f32 %v2384_v19  ;;  %v1476_v39 = vand.u32 2147483647, %v2755_v17  ;;  %v592_v21 = vpop.f32.mrf.mxu2 }
  0xc0   : > { %v2388_v26 = vpop.eup %2387  ;;  %v1228_v28 = vmul.f32 %v2386_v23, %v2746_v3  ;;  %2393 = vrcp.f32 %v2759_v20  ;;  %vm1233_vm5 = vweird.f32 %v2386_v23  ;;  %vm1472_vm6 = vweird.f32 %v2755_v17  ;;  %vm994_vm7 = vmor %vm992_vm0, %vm993_vm4  ;;  %v632_v22 = vpop.f32.mrf.mxu3 }
  0xc1   : > { %v2390_v31 = vpop.eup %2389  ;;  %v989_v32 = vsub.f32 1.0, %v988_v24  ;;  %v2784_v41 = vadd.f32 1.0, %v2388_v26  ;;  %2395 = vpow2.f32 %v2269_v30  ;;  %v1478_v46 = vand.u32 2147483648, %v2755_v17  ;;  %vm1234_vm9 = vmor %vm1232_vm2, %vm1233_vm5 }
  0xc2   : > { %v1229_v35 = vsub.f32 1.0, %v1228_v28  ;;  %v2786_v42 = vadd.f32 1.0, %v2390_v31  ;;  %v1716_v47 = vand.u32 2147483647, %v2759_v20  ;;  %vm1712_vm8 = vweird.f32 %v2759_v20 }
  0xc3   : > { %v990_v38 = vmul.f32 %v2384_v19, %v989_v32  ;;  %2397 = vrcp.f32 %v2784_v41  ;;  %v2285_v50 = vmul.f32 -1.442695, %v716_v34  ;;  %vm2805_vm10 = vcmp.eq.f32.partialorder %v1476_v39, 8.507059e+37  ;;  %v514_v32 = vpop.f32.mrf.mxu0 }
  0xc4   : > { %v1230_v43 = vmul.f32 %v2386_v23, %v1229_v35  ;;  %v1718_v54 = vand.u32 2147483648, %v2759_v20  ;;  %2399 = vrcp.f32 %v2786_v42  ;;  %v1479_v60 = vor.u32 1.1754944e-38, %v1478_v46 }
  0xc5   : > { %v2392_v44 = vpop.eup %2391  ;;  %v991_v45 = vadd.f32 %v2384_v19, %v990_v38  ;;  %vm2817_vm11 = vcmp.eq.f32.partialorder %v1716_v47, 8.507059e+37  ;;  %v1011_v62 = vand.u32 2147483647, %v2784_v41  ;;  %2401 = vpow2.f32 %v2285_v50 }
  0xc6   : > { %v1231_v48 = vadd.f32 %v2386_v23, %v1230_v43  ;;  %v1468_v49 = vmul.f32 %v2392_v44, %v2755_v17  ;;  %v2394_v51 = vpop.eup %2393  ;;  %vm1473_vm12 = vweird.f32 %v2392_v44  ;;  %v1719_v3 = vor.u32 1.1754944e-38, %v1718_v54 }
  0xc7   : > { %v995_v52 = vsel %vm994_vm7, %v2384_v19, %v991_v45  ;;  %v1708_v58 = vmul.f32 %v2394_v51, %v2759_v20  ;;  %v2396_v63 = vpop.eup %2395  ;;  %vm1713_vm13 = vweird.f32 %v2394_v51  ;;  %vm1007_vm14 = vweird.f32 %v2784_v41  ;;  %vm1474_vm15 = vmor %vm1472_vm6, %vm1473_vm12 }
  0xc8   : > { %v1000_v55 = vsel %vm2768_vm1, %v999_v27, %v995_v52  ;;  %v1235_v56 = vsel %vm1234_vm9, %v2386_v23, %v1231_v48  ;;  %v1469_v57 = vsub.f32 1.0, %v1468_v49  ;;  %v2824_v4 = vadd.f32 1.0, %v2396_v63  ;;  %vm1714_vm1 = vmor %vm1712_vm8, %vm1713_vm13 }
  0xc9   : > { %1947 = vst [vmem:[%s2795_s14] sm:$0xff] %v1000_v55  ;;  %v1240_v59 = vsel %vm2775_vm3, %v1239_v33, %v1235_v56  ;;  %v1709_v1 = vsub.f32 1.0, %v1708_v58  ;;  %v2398_v2 = vpop.eup %2397  ;;  %v2238_v8 = vmul.f32 -1.442695, %v669_v36  ;;  %vm2829_vm0 = vcmp.eq.f32.partialorder %v1011_v62, 8.507059e+37  ;;  %v554_v55 = vpop.f32.mrf.mxu1 }
  0xca   : > { %1963 = vst [vmem:[%s2795_s14 + $0x80] sm:$0xff] %v1240_v59  ;;  %v1470_v0 = vmul.f32 %v2392_v44, %v1469_v57  ;;  %v1003_v7 = vmul.f32 %v2398_v2, %v2784_v41  ;;  %v2400_v9 = vpop.eup %2399  ;;  %v1013_v11 = vand.u32 2147483648, %v2784_v41  ;;  %2403 = vrcp.f32 %v2824_v4 }
  0xcb   : > { %v1710_v6 = vmul.f32 %v2394_v51, %v1709_v1  ;;  %v2254_v12 = vmul.f32 -1.442695, %v685_v37  ;;  %v1243_v16 = vmul.f32 %v2400_v9, %v2786_v42  ;;  %vm1008_vm2 = vweird.f32 %v2398_v2  ;;  %v2402_v23 = vpop.eup %2401 }
  0xcc   : > { %v1471_v5 = vadd.f32 %v2392_v44, %v1470_v0  ;;  %v1004_v15 = vsub.f32 1.0, %v1003_v7  ;;  %v1251_v17 = vand.u32 2147483647, %v2786_v42  ;;  %v1253_v19 = vand.u32 2147483648, %v2786_v42  ;;  %vm1009_vm4 = vmor %vm1007_vm14, %vm1008_vm2  ;;  %v634_v7 = vpop.f32.mrf.mxu3 }
  0xcd   : > { %v1711_v14 = vadd.f32 %v2394_v51, %v1710_v6  ;;  %v1244_v26 = vsub.f32 1.0, %v1243_v16  ;;  %2405 = vpow2.f32 %v2238_v8  ;;  %vm1248_vm3 = vweird.f32 %v2400_v9  ;;  %v517_v8 = vpop.f32.mrf.mxu0 }
  0xce   : > { %v1475_v13 = vsel %vm1474_vm15, %v2392_v44, %v1471_v5  ;;  %v1005_v25 = vmul.f32 %v2398_v2, %v1004_v15  ;;  %v2846_v20 = vadd.f32 1.0, %v2402_v23  ;;  %2407 = vpow2.f32 %v2254_v12 }
  0xcf   : > { %v1480_v18 = vsel %vm2805_vm10, %v1479_v60, %v1475_v13  ;;  %v1715_v24 = vsel %vm1714_vm1, %v2394_v51, %v1711_v14  ;;  %v1245_v29 = vmul.f32 %v2400_v9, %v1244_v26  ;;  %v593_v30 = vadd.f32 %v2736_v40, %v592_v21 }
  0xd0   : > { %1979 = vst [vmem:[%s2795_s14 + $0x100] sm:$0xff] %v1480_v18  ;;  %v1720_v27 = vsel %vm2817_vm11, %v1719_v3, %v1715_v24  ;;  %v1006_v28 = vadd.f32 %v2398_v2, %v1005_v25  ;;  %v633_v31 = vadd.f32 %v2736_v40, %v632_v22  ;;  %v2404_v33 = vpop.eup %2403  ;;  %v1014_v34 = vor.u32 1.1754944e-38, %v1013_v11  ;;  %v594_v3 = vpop.f32.mrf.mxu2 }
  0xd1   : > { %1995 = vst [vmem:[%s2795_s14 + $0x180] sm:$0xff] %v1720_v27  ;;  %vm1247_vm5 = vweird.f32 %v2786_v42  ;;  %vm2855_vm6 = vcmp.eq.f32.partialorder %v1251_v17, 8.507059e+37  ;;  %2409 = vrcp.f32 %v2846_v20  ;;  %v1246_v37 = vadd.f32 %v2400_v9, %v1245_v29 }
  0xd2   : > { %v1010_v36 = vsel %vm1009_vm4, %v2398_v2, %v1006_v28  ;;  %v1254_v38 = vor.u32 1.1754944e-38, %v1253_v19  ;;  %v1483_v39 = vmul.f32 %v2404_v33, %v2824_v4  ;;  %vm1249_vm7 = vmor %vm1247_vm5, %vm1248_vm3  ;;  %v1491_v41 = vand.u32 2147483647, %v2824_v4 }
  0xd3   : > { %v1015_v43 = vsel %vm2829_vm0, %v1014_v34, %v1010_v36  ;;  %v1493_v42 = vand.u32 2147483648, %v2824_v4  ;;  %v701_v44 = vmax.f32 %v593_v30, 0.0  ;;  %v2406_v45 = vpop.eup %2405  ;;  %v1250_v46 = vsel %vm1249_vm7, %v2400_v9, %v1246_v37 }
  0xd4   : > { %1948 = vst [vmem:[%s2795_s14 + $0x8] sm:$0xff] %v1015_v43  ;;  %v1484_v47 = vsub.f32 1.0, %v1483_v39  ;;  %v717_v48 = vmax.f32 %v633_v31, 0.0  ;;  %v515_v49 = vadd.f32 %v2736_v40, %v514_v32  ;;  %v2408_v50 = vpop.eup %2407  ;;  %v1255_v51 = vsel %vm2855_vm6, %v1254_v38, %v1250_v46 }
  0xd5   : > { %v1731_v52 = vand.u32 2147483647, %v2846_v20  ;;  %v1733_v53 = vand.u32 2147483648, %v2846_v20  ;;  %v2872_v54 = vadd.f32 1.0, %v2406_v45  ;;  %1964 = vst [vmem:[%s2795_s14 + $0x88] sm:$0xff] %v1255_v51  ;;  %vm1488_vm8 = vweird.f32 %v2404_v33 }
  0xd6   : > { %v1485_v56 = vmul.f32 %v2404_v33, %v1484_v47  ;;  %v2875_v57 = vadd.f32 1.0, %v2408_v50  ;;  %v2270_v58 = vmul.f32 -1.442695, %v701_v44  ;;  %vm1487_vm9 = vweird.f32 %v2824_v4  ;;  %v557_v44 = vpop.f32.mrf.mxu1 }
  0xd7   : > { %v2410_v59 = vpop.eup %2409  ;;  %2411 = vrcp.f32 %v2872_v54  ;;  %v2286_v60 = vmul.f32 -1.442695, %v717_v48  ;;  %v670_v61 = vmax.f32 %v515_v49, 0.0  ;;  %v555_v0 = vadd.f32 %v2736_v40, %v554_v55  ;;  %vm1489_vm10 = vmor %vm1487_vm9, %vm1488_vm8 }
  0xd8   : > { %v1486_v62 = vadd.f32 %v2404_v33, %v1485_v56  ;;  %v1723_v63 = vmul.f32 %v2410_v59, %v2846_v20  ;;  %2413 = vrcp.f32 %v2875_v57  ;;  %vm1492_vm11 = vcmp.eq.f32.partialorder %v1491_v41, 8.507059e+37 }
  0xd9   : > { %v1494_v1 = vor.u32 1.1754944e-38, %v1493_v42  ;;  %vm1727_vm12 = vweird.f32 %v2846_v20  ;;  %vm2883_vm13 = vcmp.eq.f32.partialorder %v1731_v52, 8.507059e+37  ;;  %v1734_v6 = vor.u32 1.1754944e-38, %v1733_v53 }
  0xda   : > { %v1490_v4 = vsel %vm1489_vm10, %v2404_v33, %v1486_v62  ;;  %v1724_v5 = vsub.f32 1.0, %v1723_v63  ;;  %2415 = vpow2.f32 %v2270_v58  ;;  %vm1022_vm14 = vweird.f32 %v2872_v54 }
  0xdb   : > { %v1495_v9 = vsel %vm1492_vm11, %v1494_v1, %v1490_v4  ;;  %2417 = vpow2.f32 %v2286_v60  ;;  %v2239_v10 = vmul.f32 -1.442695, %v670_v61  ;;  %vm1728_vm15 = vweird.f32 %v2410_v59 }
  0xdc   : > { %1980 = vst [vmem:[%s2795_s14 + $0x108] sm:$0xff] %v1495_v9  ;;  %v1725_v11 = vmul.f32 %v2410_v59, %v1724_v5  ;;  %v686_v12 = vmax.f32 %v555_v0, 0.0  ;;  %v595_v13 = vadd.f32 %v2736_v40, %v594_v3  ;;  %v1026_v15 = vand.u32 2147483647, %v2872_v54  ;;  %vm1729_vm0 = vmor %vm1727_vm12, %vm1728_vm15 }
  0xdd   : > { %v2412_v14 = vpop.eup %2411  ;;  %2419 = vpow2.f32 %v2239_v10  ;;  %v635_v16 = vadd.f32 %v2736_v40, %v634_v7  ;;  %v518_v18 = vadd.f32 %v2736_v40, %v517_v8  ;;  %v1028_v22 = vand.u32 2147483648, %v2872_v54 }
  0xde   : > { %v2414_v17 = vpop.eup %2413  ;;  %v1726_v19 = vadd.f32 %v2410_v59, %v1725_v11  ;;  %v1018_v21 = vmul.f32 %v2412_v14, %v2872_v54  ;;  %v2255_v23 = vmul.f32 -1.442695, %v686_v12  ;;  %vm1262_vm1 = vweird.f32 %v2875_v57  ;;  %v597_v12 = vpop.f32.mrf.mxu2 }
  0xdf   : > { %v1258_v24 = vmul.f32 %v2414_v17, %v2875_v57  ;;  %v1268_v25 = vand.u32 2147483648, %v2875_v57  ;;  %v702_v26 = vmax.f32 %v595_v13, 0.0  ;;  %v718_v30 = vmax.f32 %v635_v16, 0.0 }
  0xe0   : > { %v2416_v27 = vpop.eup %2415  ;;  %v1730_v28 = vsel %vm1729_vm0, %v2410_v59, %v1726_v19  ;;  %v1019_v29 = vsub.f32 1.0, %v1018_v21  ;;  %2421 = vpow2.f32 %v2255_v23  ;;  %v671_v34 = vmax.f32 %v518_v18, 0.0 }
  0xe1   : > { %v2418_v31 = vpop.eup %2417  ;;  %v1735_v32 = vsel %vm2883_vm13, %v1734_v6, %v1730_v28  ;;  %v1259_v33 = vsub.f32 1.0, %v1258_v24  ;;  %v2902_v20 = vadd.f32 1.0, %v2416_v27  ;;  %vm1023_vm2 = vweird.f32 %v2412_v14 }
  0xe2   : > { %1996 = vst [vmem:[%s2795_s14 + $0x188] sm:$0xff] %v1735_v32  ;;  %v1020_v35 = vmul.f32 %v2412_v14, %v1019_v29  ;;  %v2905_v36 = vadd.f32 1.0, %v2418_v31  ;;  %v2271_v37 = vmul.f32 -1.442695, %v702_v26  ;;  %vm1263_vm3 = vweird.f32 %v2414_v17  ;;  %vm1024_vm5 = vmor %vm1022_vm14, %vm1023_vm2 }
  0xe3   : > { %v2420_v38 = vpop.eup %2419  ;;  %v1260_v39 = vmul.f32 %v2414_v17, %v1259_v33  ;;  %v1266_v43 = vand.u32 2147483647, %v2875_v57  ;;  %2423 = vrcp.f32 %v2902_v20  ;;  %vm1027_vm4 = vcmp.eq.f32.partialorder %v1026_v15, 8.507059e+37  ;;  %vm1264_vm6 = vmor %vm1262_vm1, %vm1263_vm3 }
  0xe4   : > { %v1021_v41 = vadd.f32 %v2412_v14, %v1020_v35  ;;  %v1029_v42 = vor.u32 1.1754944e-38, %v1028_v22  ;;  %2425 = vrcp.f32 %v2905_v36  ;;  %v1269_v46 = vor.u32 1.1754944e-38, %v1268_v25  ;;  %v637_v35 = vpop.f32.mrf.mxu3 }
  0xe5   : > { %v1261_v45 = vadd.f32 %v2414_v17, %v1260_v39  ;;  %v2287_v47 = vmul.f32 -1.442695, %v718_v30  ;;  %v2240_v48 = vmul.f32 -1.442695, %v671_v34  ;;  %v1506_v51 = vand.u32 2147483647, %v2902_v20 }
  0xe6   : > { %v2422_v49 = vpop.eup %2421  ;;  %v1025_v50 = vsel %vm1024_vm5, %v2412_v14, %v1021_v41  ;;  %v2916_v52 = vadd.f32 1.0, %v2420_v38  ;;  %2427 = vpow2.f32 %v2271_v37  ;;  %vm1267_vm7 = vcmp.eq.f32.partialorder %v1266_v43, 8.507059e+37  ;;  %v599_v7 = vpop.f32.mrf.mxu2 }
  0xe7   : > { %v1030_v53 = vsel %vm1027_vm4, %v1029_v42, %v1025_v50  ;;  %v1265_v54 = vsel %vm1264_vm6, %v2414_v17, %v1261_v45  ;;  %v558_v55 = vadd.f32 %v2736_v40, %v557_v44  ;;  %v1508_v58 = vand.u32 2147483648, %v2902_v20 }
  0xe8   : > { %1949 = vst [vmem:[%s2795_s14 + $0x10] sm:$0xff] %v1030_v53  ;;  %v1270_v56 = vsel %vm1267_vm7, %v1269_v46, %v1265_v54  ;;  %v1746_v59 = vand.u32 2147483647, %v2905_v36  ;;  %2429 = vrcp.f32 %v2916_v52  ;;  %vm1502_vm8 = vweird.f32 %v2902_v20 }
  0xe9   : > { %v2424_v57 = vpop.eup %2423  ;;  %1965 = vst [vmem:[%s2795_s14 + $0x90] sm:$0xff] %v1270_v56  ;;  %v1748_v60 = vand.u32 2147483648, %v2905_v36  ;;  %v2926_v61 = vadd.f32 1.0, %v2422_v49  ;;  %2431 = vpow2.f32 %v2287_v47  ;;  %vm2929_vm9 = vcmp.eq.f32.partialorder %v1506_v51, 8.507059e+37 }
  0xea   : > { %v2426_v62 = vpop.eup %2425  ;;  %v1498_v63 = vmul.f32 %v2424_v57, %v2902_v20  ;;  %vm1742_vm10 = vweird.f32 %v2905_v36  ;;  %2433 = vpow2.f32 %v2240_v48  ;;  %v1041_v2 = vand.u32 2147483647, %v2916_v52 }
  0xeb   : > { %v1738_v1 = vmul.f32 %v2426_v62, %v2905_v36  ;;  %v1043_v3 = vand.u32 2147483648, %v2916_v52  ;;  %2435 = vrcp.f32 %v2926_v61  ;;  %v1509_v6 = vor.u32 1.1754944e-38, %v1508_v58 }
  0xec   : > { %v2428_v4 = vpop.eup %2427  ;;  %v1499_v5 = vsub.f32 1.0, %v1498_v63  ;;  %vm2938_vm11 = vcmp.eq.f32.partialorder %v1746_v59, 8.507059e+37  ;;  %v687_v8 = vmax.f32 %v558_v55, 0.0  ;;  %v1749_v10 = vor.u32 1.1754944e-38, %v1748_v60  ;;  %v519_v55 = vpop.f32.mrf.mxu0 }
  0xed   : > { %v1739_v9 = vsub.f32 1.0, %v1738_v1  ;;  %vm1037_vm12 = vweird.f32 %v2916_v52  ;;  %v2943_v11 = vadd.f32 1.0, %v2428_v4  ;;  %vm1503_vm13 = vweird.f32 %v2424_v57 }
  0xee   : > { %v2430_v13 = vpop.eup %2429  ;;  %v1500_v14 = vmul.f32 %v2424_v57, %v1499_v5  ;;  %vm1743_vm14 = vweird.f32 %v2426_v62  ;;  %v1281_v15 = vand.u32 2147483647, %v2926_v61  ;;  %vm2947_vm15 = vcmp.eq.f32.partialorder %v1041_v2, 8.507059e+37  ;;  %vm1504_vm1 = vmor %vm1502_vm8, %vm1503_vm13  ;;  %v559_v2 = vpop.f32.mrf.mxu1 }
  0xef   : > { %v2432_v16 = vpop.eup %2431  ;;  %v1740_v18 = vmul.f32 %v2426_v62, %v1739_v9  ;;  %v1033_v17 = vmul.f32 %v2430_v13, %v2916_v52  ;;  %v1044_v21 = vor.u32 1.1754944e-38, %v1043_v3  ;;  %2437 = vrcp.f32 %v2943_v11  ;;  %vm1744_vm2 = vmor %vm1742_vm10, %vm1743_vm14 }
  0xf0   : > { %v2434_v22 = vpop.eup %2433  ;;  %v1501_v23 = vadd.f32 %v2424_v57, %v1500_v14  ;;  %vm1277_vm0 = vweird.f32 %v2926_v61  ;;  %v1283_v24 = vand.u32 2147483648, %v2926_v61  ;;  %v2256_v25 = vmul.f32 -1.442695, %v687_v8 }
  0xf1   : > { %v598_v26 = vadd.f32 %v2736_v40, %v597_v12  ;;  %v2436_v27 = vpop.eup %2435  ;;  %v1741_v28 = vadd.f32 %v2426_v62, %v1740_v18  ;;  %v1034_v29 = vsub.f32 1.0, %v1033_v17  ;;  %v2958_v30 = vadd.f32 1.0, %v2432_v16 }
  0xf2   : > { %v2960_v31 = vadd.f32 1.0, %v2434_v22  ;;  %v1505_v32 = vsel %vm1504_vm1, %v2424_v57, %v1501_v23  ;;  %vm1038_vm3 = vweird.f32 %v2430_v13  ;;  %v1273_v33 = vmul.f32 %v2436_v27, %v2926_v61 }
  0xf3   : > { %vm2966_vm4 = vcmp.eq.f32.partialorder %v1281_v15, 8.507059e+37  ;;  %v1521_v20 = vand.u32 2147483647, %v2943_v11  ;;  %v1510_v37 = vsel %vm2929_vm9, %v1509_v6, %v1505_v32  ;;  %v1745_v38 = vsel %vm1744_vm2, %v2426_v62, %v1741_v28  ;;  %vm1039_vm6 = vmor %vm1037_vm12, %vm1038_vm3 }
  0xf4   : > { %v1035_v39 = vmul.f32 %v2430_v13, %v1034_v29  ;;  %v1523_v43 = vand.u32 2147483648, %v2943_v11  ;;  %1981 = vst [vmem:[%s2795_s14 + $0x110] sm:$0xff] %v1510_v37  ;;  %v1750_v36 = vsel %vm2938_vm11, %v1749_v10, %v1745_v38  ;;  %v1274_v41 = vsub.f32 1.0, %v1273_v33 }
  0xf5   : > { %v1284_v42 = vor.u32 1.1754944e-38, %v1283_v24  ;;  %2439 = vrcp.f32 %v2958_v30  ;;  %v2438_v44 = vpop.eup %2437  ;;  %1997 = vst [vmem:[%s2795_s14 + $0x190] sm:$0xff] %v1750_v36  ;;  %vm1517_vm5 = vweird.f32 %v2943_v11  ;;  %v638_v46 = vadd.f32 %v2736_v40, %v637_v35 }
  0xf6   : > { %v1036_v45 = vadd.f32 %v2430_v13, %v1035_v39  ;;  %2441 = vrcp.f32 %v2960_v31  ;;  %v1275_v47 = vmul.f32 %v2436_v27, %v1274_v41  ;;  %vm1278_vm7 = vweird.f32 %v2436_v27 }
  0xf7   : > { %v1513_v48 = vmul.f32 %v2438_v44, %v2943_v11  ;;  %vm2986_vm8 = vcmp.eq.f32.partialorder %v1521_v20, 8.507059e+37  ;;  %v1524_v51 = vor.u32 1.1754944e-38, %v1523_v43  ;;  %v1761_v53 = vand.u32 2147483647, %v2958_v30  ;;  %vm1279_vm10 = vmor %vm1277_vm0, %vm1278_vm7 }
  0xf8   : > { %v1040_v50 = vsel %vm1039_vm6, %v2430_v13, %v1036_v45  ;;  %v1763_v54 = vand.u32 2147483648, %v2958_v30  ;;  %v1276_v52 = vadd.f32 %v2436_v27, %v1275_v47  ;;  %vm1518_vm9 = vweird.f32 %v2438_v44 }
  0xf9   : > { %v1045_v56 = vsel %vm2947_vm15, %v1044_v21, %v1040_v50  ;;  %v1514_v58 = vsub.f32 1.0, %v1513_v48  ;;  %vm1052_vm11 = vweird.f32 %v2960_v31  ;;  %2443 = vpow2.f32 %v2256_v25  ;;  %vm1519_vm13 = vmor %vm1517_vm5, %vm1518_vm9 }
  0xfa   : > { %1950 = vst [vmem:[%s2795_s14 + $0x18] sm:$0xff] %v1045_v56  ;;  %v703_v59 = vmax.f32 %v598_v26, 0.0  ;;  %v719_v57 = vmax.f32 %v638_v46, 0.0  ;;  %v1280_v62 = vsel %vm1279_vm10, %v2436_v27, %v1276_v52  ;;  %v1056_v0 = vand.u32 2147483647, %v2960_v31 }
  0xfb   : > { %v2440_v60 = vpop.eup %2439  ;;  %v1515_v63 = vmul.f32 %v2438_v44, %v1514_v58  ;;  %v520_v1 = vadd.f32 %v2736_v40, %v519_v55  ;;  %v1285_v4 = vsel %vm2966_vm4, %v1284_v42, %v1280_v62  ;;  %v1058_v5 = vand.u32 2147483648, %v2960_v31 }
  0xfc   : > { %v2442_v3 = vpop.eup %2441  ;;  %v1753_v61 = vmul.f32 %v2440_v60, %v2958_v30  ;;  %v2272_v6 = vmul.f32 -1.442695, %v703_v59  ;;  %1966 = vst [vmem:[%s2795_s14 + $0x98] sm:$0xff] %v1285_v4  ;;  %vm1758_vm12 = vweird.f32 %v2440_v60  ;;  %v2288_v10 = vmul.f32 -1.442695, %v719_v57 }
  0xfd   : > { %v1516_v8 = vadd.f32 %v2438_v44, %v1515_v63  ;;  %v1048_v9 = vmul.f32 %v2442_v3, %v2960_v31  ;;  %v672_v13 = vmax.f32 %v520_v1, 0.0  ;;  %v560_v14 = vadd.f32 %v2736_v40, %v559_v2  ;;  %v522_v31 = vpop.f32.mrf.mxu0 }
  0xfe   : > { %v1754_v12 = vsub.f32 1.0, %v1753_v61  ;;  %2445 = vpow2.f32 %v2272_v6  ;;  %v600_v18 = vadd.f32 %v2736_v40, %v599_v7  ;;  %vm1053_vm14 = vweird.f32 %v2442_v3 }
  0xff   : > { %v1520_v15 = vsel %vm1519_vm13, %v2438_v44, %v1516_v8  ;;  %v1049_v16 = vsub.f32 1.0, %v1048_v9  ;;  %2447 = vpow2.f32 %v2288_v10  ;;  %v2444_v17 = vpop.eup %2443  ;;  %v2241_v22 = vmul.f32 -1.442695, %v672_v13  ;;  %vm1054_vm2 = vmor %vm1052_vm11, %vm1053_vm14 }
 0x100   : > { %v1525_v19 = vsel %vm2986_vm8, %v1524_v51, %v1520_v15  ;;  %v1755_v21 = vmul.f32 %v2440_v60, %v1754_v12  ;;  %v688_v23 = vmax.f32 %v560_v14, 0.0  ;;  %v3014_v24 = vadd.f32 1.0, %v2444_v17 }
 0x101   : > { %1982 = vst [vmem:[%s2795_s14 + $0x118] sm:$0xff] %v1525_v19  ;;  %v1050_v11 = vmul.f32 %v2442_v3, %v1049_v16  ;;  %v704_v25 = vmax.f32 %v600_v18, 0.0  ;;  %vm1757_vm15 = vweird.f32 %v2958_v30  ;;  %2449 = vpow2.f32 %v2241_v22  ;;  %v639_v30 = vpop.f32.mrf.mxu3 }
 0x102   : > { %v1756_v26 = vadd.f32 %v2440_v60, %v1755_v21  ;;  %v2257_v27 = vmul.f32 -1.442695, %v688_v23  ;;  %vm1759_vm0 = vmor %vm1757_vm15, %vm1758_vm12  ;;  %vm1762_vm1 = vcmp.eq.f32.partialorder %v1761_v53, 8.507059e+37  ;;  %v1764_v28 = vor.u32 1.1754944e-38, %v1763_v54  ;;  %v3114_v54 = vld [vmem:[%s3814_s2] ss:$0 sm:$0xff] }
 0x103   : > { %v1051_v29 = vadd.f32 %v2442_v3, %v1050_v11  ;;  %2451 = vrcp.f32 %v3014_v24  ;;  %v1059_v34 = vor.u32 1.1754944e-38, %v1058_v5  ;;  %v2273_v20 = vmul.f32 -1.442695, %v704_v25 }
 0x104   : > { %v2446_v32 = vpop.eup %2445  ;;  %v1760_v33 = vsel %vm1759_vm0, %v2440_v60, %v1756_v26  ;;  %2453 = vpow2.f32 %v2257_v27  ;;  %vm1057_vm3 = vcmp.eq.f32.partialorder %v1056_v0, 8.507059e+37  ;;  %v1296_v36 = vand.u32 2147483647, %v3014_v24 }
 0x105   : > { %v2448_v35 = vpop.eup %2447  ;;  %v1765_v37 = vsel %vm1762_vm1, %v1764_v28, %v1760_v33  ;;  %v1055_v38 = vsel %vm1054_vm2, %v2442_v3, %v1051_v29  ;;  %v3021_v39 = vadd.f32 1.0, %v2446_v32  ;;  %2455 = vpow2.f32 %v2273_v20  ;;  %v562_v3 = vpop.f32.mrf.mxu1 }
 0x106   : > { %1998 = vst [vmem:[%s2795_s14 + $0x198] sm:$0xff] %v1765_v37  ;;  %v1060_v43 = vsel %vm1057_vm3, %v1059_v34, %v1055_v38  ;;  %v3025_v41 = vadd.f32 1.0, %v2448_v35  ;;  %v640_v42 = vadd.f32 %v2736_v40, %v639_v30  ;;  %v1298_v45 = vand.u32 2147483648, %v3014_v24  ;;  %v602_v35 = vpop.f32.mrf.mxu2 }
 0x107   : > { %1951 = vst [vmem:[%s2795_s14 + $0x20] sm:$0xff] %v1060_v43  ;;  %2457 = vrcp.f32 %v3021_v39  ;;  %v2450_v44 = vpop.eup %2449  ;;  %v1538_v47 = vand.u32 2147483648, %v3021_v39  ;;  %v3037_v50 = vadd.f32 %v2736_v40, %v522_v31  ;;  %vm1292_vm4 = vweird.f32 %v3014_v24 }
 0x108   : > { %2459 = vrcp.f32 %v3025_v41  ;;  %v1778_v48 = vand.u32 2147483648, %v3025_v41  ;;  %v3034_v49 = vadd.f32 1.0, %v2450_v44  ;;  %vm3041_vm5 = vcmp.eq.f32.partialorder %v1296_v36, 8.507059e+37 }
 0x109   : > { %v2452_v46 = vpop.eup %2451  ;;  %v1536_v55 = vand.u32 2147483647, %v3021_v39  ;;  %v1776_v56 = vand.u32 2147483647, %v3025_v41  ;;  %v720_v58 = vmax.f32 %v640_v42, 0.0  ;;  %v1299_v60 = vor.u32 1.1754944e-38, %v1298_v45 }
 0x10a   : > { %v2454_v51 = vpop.eup %2453  ;;  %v1288_v53 = vmul.f32 %v2452_v46, %v3014_v24  ;;  %2461 = vrcp.f32 %v3034_v49  ;;  %v1073_v52 = vand.u32 2147483648, %v3034_v49  ;;  %vm1532_vm6 = vweird.f32 %v3021_v39 }
 0x10b   : > { %v2456_v59 = vpop.eup %2455  ;;  %v3050_v62 = vadd.f32 1.0, %v2454_v51  ;;  %vm1293_vm7 = vweird.f32 %v2452_v46  ;;  %v1539_v0 = vor.u32 1.1754944e-38, %v1538_v47  ;;  %vm1772_vm8 = vweird.f32 %v3025_v41  ;;  %v524_v47 = vpop.f32.mrf.mxu0 }
 0x10c   : > { %v1289_v57 = vsub.f32 1.0, %v1288_v53  ;;  %v1779_v1 = vor.u32 1.1754944e-38, %v1778_v48  ;;  %v3053_v2 = vadd.f32 1.0, %v2456_v59  ;;  %vm3056_vm9 = vcmp.eq.f32.partialorder %v1536_v55, 8.507059e+37  ;;  %vm1294_vm12 = vmor %vm1292_vm4, %vm1293_vm7 }
 0x10d   : > { %v2458_v63 = vpop.eup %2457  ;;  %v1071_v7 = vand.u32 2147483647, %v3034_v49  ;;  %2463 = vrcp.f32 %v3050_v62  ;;  %vm3063_vm10 = vcmp.eq.f32.partialorder %v1776_v56, 8.507059e+37  ;;  %v3067_v10 = vor.u32 1.1754944e-38, %v1073_v52 }
 0x10e   : > { %v2460_v4 = vpop.eup %2459  ;;  %v1290_v61 = vmul.f32 %v2452_v46, %v1289_v57  ;;  %v1528_v5 = vmul.f32 %v2458_v63, %v3021_v39  ;;  %v2289_v12 = vmul.f32 -1.442695, %v720_v58  ;;  %v673_v13 = vmax.f32 %v3037_v50, 0.0 }
 0x10f   : > { %v1768_v8 = vmul.f32 %v2460_v4, %v3025_v41  ;;  %vm1067_vm11 = vweird.f32 %v3034_v49  ;;  %2465 = vrcp.f32 %v3053_v2  ;;  %v563_v16 = vadd.f32 %v2736_v40, %v562_v3 }
 0x110   : > { %v1291_v14 = vadd.f32 %v2452_v46, %v1290_v61  ;;  %v1529_v15 = vsub.f32 1.0, %v1528_v5  ;;  %v2462_v18 = vpop.eup %2461  ;;  %vm1533_vm13 = vweird.f32 %v2458_v63  ;;  %v1311_v19 = vand.u32 2147483647, %v3050_v62 }
 0x111   : > { %v1769_v17 = vsub.f32 1.0, %v1768_v8  ;;  %v1313_v21 = vand.u32 2147483648, %v3050_v62  ;;  %vm1773_vm14 = vweird.f32 %v2460_v4  ;;  %v1063_v11 = vmul.f32 %v2462_v18, %v3034_v49  ;;  %vm1534_vm2 = vmor %vm1532_vm6, %vm1533_vm13 }
 0x112   : > { %v1295_v22 = vsel %vm1294_vm12, %v2452_v46, %v1291_v14  ;;  %v1530_v23 = vmul.f32 %v2458_v63, %v1529_v15  ;;  %vm3079_vm15 = vcmp.eq.f32.partialorder %v1071_v7, 8.507059e+37  ;;  %vm1307_vm0 = vweird.f32 %v3050_v62  ;;  %v642_v46 = vpop.f32.mrf.mxu3  ;;  %v604_v15 = vpop.f32.mrf.mxu2 }
 0x113   : > { %v1300_v40 = vsel %vm3041_vm5, %v1299_v60, %v1295_v22  ;;  %v1770_v24 = vmul.f32 %v2460_v4, %v1769_v17  ;;  %v1551_v26 = vand.u32 2147483647, %v3053_v2  ;;  %v2464_v27 = vpop.eup %2463  ;;  %v1064_v29 = vsub.f32 1.0, %v1063_v11  ;;  %vm1774_vm5 = vmor %vm1772_vm8, %vm1773_vm14 }
 0x114   : > { %1967 = vst [vmem:[%s2795_s14 + $0xa0] sm:$0xff] %v1300_v40  ;;  %v1531_v28 = vadd.f32 %v2458_v63, %v1530_v23  ;;  %vm1068_vm1 = vweird.f32 %v2462_v18  ;;  %2467 = vpow2.f32 %v2289_v12  ;;  %v1303_v33 = vmul.f32 %v2464_v27, %v3050_v62 }
 0x115   : > { %v1771_v32 = vadd.f32 %v2460_v4, %v1770_v24  ;;  %vm3092_vm3 = vcmp.eq.f32.partialorder %v1311_v19, 8.507059e+37  ;;  %v1314_v20 = vor.u32 1.1754944e-38, %v1313_v21  ;;  %vm1547_vm4 = vweird.f32 %v3053_v2  ;;  %v2466_v37 = vpop.eup %2465  ;;  %vm1069_vm7 = vmor %vm1067_vm11, %vm1068_vm1 }
 0x116   : > { %v2242_v30 = vmul.f32 -1.442695, %v673_v13  ;;  %v1535_v38 = vsel %vm1534_vm2, %v2458_v63, %v1531_v28  ;;  %v1065_v39 = vmul.f32 %v2462_v18, %v1064_v29  ;;  %v1553_v43 = vand.u32 2147483648, %v3053_v2 }
 0x117   : > { %v689_v36 = vmax.f32 %v563_v16, 0.0  ;;  %v1540_v31 = vsel %vm3056_vm9, %v1539_v0, %v1535_v38  ;;  %v1775_v42 = vsel %vm1774_vm5, %v2460_v4, %v1771_v32  ;;  %v1304_v44 = vsub.f32 1.0, %v1303_v33  ;;  %v564_v0 = vpop.f32.mrf.mxu1 }
 0x118   : > { %v1543_v45 = vmul.f32 %v2466_v37, %v3053_v2  ;;  %1983 = vst [vmem:[%s2795_s14 + $0x120] sm:$0xff] %v1540_v31  ;;  %v1780_v48 = vsel %vm3063_vm10, %v1779_v1, %v1775_v42  ;;  %v1066_v41 = vadd.f32 %v2462_v18, %v1065_v39  ;;  %vm1308_vm6 = vweird.f32 %v2464_v27 }
 0x119   : > { %2469 = vpow2.f32 %v2242_v30  ;;  %1999 = vst [vmem:[%s2795_s14 + $0x1a0] sm:$0xff] %v1780_v48  ;;  %v1305_v50 = vmul.f32 %v2464_v27, %v1304_v44  ;;  %v2258_v53 = vmul.f32 -1.442695, %v689_v36  ;;  %v603_v55 = vadd.f32 %v3114_v54, %v602_v35  ;;  %vm1309_vm9 = vmor %vm1307_vm0, %vm1308_vm6 }
 0x11a   : > { %v1544_v51 = vsub.f32 1.0, %v1543_v45  ;;  %v2468_v56 = vpop.eup %2467  ;;  %v1070_v52 = vsel %vm1069_vm7, %v2462_v18, %v1066_v41  ;;  %vm1548_vm8 = vweird.f32 %v2466_v37  ;;  %v643_v58 = vadd.f32 %v3114_v54, %v642_v46  ;;  %v644_v24 = vpop.f32.mrf.mxu3 }
 0x11b   : > { %v525_v59 = vadd.f32 %v3114_v54, %v524_v47  ;;  %v1075_v49 = vsel %vm3079_vm15, %v3067_v10, %v1070_v52  ;;  %v1306_v57 = vadd.f32 %v2464_v27, %v1305_v50  ;;  %v3122_v63 = vadd.f32 1.0, %v2468_v56  ;;  %vm1549_vm11 = vmor %vm1547_vm4, %vm1548_vm8 }
 0x11c   : > { %v1545_v60 = vmul.f32 %v2466_v37, %v1544_v51  ;;  %1952 = vst [vmem:[%s2795_s14 + $0x28] sm:$0xff] %v1075_v49  ;;  %2471 = vpow2.f32 %v2258_v53  ;;  %v705_v1 = vmax.f32 %v603_v55, 0.0  ;;  %v721_v3 = vmax.f32 %v643_v58, 0.0 }
 0x11d   : > { %v674_v4 = vmax.f32 %v525_v59, 0.0  ;;  %v1310_v61 = vsel %vm1309_vm9, %v2464_v27, %v1306_v57  ;;  %vm1552_vm10 = vcmp.eq.f32.partialorder %v1551_v26, 8.507059e+37  ;;  %2473 = vrcp.f32 %v3122_v63 }
 0x11e   : > { %v1546_v5 = vadd.f32 %v2466_v37, %v1545_v60  ;;  %v1315_v7 = vsel %vm3092_vm3, %v1314_v20, %v1310_v61  ;;  %v1554_v62 = vor.u32 1.1754944e-38, %v1553_v43  ;;  %v2274_v8 = vmul.f32 -1.442695, %v705_v1  ;;  %v527_v43 = vpop.f32.mrf.mxu0 }
 0x11f   : > { %v2470_v6 = vpop.eup %2469  ;;  %v565_v9 = vadd.f32 %v3114_v54, %v564_v0  ;;  %1968 = vst [vmem:[%s2795_s14 + $0xa8] sm:$0xff] %v1315_v7  ;;  %v2290_v13 = vmul.f32 -1.442695, %v721_v3  ;;  %v2243_v14 = vmul.f32 -1.442695, %v674_v4  ;;  %v1793_v17 = vand.u32 2147483648, %v3122_v63 }
 0x120   : > { %v1550_v10 = vsel %vm1549_vm11, %v2466_v37, %v1546_v5  ;;  %v3136_v12 = vadd.f32 1.0, %v2470_v6  ;;  %2475 = vpow2.f32 %v2274_v8  ;;  %v1791_v18 = vand.u32 2147483647, %v3122_v63 }
 0x121   : > { %v1555_v16 = vsel %vm1552_vm10, %v1554_v62, %v1550_v10  ;;  %v690_v19 = vmax.f32 %v565_v9, 0.0  ;;  %v605_v21 = vadd.f32 %v3114_v54, %v604_v15  ;;  %vm1787_vm12 = vweird.f32 %v3122_v63 }
 0x122   : > { %1984 = vst [vmem:[%s2795_s14 + $0x128] sm:$0xff] %v1555_v16  ;;  %2477 = vrcp.f32 %v3136_v12  ;;  %v2472_v2 = vpop.eup %2471  ;;  %v1086_v26 = vand.u32 2147483647, %v3136_v12  ;;  %v1088_v27 = vand.u32 2147483648, %v3136_v12  ;;  %vm3150_vm13 = vcmp.eq.f32.partialorder %v1791_v18, 8.507059e+37 }
 0x123   : > { %2479 = vpow2.f32 %v2290_v13  ;;  %v2474_v22 = vpop.eup %2473  ;;  %v3143_v23 = vadd.f32 1.0, %v2472_v2  ;;  %v2259_v25 = vmul.f32 -1.442695, %v690_v19  ;;  %v706_v40 = vmax.f32 %v605_v21, 0.0 }
 0x124   : > { %2481 = vpow2.f32 %v2243_v14  ;;  %v1783_v11 = vmul.f32 %v2474_v22, %v3122_v63  ;;  %v1794_v33 = vor.u32 1.1754944e-38, %v1793_v17  ;;  %vm1082_vm14 = vweird.f32 %v3136_v12 }
 0x125   : > { %2483 = vrcp.f32 %v3143_v23  ;;  %v2275_v34 = vmul.f32 -1.442695, %v706_v40  ;;  %v645_v35 = vadd.f32 %v3114_v54, %v644_v24  ;;  %vm1788_vm15 = vweird.f32 %v2474_v22 }
 0x126   : > { %v2476_v28 = vpop.eup %2475  ;;  %v1784_v29 = vsub.f32 1.0, %v1783_v11  ;;  %2485 = vpow2.f32 %v2259_v25  ;;  %vm3159_vm0 = vcmp.eq.f32.partialorder %v1086_v26, 8.507059e+37  ;;  %v1089_v42 = vor.u32 1.1754944e-38, %v1088_v27  ;;  %vm1789_vm1 = vmor %vm1787_vm12, %vm1788_vm15  ;;  %v607_v27 = vpop.f32.mrf.mxu2 }
 0x127   : > { %v3155_v30 = vadd.f32 1.0, %v2476_v28  ;;  %2487 = vpow2.f32 %v2275_v34  ;;  %v1326_v44 = vand.u32 2147483647, %v3143_v23  ;;  %vm1322_vm2 = vweird.f32 %v3143_v23 }
 0x128   : > { %v2478_v20 = vpop.eup %2477  ;;  %v1785_v38 = vmul.f32 %v2474_v22, %v1784_v29  ;;  %v1328_v50 = vand.u32 2147483648, %v3143_v23  ;;  %v722_v51 = vmax.f32 %v645_v35, 0.0  ;;  %v528_v53 = vadd.f32 %v3114_v54, %v527_v43 }
 0x129   : > { %v2480_v37 = vpop.eup %2479  ;;  %v1078_v39 = vmul.f32 %v2478_v20, %v3136_v12  ;;  %2489 = vrcp.f32 %v3155_v30  ;;  %vm1083_vm3 = vweird.f32 %v2478_v20  ;;  %v1566_v49 = vand.u32 2147483647, %v3155_v30 }
 0x12a   : > { %v2482_v36 = vpop.eup %2481  ;;  %v1786_v45 = vadd.f32 %v2474_v22, %v1785_v38  ;;  %v3165_v47 = vadd.f32 1.0, %v2480_v37  ;;  %v1568_v57 = vand.u32 2147483648, %v3155_v30  ;;  %vm3181_vm4 = vcmp.eq.f32.partialorder %v1326_v44, 8.507059e+37  ;;  %vm1084_vm5 = vmor %vm1082_vm14, %vm1083_vm3 }
 0x12b   : > { %v1079_v46 = vsub.f32 1.0, %v1078_v39  ;;  %v3167_v48 = vadd.f32 1.0, %v2482_v36  ;;  %v2484_v41 = vpop.eup %2483  ;;  %v1329_v4 = vor.u32 1.1754944e-38, %v1328_v50  ;;  %vm1562_vm7 = vweird.f32 %v3155_v30 }
 0x12c   : > { %v1790_v55 = vsel %vm1789_vm1, %v2474_v22, %v1786_v45  ;;  %v1318_v52 = vmul.f32 %v2484_v41, %v3143_v23  ;;  %v2486_v58 = vpop.eup %2485  ;;  %2491 = vrcp.f32 %v3165_v47  ;;  %vm1323_vm6 = vweird.f32 %v2484_v41  ;;  %v567_v23 = vpop.f32.mrf.mxu1 }
 0x12d   : > { %v1080_v56 = vmul.f32 %v2478_v20, %v1079_v46  ;;  %v1795_v59 = vsel %vm3150_vm13, %v1794_v33, %v1790_v55  ;;  %v2488_v60 = vpop.eup %2487  ;;  %2493 = vrcp.f32 %v3167_v48  ;;  %v2291_v61 = vmul.f32 -1.442695, %v722_v51  ;;  %vm1324_vm10 = vmor %vm1322_vm2, %vm1323_vm6 }
 0x12e   : > { %2000 = vst [vmem:[%s2795_s14 + $0x1a8] sm:$0xff] %v1795_v59  ;;  %v1319_v0 = vsub.f32 1.0, %v1318_v52  ;;  %v1806_v62 = vand.u32 2147483647, %v3165_v47  ;;  %vm3193_vm8 = vcmp.eq.f32.partialorder %v1566_v49, 8.507059e+37  ;;  %v1569_v10 = vor.u32 1.1754944e-38, %v1568_v57  ;;  %v647_v52 = vpop.f32.mrf.mxu3 }
 0x12f   : > { %v1081_v63 = vadd.f32 %v2478_v20, %v1080_v56  ;;  %v2490_v3 = vpop.eup %2489  ;;  %v675_v12 = vmax.f32 %v528_v53, 0.0  ;;  %vm1802_vm9 = vweird.f32 %v3165_v47  ;;  %v1808_v15 = vand.u32 2147483648, %v3165_v47 }
 0x130   : > { %v1320_v6 = vmul.f32 %v2484_v41, %v1319_v0  ;;  %v1558_v7 = vmul.f32 %v2490_v3, %v3155_v30  ;;  %v3200_v16 = vadd.f32 1.0, %v2486_v58  ;;  %vm1097_vm11 = vweird.f32 %v3167_v48 }
 0x131   : > { %v1085_v5 = vsel %vm1084_vm5, %v2478_v20, %v1081_v63  ;;  %v1101_v2 = vand.u32 2147483647, %v3167_v48  ;;  %v3207_v17 = vadd.f32 1.0, %v2488_v60  ;;  %2495 = vpow2.f32 %v2291_v61 }
 0x132   : > { %v1090_v8 = vsel %vm3159_vm0, %v1089_v42, %v1085_v5  ;;  %v1321_v13 = vadd.f32 %v2484_v41, %v1320_v6  ;;  %v1559_v14 = vsub.f32 1.0, %v1558_v7  ;;  %v2492_v18 = vpop.eup %2491  ;;  %vm1563_vm12 = vweird.f32 %v2490_v3 }
 0x133   : > { %1953 = vst [vmem:[%s2795_s14 + $0x30] sm:$0xff] %v1090_v8  ;;  %v2494_v19 = vpop.eup %2493  ;;  %v1798_v11 = vmul.f32 %v2492_v18, %v3165_v47  ;;  %vm3210_vm13 = vcmp.eq.f32.partialorder %v1806_v62, 8.507059e+37  ;;  %v1103_v26 = vand.u32 2147483648, %v3167_v48  ;;  %2497 = vrcp.f32 %v3200_v16  ;;  %vm1564_vm14 = vmor %vm1562_vm7, %vm1563_vm12 }
 0x134   : > { %v1325_v21 = vsel %vm1324_vm10, %v2484_v41, %v1321_v13  ;;  %v1560_v22 = vmul.f32 %v2490_v3, %v1559_v14  ;;  %v1093_v24 = vmul.f32 %v2494_v19, %v3167_v48  ;;  %v1809_v32 = vor.u32 1.1754944e-38, %v1808_v15  ;;  %v529_v48 = vpop.f32.mrf.mxu0 }
 0x135   : > { %v1330_v40 = vsel %vm3181_vm4, %v1329_v4, %v1325_v21  ;;  %v1799_v29 = vsub.f32 1.0, %v1798_v11  ;;  %v2244_v33 = vmul.f32 -1.442695, %v675_v12  ;;  %vm3222_vm15 = vcmp.eq.f32.partialorder %v1101_v2, 8.507059e+37 }
 0x136   : > { %1969 = vst [vmem:[%s2795_s14 + $0xb0] sm:$0xff] %v1330_v40  ;;  %v1561_v28 = vadd.f32 %v2490_v3, %v1560_v22  ;;  %v1094_v34 = vsub.f32 1.0, %v1093_v24  ;;  %2499 = vrcp.f32 %v3207_v17  ;;  %v568_v35 = vadd.f32 %v3114_v54, %v567_v23  ;;  %v609_v24 = vpop.f32.mrf.mxu2 }
 0x137   : > { %v1800_v38 = vmul.f32 %v2492_v18, %v1799_v29  ;;  %vm1803_vm0 = vweird.f32 %v2492_v18  ;;  %v608_v39 = vadd.f32 %v3114_v54, %v607_v27  ;;  %v2496_v43 = vpop.eup %2495  ;;  %vm1098_vm1 = vweird.f32 %v2494_v19 }
 0x138   : > { %v1565_v37 = vsel %vm1564_vm14, %v2490_v3, %v1561_v28  ;;  %v1095_v30 = vmul.f32 %v2494_v19, %v1094_v34  ;;  %v1341_v31 = vand.u32 2147483647, %v3200_v16  ;;  %v1104_v44 = vor.u32 1.1754944e-38, %v1103_v26  ;;  %vm1804_vm2 = vmor %vm1802_vm9, %vm1803_vm0 }
 0x139   : > { %v1570_v36 = vsel %vm3193_vm8, %v1569_v10, %v1565_v37  ;;  %v1801_v42 = vadd.f32 %v2492_v18, %v1800_v38  ;;  %v3233_v45 = vadd.f32 1.0, %v2496_v43  ;;  %2501 = vpow2.f32 %v2244_v33  ;;  %v2498_v46 = vpop.eup %2497  ;;  %vm1099_vm4 = vmor %vm1097_vm11, %vm1098_vm1 }
 0x13a   : > { %1985 = vst [vmem:[%s2795_s14 + $0x130] sm:$0xff] %v1570_v36  ;;  %v1096_v41 = vadd.f32 %v2494_v19, %v1095_v30  ;;  %vm1337_vm3 = vweird.f32 %v3200_v16  ;;  %v1343_v50 = vand.u32 2147483648, %v3200_v16  ;;  %v691_v51 = vmax.f32 %v568_v35, 0.0 }
 0x13b   : > { %v1805_v53 = vsel %vm1804_vm2, %v2492_v18, %v1801_v42  ;;  %v1333_v55 = vmul.f32 %v2498_v46, %v3200_v16  ;;  %2503 = vrcp.f32 %v3233_v45  ;;  %v707_v56 = vmax.f32 %v608_v39, 0.0 }
 0x13c   : > { %v2500_v47 = vpop.eup %2499  ;;  %v1810_v58 = vsel %vm3210_vm13, %v1809_v32, %v1805_v53  ;;  %v1100_v59 = vsel %vm1099_vm4, %v2494_v19, %v1096_v41  ;;  %vm3245_vm5 = vcmp.eq.f32.partialorder %v1341_v31, 8.507059e+37  ;;  %vm1577_vm6 = vweird.f32 %v3207_v17  ;;  %v569_v19 = vpop.f32.mrf.mxu1 }
 0x13d   : > { %2001 = vst [vmem:[%s2795_s14 + $0x1b0] sm:$0xff] %v1810_v58  ;;  %v1105_v57 = vsel %vm3222_vm15, %v1104_v44, %v1100_v59  ;;  %v1334_v60 = vsub.f32 1.0, %v1333_v55  ;;  %v1573_v63 = vmul.f32 %v2500_v47, %v3207_v17  ;;  %v1581_v0 = vand.u32 2147483647, %v3207_v17  ;;  %v649_v44 = vpop.f32.mrf.mxu3 }
 0x13e   : > { %1954 = vst [vmem:[%s2795_s14 + $0x38] sm:$0xff] %v1105_v57  ;;  %vm1338_vm7 = vweird.f32 %v2498_v46  ;;  %v1583_v1 = vand.u32 2147483648, %v3207_v17  ;;  %v2260_v3 = vmul.f32 -1.442695, %v691_v51  ;;  %v648_v4 = vadd.f32 %v3114_v54, %v647_v52 }
 0x13f   : > { %v2502_v61 = vpop.eup %2501  ;;  %v1335_v5 = vmul.f32 %v2498_v46, %v1334_v60  ;;  %v1574_v6 = vsub.f32 1.0, %v1573_v63  ;;  %v2276_v7 = vmul.f32 -1.442695, %v707_v56  ;;  %v530_v62 = vadd.f32 %v3114_v54, %v529_v48  ;;  %vm1339_vm9 = vmor %vm1337_vm3, %vm1338_vm7 }
 0x140   : > { %vm1578_vm8 = vweird.f32 %v2500_v47  ;;  %v3259_v8 = vadd.f32 1.0, %v2502_v61  ;;  %2505 = vpow2.f32 %v2260_v3  ;;  %v723_v9 = vmax.f32 %v648_v4, 0.0 }
 0x141   : > { %v2504_v10 = vpop.eup %2503  ;;  %v1336_v12 = vadd.f32 %v2498_v46, %v1335_v5  ;;  %v1575_v13 = vmul.f32 %v2500_v47, %v1574_v6  ;;  %2507 = vpow2.f32 %v2276_v7  ;;  %v676_v14 = vmax.f32 %v530_v62, 0.0  ;;  %vm1579_vm12 = vmor %vm1577_vm6, %vm1578_vm8 }
 0x142   : > { %v1344_v15 = vor.u32 1.1754944e-38, %v1343_v50  ;;  %vm3264_vm10 = vcmp.eq.f32.partialorder %v1581_v0, 8.507059e+37  ;;  %v1813_v2 = vmul.f32 %v2504_v10, %v3233_v45  ;;  %2509 = vrcp.f32 %v3259_v8 }
 0x143   : > { %v1340_v21 = vsel %vm1339_vm9, %v2498_v46, %v1336_v12  ;;  %v1576_v22 = vadd.f32 %v2500_v47, %v1575_v13  ;;  %v1584_v11 = vor.u32 1.1754944e-38, %v1583_v1  ;;  %vm1817_vm11 = vweird.f32 %v3233_v45  ;;  %v532_v46 = vpop.f32.mrf.mxu0 }
 0x144   : > { %v1345_v16 = vsel %vm3245_vm5, %v1344_v15, %v1340_v21  ;;  %v1814_v25 = vsub.f32 1.0, %v1813_v2  ;;  %v2292_v23 = vmul.f32 -1.442695, %v723_v9  ;;  %v2245_v40 = vmul.f32 -1.442695, %v676_v14 }
 0x145   : > { %1970 = vst [vmem:[%s2795_s14 + $0xb8] sm:$0xff] %v1345_v16  ;;  %v1580_v26 = vsel %vm1579_vm12, %v2500_v47, %v1576_v22  ;;  %v1821_v27 = vand.u32 2147483647, %v3233_v45  ;;  %v1823_v28 = vand.u32 2147483648, %v3233_v45  ;;  %v570_v29 = vadd.f32 %v3114_v54, %v569_v19 }
 0x146   : > { %v2506_v32 = vpop.eup %2505  ;;  %v1585_v33 = vsel %vm3264_vm10, %v1584_v11, %v1580_v26  ;;  %v1815_v34 = vmul.f32 %v2504_v10, %v1814_v25  ;;  %vm1818_vm13 = vweird.f32 %v2504_v10  ;;  %2511 = vpow2.f32 %v2292_v23 }
 0x147   : > { %v2508_v17 = vpop.eup %2507  ;;  %1986 = vst [vmem:[%s2795_s14 + $0x138] sm:$0xff] %v1585_v33  ;;  %v1116_v20 = vand.u32 2147483647, %v3259_v8  ;;  %v3284_v35 = vadd.f32 1.0, %v2506_v32  ;;  %2513 = vpow2.f32 %v2245_v40  ;;  %v610_v37 = vadd.f32 %v3114_v54, %v609_v24  ;;  %vm1819_vm14 = vmor %vm1817_vm11, %vm1818_vm13 }
 0x148   : > { %v2510_v38 = vpop.eup %2509  ;;  %v1816_v39 = vadd.f32 %v2504_v10, %v1815_v34  ;;  %v1118_v43 = vand.u32 2147483648, %v3259_v8  ;;  %v3288_v36 = vadd.f32 1.0, %v2508_v17  ;;  %v692_v30 = vmax.f32 %v570_v29, 0.0  ;;  %v572_v29 = vpop.f32.mrf.mxu1 }
 0x149   : > { %v1824_v31 = vor.u32 1.1754944e-38, %v1823_v28  ;;  %v1108_v42 = vmul.f32 %v2510_v38, %v3259_v8  ;;  %2515 = vrcp.f32 %v3284_v35  ;;  %vm1822_vm15 = vcmp.eq.f32.partialorder %v1821_v27, 8.507059e+37 }
 0x14a   : > { %v1820_v41 = vsel %vm1819_vm14, %v2504_v10, %v1816_v39  ;;  %vm1112_vm0 = vweird.f32 %v3259_v8  ;;  %2517 = vrcp.f32 %v3288_v36  ;;  %vm3296_vm1 = vcmp.eq.f32.partialorder %v1116_v20, 8.507059e+37 }
 0x14b   : > { %v1825_v50 = vsel %vm1822_vm15, %v1824_v31, %v1820_v41  ;;  %v1109_v51 = vsub.f32 1.0, %v1108_v42  ;;  %v708_v45 = vmax.f32 %v610_v37, 0.0  ;;  %v1119_v56 = vor.u32 1.1754944e-38, %v1118_v43 }
 0x14c   : > { %v2512_v55 = vpop.eup %2511  ;;  %2002 = vst [vmem:[%s2795_s14 + $0x1b8] sm:$0xff] %v1825_v50  ;;  %v2261_v52 = vmul.f32 -1.442695, %v692_v30  ;;  %v650_v47 = vadd.f32 %v3114_v54, %v649_v44  ;;  %v3303_v58 = vadd.f32 %v3114_v54, %v532_v46  ;;  %vm1113_vm2 = vweird.f32 %v2510_v38 }
 0x14d   : > { %v2514_v59 = vpop.eup %2513  ;;  %v1110_v49 = vmul.f32 %v2510_v38, %v1109_v51  ;;  %v1356_v48 = vand.u32 2147483647, %v3284_v35  ;;  %v3306_v57 = vadd.f32 1.0, %v2512_v55  ;;  %vm1352_vm3 = vweird.f32 %v3284_v35  ;;  %vm1114_vm4 = vmor %vm1112_vm0, %vm1113_vm2 }
 0x14e   : > { %v1358_v60 = vand.u32 2147483648, %v3284_v35  ;;  %v3310_v63 = vadd.f32 1.0, %v2514_v59  ;;  %2519 = vpow2.f32 %v2261_v52  ;;  %v1596_v3 = vand.u32 2147483647, %v3288_v36 }
 0x14f   : > { %v2516_v0 = vpop.eup %2515  ;;  %v1111_v1 = vadd.f32 %v2510_v38, %v1110_v49  ;;  %2521 = vrcp.f32 %v3306_v57  ;;  %v2277_v4 = vmul.f32 -1.442695, %v708_v45  ;;  %v1598_v6 = vand.u32 2147483648, %v3288_v36 }
 0x150   : > { %v2518_v61 = vpop.eup %2517  ;;  %v1348_v5 = vmul.f32 %v2516_v0, %v3284_v35  ;;  %2523 = vrcp.f32 %v3310_v63  ;;  %v724_v7 = vmax.f32 %v650_v47, 0.0  ;;  %vm3319_vm5 = vcmp.eq.f32.partialorder %v1356_v48, 8.507059e+37 }
 0x151   : > { %v1115_v62 = vsel %vm1114_vm4, %v2510_v38, %v1111_v1  ;;  %v1588_v10 = vmul.f32 %v2518_v61, %v3288_v36  ;;  %vm1592_vm6 = vweird.f32 %v3288_v36  ;;  %v1836_v13 = vand.u32 2147483647, %v3306_v57  ;;  %v612_v38 = vpop.f32.mrf.mxu2 }
 0x152   : > { %v1120_v8 = vsel %vm3296_vm1, %v1119_v56, %v1115_v62  ;;  %v1349_v12 = vsub.f32 1.0, %v1348_v5  ;;  %v1838_v14 = vand.u32 2147483648, %v3306_v57  ;;  %v1359_v15 = vor.u32 1.1754944e-38, %v1358_v60 }
 0x153   : > { %1955 = vst [vmem:[%s2795_s14 + $0x40] sm:$0xff] %v1120_v8  ;;  %v1589_v18 = vsub.f32 1.0, %v1588_v10  ;;  %vm3330_vm7 = vcmp.eq.f32.partialorder %v1596_v3, 8.507059e+37  ;;  %2525 = vpow2.f32 %v2277_v4  ;;  %vm1353_vm8 = vweird.f32 %v2516_v0  ;;  %v534_v4 = vpop.f32.mrf.mxu0  ;;  %v574_v10 = vpop.f32.mrf.mxu1 }
 0x154   : > { %v2520_v19 = vpop.eup %2519  ;;  %v1350_v21 = vmul.f32 %v2516_v0, %v1349_v12  ;;  %v1599_v22 = vor.u32 1.1754944e-38, %v1598_v6  ;;  %v2293_v11 = vmul.f32 -1.442695, %v724_v7  ;;  %vm1593_vm9 = vweird.f32 %v2518_v61  ;;  %vm1354_vm12 = vmor %vm1352_vm3, %vm1353_vm8 }
 0x155   : > { %v2522_v16 = vpop.eup %2521  ;;  %v1590_v25 = vmul.f32 %v2518_v61, %v1589_v18  ;;  %vm1832_vm10 = vweird.f32 %v3306_v57  ;;  %v3335_v23 = vadd.f32 1.0, %v2520_v19  ;;  %vm3338_vm11 = vcmp.eq.f32.partialorder %v1836_v13, 8.507059e+37  ;;  %vm1594_vm13 = vmor %vm1592_vm6, %vm1593_vm9 }
 0x156   : > { %v2524_v40 = vpop.eup %2523  ;;  %v1351_v24 = vadd.f32 %v2516_v0, %v1350_v21  ;;  %v1828_v26 = vmul.f32 %v2522_v16, %v3306_v57  ;;  %v1839_v28 = vor.u32 1.1754944e-38, %v1838_v14  ;;  %2527 = vpow2.f32 %v2293_v11 }
 0x157   : > { %v1591_v32 = vadd.f32 %v2518_v61, %v1590_v25  ;;  %v1123_v33 = vmul.f32 %v2524_v40, %v3310_v63  ;;  %2529 = vrcp.f32 %v3335_v23  ;;  %v677_v34 = vmax.f32 %v3303_v58, 0.0 }
 0x158   : > { %v1355_v17 = vsel %vm1354_vm12, %v2516_v0, %v1351_v24  ;;  %v1829_v20 = vsub.f32 1.0, %v1828_v26  ;;  %v1131_v37 = vand.u32 2147483647, %v3310_v63  ;;  %v1133_v35 = vand.u32 2147483648, %v3310_v63  ;;  %v652_v0 = vpop.f32.mrf.mxu3 }
 0x159   : > { %v2526_v39 = vpop.eup %2525  ;;  %v1360_v43 = vsel %vm3319_vm5, %v1359_v15, %v1355_v17  ;;  %v1595_v30 = vsel %vm1594_vm13, %v2518_v61, %v1591_v32  ;;  %v1124_v31 = vsub.f32 1.0, %v1123_v33  ;;  %v573_v42 = vadd.f32 %v3114_v54, %v572_v29  ;;  %v614_v15 = vpop.f32.mrf.mxu2 }
 0x15a   : > { %1971 = vst [vmem:[%s2795_s14 + $0xc0] sm:$0xff] %v1360_v43  ;;  %v1600_v36 = vsel %vm3330_vm7, %v1599_v22, %v1595_v30  ;;  %v1830_v44 = vmul.f32 %v2522_v16, %v1829_v20  ;;  %vm1833_vm14 = vweird.f32 %v2522_v16  ;;  %v3359_v46 = vadd.f32 1.0, %v2526_v39 }
 0x15b   : > { %1987 = vst [vmem:[%s2795_s14 + $0x140] sm:$0xff] %v1600_v36  ;;  %v1125_v41 = vmul.f32 %v2524_v40, %v1124_v31  ;;  %vm1127_vm15 = vweird.f32 %v3310_v63  ;;  %vm1128_vm0 = vweird.f32 %v2524_v40  ;;  %v2246_v50 = vmul.f32 -1.442695, %v677_v34  ;;  %vm1834_vm2 = vmor %vm1832_vm10, %vm1833_vm14 }
 0x15c   : > { %v2528_v51 = vpop.eup %2527  ;;  %v1831_v53 = vadd.f32 %v2522_v16, %v1830_v44  ;;  %vm3363_vm1 = vcmp.eq.f32.partialorder %v1131_v37, 8.507059e+37  ;;  %v1371_v55 = vand.u32 2147483647, %v3335_v23  ;;  %2531 = vrcp.f32 %v3359_v46  ;;  %vm1129_vm3 = vmor %vm1127_vm15, %vm1128_vm0 }
 0x15d   : > { %v2530_v56 = vpop.eup %2529  ;;  %v1126_v52 = vadd.f32 %v2524_v40, %v1125_v41  ;;  %v3371_v47 = vadd.f32 1.0, %v2528_v51  ;;  %2533 = vpow2.f32 %v2246_v50  ;;  %v693_v58 = vmax.f32 %v573_v42, 0.0 }
 0x15e   : > { %v1835_v59 = vsel %vm1834_vm2, %v2522_v16, %v1831_v53  ;;  %v1134_v49 = vor.u32 1.1754944e-38, %v1133_v35  ;;  %v1363_v48 = vmul.f32 %v2530_v56, %v3335_v23  ;;  %v1373_v60 = vand.u32 2147483648, %v3335_v23 }
 0x15f   : > { %v1840_v57 = vsel %vm3338_vm11, %v1839_v28, %v1835_v59  ;;  %v1130_v1 = vsel %vm1129_vm3, %v2524_v40, %v1126_v52  ;;  %v1611_v3 = vand.u32 2147483647, %v3359_v46  ;;  %2535 = vrcp.f32 %v3371_v47 }
 0x160   : > { %2003 = vst [vmem:[%s2795_s14 + $0x1c0] sm:$0xff] %v1840_v57  ;;  %v1135_v63 = vsel %vm3363_vm1, %v1134_v49, %v1130_v1  ;;  %v1364_v61 = vsub.f32 1.0, %v1363_v48  ;;  %vm1367_vm4 = vweird.f32 %v3335_v23  ;;  %vm3385_vm5 = vcmp.eq.f32.partialorder %v1371_v55, 8.507059e+37  ;;  %v654_v50 = vpop.f32.mrf.mxu3 }
 0x161   : > { %1956 = vst [vmem:[%s2795_s14 + $0x48] sm:$0xff] %v1135_v63  ;;  %v1613_v6 = vand.u32 2147483648, %v3359_v46  ;;  %v2262_v7 = vmul.f32 -1.442695, %v693_v58  ;;  %v613_v62 = vadd.f32 %v3114_v54, %v612_v38  ;;  %v653_v9 = vadd.f32 %v3114_v54, %v652_v0  ;;  %v537_v58 = vpop.f32.mrf.mxu0 }
 0x162   : > { %v2532_v8 = vpop.eup %2531  ;;  %v1365_v12 = vmul.f32 %v2530_v56, %v1364_v61  ;;  %vm1368_vm6 = vweird.f32 %v2530_v56  ;;  %v1374_v13 = vor.u32 1.1754944e-38, %v1373_v60  ;;  %v535_v14 = vadd.f32 %v3114_v54, %v534_v4 }
 0x163   : > { %v2534_v18 = vpop.eup %2533  ;;  %v1603_v2 = vmul.f32 %v2532_v8, %v3359_v46  ;;  %vm1607_vm7 = vweird.f32 %v3359_v46  ;;  %vm3396_vm8 = vcmp.eq.f32.partialorder %v1611_v3, 8.507059e+37  ;;  %2537 = vpow2.f32 %v2262_v7  ;;  %vm1369_vm9 = vmor %vm1367_vm4, %vm1368_vm6  ;;  %v577_v7 = vpop.f32.mrf.mxu1 }
 0x164   : > { %v1366_v21 = vadd.f32 %v2530_v56, %v1365_v12  ;;  %v3400_v22 = vadd.f32 1.0, %v2534_v18  ;;  %v709_v11 = vmax.f32 %v613_v62, 0.0  ;;  %v575_v16 = vadd.f32 %v3114_v54, %v574_v10  ;;  %v617_v12 = vpop.f32.mrf.mxu2 }
 0x165   : > { %v2536_v25 = vpop.eup %2535  ;;  %v1604_v40 = vsub.f32 1.0, %v1603_v2  ;;  %v1614_v24 = vor.u32 1.1754944e-38, %v1613_v6  ;;  %v725_v26 = vmax.f32 %v653_v9, 0.0  ;;  %v615_v27 = vadd.f32 %v3114_v54, %v614_v15 }
 0x166   : > { %v1370_v28 = vsel %vm1369_vm9, %v2530_v56, %v1366_v21  ;;  %v1843_v29 = vmul.f32 %v2536_v25, %v3371_v47  ;;  %2539 = vrcp.f32 %v3400_v22  ;;  %v678_v32 = vmax.f32 %v535_v14, 0.0 }
 0x167   : > { %v1375_v33 = vsel %vm3385_vm5, %v1374_v13, %v1370_v28  ;;  %v1605_v34 = vmul.f32 %v2532_v8, %v1604_v40  ;;  %vm1608_vm10 = vweird.f32 %v2532_v8  ;;  %v1851_v17 = vand.u32 2147483647, %v3371_v47 }
 0x168   : > { %1972 = vst [vmem:[%s2795_s14 + $0xc8] sm:$0xff] %v1375_v33  ;;  %v1844_v23 = vsub.f32 1.0, %v1843_v29  ;;  %v1853_v20 = vand.u32 2147483648, %v3371_v47  ;;  %v2278_v37 = vmul.f32 -1.442695, %v709_v11  ;;  %v694_v35 = vmax.f32 %v575_v16, 0.0  ;;  %vm1609_vm12 = vmor %vm1607_vm7, %vm1608_vm10 }
 0x169   : > { %v2538_v38 = vpop.eup %2537  ;;  %v1606_v39 = vadd.f32 %v2532_v8, %v1605_v34  ;;  %vm1848_vm11 = vweird.f32 %v2536_v25  ;;  %v2294_v43 = vmul.f32 -1.442695, %v725_v26  ;;  %v710_v30 = vmax.f32 %v615_v27, 0.0 }
 0x16a   : > { %v1845_v31 = vmul.f32 %v2536_v25, %v1844_v23  ;;  %v3415_v42 = vadd.f32 1.0, %v2538_v38  ;;  %2541 = vpow2.f32 %v2278_v37  ;;  %v2247_v36 = vmul.f32 -1.442695, %v678_v32 }
 0x16b   : > { %v1610_v44 = vsel %vm1609_vm12, %v2532_v8, %v1606_v39  ;;  %vm1847_vm13 = vweird.f32 %v3371_v47  ;;  %vm3418_vm14 = vcmp.eq.f32.partialorder %v1851_v17, 8.507059e+37  ;;  %2543 = vpow2.f32 %v2294_v43 }
 0x16c   : > { %v2540_v51 = vpop.eup %2539  ;;  %v1615_v46 = vsel %vm3396_vm8, %v1614_v24, %v1610_v44  ;;  %v1846_v53 = vadd.f32 %v2536_v25, %v1845_v31  ;;  %2545 = vrcp.f32 %v3415_v42  ;;  %v2263_v45 = vmul.f32 -1.442695, %v694_v35  ;;  %vm1849_vm15 = vmor %vm1847_vm13, %vm1848_vm11 }
 0x16d   : > { %1988 = vst [vmem:[%s2795_s14 + $0x148] sm:$0xff] %v1615_v46  ;;  %v1854_v55 = vor.u32 1.1754944e-38, %v1853_v20  ;;  %v1138_v56 = vmul.f32 %v2540_v51, %v3400_v22  ;;  %v1146_v52 = vand.u32 2147483647, %v3400_v22  ;;  %v2279_v47 = vmul.f32 -1.442695, %v710_v30 }
 0x16e   : > { %v1850_v59 = vsel %vm1849_vm15, %v2536_v25, %v1846_v53  ;;  %v1148_v49 = vand.u32 2147483648, %v3400_v22  ;;  %2547 = vpow2.f32 %v2247_v36  ;;  %v655_v48 = vadd.f32 %v3114_v54, %v654_v50 }
 0x16f   : > { %v1855_v60 = vsel %vm3418_vm14, %v1854_v55, %v1850_v59  ;;  %v1139_v0 = vsub.f32 1.0, %v1138_v56  ;;  %vm1142_vm0 = vweird.f32 %v3400_v22  ;;  %v1386_v57 = vand.u32 2147483647, %v3415_v42 }
 0x170   : > { %v2542_v1 = vpop.eup %2541  ;;  %2004 = vst [vmem:[%s2795_s14 + $0x1c8] sm:$0xff] %v1855_v60  ;;  %vm1143_vm1 = vweird.f32 %v2540_v51  ;;  %2549 = vpow2.f32 %v2263_v45  ;;  %v726_v3 = vmax.f32 %v655_v48, 0.0  ;;  %v538_v4 = vadd.f32 %v3114_v54, %v537_v58 }
 0x171   : > { %v2544_v63 = vpop.eup %2543  ;;  %v1140_v61 = vmul.f32 %v2540_v51, %v1139_v0  ;;  %v1388_v5 = vand.u32 2147483648, %v3415_v42  ;;  %v3438_v6 = vadd.f32 1.0, %v2542_v1  ;;  %2551 = vpow2.f32 %v2279_v47  ;;  %vm1144_vm5 = vmor %vm1142_vm0, %vm1143_vm1 }
 0x172   : > { %v2546_v62 = vpop.eup %2545  ;;  %vm3440_vm2 = vcmp.eq.f32.partialorder %v1146_v52, 8.507059e+37  ;;  %v1149_v10 = vor.u32 1.1754944e-38, %v1148_v49  ;;  %vm1382_vm3 = vweird.f32 %v3415_v42  ;;  %v3445_v8 = vadd.f32 1.0, %v2544_v63 }
 0x173   : > { %v1141_v13 = vadd.f32 %v2540_v51, %v1140_v61  ;;  %v1378_v14 = vmul.f32 %v2546_v62, %v3415_v42  ;;  %vm3448_vm4 = vcmp.eq.f32.partialorder %v1386_v57, 8.507059e+37  ;;  %2553 = vrcp.f32 %v3438_v6 }
 0x174   : > { %v2548_v18 = vpop.eup %2547  ;;  %2555 = vrcp.f32 %v3445_v8  ;;  %v2295_v2 = vmul.f32 -1.442695, %v726_v3  ;;  %v679_v19 = vmax.f32 %v538_v4, 0.0  ;;  %v578_v21 = vadd.f32 %v3114_v54, %v577_v7 }
 0x175   : > { %v1145_v11 = vsel %vm1144_vm5, %v2540_v51, %v1141_v13  ;;  %v1379_v16 = vsub.f32 1.0, %v1378_v14  ;;  %v1389_v25 = vor.u32 1.1754944e-38, %v1388_v5  ;;  %v3459_v40 = vadd.f32 %v3114_v54, %v617_v12  ;;  %v657_v14 = vpop.f32.mrf.mxu3 }
 0x176   : > { %v2550_v24 = vpop.eup %2549  ;;  %v1150_v26 = vsel %vm3440_vm2, %v1149_v10, %v1145_v11  ;;  %vm1383_vm6 = vweird.f32 %v2546_v62  ;;  %v1626_v22 = vand.u32 2147483647, %v3438_v6  ;;  %v1628_v27 = vand.u32 2147483648, %v3438_v6 }
 0x177   : > { %v2552_v28 = vpop.eup %2551  ;;  %1957 = vst [vmem:[%s2795_s14 + $0x50] sm:$0xff] %v1150_v26  ;;  %v1380_v29 = vmul.f32 %v2546_v62, %v1379_v16  ;;  %v1866_v32 = vand.u32 2147483647, %v3445_v8  ;;  %v3467_v33 = vadd.f32 1.0, %v2548_v18  ;;  %v3469_v34 = vadd.f32 1.0, %v2550_v24  ;;  %vm1384_vm8 = vmor %vm1382_vm3, %vm1383_vm6  ;;  %v579_v24 = vpop.f32.mrf.mxu1 }
 0x178   : > { %vm1622_vm7 = vweird.f32 %v3438_v6  ;;  %2557 = vpow2.f32 %v2295_v2  ;;  %v3472_v54 = vmul.f32 -1.442695, %v679_v19  ;;  %v695_v17 = vmax.f32 %v578_v21, 0.0  ;;  %v539_v2 = vpop.f32.mrf.mxu0 }
 0x179   : > { %v2554_v23 = vpop.eup %2553  ;;  %v1381_v20 = vadd.f32 %v2546_v62, %v1380_v29  ;;  %v1868_v37 = vand.u32 2147483648, %v3445_v8  ;;  %2559 = vrcp.f32 %v3467_v33  ;;  %v3476_v35 = vadd.f32 1.0, %v2552_v28 }
 0x17a   : > { %v2556_v38 = vpop.eup %2555  ;;  %v1618_v39 = vmul.f32 %v2554_v23, %v3438_v6  ;;  %vm3482_vm9 = vcmp.eq.f32.partialorder %v1626_v22, 8.507059e+37  ;;  %vm1862_vm10 = vweird.f32 %v3445_v8  ;;  %2561 = vrcp.f32 %v3469_v34 }
 0x17b   : > { %v1385_v30 = vsel %vm1384_vm8, %v2546_v62, %v1381_v20  ;;  %v1629_v31 = vor.u32 1.1754944e-38, %v1628_v27  ;;  %v1858_v36 = vmul.f32 %v2556_v38, %v3445_v8  ;;  %vm3489_vm11 = vcmp.eq.f32.partialorder %v1866_v32, 8.507059e+37  ;;  %v3542_v27 = vld [vmem:[%s3814_s2] ss:$0 sm:$0xff] }
 0x17c   : > { %v1390_v42 = vsel %vm3448_vm4, %v1389_v25, %v1385_v30  ;;  %v1619_v41 = vsub.f32 1.0, %v1618_v39  ;;  %v1161_v50 = vand.u32 2147483647, %v3467_v33  ;;  %v1163_v51 = vand.u32 2147483648, %v3467_v33 }
 0x17d   : > { %1973 = vst [vmem:[%s2795_s14 + $0xd0] sm:$0xff] %v1390_v42  ;;  %v1859_v46 = vsub.f32 1.0, %v1858_v36  ;;  %v1869_v53 = vor.u32 1.1754944e-38, %v1868_v37  ;;  %2563 = vrcp.f32 %v3476_v35  ;;  %v2264_v45 = vmul.f32 -1.442695, %v695_v17  ;;  %v619_v42 = vpop.f32.mrf.mxu2 }
 0x17e   : > { %v2558_v55 = vpop.eup %2557  ;;  %v1620_v56 = vmul.f32 %v2554_v23, %v1619_v41  ;;  %vm1623_vm12 = vweird.f32 %v2554_v23  ;;  %vm1157_vm13 = vweird.f32 %v3467_v33  ;;  %v1401_v52 = vand.u32 2147483647, %v3469_v34 }
 0x17f   : > { %v2560_v47 = vpop.eup %2559  ;;  %v1860_v58 = vmul.f32 %v2556_v38, %v1859_v46  ;;  %vm1863_vm14 = vweird.f32 %v2556_v38  ;;  %v1403_v59 = vand.u32 2147483648, %v3469_v34  ;;  %v3502_v49 = vadd.f32 1.0, %v2558_v55  ;;  %vm1624_vm1 = vmor %vm1622_vm7, %vm1623_vm12 }
 0x180   : > { %v2562_v48 = vpop.eup %2561  ;;  %v1621_v60 = vadd.f32 %v2554_v23, %v1620_v56  ;;  %v1153_v0 = vmul.f32 %v2560_v47, %v3467_v33  ;;  %vm3505_vm15 = vcmp.eq.f32.partialorder %v1161_v50, 8.507059e+37  ;;  %v1164_v1 = vor.u32 1.1754944e-38, %v1163_v51  ;;  %vm1864_vm2 = vmor %vm1862_vm10, %vm1863_vm14  ;;  %v659_v56 = vpop.f32.mrf.mxu3 }
 0x181   : > { %vm1397_vm0 = vweird.f32 %v3469_v34  ;;  %v1861_v3 = vadd.f32 %v2556_v38, %v1860_v58  ;;  %v1393_v4 = vmul.f32 %v2562_v48, %v3469_v34  ;;  %v1641_v63 = vand.u32 2147483647, %v3476_v35 }
 0x182   : > { %v1643_v61 = vand.u32 2147483648, %v3476_v35  ;;  %v1625_v5 = vsel %vm1624_vm1, %v2554_v23, %v1621_v60  ;;  %v1154_v7 = vsub.f32 1.0, %v1153_v0  ;;  %vm3518_vm3 = vcmp.eq.f32.partialorder %v1401_v52, 8.507059e+37 }
 0x183   : > { %vm1637_vm4 = vweird.f32 %v3476_v35  ;;  %2565 = vrcp.f32 %v3502_v49  ;;  %v2564_v6 = vpop.eup %2563  ;;  %v1630_v9 = vsel %vm3482_vm9, %v1629_v31, %v1625_v5  ;;  %v1865_v10 = vsel %vm1864_vm2, %v2556_v38, %v1861_v3 }
 0x184   : > { %v1394_v12 = vsub.f32 1.0, %v1393_v4  ;;  %v1404_v13 = vor.u32 1.1754944e-38, %v1403_v59  ;;  %1989 = vst [vmem:[%s2795_s14 + $0x150] sm:$0xff] %v1630_v9  ;;  %v1870_v8 = vsel %vm3489_vm11, %v1869_v53, %v1865_v10  ;;  %v1155_v15 = vmul.f32 %v2560_v47, %v1154_v7  ;;  %v542_v9 = vpop.f32.mrf.mxu0 }
 0x185   : > { %vm1158_vm5 = vweird.f32 %v2560_v47  ;;  %v1633_v18 = vmul.f32 %v2564_v6, %v3476_v35  ;;  %2005 = vst [vmem:[%s2795_s14 + $0x1d0] sm:$0xff] %v1870_v8  ;;  %vm1398_vm6 = vweird.f32 %v2562_v48  ;;  %vm3531_vm7 = vcmp.eq.f32.partialorder %v1641_v63, 8.507059e+37 }
 0x186   : > { %v1395_v19 = vmul.f32 %v2562_v48, %v1394_v12  ;;  %2567 = vpow2.f32 %v3472_v54  ;;  %v1156_v11 = vadd.f32 %v2560_v47, %v1155_v15  ;;  %v711_v25 = vmax.f32 %v3459_v40, 0.0  ;;  %vm1159_vm8 = vmor %vm1157_vm13, %vm1158_vm5 }
 0x187   : > { %v1634_v16 = vsub.f32 1.0, %v1633_v18  ;;  %2569 = vpow2.f32 %v2264_v45  ;;  %v1644_v22 = vor.u32 1.1754944e-38, %v1643_v61  ;;  %v658_v28 = vadd.f32 %v3542_v27, %v657_v14  ;;  %vm1399_vm9 = vmor %vm1397_vm0, %vm1398_vm6 }
 0x188   : > { %v1396_v26 = vadd.f32 %v2562_v48, %v1395_v19  ;;  %v540_v29 = vadd.f32 %v3542_v27, %v539_v2  ;;  %v1160_v54 = vsel %vm1159_vm8, %v2560_v47, %v1156_v11  ;;  %vm1638_vm10 = vweird.f32 %v2564_v6 }
 0x189   : > { %v2566_v32 = vpop.eup %2565  ;;  %v1635_v40 = vmul.f32 %v2564_v6, %v1634_v16  ;;  %v2280_v33 = vmul.f32 -1.442695, %v711_v25  ;;  %v1165_v17 = vsel %vm3505_vm15, %v1164_v1, %v1160_v54  ;;  %v580_v37 = vadd.f32 %v3542_v27, %v579_v24  ;;  %vm1639_vm11 = vmor %vm1637_vm4, %vm1638_vm10  ;;  %v582_v54 = vpop.f32.mrf.mxu1 }
 0x18a   : > { %v1400_v23 = vsel %vm1399_vm9, %v2562_v48, %v1396_v26  ;;  %v1873_v20 = vmul.f32 %v2566_v32, %v3502_v49  ;;  %1958 = vst [vmem:[%s2795_s14 + $0x58] sm:$0xff] %v1165_v17  ;;  %v727_v43 = vmax.f32 %v658_v28, 0.0  ;;  %v1881_v31 = vand.u32 2147483647, %v3502_v49 }
 0x18b   : > { %v1405_v38 = vsel %vm3518_vm3, %v1404_v13, %v1400_v23  ;;  %v1636_v39 = vadd.f32 %v2564_v6, %v1635_v40  ;;  %2571 = vpow2.f32 %v2280_v33  ;;  %v1883_v36 = vand.u32 2147483648, %v3502_v49 }
 0x18c   : > { %v2568_v34 = vpop.eup %2567  ;;  %1974 = vst [vmem:[%s2795_s14 + $0xd8] sm:$0xff] %v1405_v38  ;;  %v1874_v30 = vsub.f32 1.0, %v1873_v20  ;;  %v680_v44 = vmax.f32 %v540_v29, 0.0  ;;  %vm1878_vm12 = vweird.f32 %v2566_v32  ;;  %v2296_v46 = vmul.f32 -1.442695, %v727_v43 }
 0x18d   : > { %v2570_v41 = vpop.eup %2569  ;;  %v1640_v50 = vsel %vm1639_vm11, %v2564_v6, %v1636_v39  ;;  %v3561_v51 = vadd.f32 1.0, %v2568_v34  ;;  %v696_v52 = vmax.f32 %v580_v37, 0.0  ;;  %v620_v47 = vadd.f32 %v3542_v27, %v619_v42 }
 0x18e   : > { %v1645_v53 = vsel %vm3531_vm7, %v1644_v22, %v1640_v50  ;;  %v1875_v45 = vmul.f32 %v2566_v32, %v1874_v30  ;;  %v3565_v35 = vadd.f32 1.0, %v2570_v41  ;;  %v2249_v55 = vmul.f32 -1.442695, %v680_v44  ;;  %v622_v41 = vpop.f32.mrf.mxu2 }
 0x18f   : > { %1990 = vst [vmem:[%s2795_s14 + $0x158] sm:$0xff] %v1645_v53  ;;  %2573 = vrcp.f32 %v3561_v51  ;;  %vm1877_vm13 = vweird.f32 %v3502_v49  ;;  %vm1882_vm14 = vcmp.eq.f32.partialorder %v1881_v31, 8.507059e+37  ;;  %v1884_v48 = vor.u32 1.1754944e-38, %v1883_v36 }
 0x190   : > { %v1876_v58 = vadd.f32 %v2566_v32, %v1875_v45  ;;  %2575 = vrcp.f32 %v3565_v35  ;;  %vm1879_vm15 = vmor %vm1877_vm13, %vm1878_vm12  ;;  %v1176_v60 = vand.u32 2147483647, %v3561_v51  ;;  %v660_v0 = vadd.f32 %v3542_v27, %v659_v56 }
 0x191   : > { %v2572_v59 = vpop.eup %2571  ;;  %2577 = vpow2.f32 %v2296_v46  ;;  %v1178_v1 = vand.u32 2147483648, %v3561_v51  ;;  %v2265_v4 = vmul.f32 -1.442695, %v696_v52  ;;  %v712_v63 = vmax.f32 %v620_v47, 0.0 }
 0x192   : > { %v1880_v57 = vsel %vm1879_vm15, %v2566_v32, %v1876_v58  ;;  %v3576_v3 = vadd.f32 1.0, %v2572_v59  ;;  %2579 = vpow2.f32 %v2249_v55  ;;  %vm1172_vm0 = vweird.f32 %v3561_v51 }
 0x193   : > { %v1885_v49 = vsel %vm1882_vm14, %v1884_v48, %v1880_v57  ;;  %v1416_v61 = vand.u32 2147483647, %v3565_v35  ;;  %v1418_v7 = vand.u32 2147483648, %v3565_v35  ;;  %v2281_v62 = vmul.f32 -1.442695, %v712_v63  ;;  %v662_v57 = vpop.f32.mrf.mxu3 }
 0x194   : > { %2006 = vst [vmem:[%s2795_s14 + $0x1d8] sm:$0xff] %v1885_v49  ;;  %2581 = vrcp.f32 %v3576_v3  ;;  %v728_v6 = vmax.f32 %v660_v0, 0.0  ;;  %vm3584_vm1 = vcmp.eq.f32.partialorder %v1176_v60, 8.507059e+37  ;;  %v1179_v14 = vor.u32 1.1754944e-38, %v1178_v1 }
 0x195   : > { %v2574_v5 = vpop.eup %2573  ;;  %2583 = vpow2.f32 %v2265_v4  ;;  %vm1412_vm2 = vweird.f32 %v3565_v35  ;;  %v1656_v18 = vand.u32 2147483647, %v3576_v3  ;;  %v1658_v11 = vand.u32 2147483648, %v3576_v3 }
 0x196   : > { %v2576_v10 = vpop.eup %2575  ;;  %v1168_v12 = vmul.f32 %v2574_v5, %v3561_v51  ;;  %2585 = vpow2.f32 %v2281_v62  ;;  %v2297_v2 = vmul.f32 -1.442695, %v728_v6  ;;  %v3595_v25 = vadd.f32 %v3542_v27, %v542_v9 }
 0x197   : > { %v2578_v8 = vpop.eup %2577  ;;  %v1408_v15 = vmul.f32 %v2576_v10, %v3565_v35  ;;  %vm3597_vm3 = vcmp.eq.f32.partialorder %v1416_v61, 8.507059e+37  ;;  %v1419_v22 = vor.u32 1.1754944e-38, %v1418_v7  ;;  %vm1173_vm4 = vweird.f32 %v2574_v5 }
 0x198   : > { %v2580_v19 = vpop.eup %2579  ;;  %v1169_v21 = vsub.f32 1.0, %v1168_v12  ;;  %v3592_v16 = vadd.f32 1.0, %v2578_v8  ;;  %vm1652_vm5 = vweird.f32 %v3576_v3  ;;  %vm1413_vm6 = vweird.f32 %v2576_v10  ;;  %vm1174_vm8 = vmor %vm1172_vm0, %vm1173_vm4 }
 0x199   : > { %v1409_v24 = vsub.f32 1.0, %v1408_v15  ;;  %v3601_v28 = vadd.f32 1.0, %v2580_v19  ;;  %vm3606_vm7 = vcmp.eq.f32.partialorder %v1656_v18, 8.507059e+37  ;;  %v1659_v37 = vor.u32 1.1754944e-38, %v1658_v11  ;;  %vm1414_vm9 = vmor %vm1412_vm2, %vm1413_vm6 }
 0x19a   : > { %v2582_v29 = vpop.eup %2581  ;;  %v1170_v32 = vmul.f32 %v2574_v5, %v1169_v21  ;;  %2587 = vrcp.f32 %v3592_v16  ;;  %v681_v38 = vmax.f32 %v3595_v25, 0.0  ;;  %v1896_v30 = vand.u32 2147483647, %v3592_v16 }
 0x19b   : > { %v2584_v40 = vpop.eup %2583  ;;  %v1410_v33 = vmul.f32 %v2576_v10, %v1409_v24  ;;  %v1648_v17 = vmul.f32 %v2582_v29, %v3576_v3  ;;  %2589 = vpow2.f32 %v2297_v2  ;;  %v3617_v31 = vadd.f32 %v3542_v27, %v582_v54 }
 0x19c   : > { %v1171_v20 = vadd.f32 %v2574_v5, %v1170_v32  ;;  %2591 = vrcp.f32 %v3601_v28  ;;  %v2586_v39 = vpop.eup %2585  ;;  %vm1653_vm10 = vweird.f32 %v2582_v29  ;;  %v3622_v44 = vadd.f32 1.0, %v2584_v40 }
 0x19d   : > { %v1411_v43 = vadd.f32 %v2576_v10, %v1410_v33  ;;  %v1649_v34 = vsub.f32 1.0, %v1648_v17  ;;  %v3624_v42 = vadd.f32 1.0, %v2586_v39  ;;  %v1898_v53 = vand.u32 2147483648, %v3592_v16  ;;  %vm1654_vm12 = vmor %vm1652_vm5, %vm1653_vm10  ;;  %v544_v33 = vpop.f32.mrf.mxu0 }
 0x19e   : > { %v1175_v36 = vsel %vm1174_vm8, %v2574_v5, %v1171_v20  ;;  %v1191_v55 = vand.u32 2147483647, %v3601_v28  ;;  %v1193_v56 = vand.u32 2147483648, %v3601_v28  ;;  %2593 = vrcp.f32 %v3622_v44 }
 0x19f   : > { %v1180_v50 = vsel %vm3584_vm1, %v1179_v14, %v1175_v36  ;;  %v1415_v51 = vsel %vm1414_vm9, %v2576_v10, %v1411_v43  ;;  %v1650_v46 = vmul.f32 %v2582_v29, %v1649_v34  ;;  %vm1892_vm11 = vweird.f32 %v3592_v16  ;;  %v664_v34 = vpop.f32.mrf.mxu3 }
 0x1a0   : > { %v2588_v45 = vpop.eup %2587  ;;  %1959 = vst [vmem:[%s2795_s14 + $0x60] sm:$0xff] %v1180_v50  ;;  %v1420_v35 = vsel %vm3597_vm3, %v1419_v22, %v1415_v51  ;;  %v623_v59 = vadd.f32 %v3542_v27, %v622_v41  ;;  %vm3642_vm13 = vcmp.eq.f32.partialorder %v1896_v30, 8.507059e+37  ;;  %vm1187_vm14 = vweird.f32 %v3601_v28 }
 0x1a1   : > { %v2590_v52 = vpop.eup %2589  ;;  %1975 = vst [vmem:[%s2795_s14 + $0xe0] sm:$0xff] %v1420_v35  ;;  %v1651_v47 = vadd.f32 %v2582_v29, %v1650_v46  ;;  %v1888_v58 = vmul.f32 %v2588_v45, %v3592_v16  ;;  %v1433_v0 = vand.u32 2147483648, %v3622_v44  ;;  %2595 = vrcp.f32 %v3624_v42 }
 0x1a2   : > { %v2592_v48 = vpop.eup %2591  ;;  %v1431_v63 = vand.u32 2147483647, %v3622_v44  ;;  %v1899_v61 = vor.u32 1.1754944e-38, %v1898_v53  ;;  %vm3653_vm15 = vcmp.eq.f32.partialorder %v1191_v55, 8.507059e+37  ;;  %v1194_v7 = vor.u32 1.1754944e-38, %v1193_v56 }
 0x1a3   : > { %v1655_v1 = vsel %vm1654_vm12, %v2582_v29, %v1651_v47  ;;  %v1889_v49 = vsub.f32 1.0, %v1888_v58  ;;  %v1183_v4 = vmul.f32 %v2592_v48, %v3601_v28  ;;  %vm1893_vm0 = vweird.f32 %v2588_v45 }
 0x1a4   : > { %v1660_v3 = vsel %vm3606_vm7, %v1659_v37, %v1655_v1  ;;  %vm1427_vm1 = vweird.f32 %v3622_v44  ;;  %v3659_v9 = vadd.f32 1.0, %v2590_v52  ;;  %v2594_v10 = vpop.eup %2593  ;;  %vm1188_vm2 = vweird.f32 %v2592_v48  ;;  %vm1894_vm5 = vmor %vm1892_vm11, %vm1893_vm0  ;;  %v584_v37 = vpop.f32.mrf.mxu1 }
 0x1a5   : > { %1991 = vst [vmem:[%s2795_s14 + $0x160] sm:$0xff] %v1660_v3  ;;  %v1890_v62 = vmul.f32 %v2588_v45, %v1889_v49  ;;  %v1184_v6 = vsub.f32 1.0, %v1183_v4  ;;  %v1434_v12 = vor.u32 1.1754944e-38, %v1433_v0  ;;  %v1671_v13 = vand.u32 2147483647, %v3624_v42  ;;  %vm1189_vm6 = vmor %vm1187_vm14, %vm1188_vm2 }
 0x1a6   : > { %v1673_v14 = vand.u32 2147483648, %v3624_v42  ;;  %v1423_v18 = vmul.f32 %v2594_v10, %v3622_v44  ;;  %vm3664_vm3 = vcmp.eq.f32.partialorder %v1431_v63, 8.507059e+37  ;;  %vm1667_vm4 = vweird.f32 %v3624_v42 }
 0x1a7   : > { %v1891_v8 = vadd.f32 %v2588_v45, %v1890_v62  ;;  %v1185_v15 = vmul.f32 %v2592_v48, %v1184_v6  ;;  %v2250_v19 = vmul.f32 -1.442695, %v681_v38  ;;  %v2596_v21 = vpop.eup %2595  ;;  %2597 = vrcp.f32 %v3659_v9  ;;  %v624_v38 = vpop.f32.mrf.mxu2 }
 0x1a8   : > { %v697_v11 = vmax.f32 %v3617_v31, 0.0  ;;  %v713_v25 = vmax.f32 %v623_v59, 0.0  ;;  %v663_v24 = vadd.f32 %v3542_v27, %v662_v57  ;;  %v1424_v29 = vsub.f32 1.0, %v1423_v18 }
 0x1a9   : > { %v1895_v26 = vsel %vm1894_vm5, %v2588_v45, %v1891_v8  ;;  %v1186_v22 = vadd.f32 %v2592_v48, %v1185_v15  ;;  %v1663_v32 = vmul.f32 %v2596_v21, %v3624_v42  ;;  %vm1428_vm7 = vweird.f32 %v2594_v10 }
 0x1aa   : > { %v1900_v54 = vsel %vm3642_vm13, %v1899_v61, %v1895_v26  ;;  %vm3681_vm8 = vcmp.eq.f32.partialorder %v1671_v13, 8.507059e+37  ;;  %v1674_v40 = vor.u32 1.1754944e-38, %v1673_v14  ;;  %v1425_v23 = vmul.f32 %v2594_v10, %v1424_v29  ;;  %vm1429_vm10 = vmor %vm1427_vm1, %vm1428_vm7 }
 0x1ab   : > { %2007 = vst [vmem:[%s2795_s14 + $0x1e0] sm:$0xff] %v1900_v54  ;;  %v1190_v17 = vsel %vm1189_vm6, %v2592_v48, %v1186_v22  ;;  %v1664_v20 = vsub.f32 1.0, %v1663_v32  ;;  %2599 = vpow2.f32 %v2250_v19  ;;  %vm1668_vm9 = vweird.f32 %v2596_v21 }
 0x1ac   : > { %v1195_v39 = vsel %vm3653_vm15, %v1194_v7, %v1190_v17  ;;  %v2266_v28 = vmul.f32 -1.442695, %v697_v11  ;;  %v2282_v43 = vmul.f32 -1.442695, %v713_v25  ;;  %v1426_v30 = vadd.f32 %v2594_v10, %v1425_v23  ;;  %vm1669_vm11 = vmor %vm1667_vm4, %vm1668_vm9 }
 0x1ad   : > { %1960 = vst [vmem:[%s2795_s14 + $0x68] sm:$0xff] %v1195_v39  ;;  %v1665_v31 = vmul.f32 %v2596_v21, %v1664_v20  ;;  %v729_v36 = vmax.f32 %v663_v24, 0.0  ;;  %v545_v41 = vadd.f32 %v3542_v27, %v544_v33  ;;  %v2598_v50 = vpop.eup %2597  ;;  %v1913_v51 = vand.u32 2147483648, %v3659_v9 }
 0x1ae   : > { %2601 = vpow2.f32 %v2266_v28  ;;  %v585_v46 = vadd.f32 %v3542_v27, %v584_v37  ;;  %v625_v53 = vadd.f32 %v3542_v27, %v624_v38  ;;  %v1430_v45 = vsel %vm1429_vm10, %v2594_v10, %v1426_v30 }
 0x1af   : > { %v1666_v35 = vadd.f32 %v2596_v21, %v1665_v31  ;;  %v1903_v55 = vmul.f32 %v2598_v50, %v3659_v9  ;;  %v665_v56 = vadd.f32 %v3542_v27, %v664_v34  ;;  %v1435_v52 = vsel %vm3664_vm3, %v1434_v12, %v1430_v45 }
 0x1b0   : > { %2603 = vpow2.f32 %v2282_v43  ;;  %v2298_v44 = vmul.f32 -1.442695, %v729_v36  ;;  %v682_v47 = vmax.f32 %v545_v41, 0.0  ;;  %1976 = vst [vmem:[%s2795_s14 + $0xe8] sm:$0xff] %v1435_v52  ;;  %v698_v60 = vmax.f32 %v585_v46, 0.0 }
 0x1b1   : > { %v2600_v58 = vpop.eup %2599  ;;  %v1670_v59 = vsel %vm1669_vm11, %v2596_v21, %v1666_v35  ;;  %v1904_v48 = vsub.f32 1.0, %v1903_v55  ;;  %v714_v0 = vmax.f32 %v625_v53, 0.0  ;;  %vm1908_vm12 = vweird.f32 %v2598_v50 }
 0x1b2   : > { %v1675_v27 = vsel %vm3681_vm8, %v1674_v40, %v1670_v59  ;;  %v3706_v57 = vadd.f32 1.0, %v2600_v58  ;;  %2605 = vpow2.f32 %v2298_v44  ;;  %v2251_v1 = vmul.f32 -1.442695, %v682_v47 }
 0x1b3   : > { %1992 = vst [vmem:[%s2795_s14 + $0x168] sm:$0xff] %v1675_v27  ;;  %v1905_v49 = vmul.f32 %v2598_v50, %v1904_v48  ;;  %v1911_v42 = vand.u32 2147483647, %v3659_v9  ;;  %v2267_v4 = vmul.f32 -1.442695, %v698_v60  ;;  %vm1907_vm13 = vweird.f32 %v3659_v9 }
 0x1b4   : > { %v2602_v63 = vpop.eup %2601  ;;  %2607 = vrcp.f32 %v3706_v57  ;;  %v730_v3 = vmax.f32 %v665_v56, 0.0  ;;  %v2283_v7 = vmul.f32 -1.442695, %v714_v0  ;;  %vm1909_vm14 = vmor %vm1907_vm13, %vm1908_vm12  ;;  %v1914_v6 = vor.u32 1.1754944e-38, %v1913_v51 }
 0x1b5   : > { %v1906_v61 = vadd.f32 %v2598_v50, %v1905_v49  ;;  %v3712_v5 = vadd.f32 1.0, %v2602_v63  ;;  %2609 = vpow2.f32 %v2251_v1  ;;  %vm1912_vm15 = vcmp.eq.f32.partialorder %v1911_v42, 8.507059e+37 }
 0x1b6   : > { %v2604_v62 = vpop.eup %2603  ;;  %2611 = vpow2.f32 %v2267_v4  ;;  %v1206_v12 = vand.u32 2147483647, %v3706_v57  ;;  %v1208_v14 = vand.u32 2147483648, %v3706_v57  ;;  %v2299_v15 = vmul.f32 -1.442695, %v730_v3 }
 0x1b7   : > { %v1910_v10 = vsel %vm1909_vm14, %v2598_v50, %v1906_v61  ;;  %2613 = vrcp.f32 %v3712_v5  ;;  %v3717_v8 = vadd.f32 1.0, %v2604_v62  ;;  %v1446_v19 = vand.u32 2147483647, %v3712_v5 }
 0x1b8   : > { %v2606_v9 = vpop.eup %2605  ;;  %v1915_v13 = vsel %vm1912_vm15, %v1914_v6, %v1910_v10  ;;  %2615 = vpow2.f32 %v2283_v7  ;;  %vm1202_vm0 = vweird.f32 %v3706_v57  ;;  %vm3727_vm1 = vcmp.eq.f32.partialorder %v1206_v12, 8.507059e+37 }
 0x1b9   : > { %2008 = vst [vmem:[%s2795_s14 + $0x1e8] sm:$0xff] %v1915_v13  ;;  %v3720_v18 = vadd.f32 1.0, %v2606_v9  ;;  %2617 = vrcp.f32 %v3717_v8  ;;  %v1209_v26 = vor.u32 1.1754944e-38, %v1208_v14  ;;  %v1448_v22 = vand.u32 2147483648, %v3712_v5 }
 0x1ba   : > { %v2608_v2 = vpop.eup %2607  ;;  %v1686_v54 = vand.u32 2147483647, %v3717_v8  ;;  %vm1442_vm3 = vweird.f32 %v3712_v5  ;;  %vm3739_vm4 = vcmp.eq.f32.partialorder %v1446_v19, 8.507059e+37  ;;  %v1688_v37 = vand.u32 2147483648, %v3717_v8 }
 0x1bb   : > { %v2610_v21 = vpop.eup %2609  ;;  %v1198_v11 = vmul.f32 %v2608_v2, %v3706_v57  ;;  %2619 = vrcp.f32 %v3720_v18  ;;  %vm1203_vm2 = vweird.f32 %v2608_v2  ;;  %v1926_v38 = vand.u32 2147483647, %v3720_v18 }
 0x1bc   : > { %v2612_v25 = vpop.eup %2611  ;;  %2621 = vpow2.f32 %v2299_v15  ;;  %v3733_v16 = vadd.f32 1.0, %v2610_v21  ;;  %v1449_v43 = vor.u32 1.1754944e-38, %v1448_v22  ;;  %vm1682_vm5 = vweird.f32 %v3717_v8  ;;  %vm1204_vm7 = vmor %vm1202_vm0, %vm1203_vm2 }
 0x1bd   : > { %v2614_v29 = vpop.eup %2613  ;;  %v1199_v32 = vsub.f32 1.0, %v1198_v11  ;;  %v3735_v40 = vadd.f32 1.0, %v2612_v25  ;;  %vm3749_vm6 = vcmp.eq.f32.partialorder %v1686_v54, 8.507059e+37  ;;  %v1928_v41 = vand.u32 2147483648, %v3720_v18 }
 0x1be   : > { %v1438_v33 = vmul.f32 %v2614_v29, %v3712_v5  ;;  %v2616_v23 = vpop.eup %2615  ;;  %2623 = vrcp.f32 %v3733_v16  ;;  %vm1443_vm8 = vweird.f32 %v2614_v29  ;;  %vm1922_vm9 = vweird.f32 %v3720_v18 }
 0x1bf   : > { %v1200_v20 = vmul.f32 %v2608_v2, %v1199_v32  ;;  %v2618_v39 = vpop.eup %2617  ;;  %2625 = vrcp.f32 %v3735_v40  ;;  %v1689_v35 = vor.u32 1.1754944e-38, %v1688_v37  ;;  %vm3759_vm10 = vcmp.eq.f32.partialorder %v1926_v38, 8.507059e+37  ;;  %vm1444_vm11 = vmor %vm1442_vm3, %vm1443_vm8 }
 0x1c0   : > { %v1439_v28 = vsub.f32 1.0, %v1438_v33  ;;  %v1678_v31 = vmul.f32 %v2618_v39, %v3717_v8  ;;  %v3765_v47 = vadd.f32 1.0, %v2616_v23  ;;  %vm1683_vm12 = vweird.f32 %v2618_v39 }
 0x1c1   : > { %v2620_v34 = vpop.eup %2619  ;;  %v1201_v30 = vadd.f32 %v2608_v2, %v1200_v20  ;;  %v1929_v48 = vor.u32 1.1754944e-38, %v1928_v41  ;;  %v1221_v4 = vand.u32 2147483647, %v3733_v16  ;;  %vm1684_vm14 = vmor %vm1682_vm5, %vm1683_vm12  ;;  %v1223_v5 = vand.u32 2147483648, %v3733_v16 }
 0x1c2   : > { %v2622_v50 = vpop.eup %2621  ;;  %v1440_v51 = vmul.f32 %v2614_v29, %v1439_v28  ;;  %v1918_v46 = vmul.f32 %v2620_v34, %v3720_v18  ;;  %v1679_v45 = vsub.f32 1.0, %v1678_v31  ;;  %vm1923_vm13 = vweird.f32 %v2620_v34 }
 0x1c3   : > { %v1205_v53 = vsel %vm1204_vm7, %v2608_v2, %v1201_v30  ;;  %v3771_v1 = vadd.f32 1.0, %v2622_v50  ;;  %2627 = vrcp.f32 %v3765_v47  ;;  %vm1924_vm15 = vmor %vm1922_vm9, %vm1923_vm13  ;;  %v1463_v6 = vand.u32 2147483648, %v3735_v40 }
 0x1c4   : > { %v1210_v56 = vsel %vm3727_vm1, %v1209_v26, %v1205_v53  ;;  %v1441_v52 = vadd.f32 %v2614_v29, %v1440_v51  ;;  %v1919_v44 = vsub.f32 1.0, %v1918_v46  ;;  %v2624_v58 = vpop.eup %2623  ;;  %v1680_v59 = vmul.f32 %v2618_v39, %v1679_v45 }
 0x1c5   : > { %1961 = vst [vmem:[%s2795_s14 + $0x70] sm:$0xff] %v1210_v56  ;;  %v2626_v60 = vpop.eup %2625  ;;  %v1213_v57 = vmul.f32 %v2624_v58, %v3733_v16  ;;  %vm1218_vm0 = vweird.f32 %v2624_v58  ;;  %2629 = vrcp.f32 %v3771_v1  ;;  %v1461_v8 = vand.u32 2147483647, %v3735_v40 }
 0x1c6   : > { %v1445_v0 = vsel %vm1444_vm11, %v2614_v29, %v1441_v52  ;;  %v1920_v27 = vmul.f32 %v2620_v34, %v1919_v44  ;;  %v1681_v42 = vadd.f32 %v2618_v39, %v1680_v59  ;;  %v1453_v63 = vmul.f32 %v2626_v60, %v3735_v40 }
 0x1c7   : > { %v1450_v49 = vsel %vm3739_vm4, %v1449_v43, %v1445_v0  ;;  %v1214_v61 = vsub.f32 1.0, %v1213_v57  ;;  %vm1458_vm1 = vweird.f32 %v2626_v60  ;;  %vm1217_vm2 = vweird.f32 %v3733_v16 }
 0x1c8   : > { %1977 = vst [vmem:[%s2795_s14 + $0xf0] sm:$0xff] %v1450_v49  ;;  %v1921_v3 = vadd.f32 %v2620_v34, %v1920_v27  ;;  %v1685_v7 = vsel %vm1684_vm14, %v2618_v39, %v1681_v42  ;;  %v1454_v62 = vsub.f32 1.0, %v1453_v63  ;;  %vm1219_vm3 = vmor %vm1217_vm2, %vm1218_vm0  ;;  %v1224_v18 = vor.u32 1.1754944e-38, %v1223_v5 }
 0x1c9   : > { %v1690_v10 = vsel %vm3749_vm6, %v1689_v35, %v1685_v7  ;;  %v1215_v9 = vmul.f32 %v2624_v58, %v1214_v61  ;;  %vm1457_vm4 = vweird.f32 %v3735_v40  ;;  %v2628_v19 = vpop.eup %2627  ;;  %vm1222_vm5 = vcmp.eq.f32.partialorder %v1221_v4, 8.507059e+37 }
 0x1ca   : > { %v1925_v12 = vsel %vm1924_vm15, %v2620_v34, %v1921_v3  ;;  %1993 = vst [vmem:[%s2795_s14 + $0x170] sm:$0xff] %v1690_v10  ;;  %v1455_v14 = vmul.f32 %v2626_v60, %v1454_v62  ;;  %vm1459_vm6 = vmor %vm1457_vm4, %vm1458_vm1  ;;  %v1464_v11 = vor.u32 1.1754944e-38, %v1463_v6  ;;  %vm1462_vm7 = vcmp.eq.f32.partialorder %v1461_v8, 8.507059e+37 }
 0x1cb   : > { %v1930_v13 = vsel %vm3759_vm10, %v1929_v48, %v1925_v12  ;;  %v1216_v15 = vadd.f32 %v2624_v58, %v1215_v9  ;;  %v1693_v26 = vmul.f32 %v2628_v19, %v3765_v47  ;;  %v2630_v22 = vpop.eup %2629  ;;  %v1703_v16 = vand.u32 2147483648, %v3765_v47 }
 0x1cc   : > { %2009 = vst [vmem:[%s2795_s14 + $0x1f0] sm:$0xff] %v1930_v13  ;;  %v1456_v2 = vadd.f32 %v2626_v60, %v1455_v14  ;;  %v1933_v54 = vmul.f32 %v2630_v22, %v3771_v1  ;;  %vm1698_vm8 = vweird.f32 %v2628_v19  ;;  %v1701_v33 = vand.u32 2147483647, %v3765_v47 }
 0x1cd   : > { %v1220_v21 = vsel %vm1219_vm3, %v2624_v58, %v1216_v15  ;;  %v1694_v32 = vsub.f32 1.0, %v1693_v26  ;;  %vm1697_vm9 = vweird.f32 %v3765_v47  ;;  %v1943_v23 = vand.u32 2147483648, %v3771_v1 }
 0x1ce   : > { %v1225_v25 = vsel %vm1222_vm5, %v1224_v18, %v1220_v21  ;;  %v1460_v24 = vsel %vm1459_vm6, %v2626_v60, %v1456_v2  ;;  %v1934_v17 = vsub.f32 1.0, %v1933_v54  ;;  %vm1938_vm10 = vweird.f32 %v2630_v22  ;;  %vm1699_vm11 = vmor %vm1697_vm9, %vm1698_vm8 }
 0x1cf   : > { %1962 = vst [vmem:[%s2795_s14 + $0x78] sm:$0xff] %v1225_v25  ;;  %v1465_v29 = vsel %vm1462_vm7, %v1464_v11, %v1460_v24  ;;  %v1695_v40 = vmul.f32 %v2628_v19, %v1694_v32  ;;  %v1941_v38 = vand.u32 2147483647, %v3771_v1  ;;  %v1704_v39 = vor.u32 1.1754944e-38, %v1703_v16 }
 0x1d0   : > { %1978 = vst [vmem:[%s2795_s14 + $0xf8] sm:$0xff] %v1465_v29  ;;  %v1935_v37 = vmul.f32 %v2630_v22, %v1934_v17  ;;  %vm1702_vm12 = vcmp.eq.f32.partialorder %v1701_v33, 8.507059e+37  ;;  %vm1937_vm13 = vweird.f32 %v3771_v1  ;;  %v1944_v30 = vor.u32 1.1754944e-38, %v1943_v23 }
 0x1d1   : > { %v1696_v20 = vadd.f32 %v2628_v19, %v1695_v40  ;;  %vm1939_vm14 = vmor %vm1937_vm13, %vm1938_vm10  ;;  %vm1942_vm15 = vcmp.eq.f32.partialorder %v1941_v38, 8.507059e+37 }
 0x1d2   : > { %v1936_v43 = vadd.f32 %v2630_v22, %v1935_v37 }
 0x1d3   : > { %v1700_v28 = vsel %vm1699_vm11, %v2628_v19, %v1696_v20 }
 0x1d4   : > { %v1705_v34 = vsel %vm1702_vm12, %v1704_v39, %v1700_v28  ;;  %v1940_v31 = vsel %vm1939_vm14, %v2630_v22, %v1936_v43 }
 0x1d5   : > { %1994 = vst [vmem:[%s2795_s14 + $0x178] sm:$0xff] %v1705_v34  ;;  %v1945_v36 = vsel %vm1942_vm15, %v1944_v30, %v1940_v31 }
 0x1d6   : > { %2010 = vst [vmem:[%s2795_s14 + $0x1f8] sm:$0xff] %v1945_v36 }
 0x1d7 PF: > { %s13_s12 = sadd.s32 1, %s2639_s12  }
 0x1d8   : > { %p10_p4 = scmp.ge.s32.totalorder %s13_s12, 6  }
 0x1da   :  { %12 = sbr.rel (!%p10_p4) target bundleno = 1 (0x1), region = 62 }

</bundles_post_ra>
